<compile_context>
chip_gen: v5e
topology: v5e:2x2
jax: 0.10.0
libtpu: 0.0.40
codegen_flags: <defaults>
</compile_context>

<pallas_src>
import functools

import jax
import jax.numpy as jnp
from jax.experimental import pallas as pl
from jax.experimental.pallas import tpu as pltpu

BN_EPS = 1e-5            # PyTorch BatchNorm2d default eps
DILATIONS = (1, 3, 5)    # compile-time constants (padding == dilation in the module)

# Set to jnp.bfloat16 on v6e/v7x for ~2-3x MXU throughput (accumulation stays f32 via
# preferred_element_type and BatchNorm renormalizes).  Left at f32 so the strict 1e-4
# check against the f32 XLA reference passes on every generation.
MXU_DTYPE = jnp.float32

TARGET_TILE_PIXELS = 8192   # amortize the ~0.35 us/grid-step pipeline overhead


# --------------------------------------------------------------------------------------
# In-kernel pieces
# --------------------------------------------------------------------------------------
def _conv_tile(x_ref, w_ref, *, TB, H, W, Cin, pmax, dilations):
    """Pre-BN conv output of all three branches for one batch tile.

    x_ref : (TB, H+2*pmax, W+2*pmax, Cin)   padded NHWC input block
    w_ref : (27*Cin, C_real)                block-diagonal fused weights
    returns f32 (TB*H*W, C_real)
    """
    TN = TB * H * W
    slabs = []
    for d in dilations:                       # static python loops -> static slice offsets
        for kh in range(3):
            for kw in range(3):
                oh = pmax - d + kh * d
                ow = pmax - d + kw * d
                s = x_ref[:, oh:oh + H, ow:ow + W, :]        # (TB, H, W, Cin)
                slabs.append(s.reshape(TN, Cin))             # free regroup when W % 8 == 0
    # im2col once: (TN, 27*Cin); ONE MXU dot against the block-diagonal weight slab.
    # TODO(synk): if profiling shows the 27 unaligned slices + lane-concat saturating the
    # XLU (likely for tiny Cin on v6e), assemble xcol in a VMEM scratch with aligned
    # copies or switch to a pure-VPU MAC formulation.
    xcol = jnp.concatenate(slabs, axis=-1)
    return jnp.dot(xcol.astype(MXU_DTYPE), w_ref[...].astype(MXU_DTYPE),
                   preferred_element_type=jnp.float32)


def _stats_kernel(x_ref, w_ref, stat_ref, *, TB, H, W, Cin, pmax, dilations):
    """Phase 1: per-tile Welford partials (row 0 = mean, row 1 = centered sum of squares)."""
    y = _conv_tile(x_ref, w_ref, TB=TB, H=H, W=W, Cin=Cin, pmax=pmax, dilations=dilations)
    c = y.shape[-1]
    mu = jnp.mean(y, axis=0, keepdims=True)                  # (1, C)
    m2 = jnp.sum((y - mu) ** 2, axis=0, keepdims=True)       # (1, C)
    stat_ref[0] = jnp.concatenate(                           # one packed (8, C) store
        [mu, m2, jnp.zeros((6, c), jnp.float32)], axis=0)


def _apply_kernel(x_ref, w_ref, bn_ref, out_ref, *, TB, H, W, Cin, pmax, dilations):
    """Phase 2: recompute conv tile, folded BN affine (one FMA) + exact GELU, NHWC store."""
    # Recompute is cheaper than a wide-intermediate HBM round trip on v5e/v6e.
    # TODO(synk): on v7x (3.2 TB/s HBM) optionally reload a bf16 y from phase 1 instead.
    y = _conv_tile(x_ref, w_ref, TB=TB, H=H, W=W, Cin=Cin, pmax=pmax, dilations=dilations)
    bn = bn_ref[...]                                          # (8, C): row 0 scale, row 1 shift
    y = y * bn[0:1, :] + bn[1:2, :]
    y = jax.nn.gelu(y, approximate=False)                     # exact erf, matches torch default
    # TODO(synk): channels-on-sublane (C, TN) tile output via an in-kernel transpose would
    # cut the epilogue vreg count ~5x and drop the wrapper NHWC->NCHW transpose.
    out_ref[...] = y.reshape(TB, H, W, y.shape[-1]).astype(out_ref.dtype)


# --------------------------------------------------------------------------------------
# Wrapper-side helpers
# --------------------------------------------------------------------------------------
def _vmem_budget_bytes():
    """Per-generation VMEM budget: ~96 MiB on v5e/v6e (128 MiB), ~48 MiB on v7x (64 MiB)."""
    try:
        cap = int(pltpu.get_tpu_info().vmem_capacity_bytes)
        return max(32 * 1024 * 1024, min(int(0.75 * cap), 96 * 1024 * 1024))
    except Exception:
        return 48 * 1024 * 1024          # conservative default fits every generation


def _pick_batch_tile(B, H, W, Cin, C_real, pmax, vmem_budget):
    """Images per grid tile: largest divisor of B within the pixel/VMEM budget, keeping
    >=2 grid tiles when B >= 2 so both v7x TensorCores stay busy (no cost on v5e/v6e)."""
    hw = H * W

    def est_bytes(tb):   # double-buffered in/out blocks + im2col + f32 accumulator
        x_blk = tb * (H + 2 * pmax) * (W + 2 * pmax) * Cin * 4
        out_blk = tb * hw * C_real * 4
        xcol = tb * hw * 9 * len(DILATIONS) * Cin * 4
        acc = tb * hw * C_real * 4
        return 2 * (x_blk + out_blk) + 2 * (xcol + acc)

    divs = [d for d in range(1, B + 1) if B % d == 0]
    ok = [d for d in divs
          if d * hw <= TARGET_TILE_PIXELS and est_bytes(d) <= vmem_budget // 2]
    tb = max(ok) if ok else 1
    if B >= 2 and B // tb < 2:
        smaller = [d for d in divs if d <= tb and B // d >= 2]
        if smaller:
            tb = max(smaller)
    # TODO(synk): if a single image (tb=1) still exceeds the budget, add row tiling with
    # halo windows (pl.Element-indexed rows or manual DMA) instead of whole-image tiles.
    return tb


def dcblock_forward(x_nchw, w_oihw, b_conv, bn_gamma, bn_beta, dilations=DILATIONS):
    """x_nchw: f32[B, Cin, H, W] -> f32[B, 3*Cout, H, W] (== torch.cat(dim=1))."""
    B, Cin, H, W = x_nchw.shape
    n_br, Cout = w_oihw.shape[0], w_oihw.shape[1]
    assert w_oihw.shape[2:] == (Cin, 3, 3) and n_br == len(dilations)
    del b_conv  # conv bias cancels exactly under training-mode BatchNorm (see header)

    pmax = int(max(dilations))
    C_real = n_br * Cout
    K = 9 * n_br * Cin                        # fused im2col contraction length
    kb = 9 * Cin                              # per-branch block of K

    vmem_budget = _vmem_budget_bytes()
    TB = _pick_batch_tile(B, H, W, Cin, C_real, pmax, vmem_budget)
    n_tiles = B // TB
    TN = TB * H * W                           # output pixels per tile (all tiles equal)
    N = B * H * W
    Hp, Wp = H + 2 * pmax, W + 2 * pmax

    # ---------------- wrapper-side layout prep (no halo duplication) ----------------
    x_nhwc = jnp.transpose(x_nchw, (0, 2, 3, 1)).astype(jnp.float32)
    x_pad = jnp.pad(x_nhwc, ((0, 0), (pmax, pmax), (pmax, pmax), (0, 0)))

    # Block-diagonal fused weights: rows [br*9*Cin, (br+1)*9*Cin) x cols
    # [br*Cout, (br+1)*Cout) hold branch br's (kh, kw, cin)-ordered taps; zeros elsewhere.
    w_fused = jnp.zeros((K, C_real), jnp.float32)
    for br in range(n_br):
        w_flat = jnp.transpose(w_oihw[br], (2, 3, 1, 0)).reshape(kb, Cout)
        w_fused = w_fused.at[br * kb:(br + 1) * kb, br * Cout:(br + 1) * Cout].set(
            w_flat.astype(jnp.float32))

    common = dict(TB=TB, H=H, W=W, Cin=Cin, pmax=pmax,
                  dilations=tuple(int(d) for d in dilations))
    cparams = pltpu.CompilerParams(
        dimension_semantics=("parallel",),            # independent tiles; megacore-safe
        vmem_limit_bytes=vmem_budget)

    x_spec = pl.BlockSpec((TB, Hp, Wp, Cin), lambda t: (t, 0, 0, 0))
    w_spec = pl.BlockSpec((K, C_real), lambda t: (0, 0))

    # ---------------- phase 1: per-tile BatchNorm partial statistics ----------------
    stats = pl.pallas_call(
        functools.partial(_stats_kernel, **common),
        out_shape=jax.ShapeDtypeStruct((n_tiles, 8, C_real), jnp.float32),
        grid_spec=pltpu.PrefetchScalarGridSpec(
            num_scalar_prefetch=0,
            grid=(n_tiles,),
            in_specs=[x_spec, w_spec],
            out_specs=pl.BlockSpec((1, 8, C_real), lambda t: (t, 0, 0))),
        compiler_params=cparams,
    )(x_pad, w_fused)

    # ------ exact cross-tile merge (Chan/Welford, equal tiles) + BN affine folding ----
    mu_t = stats[:, 0, :]                               # (n_tiles, C_real)
    m2_t = stats[:, 1, :]
    mean0 = jnp.mean(mu_t, axis=0)                      # equal-sized tiles
    var0 = (jnp.sum(m2_t, axis=0)
            + TN * jnp.sum((mu_t - mean0) ** 2, axis=0)) / N    # biased, matches torch
    gamma = bn_gamma.reshape(-1).astype(jnp.float32)
    beta = bn_beta.reshape(-1).astype(jnp.float32)
    scale = gamma / jnp.sqrt(var0 + BN_EPS)
    shift = beta - mean0 * scale                        # conv bias cancels here
    bn = jnp.zeros((8, C_real), jnp.float32).at[0].set(scale).at[1].set(shift)

    # -------- phase 2: conv recompute + folded BN + exact GELU -> NHWC output --------
    out_nhwc = pl.pallas_call(
        functools.partial(_apply_kernel, **common),
        out_shape=jax.ShapeDtypeStruct((B, H, W, C_real), jnp.float32),
        grid_spec=pltpu.PrefetchScalarGridSpec(
            num_scalar_prefetch=0,
            grid=(n_tiles,),
            in_specs=[x_spec, w_spec,
                      pl.BlockSpec((8, C_real), lambda t: (0, 0))],
            out_specs=pl.BlockSpec((TB, H, W, C_real), lambda t: (t, 0, 0, 0))),
        compiler_params=cparams,
    )(x_pad, w_fused, bn)

    # Channel order already matches torch.cat(dim=1); single NHWC -> NCHW transpose.
    return jnp.transpose(out_nhwc, (0, 3, 1, 2))


# --------------------------------------------------------------------------------------
# Pure-JAX reference (mirrors the PyTorch forward, NCHW throughout)
# --------------------------------------------------------------------------------------
def dcblock_reference(x_nchw, w_oihw_stack, b_stack, g_stack, bt_stack, dilations):
    outs = []
    for br, d in enumerate(dilations):
        y = jax.lax.conv_general_dilated(
            x_nchw, w_oihw_stack[br], window_strides=(1, 1),
            padding=((d, d), (d, d)), rhs_dilation=(d, d),
            dimension_numbers=('NCHW', 'OIHW', 'NCHW'))
        y = y + b_stack[br].reshape(1, -1, 1, 1)
        mu = y.mean(axis=(0, 2, 3), keepdims=True)
        var = ((y - mu) ** 2).mean(axis=(0, 2, 3), keepdims=True)
        y = (y - mu) / jnp.sqrt(var + BN_EPS)
        y = y * g_stack[br].reshape(1, -1, 1, 1) + bt_stack[br].reshape(1, -1, 1, 1)
        outs.append(jax.nn.gelu(y, approximate=False))
    return jnp.concatenate(outs, axis=1)


if __name__ == "__main__":
    B, Cin, Cout, H, W = 2, 4, 8, 16, 16
    n_br = len(DILATIONS)

    key = jax.random.PRNGKey(0)
    k_x, k_w, k_b, k_g, k_bt = jax.random.split(key, 5)

    x = jax.random.normal(k_x, (B, Cin, H, W), dtype=jnp.float32)

    # Deterministic synthetic parameters (shapes follow nn.Conv2d / nn.BatchNorm2d).
    w_oihw = 0.1 * jax.random.normal(k_w, (n_br, Cout, Cin, 3, 3), dtype=jnp.float32)
    b_conv = 0.1 * jax.random.normal(k_b, (n_br, Cout), dtype=jnp.float32)
    bn_gamma = 1.0 + 0.05 * jax.random.normal(k_g, (n_br, Cout), dtype=jnp.float32)
    bn_beta = 0.05 * jax.random.normal(k_bt, (n_br, Cout), dtype=jnp.float32)

    out = dcblock_forward(x, w_oihw, b_conv, bn_gamma, bn_beta, DILATIONS)
    out = jax.block_until_ready(out)

    ref = dcblock_reference(x, w_oihw, b_conv, bn_gamma, bn_beta, DILATIONS)
    ref = jax.block_until_ready(ref)

    assert out.shape == (B, n_br * Cout, H, W), out.shape
    max_err = float(jnp.max(jnp.abs(out - ref)))
    assert jnp.allclose(out, ref, atol=1e-4, rtol=1e-4), f"max abs diff = {max_err}"

    print("KERNEL_OK")
</pallas_src>

<mosaic_0001>
module attributes {stable_mosaic.version = 11 : i64} {
  func.func @_stats_kernel(%arg0: i32, %arg1: memref<1x26x26x4xf32, #tpu.memory_space<vmem>>, %arg2: memref<108x24xf32, #tpu.memory_space<vmem>>, %arg3: memref<1x8x24xf32, #tpu.memory_space<vmem>>) attributes {dimension_semantics = [#tpu.dimension_semantics<parallel>], iteration_bounds = array<i64: 2>, scalar_prefetch = 0 : i64, scratch_operands = 0 : i64, tpu.core_type = #tpu.core_type<tc>, window_params = [{transform_indices = @transform_0, window_bounds = array<i64: 1, 26, 26, 4>}, {pipeline_mode = #tpu.pipeline_mode<synchronous>, transform_indices = @transform_1, window_bounds = array<i64: 108, 24>}, {transform_indices = @transform_2, window_bounds = array<i64: 1, 8, 24>}]} {
    %c0 = arith.constant 0 : index
    %c4 = arith.constant 4 : index
    %c4_0 = arith.constant 4 : index
    %c0_1 = arith.constant 0 : index
    %0 = vector.load %arg1[%c0, %c4, %c4_0, %c0_1] : memref<1x26x26x4xf32, #tpu.memory_space<vmem>>, vector<1x16x16x4xf32>
    %1 = vector.shape_cast %0 : vector<1x16x16x4xf32> to vector<256x4xf32>
    %c0_2 = arith.constant 0 : index
    %c4_3 = arith.constant 4 : index
    %c5 = arith.constant 5 : index
    %c0_4 = arith.constant 0 : index
    %2 = vector.load %arg1[%c0_2, %c4_3, %c5, %c0_4] : memref<1x26x26x4xf32, #tpu.memory_space<vmem>>, vector<1x16x16x4xf32>
    %3 = vector.shape_cast %2 : vector<1x16x16x4xf32> to vector<256x4xf32>
    %c0_5 = arith.constant 0 : index
    %c4_6 = arith.constant 4 : index
    %c6 = arith.constant 6 : index
    %c0_7 = arith.constant 0 : index
    %4 = vector.load %arg1[%c0_5, %c4_6, %c6, %c0_7] : memref<1x26x26x4xf32, #tpu.memory_space<vmem>>, vector<1x16x16x4xf32>
    %5 = vector.shape_cast %4 : vector<1x16x16x4xf32> to vector<256x4xf32>
    %c0_8 = arith.constant 0 : index
    %c5_9 = arith.constant 5 : index
    %c4_10 = arith.constant 4 : index
    %c0_11 = arith.constant 0 : index
    %6 = vector.load %arg1[%c0_8, %c5_9, %c4_10, %c0_11] : memref<1x26x26x4xf32, #tpu.memory_space<vmem>>, vector<1x16x16x4xf32>
    %7 = vector.shape_cast %6 : vector<1x16x16x4xf32> to vector<256x4xf32>
    %c0_12 = arith.constant 0 : index
    %c5_13 = arith.constant 5 : index
    %c5_14 = arith.constant 5 : index
    %c0_15 = arith.constant 0 : index
    %8 = vector.load %arg1[%c0_12, %c5_13, %c5_14, %c0_15] : memref<1x26x26x4xf32, #tpu.memory_space<vmem>>, vector<1x16x16x4xf32>
    %9 = vector.shape_cast %8 : vector<1x16x16x4xf32> to vector<256x4xf32>
    %c0_16 = arith.constant 0 : index
    %c5_17 = arith.constant 5 : index
    %c6_18 = arith.constant 6 : index
    %c0_19 = arith.constant 0 : index
    %10 = vector.load %arg1[%c0_16, %c5_17, %c6_18, %c0_19] : memref<1x26x26x4xf32, #tpu.memory_space<vmem>>, vector<1x16x16x4xf32>
    %11 = vector.shape_cast %10 : vector<1x16x16x4xf32> to vector<256x4xf32>
    %c0_20 = arith.constant 0 : index
    %c6_21 = arith.constant 6 : index
    %c4_22 = arith.constant 4 : index
    %c0_23 = arith.constant 0 : index
    %12 = vector.load %arg1[%c0_20, %c6_21, %c4_22, %c0_23] : memref<1x26x26x4xf32, #tpu.memory_space<vmem>>, vector<1x16x16x4xf32>
    %13 = vector.shape_cast %12 : vector<1x16x16x4xf32> to vector<256x4xf32>
    %c0_24 = arith.constant 0 : index
    %c6_25 = arith.constant 6 : index
    %c5_26 = arith.constant 5 : index
    %c0_27 = arith.constant 0 : index
    %14 = vector.load %arg1[%c0_24, %c6_25, %c5_26, %c0_27] : memref<1x26x26x4xf32, #tpu.memory_space<vmem>>, vector<1x16x16x4xf32>
    %15 = vector.shape_cast %14 : vector<1x16x16x4xf32> to vector<256x4xf32>
    %c0_28 = arith.constant 0 : index
    %c6_29 = arith.constant 6 : index
    %c6_30 = arith.constant 6 : index
    %c0_31 = arith.constant 0 : index
    %16 = vector.load %arg1[%c0_28, %c6_29, %c6_30, %c0_31] : memref<1x26x26x4xf32, #tpu.memory_space<vmem>>, vector<1x16x16x4xf32>
    %17 = vector.shape_cast %16 : vector<1x16x16x4xf32> to vector<256x4xf32>
    %c0_32 = arith.constant 0 : index
    %c2 = arith.constant 2 : index
    %c2_33 = arith.constant 2 : index
    %c0_34 = arith.constant 0 : index
    %18 = vector.load %arg1[%c0_32, %c2, %c2_33, %c0_34] : memref<1x26x26x4xf32, #tpu.memory_space<vmem>>, vector<1x16x16x4xf32>
    %19 = vector.shape_cast %18 : vector<1x16x16x4xf32> to vector<256x4xf32>
    %c0_35 = arith.constant 0 : index
    %c2_36 = arith.constant 2 : index
    %c5_37 = arith.constant 5 : index
    %c0_38 = arith.constant 0 : index
    %20 = vector.load %arg1[%c0_35, %c2_36, %c5_37, %c0_38] : memref<1x26x26x4xf32, #tpu.memory_space<vmem>>, vector<1x16x16x4xf32>
    %21 = vector.shape_cast %20 : vector<1x16x16x4xf32> to vector<256x4xf32>
    %c0_39 = arith.constant 0 : index
    %c2_40 = arith.constant 2 : index
    %c8 = arith.constant 8 : index
    %c0_41 = arith.constant 0 : index
    %22 = vector.load %arg1[%c0_39, %c2_40, %c8, %c0_41] : memref<1x26x26x4xf32, #tpu.memory_space<vmem>>, vector<1x16x16x4xf32>
    %23 = vector.shape_cast %22 : vector<1x16x16x4xf32> to vector<256x4xf32>
    %c0_42 = arith.constant 0 : index
    %c5_43 = arith.constant 5 : index
    %c2_44 = arith.constant 2 : index
    %c0_45 = arith.constant 0 : index
    %24 = vector.load %arg1[%c0_42, %c5_43, %c2_44, %c0_45] : memref<1x26x26x4xf32, #tpu.memory_space<vmem>>, vector<1x16x16x4xf32>
    %25 = vector.shape_cast %24 : vector<1x16x16x4xf32> to vector<256x4xf32>
    %c0_46 = arith.constant 0 : index
    %c5_47 = arith.constant 5 : index
    %c5_48 = arith.constant 5 : index
    %c0_49 = arith.constant 0 : index
    %26 = vector.load %arg1[%c0_46, %c5_47, %c5_48, %c0_49] : memref<1x26x26x4xf32, #tpu.memory_space<vmem>>, vector<1x16x16x4xf32>
    %27 = vector.shape_cast %26 : vector<1x16x16x4xf32> to vector<256x4xf32>
    %c0_50 = arith.constant 0 : index
    %c5_51 = arith.constant 5 : index
    %c8_52 = arith.constant 8 : index
    %c0_53 = arith.constant 0 : index
    %28 = vector.load %arg1[%c0_50, %c5_51, %c8_52, %c0_53] : memref<1x26x26x4xf32, #tpu.memory_space<vmem>>, vector<1x16x16x4xf32>
    %29 = vector.shape_cast %28 : vector<1x16x16x4xf32> to vector<256x4xf32>
    %c0_54 = arith.constant 0 : index
    %c8_55 = arith.constant 8 : index
    %c2_56 = arith.constant 2 : index
    %c0_57 = arith.constant 0 : index
    %30 = vector.load %arg1[%c0_54, %c8_55, %c2_56, %c0_57] : memref<1x26x26x4xf32, #tpu.memory_space<vmem>>, vector<1x16x16x4xf32>
    %31 = vector.shape_cast %30 : vector<1x16x16x4xf32> to vector<256x4xf32>
    %c0_58 = arith.constant 0 : index
    %c8_59 = arith.constant 8 : index
    %c5_60 = arith.constant 5 : index
    %c0_61 = arith.constant 0 : index
    %32 = vector.load %arg1[%c0_58, %c8_59, %c5_60, %c0_61] : memref<1x26x26x4xf32, #tpu.memory_space<vmem>>, vector<1x16x16x4xf32>
    %33 = vector.shape_cast %32 : vector<1x16x16x4xf32> to vector<256x4xf32>
    %c0_62 = arith.constant 0 : index
    %c8_63 = arith.constant 8 : index
    %c8_64 = arith.constant 8 : index
    %c0_65 = arith.constant 0 : index
    %34 = vector.load %arg1[%c0_62, %c8_63, %c8_64, %c0_65] : memref<1x26x26x4xf32, #tpu.memory_space<vmem>>, vector<1x16x16x4xf32>
    %35 = vector.shape_cast %34 : vector<1x16x16x4xf32> to vector<256x4xf32>
    %c0_66 = arith.constant 0 : index
    %c0_67 = arith.constant 0 : index
    %c0_68 = arith.constant 0 : index
    %c0_69 = arith.constant 0 : index
    %36 = vector.load %arg1[%c0_66, %c0_67, %c0_68, %c0_69] : memref<1x26x26x4xf32, #tpu.memory_space<vmem>>, vector<1x16x16x4xf32>
    %37 = vector.shape_cast %36 : vector<1x16x16x4xf32> to vector<256x4xf32>
    %c0_70 = arith.constant 0 : index
    %c0_71 = arith.constant 0 : index
    %c5_72 = arith.constant 5 : index
    %c0_73 = arith.constant 0 : index
    %38 = vector.load %arg1[%c0_70, %c0_71, %c5_72, %c0_73] : memref<1x26x26x4xf32, #tpu.memory_space<vmem>>, vector<1x16x16x4xf32>
    %39 = vector.shape_cast %38 : vector<1x16x16x4xf32> to vector<256x4xf32>
    %c0_74 = arith.constant 0 : index
    %c0_75 = arith.constant 0 : index
    %c10 = arith.constant 10 : index
    %c0_76 = arith.constant 0 : index
    %40 = vector.load %arg1[%c0_74, %c0_75, %c10, %c0_76] : memref<1x26x26x4xf32, #tpu.memory_space<vmem>>, vector<1x16x16x4xf32>
    %41 = vector.shape_cast %40 : vector<1x16x16x4xf32> to vector<256x4xf32>
    %c0_77 = arith.constant 0 : index
    %c5_78 = arith.constant 5 : index
    %c0_79 = arith.constant 0 : index
    %c0_80 = arith.constant 0 : index
    %42 = vector.load %arg1[%c0_77, %c5_78, %c0_79, %c0_80] : memref<1x26x26x4xf32, #tpu.memory_space<vmem>>, vector<1x16x16x4xf32>
    %43 = vector.shape_cast %42 : vector<1x16x16x4xf32> to vector<256x4xf32>
    %c0_81 = arith.constant 0 : index
    %c5_82 = arith.constant 5 : index
    %c5_83 = arith.constant 5 : index
    %c0_84 = arith.constant 0 : index
    %44 = vector.load %arg1[%c0_81, %c5_82, %c5_83, %c0_84] : memref<1x26x26x4xf32, #tpu.memory_space<vmem>>, vector<1x16x16x4xf32>
    %45 = vector.shape_cast %44 : vector<1x16x16x4xf32> to vector<256x4xf32>
    %c0_85 = arith.constant 0 : index
    %c5_86 = arith.constant 5 : index
    %c10_87 = arith.constant 10 : index
    %c0_88 = arith.constant 0 : index
    %46 = vector.load %arg1[%c0_85, %c5_86, %c10_87, %c0_88] : memref<1x26x26x4xf32, #tpu.memory_space<vmem>>, vector<1x16x16x4xf32>
    %47 = vector.shape_cast %46 : vector<1x16x16x4xf32> to vector<256x4xf32>
    %c0_89 = arith.constant 0 : index
    %c10_90 = arith.constant 10 : index
    %c0_91 = arith.constant 0 : index
    %c0_92 = arith.constant 0 : index
    %48 = vector.load %arg1[%c0_89, %c10_90, %c0_91, %c0_92] : memref<1x26x26x4xf32, #tpu.memory_space<vmem>>, vector<1x16x16x4xf32>
    %49 = vector.shape_cast %48 : vector<1x16x16x4xf32> to vector<256x4xf32>
    %c0_93 = arith.constant 0 : index
    %c10_94 = arith.constant 10 : index
    %c5_95 = arith.constant 5 : index
    %c0_96 = arith.constant 0 : index
    %50 = vector.load %arg1[%c0_93, %c10_94, %c5_95, %c0_96] : memref<1x26x26x4xf32, #tpu.memory_space<vmem>>, vector<1x16x16x4xf32>
    %51 = vector.shape_cast %50 : vector<1x16x16x4xf32> to vector<256x4xf32>
    %c0_97 = arith.constant 0 : index
    %c10_98 = arith.constant 10 : index
    %c10_99 = arith.constant 10 : index
    %c0_100 = arith.constant 0 : index
    %52 = vector.load %arg1[%c0_97, %c10_98, %c10_99, %c0_100] : memref<1x26x26x4xf32, #tpu.memory_space<vmem>>, vector<1x16x16x4xf32>
    %53 = vector.shape_cast %52 : vector<1x16x16x4xf32> to vector<256x4xf32>
    %54 = tpu.concatenate %1, %3, %5, %7, %9, %11, %13, %15, %17, %19, %21, %23, %25, %27, %29, %31 in 1 : vector<256x4xf32>, vector<256x4xf32>, vector<256x4xf32>, vector<256x4xf32>, vector<256x4xf32>, vector<256x4xf32>, vector<256x4xf32>, vector<256x4xf32>, vector<256x4xf32>, vector<256x4xf32>, vector<256x4xf32>, vector<256x4xf32>, vector<256x4xf32>, vector<256x4xf32>, vector<256x4xf32>, vector<256x4xf32> -> vector<256x64xf32>
    %55 = tpu.concatenate %33, %35, %37, %39, %41, %43, %45, %47, %49, %51, %53 in 1 : vector<256x4xf32>, vector<256x4xf32>, vector<256x4xf32>, vector<256x4xf32>, vector<256x4xf32>, vector<256x4xf32>, vector<256x4xf32>, vector<256x4xf32>, vector<256x4xf32>, vector<256x4xf32>, vector<256x4xf32> -> vector<256x44xf32>
    %56 = tpu.concatenate %54, %55 in 1 : vector<256x64xf32>, vector<256x44xf32> -> vector<256x108xf32>
    %c0_101 = arith.constant 0 : index
    %c0_102 = arith.constant 0 : index
    %57 = vector.load %arg2[%c0_101, %c0_102] : memref<108x24xf32, #tpu.memory_space<vmem>>, vector<108x24xf32>
    %cst = arith.constant dense<0.000000e+00> : vector<256x24xf32>
    %58 = tpu.matmul %56, %57, %cst {dimension_numbers = #tpu.dot_dimension_numbers<[1], [0], [0], [1], [0, 0, 1, 1], [], []>} : vector<256x108xf32>, vector<108x24xf32>, vector<256x24xf32> -> vector<256x24xf32>
    %cst_103 = arith.constant dense<0.000000e+00> : vector<24xf32>
    %59 = vector.multi_reduction <add>, %58, %cst_103 [0] : vector<256x24xf32> to vector<24xf32>
    %60 = vector.shape_cast %59 : vector<24xf32> to vector<1x24xf32>
    %cst_104 = arith.constant 2.560000e+02 : f32
    %61 = vector.broadcast %cst_104 : f32 to vector<1x24xf32>
    %62 = arith.divf %60, %61 : vector<1x24xf32>
    %63 = vector.broadcast %62 : vector<1x24xf32> to vector<256x24xf32>
    %64 = arith.subf %58, %63 : vector<256x24xf32>
    %65 = arith.mulf %64, %64 : vector<256x24xf32>
    %cst_105 = arith.constant dense<0.000000e+00> : vector<24xf32>
    %66 = vector.multi_reduction <add>, %65, %cst_105 [0] : vector<256x24xf32> to vector<24xf32>
    %67 = vector.shape_cast %66 : vector<24xf32> to vector<1x24xf32>
    %cst_106 = arith.constant 0.000000e+00 : f32
    %68 = vector.broadcast %cst_106 : f32 to vector<6x24xf32>
    %69 = tpu.concatenate %62, %67, %68 in 0 : vector<1x24xf32>, vector<1x24xf32>, vector<6x24xf32> -> vector<8x24xf32>
    %c0_107 = arith.constant 0 : index
    %c0_108 = arith.constant 0 : index
    %c0_109 = arith.constant 0 : index
    %70 = vector.load %arg3[%c0_107, %c0_108, %c0_109] : memref<1x8x24xf32, #tpu.memory_space<vmem>>, vector<1x8x24xf32>
    %71 = vector.shape_cast %70 : vector<1x8x24xf32> to vector<8x24xf32>
    %72 = vector.shape_cast %69 : vector<8x24xf32> to vector<1x8x24xf32>
    tpu.vector_store %arg3[%c0_107, %c0_108, %c0_109], %72 {strides = array<i32>} : memref<1x8x24xf32, #tpu.memory_space<vmem>>, vector<1x8x24xf32>,
    return
  }
  func.func @transform_0(%arg0: i32) -> (i32, i32, i32, i32) {
    %c0_i32 = arith.constant 0 : i32
    %c0_i32_0 = arith.constant 0 : i32
    %c0_i32_1 = arith.constant 0 : i32
    %c0_i32_2 = arith.constant 0 : i32
    return %arg0, %c0_i32, %c0_i32_0, %c0_i32_1 : i32, i32, i32, i32
  }
  func.func @transform_1(%arg0: i32) -> (i32, i32) {
    %c0_i32 = arith.constant 0 : i32
    %c0_i32_0 = arith.constant 0 : i32
    %c0_i32_1 = arith.constant 0 : i32
    return %c0_i32, %c0_i32_0 : i32, i32
  }
  func.func @transform_2(%arg0: i32) -> (i32, i32, i32) {
    %c0_i32 = arith.constant 0 : i32
    %c0_i32_0 = arith.constant 0 : i32
    %c0_i32_1 = arith.constant 0 : i32
    return %arg0, %c0_i32, %c0_i32_0 : i32, i32, i32
  }
}

</mosaic_0001>

<bundles_post_ra>
// kernel: tpu_custom_call.1
= control target key start
LH: loop header
LB: loop body
LE: loop exit
PB: predicated region body
PF: predicated region fallthrough
CT: control target
= control target key end

     0   :  { %7 = vsyncpa [#allocation3], 0  ;;  %s12485_s0 = inlined_call_operand.vmem [shape: f32[2,26,26,4], index: 0, kind: input, shape index: {}]   ;;  %s12486_s1 = inlined_call_operand.vmem [shape: f32[108,24], index: 1, kind: input, shape index: {}]   ;;  %s12487_s2 = inlined_call_operand.hbm [shape: f32[2,8,24], index: 2, kind: output, shape index: {}]  }
   0x1   :  { %9 = vsyncpa [#allocation3 + $0x1], 0  ;;  %s6567_s9 = smov 0   ;;  %s6569_s10 = smov 0  }
   0x2   :  { %s6571_s11 = smov 0   ;;  %s6573_s12 = smov 0  }
   0x3 LB: > { %s6588_s13 = sadd.s32 4294967295, %s6533_s12   ;;  %s5514_s14 = sadd.s32 4294967294, %s6533_s12   ;;  %s6533_s12 = sphi %s6573_s12, %s14031_s12   ;;  %s6529_s11 = sphi %s6571_s11, %s14030_s11   ;;  %s6525_s10 = sphi %s6569_s10, %s14029_s10   ;;  %s6521_s9 = sphi %s6567_s9, %s14028_s9  }
   0x4   : > { %s6592_s15 = sadd.s32 1, %s6533_s12   ;;  %s69_s16 = sadd.s32 1, %s6529_s11 }
   0x5   : > { %s66_s17 = ssub.s32 %s6533_s12, %s6592_s15  ;;  %p79_p0 = scmp.ne.s32.totalorder %s6529_s11, %s6525_s10 }
   0x6   : > { %p67_p1 = scmp.eq.s32.totalorder %s66_s17, 0  ;;  %p80_p2 = scmp.eq.s32.totalorder %s6588_s13, 1 }
   0x7   : > { %p85_p3 = scmp.ne.s32.totalorder %s6525_s10, %s6521_s9  ;;  %p86_p4 = scmp.eq.s32.totalorder %s5514_s14, 1 }
   0x8   : > { %s6603_s18 = scalar_select %p67_p1, %s6529_s11, %s69_s16  }
   0x9   : > { %p6605_p5 = por %p80_p2, %p79_p0  ;;  %p6609_p6 = por %p86_p4, %p85_p3 }
   0xa   : > { %p5517_p7 = scmp.ge.s32.totalorder %s6533_s12, 1  ;;  %p115_p8 = scmp.lt.s32.totalorder %s6533_s12, 3 }
   0xc   : > { %p116_p9 = pnand %p5517_p7, %p115_p8 }
   0xe   : > { %119 = sbr.rel (%p116_p9) target bundleno = 2688 (0xa80), region = 28 }
  0x13   : > { %p137_p10 = scmp.lt.s32.totalorder %s6588_s13, 1  ;;  %s6535_s26 = smov 4   ;;  %vm2804_vm0 = vcmask 31744   ;;  %vm2837_vm1 = vcmask 64512   ;;  %vm2870_vm2 = vcmask 97280   ;;  %vm2903_vm3 = vcmask 130048  }
  0x14   : > { %s6536_s27 = smov 8   ;;  %s6537_s28 = smov 12   ;;  %vm12520_vm4 = vcmask 162816   ;;  %vm2969_vm5 = vcmask 195584   ;;  %vm12516_vm6 = vcmask 228352   ;;  %vm3035_vm7 = vcmask 261120  }
  0x15   : > { %s138_s21 = scalar_select %p137_p10, %s6588_s13, 1  ;;  %vm3068_vm8 = vcmask 293888   ;;  %vm3101_vm9 = vcmask 326656   ;;  %vm5107_vm10 = vcmask 1043456   ;;  %vm3134_vm11 = vcmask 359424  }
  0x16   : > { %s6538_s29 = smov 16   ;;  %s6539_s30 = smov 20   ;;  %vm12519_vm12 = vcmask 392192   ;;  %vm3233_vm13 = vcmask 457728   ;;  %vm12515_vm14 = vcmask 424960   ;;  %vm4963_vm15 = vcmask 523264  }
  0x17   : > { %s6271_s22 = smul.u32 832, %s138_s21  ;;  %s6540_s3 = smov 24  }
  0x18   : > { %s6541_s4 = smov 28   ;;  %s6542_s5 = smov 32  }
  0x19   : > { %s6620_s25 = scalar_lea.vmem %s12485_s0, %s6271_s22  ;;  %s6543_s6 = smov 36  }
  0x1a   : > { %v6623_v0 = vld [vmem:[%s6620_s25 + $0xc5] sm:$0xff]  ;;  %v6635_v3 = vld [vmem:[%s6620_s25 + $0xcd] sm:$0xff]  ;;  %s6544_s7 = smov 40   ;;  %s6545_s8 = smov 44  }
  0x1b   : > { %v6626_v1 = vld [vmem:[%s6620_s25 + $0xa5] sm:$0xff]  ;;  %956 = vrot.lane.b32.xlu2 %v6623_v0, %s6535_s26  ;;  %v6638_v4 = vld [vmem:[%s6620_s25 + $0xad] sm:$0xff]  ;;  %s6546_s14 = smov 48   ;;  %s6547_s16 = smov 52  }
  0x1c   : > { %v5552_v2 = vld [vmem:[%s6620_s25 + $0x85] sm:$0xff]  ;;  %952 = vrot.lane.b32.xlu1 %v6626_v1, %s6535_s26  ;;  %v5553_v5 = vld [vmem:[%s6620_s25 + $0x8d] sm:$0xff]  ;;  %s6548_s17 = smov 56   ;;  %s6549_s21 = smov 60  }
  0x1d   : > { %948 = vrot.lane.b32.xlu0 %v5552_v2, %s6535_s26  ;;  %v6647_v6 = vld [vmem:[%s6620_s25 + $0x105] sm:$0xff]  ;;  %v6650_v7 = vld [vmem:[%s6620_s25 + $0xed] sm:$0xff]  ;;  %s6550_s22 = smov 64  }
  0x1e   : > { %v6653_v8 = vld [vmem:[%s6620_s25 + $0xe5] sm:$0xff]  ;;  %v6662_v9 = vld [vmem:[%s6620_s25 + $0x12d] sm:$0xff] }
  0x1f   : > { %v6665_v10 = vld [vmem:[%s6620_s25 + $0x125] sm:$0xff]  ;;  %v6668_v11 = vld [vmem:[%s6620_s25 + $0x10d] sm:$0xff] }
  0x20   : > { %v6677_v12 = vld [vmem:[%s6620_s25 + $0x165] sm:$0xff]  ;;  %v6680_v13 = vld [vmem:[%s6620_s25 + $0x14d] sm:$0xff] }
  0x21   : > { %v6683_v14 = vld [vmem:[%s6620_s25 + $0x145] sm:$0xff]  ;;  %v6692_v15 = vld [vmem:[%s6620_s25 + $0x18d] sm:$0xff] }
  0x22   : > { %v6695_v16 = vld [vmem:[%s6620_s25 + $0x185] sm:$0xff]  ;;  %v6698_v17 = vld [vmem:[%s6620_s25 + $0x16d] sm:$0xff] }
  0x23   : > { %958 = vrot.lane.b32.xlu2 %v6635_v3, %s6535_s26  ;;  %v6707_v18 = vld [vmem:[%s6620_s25 + $0x1c5] sm:$0xff]  ;;  %v6710_v19 = vld [vmem:[%s6620_s25 + $0x1ad] sm:$0xff] }
  0x24   : > { %954 = vrot.lane.b32.xlu1 %v6638_v4, %s6535_s26  ;;  %v6713_v20 = vld [vmem:[%s6620_s25 + $0x1a5] sm:$0xff]  ;;  %v6722_v21 = vld [vmem:[%s6620_s25 + $0x1ed] sm:$0xff] }
  0x25   : > { %950 = vrot.lane.b32.xlu0 %v5553_v5, %s6535_s26  ;;  %v6725_v22 = vld [vmem:[%s6620_s25 + $0x1e5] sm:$0xff]  ;;  %v6728_v23 = vld [vmem:[%s6620_s25 + $0x1cd] sm:$0xff] }
  0x26   : > { %v6737_v24 = vld [vmem:[%s6620_s25 + $0x225] sm:$0xff]  ;;  %v6740_v25 = vld [vmem:[%s6620_s25 + $0x20d] sm:$0xff] }
  0x27   : > { %v6743_v26 = vld [vmem:[%s6620_s25 + $0x205] sm:$0xff]  ;;  %v6752_v27 = vld [vmem:[%s6620_s25 + $0x24d] sm:$0xff] }
  0x28   : > { %v6755_v28 = vld [vmem:[%s6620_s25 + $0x245] sm:$0xff]  ;;  %v6758_v29 = vld [vmem:[%s6620_s25 + $0x22d] sm:$0xff] }
  0x29   : > { %v5584_v30 = vld [vmem:[%s6620_s25 + $0x86] sm:$0xff]  ;;  %v6779_v33 = vld [vmem:[%s6620_s25 + $0xae] sm:$0xff] }
  0x2a   : > { %v6768_v31 = vld [vmem:[%s6620_s25 + $0x26d] sm:$0xff]  ;;  %v6771_v32 = vld [vmem:[%s6620_s25 + $0x265] sm:$0xff] }
  0x2b   : > { %964 = vrot.lane.b32.xlu2 %v6647_v6, %s6535_s26  ;;  %v6782_v34 = vld [vmem:[%s6620_s25 + $0xa6] sm:$0xff]  ;;  %v5585_v35 = vld [vmem:[%s6620_s25 + $0x8e] sm:$0xff] }
  0x2c   : > { %962 = vrot.lane.b32.xlu1 %v6650_v7, %s6535_s26  ;;  %v6793_v37 = vld [vmem:[%s6620_s25 + $0xe6] sm:$0xff]  ;;  %v6796_v38 = vld [vmem:[%s6620_s25 + $0xce] sm:$0xff] }
  0x2d   : > { %960 = vrot.lane.b32.xlu0 %v6653_v8, %s6535_s26  ;;  %v6799_v39 = vld [vmem:[%s6620_s25 + $0xc6] sm:$0xff]  ;;  %v6810_v41 = vld [vmem:[%s6620_s25 + $0x10e] sm:$0xff] }
  0x2e   : > { %v6813_v42 = vld [vmem:[%s6620_s25 + $0x106] sm:$0xff]  ;;  %v6816_v43 = vld [vmem:[%s6620_s25 + $0xee] sm:$0xff] }
  0x2f   : > { %v6827_v45 = vld [vmem:[%s6620_s25 + $0x146] sm:$0xff]  ;;  %v6830_v46 = vld [vmem:[%s6620_s25 + $0x12e] sm:$0xff] }
  0x30   : > { %v6833_v47 = vld [vmem:[%s6620_s25 + $0x126] sm:$0xff]  ;;  %v6848_v51 = vld [vmem:[%s6620_s25 + $0x16e] sm:$0xff] }
  0x31   : > { %v6851_v52 = vld [vmem:[%s6620_s25 + $0x166] sm:$0xff]  ;;  %v6854_v53 = vld [vmem:[%s6620_s25 + $0x14e] sm:$0xff] }
  0x32   : > { %v6869_v57 = vld [vmem:[%s6620_s25 + $0x1a6] sm:$0xff]  ;;  %v6872_v58 = vld [vmem:[%s6620_s25 + $0x18e] sm:$0xff] }
  0x33   : > { %970 = vrot.lane.b32.xlu2 %v6662_v9, %s6535_s26  ;;  %v6875_v59 = vld [vmem:[%s6620_s25 + $0x186] sm:$0xff]  ;;  %v6890_v63 = vld [vmem:[%s6620_s25 + $0x1ce] sm:$0xff] }
  0x34   : > { %968 = vrot.lane.b32.xlu1 %v6665_v10, %s6535_s26  ;;  %v6893_v2 = vld [vmem:[%s6620_s25 + $0x1c6] sm:$0xff]  ;;  %v6896_v5 = vld [vmem:[%s6620_s25 + $0x1ae] sm:$0xff] }
  0x35   : > { %966 = vrot.lane.b32.xlu0 %v6668_v11, %s6535_s26 }
  0x3b   : > { %976 = vrot.lane.b32.xlu2 %v6677_v12, %s6535_s26 }
  0x3c   : > { %974 = vrot.lane.b32.xlu1 %v6680_v13, %s6535_s26 }
  0x3d   : > { %972 = vrot.lane.b32.xlu0 %v6683_v14, %s6535_s26 }
  0x43   : > { %982 = vrot.lane.b32.xlu2 %v6692_v15, %s6535_s26 }
  0x44   : > { %980 = vrot.lane.b32.xlu1 %v6695_v16, %s6535_s26 }
  0x45   : > { %978 = vrot.lane.b32.xlu0 %v6698_v17, %s6535_s26 }
  0x4b   : > { %988 = vrot.lane.b32.xlu2 %v6707_v18, %s6535_s26 }
  0x4c   : > { %986 = vrot.lane.b32.xlu1 %v6710_v19, %s6535_s26 }
  0x4d   : > { %984 = vrot.lane.b32.xlu0 %v6713_v20, %s6535_s26 }
  0x53   : > { %994 = vrot.lane.b32.xlu2 %v6722_v21, %s6535_s26 }
  0x54   : > { %992 = vrot.lane.b32.xlu1 %v6725_v22, %s6535_s26 }
  0x55   : > { %990 = vrot.lane.b32.xlu0 %v6728_v23, %s6535_s26 }
  0x5b   : > { %1000 = vrot.lane.b32.xlu2 %v6737_v24, %s6535_s26 }
  0x5c   : > { %998 = vrot.lane.b32.xlu1 %v6740_v25, %s6535_s26 }
  0x5d   : > { %996 = vrot.lane.b32.xlu0 %v6743_v26, %s6535_s26 }
  0x63   : > { %1006 = vrot.lane.b32.xlu2 %v6752_v27, %s6535_s26 }
  0x64   : > { %1004 = vrot.lane.b32.xlu1 %v6755_v28, %s6535_s26 }
  0x65   : > { %1002 = vrot.lane.b32.xlu0 %v6758_v29, %s6535_s26 }
  0x6b   : > { %1076 = vrot.lane.b32.xlu2 %v5584_v30, %s6536_s27 }
  0x6c   : > { %1010 = vrot.lane.b32.xlu1 %v6768_v31, %s6535_s26 }
  0x6d   : > { %1008 = vrot.lane.b32.xlu0 %v6771_v32, %s6535_s26 }
  0x73   : > { %1082 = vrot.lane.b32.xlu2 %v6779_v33, %s6536_s27 }
  0x74   : > { %1080 = vrot.lane.b32.xlu1 %v6782_v34, %s6536_s27 }
  0x75   : > { %1078 = vrot.lane.b32.xlu0 %v5585_v35, %s6536_s27  ;;  %v6790_v36 = vpop.permute.xlu2 %956 }
  0x76   : > { %12523 = vst [vmem:[#allocation5_spill] sm:$0xff] %v6790_v36  ;;  %v6932_v36 = vld [vmem:[%s6620_s25 + $0x22e] sm:$0xff] }
  0x77   : > { %12541 = vst [vmem:[#allocation23_spill] sm:$0xff] %v6932_v36 }
  0x7b   : > { %1088 = vrot.lane.b32.xlu2 %v6793_v37, %s6536_s27 }
  0x7c   : > { %1086 = vrot.lane.b32.xlu1 %v6796_v38, %s6536_s27 }
  0x7d   : > { %1084 = vrot.lane.b32.xlu0 %v6799_v39, %s6536_s27  ;;  %v6807_v40 = vpop.permute.xlu2 %958 }
  0x7e   : > { %12524 = vst [vmem:[#allocation6_spill] sm:$0xff] %v6807_v40  ;;  %v6917_v40 = vld [vmem:[%s6620_s25 + $0x1e6] sm:$0xff] }
  0x83   : > { %1094 = vrot.lane.b32.xlu2 %v6810_v41, %s6536_s27 }
  0x84   : > { %1092 = vrot.lane.b32.xlu1 %v6813_v42, %s6536_s27 }
  0x85   : > { %1090 = vrot.lane.b32.xlu0 %v6816_v43, %s6536_s27  ;;  %v6824_v44 = vpop.permute.xlu2 %964 }
  0x86   : > { %12525 = vst [vmem:[#allocation7_spill] sm:$0xff] %v6824_v44  ;;  %v6959_v44 = vld [vmem:[%s6620_s25 + $0x246] sm:$0xff] }
  0x87   : > { %12547 = vst [vmem:[#allocation29_spill] sm:$0xff] %v6959_v44 }
  0x8b   : > { %1100 = vrot.lane.b32.xlu2 %v6827_v45, %s6536_s27 }
  0x8c   : > { %1098 = vrot.lane.b32.xlu1 %v6830_v46, %s6536_s27 }
  0x8d   : > { %1096 = vrot.lane.b32.xlu0 %v6833_v47, %s6536_s27  ;;  %v6841_v48 = vpop.permute.xlu2 %970 }
  0x8e   : > { %12526 = vst [vmem:[#allocation8_spill] sm:$0xff] %v6841_v48  ;;  %v6843_v49 = vpop.permute.xlu1 %952 }
  0x8f   : > { %12527 = vst [vmem:[#allocation9_spill] sm:$0xff] %v6843_v49  ;;  %v6845_v50 = vpop.permute.xlu0 %948  ;;  %v6956_v49 = vld [vmem:[%s6620_s25 + $0x24e] sm:$0xff] }
  0x90   : > { %12528 = vst [vmem:[#allocation10_spill] sm:$0xff] %v6845_v50  ;;  %v5522_v50 = vld [vmem:[%s6620_s25 + $0xa4] sm:$0xff] }
  0x91   : > { %12546 = vst [vmem:[#allocation28_spill] sm:$0xff] %v6956_v49 }
  0x93   : > { %1106 = vrot.lane.b32.xlu2 %v6848_v51, %s6536_s27 }
  0x94   : > { %1104 = vrot.lane.b32.xlu1 %v6851_v52, %s6536_s27 }
  0x95   : > { %1102 = vrot.lane.b32.xlu0 %v6854_v53, %s6536_s27  ;;  %v6862_v54 = vpop.permute.xlu2 %976 }
  0x96   : > { %12529 = vst [vmem:[#allocation11_spill] sm:$0xff] %v6862_v54  ;;  %v6864_v55 = vpop.permute.xlu1 %954  ;;  %v6911_v54 = vld [vmem:[%s6620_s25 + $0x206] sm:$0xff] }
  0x97   : > { %12530 = vst [vmem:[#allocation12_spill] sm:$0xff] %v6864_v55  ;;  %v6866_v56 = vpop.permute.xlu0 %950  ;;  %v6953_v55 = vld [vmem:[%s6620_s25 + $0x266] sm:$0xff] }
  0x98   : > { %12531 = vst [vmem:[#allocation13_spill] sm:$0xff] %v6866_v56  ;;  %v6974_v56 = vld [vmem:[%s6620_s25 + $0x26e] sm:$0xff] }
  0x99   : > { %12545 = vst [vmem:[#allocation27_spill] sm:$0xff] %v6953_v55 }
  0x9a   : > { %12551 = vst [vmem:[#allocation33_spill] sm:$0xff] %v6974_v56 }
  0x9b   : > { %1112 = vrot.lane.b32.xlu2 %v6869_v57, %s6536_s27 }
  0x9c   : > { %1110 = vrot.lane.b32.xlu1 %v6872_v58, %s6536_s27 }
  0x9d   : > { %1108 = vrot.lane.b32.xlu0 %v6875_v59, %s6536_s27  ;;  %v6883_v60 = vpop.permute.xlu2 %982 }
  0x9e   : > { %12532 = vst [vmem:[#allocation14_spill] sm:$0xff] %v6883_v60  ;;  %v6885_v61 = vpop.permute.xlu1 %962 }
  0x9f   : > { %12533 = vst [vmem:[#allocation15_spill] sm:$0xff] %v6885_v61  ;;  %v6887_v62 = vpop.permute.xlu0 %960 }
  0xa0   : > { %12534 = vst [vmem:[#allocation16_spill] sm:$0xff] %v6887_v62  ;;  %v6914_v62 = vld [vmem:[%s6620_s25 + $0x1ee] sm:$0xff] }
  0xa3   : > { %1118 = vrot.lane.b32.xlu2 %v6890_v63, %s6536_s27 }
  0xa4   : > { %1116 = vrot.lane.b32.xlu1 %v6893_v2, %s6536_s27 }
  0xa5   : > { %1114 = vrot.lane.b32.xlu0 %v6896_v5, %s6536_s27  ;;  %v6904_v30 = vpop.permute.xlu2 %988 }
  0xa6   : > { %12535 = vst [vmem:[#allocation17_spill] sm:$0xff] %v6904_v30  ;;  %v6906_v35 = vpop.permute.xlu1 %968 }
  0xa7   : > { %12536 = vst [vmem:[#allocation18_spill] sm:$0xff] %v6906_v35  ;;  %v6908_v61 = vpop.permute.xlu0 %966  ;;  %v6935_v35 = vld [vmem:[%s6620_s25 + $0x226] sm:$0xff] }
  0xa8   : > { %12537 = vst [vmem:[#allocation19_spill] sm:$0xff] %v6908_v61  ;;  %v6938_v61 = vld [vmem:[%s6620_s25 + $0x20e] sm:$0xff] }
  0xab   : > { %1124 = vrot.lane.b32.xlu2 %v6911_v54, %s6536_s27 }
  0xac   : > { %1122 = vrot.lane.b32.xlu1 %v6914_v62, %s6536_s27 }
  0xad   : > { %1120 = vrot.lane.b32.xlu0 %v6917_v40, %s6536_s27  ;;  %v6925_v30 = vpop.permute.xlu2 %994 }
  0xae   : > { %12538 = vst [vmem:[#allocation20_spill] sm:$0xff] %v6925_v30  ;;  %v6927_v48 = vpop.permute.xlu1 %974 }
  0xaf   : > { %12539 = vst [vmem:[#allocation21_spill] sm:$0xff] %v6927_v48  ;;  %v6929_v60 = vpop.permute.xlu0 %972 }
  0xb0   : > { %12540 = vst [vmem:[#allocation22_spill] sm:$0xff] %v6929_v60 }
  0xb3   : > { %1130 = vrot.lane.b32.xlu2 %v6932_v36, %s6536_s27  ;;  %v5523_v36 = vld [vmem:[%s6620_s25 + $0xac] sm:$0xff] }
  0xb4   : > { %1128 = vrot.lane.b32.xlu1 %v6935_v35, %s6536_s27 }
  0xb5   : > { %1126 = vrot.lane.b32.xlu0 %v6938_v61, %s6536_s27  ;;  %v6946_v30 = vpop.permute.xlu2 %1000 }
  0xb6   : > { %12542 = vst [vmem:[#allocation24_spill] sm:$0xff] %v6946_v30  ;;  %v6948_v48 = vpop.permute.xlu1 %980 }
  0xb7   : > { %12543 = vst [vmem:[#allocation25_spill] sm:$0xff] %v6948_v48  ;;  %v6950_v60 = vpop.permute.xlu0 %978 }
  0xb8   : > { %12544 = vst [vmem:[#allocation26_spill] sm:$0xff] %v6950_v60 }
  0xbb   : > { %1136 = vrot.lane.b32.xlu2 %v6953_v55, %s6536_s27  ;;  %v5525_v55 = vld [vmem:[%s6620_s25 + $0xcc] sm:$0xff] }
  0xbc   : > { %1134 = vrot.lane.b32.xlu1 %v6956_v49, %s6536_s27  ;;  %v5524_v49 = vld [vmem:[%s6620_s25 + $0xc4] sm:$0xff] }
  0xbd   : > { %1132 = vrot.lane.b32.xlu0 %v6959_v44, %s6536_s27  ;;  %v6967_v30 = vpop.permute.xlu2 %1006  ;;  %v6990_v44 = vld [vmem:[%s6620_s25 + $0xe4] sm:$0xff] }
  0xbe   : > { %12548 = vst [vmem:[#allocation30_spill] sm:$0xff] %v6967_v30  ;;  %v6969_v60 = vpop.permute.xlu1 %986 }
  0xbf   : > { %12549 = vst [vmem:[#allocation31_spill] sm:$0xff] %v6969_v60  ;;  %v6971_v48 = vpop.permute.xlu0 %984 }
  0xc0   : > { %12550 = vst [vmem:[#allocation32_spill] sm:$0xff] %v6971_v48 }
  0xc1   : > { %12555 = vst [vmem:[#allocation37_spill] sm:$0xff] %v6990_v44 }
  0xc3   : > { %1206 = vrot.lane.b32.xlu2 %v5523_v36, %s6537_s28 }
  0xc4   : > { %1204 = vrot.lane.b32.xlu1 %v5522_v50, %s6537_s28 }
  0xc5   : > { %1138 = vrot.lane.b32.xlu0 %v6974_v56, %s6536_s27  ;;  %v6982_v30 = vpop.permute.xlu2 %1076  ;;  %v7008_v56 = vld [vmem:[%s6620_s25 + $0xec] sm:$0xff] }
  0xc6   : > { %12552 = vst [vmem:[#allocation34_spill] sm:$0xff] %v6982_v30  ;;  %v6984_v60 = vpop.permute.xlu1 %992  ;;  %v7005_v30 = vld [vmem:[%s6620_s25 + $0x10c] sm:$0xff] }
  0xc7   : > { %12553 = vst [vmem:[#allocation35_spill] sm:$0xff] %v6984_v60  ;;  %v6986_v48 = vpop.permute.xlu0 %990 }
  0xc8   : > { %12554 = vst [vmem:[#allocation36_spill] sm:$0xff] %v6986_v48  ;;  %v5528_v48 = vld [vmem:[%s6620_s25 + $0x104] sm:$0xff] }
  0xc9   : > { %12559 = vst [vmem:[#allocation41_spill] sm:$0xff] %v7005_v30 }
  0xca   : > { %12560 = vst [vmem:[#allocation42_spill] sm:$0xff] %v7008_v56 }
  0xcb   : > { %1212 = vrot.lane.b32.xlu2 %v6990_v44, %s6537_s28  ;;  %v7026_v44 = vld [vmem:[%s6620_s25 + $0x124] sm:$0xff] }
  0xcc   : > { %1210 = vrot.lane.b32.xlu1 %v5525_v55, %s6537_s28  ;;  %12565 = vst [vmem:[#allocation47_spill] sm:$0xff] %v7026_v44 }
  0xcd   : > { %1208 = vrot.lane.b32.xlu0 %v5524_v49, %s6537_s28  ;;  %v6997_v36 = vpop.permute.xlu2 %1082 }
  0xce   : > { %12556 = vst [vmem:[#allocation38_spill] sm:$0xff] %v6997_v36  ;;  %v6999_v50 = vpop.permute.xlu1 %998  ;;  %v7023_v36 = vld [vmem:[%s6620_s25 + $0x144] sm:$0xff] }
  0xcf   : > { %12557 = vst [vmem:[#allocation39_spill] sm:$0xff] %v6999_v50  ;;  %v7001_v60 = vpop.permute.xlu0 %996 }
  0xd0   : > { %12558 = vst [vmem:[#allocation40_spill] sm:$0xff] %v7001_v60  ;;  %v5531_v60 = vld [vmem:[%s6620_s25 + $0x12c] sm:$0xff] }
  0xd1   : > { %12564 = vst [vmem:[#allocation46_spill] sm:$0xff] %v7023_v36 }
  0xd3   : > { %1218 = vrot.lane.b32.xlu2 %v7005_v30, %s6537_s28  ;;  %v7041_v30 = vld [vmem:[%s6620_s25 + $0x16c] sm:$0xff] }
  0xd4   : > { %1216 = vrot.lane.b32.xlu1 %v5528_v48, %s6537_s28  ;;  %12569 = vst [vmem:[#allocation51_spill] sm:$0xff] %v7041_v30 }
  0xd5   : > { %1214 = vrot.lane.b32.xlu0 %v7008_v56, %s6537_s28  ;;  %v7015_v49 = vpop.permute.xlu2 %1088  ;;  %v7044_v56 = vld [vmem:[%s6620_s25 + $0x14c] sm:$0xff] }
  0xd6   : > { %12561 = vst [vmem:[#allocation43_spill] sm:$0xff] %v7015_v49  ;;  %v7017_v55 = vpop.permute.xlu1 %1004  ;;  %v5534_v49 = vld [vmem:[%s6620_s25 + $0x164] sm:$0xff] }
  0xd7   : > { %12562 = vst [vmem:[#allocation44_spill] sm:$0xff] %v7017_v55  ;;  %v7019_v50 = vpop.permute.xlu0 %1002 }
  0xd8   : > { %12563 = vst [vmem:[#allocation45_spill] sm:$0xff] %v7019_v50 }
  0xd9   : > { %12570 = vst [vmem:[#allocation52_spill] sm:$0xff] %v7044_v56 }
  0xdb   : > { %1224 = vrot.lane.b32.xlu2 %v7023_v36, %s6537_s28  ;;  %v7059_v36 = vld [vmem:[%s6620_s25 + $0x1a4] sm:$0xff] }
  0xdc   : > { %1222 = vrot.lane.b32.xlu1 %v5531_v60, %s6537_s28  ;;  %12574 = vst [vmem:[#allocation56_spill] sm:$0xff] %v7059_v36 }
  0xdd   : > { %1220 = vrot.lane.b32.xlu0 %v7026_v44, %s6537_s28  ;;  %v7033_v48 = vpop.permute.xlu2 %1094  ;;  %v7062_v44 = vld [vmem:[%s6620_s25 + $0x184] sm:$0xff] }
  0xde   : > { %12566 = vst [vmem:[#allocation48_spill] sm:$0xff] %v7033_v48  ;;  %v7035_v55 = vpop.permute.xlu1 %1010  ;;  %v5537_v48 = vld [vmem:[%s6620_s25 + $0x18c] sm:$0xff] }
  0xdf   : > { %12567 = vst [vmem:[#allocation49_spill] sm:$0xff] %v7035_v55  ;;  %v7037_v50 = vpop.permute.xlu0 %1008 }
  0xe0   : > { %12568 = vst [vmem:[#allocation50_spill] sm:$0xff] %v7037_v50 }
  0xe1   : > { %12575 = vst [vmem:[#allocation57_spill] sm:$0xff] %v7062_v44 }
  0xe3   : > { %1230 = vrot.lane.b32.xlu2 %v7041_v30, %s6537_s28  ;;  %v7077_v30 = vld [vmem:[%s6620_s25 + $0x1cc] sm:$0xff] }
  0xe4   : > { %1228 = vrot.lane.b32.xlu1 %v5534_v49, %s6537_s28  ;;  %12579 = vst [vmem:[#allocation61_spill] sm:$0xff] %v7077_v30 }
  0xe5   : > { %1226 = vrot.lane.b32.xlu0 %v7044_v56, %s6537_s28  ;;  %v7051_v60 = vpop.permute.xlu2 %1100  ;;  %v7080_v56 = vld [vmem:[%s6620_s25 + $0x1ac] sm:$0xff] }
  0xe6   : > { %12571 = vst [vmem:[#allocation53_spill] sm:$0xff] %v7051_v60  ;;  %v7053_v55 = vpop.permute.xlu1 %1080 }
  0xe7   : > { %12572 = vst [vmem:[#allocation54_spill] sm:$0xff] %v7053_v55  ;;  %v7055_v50 = vpop.permute.xlu0 %1078 }
  0xe8   : > { %12573 = vst [vmem:[#allocation55_spill] sm:$0xff] %v7055_v50  ;;  %v5540_v50 = vld [vmem:[%s6620_s25 + $0x1c4] sm:$0xff] }
  0xe9   : > { %12580 = vst [vmem:[#allocation62_spill] sm:$0xff] %v7080_v56 }
  0xeb   : > { %1236 = vrot.lane.b32.xlu2 %v7059_v36, %s6537_s28  ;;  %v7097_v36 = vld [vmem:[%s6620_s25 + $0x204] sm:$0xff] }
  0xec   : > { %1234 = vrot.lane.b32.xlu1 %v5537_v48, %s6537_s28  ;;  %12585 = vst [vmem:[#allocation67_spill] sm:$0xff] %v7097_v36 }
  0xed   : > { %1232 = vrot.lane.b32.xlu0 %v7062_v44, %s6537_s28  ;;  %v7069_v49 = vpop.permute.xlu2 %1106  ;;  %v7100_v44 = vld [vmem:[%s6620_s25 + $0x1e4] sm:$0xff] }
  0xee   : > { %12576 = vst [vmem:[#allocation58_spill] sm:$0xff] %v7069_v49  ;;  %v7071_v60 = vpop.permute.xlu1 %1086 }
  0xef   : > { %12577 = vst [vmem:[#allocation59_spill] sm:$0xff] %v7071_v60  ;;  %v7073_v55 = vpop.permute.xlu0 %1084 }
  0xf0   : > { %12578 = vst [vmem:[#allocation60_spill] sm:$0xff] %v7073_v55  ;;  %v7094_v55 = vld [vmem:[%s6620_s25 + $0x1ec] sm:$0xff] }
  0xf1   : > { %12584 = vst [vmem:[#allocation66_spill] sm:$0xff] %v7094_v55 }
  0xf2   : > { %12586 = vst [vmem:[#allocation68_spill] sm:$0xff] %v7100_v44 }
  0xf3   : > { %1242 = vrot.lane.b32.xlu2 %v7077_v30, %s6537_s28  ;;  %v7118_v30 = vld [vmem:[%s6620_s25 + $0x22c] sm:$0xff] }
  0xf4   : > { %1240 = vrot.lane.b32.xlu1 %v5540_v50, %s6537_s28  ;;  %12591 = vst [vmem:[#allocation73_spill] sm:$0xff] %v7118_v30 }
  0xf5   : > { %1238 = vrot.lane.b32.xlu0 %v7080_v56, %s6537_s28  ;;  %v7087_v48 = vpop.permute.xlu2 %1112  ;;  %v7121_v56 = vld [vmem:[%s6620_s25 + $0x20c] sm:$0xff] }
  0xf6   : > { %12581 = vst [vmem:[#allocation63_spill] sm:$0xff] %v7087_v48  ;;  %v7089_v49 = vpop.permute.xlu1 %1092 }
  0xf7   : > { %12582 = vst [vmem:[#allocation64_spill] sm:$0xff] %v7089_v49  ;;  %v7091_v60 = vpop.permute.xlu0 %1090  ;;  %v7115_v49 = vld [vmem:[%s6620_s25 + $0x224] sm:$0xff] }
  0xf8   : > { %12583 = vst [vmem:[#allocation65_spill] sm:$0xff] %v7091_v60 }
  0xf9   : > { %12590 = vst [vmem:[#allocation72_spill] sm:$0xff] %v7115_v49 }
  0xfa   : > { %12592 = vst [vmem:[#allocation74_spill] sm:$0xff] %v7121_v56 }
  0xfb   : > { %1248 = vrot.lane.b32.xlu2 %v7097_v36, %s6537_s28  ;;  %v7136_v36 = vld [vmem:[%s6620_s25 + $0x24c] sm:$0xff] }
  0xfc   : > { %1246 = vrot.lane.b32.xlu1 %v7094_v55, %s6537_s28  ;;  %v7142_v55 = vld [vmem:[%s6620_s25 + $0x244] sm:$0xff] }
  0xfd   : > { %1244 = vrot.lane.b32.xlu0 %v7100_v44, %s6537_s28  ;;  %v7108_v50 = vpop.permute.xlu2 %1118  ;;  %v7139_v44 = vld [vmem:[%s6620_s25 + $0x264] sm:$0xff] }
  0xfe   : > { %12587 = vst [vmem:[#allocation69_spill] sm:$0xff] %v7108_v50  ;;  %v7110_v60 = vpop.permute.xlu1 %1098 }
  0xff   : > { %12588 = vst [vmem:[#allocation70_spill] sm:$0xff] %v7110_v60  ;;  %v7112_v48 = vpop.permute.xlu0 %1096 }
 0x100   : > { %12589 = vst [vmem:[#allocation71_spill] sm:$0xff] %v7112_v48 }
 0x101   : > { %12596 = vst [vmem:[#allocation78_spill] sm:$0xff] %v7139_v44 }
 0x103   : > { %1254 = vrot.lane.b32.xlu2 %v7118_v30, %s6537_s28  ;;  %v7157_v30 = vld [vmem:[%s6620_s25 + $0x28c] sm:$0xff] }
 0x104   : > { %1252 = vrot.lane.b32.xlu1 %v7115_v49, %s6537_s28  ;;  %12600 = vst [vmem:[#allocation82_spill] sm:$0xff] %v7157_v30  ;;  %v7163_v49 = vld [vmem:[%s6620_s25 + $0x26c] sm:$0xff] }
 0x105   : > { %1250 = vrot.lane.b32.xlu0 %v7121_v56, %s6537_s28  ;;  %v7129_v50 = vpop.permute.xlu2 %1124  ;;  %v7160_v56 = vld [vmem:[%s6620_s25 + $0x284] sm:$0xff]  ;;  %12601 = vst [vmem:[#allocation83_spill] sm:$0xff] %v7163_v49 }
 0x106   : > { %12593 = vst [vmem:[#allocation75_spill] sm:$0xff] %v7129_v50  ;;  %v7131_v60 = vpop.permute.xlu1 %1104 }
 0x107   : > { %12594 = vst [vmem:[#allocation76_spill] sm:$0xff] %v7131_v60  ;;  %v7133_v48 = vpop.permute.xlu0 %1102 }
 0x108   : > { %12595 = vst [vmem:[#allocation77_spill] sm:$0xff] %v7133_v48 }
 0x10b   : > { %1260 = vrot.lane.b32.xlu2 %v7139_v44, %s6537_s28 }
 0x10c   : > { %1258 = vrot.lane.b32.xlu1 %v7136_v36, %s6537_s28 }
 0x10d   : > { %1256 = vrot.lane.b32.xlu0 %v7142_v55, %s6537_s28  ;;  %v7150_v50 = vpop.permute.xlu2 %1130 }
 0x10e   : > { %12597 = vst [vmem:[#allocation79_spill] sm:$0xff] %v7150_v50  ;;  %v7152_v60 = vpop.permute.xlu1 %1110 }
 0x10f   : > { %12598 = vst [vmem:[#allocation80_spill] sm:$0xff] %v7152_v60  ;;  %v7154_v48 = vpop.permute.xlu0 %1108 }
 0x110   : > { %12599 = vst [vmem:[#allocation81_spill] sm:$0xff] %v7154_v48 }
 0x113   : > { %1266 = vrot.lane.b32.xlu2 %v7157_v30, %s6537_s28 }
 0x114   : > { %1264 = vrot.lane.b32.xlu1 %v7160_v56, %s6537_s28 }
 0x115   : > { %1262 = vrot.lane.b32.xlu0 %v7163_v49, %s6537_s28  ;;  %v7171_v50 = vpop.permute.xlu2 %1136 }
 0x116   : > { %12602 = vst [vmem:[#allocation84_spill] sm:$0xff] %v7171_v50  ;;  %v7173_v60 = vpop.permute.xlu1 %1116  ;;  %v7301_v50 = vld [vmem:[%s6620_s25 + $0x285] sm:$0xff] }
 0x117   : > { %12603 = vst [vmem:[#allocation85_spill] sm:$0xff] %v7173_v60  ;;  %v7175_v48 = vpop.permute.xlu0 %1114 }
 0x118   : > { %12604 = vst [vmem:[#allocation86_spill] sm:$0xff] %v7175_v48  ;;  %v7658_v48 = vld [vmem:[%s6620_s25 + $0x1a5] sm:$0xff] }
 0x11b   : > { %1336 = vrot.lane.b32.xlu2 %v6623_v0, %s6538_s29 }
 0x11c   : > { %1334 = vrot.lane.b32.xlu1 %v6638_v4, %s6538_s29 }
 0x11d   : > { %1332 = vrot.lane.b32.xlu0 %v6626_v1, %s6538_s29  ;;  %v7183_v30 = vpop.permute.xlu2 %1206 }
 0x11e   : > { %12605 = vst [vmem:[#allocation87_spill] sm:$0xff] %v7183_v30  ;;  %v7185_v44 = vpop.permute.xlu1 %1122 }
 0x11f   : > { %12606 = vst [vmem:[#allocation88_spill] sm:$0xff] %v7185_v44  ;;  %v7187_v49 = vpop.permute.xlu0 %1120 }
 0x120   : > { %12607 = vst [vmem:[#allocation89_spill] sm:$0xff] %v7187_v49  ;;  %v5713_v49 = vld [vmem:[%s6620_s25 + $0xcc] sm:$0xff] }
 0x123   : > { %1342 = vrot.lane.b32.xlu2 %v6650_v7, %s6538_s29 }
 0x124   : > { %1340 = vrot.lane.b32.xlu1 %v6653_v8, %s6538_s29 }
 0x125   : > { %1338 = vrot.lane.b32.xlu0 %v6635_v3, %s6538_s29  ;;  %v7195_v0 = vpop.permute.xlu2 %1212 }
 0x126   : > { %12608 = vst [vmem:[#allocation90_spill] sm:$0xff] %v7195_v0  ;;  %v7197_v4 = vpop.permute.xlu1 %1128 }
 0x127   : > { %12609 = vst [vmem:[#allocation91_spill] sm:$0xff] %v7197_v4  ;;  %v7199_v1 = vpop.permute.xlu0 %1126 }
 0x128   : > { %12610 = vst [vmem:[#allocation92_spill] sm:$0xff] %v7199_v1  ;;  %v7580_v1 = vld [vmem:[%s6620_s25 + $0xc5] sm:$0xff] }
 0x12b   : > { %1348 = vrot.lane.b32.xlu2 %v6665_v10, %s6538_s29 }
 0x12c   : > { %1346 = vrot.lane.b32.xlu1 %v6668_v11, %s6538_s29 }
 0x12d   : > { %1344 = vrot.lane.b32.xlu0 %v6647_v6, %s6538_s29  ;;  %v7207_v7 = vpop.permute.xlu2 %1218 }
 0x12e   : > { %12611 = vst [vmem:[#allocation93_spill] sm:$0xff] %v7207_v7  ;;  %v7209_v8 = vpop.permute.xlu1 %1134  ;;  %v12708_v7 = vld [vmem:[#allocation74_spill] sm:$0xff] }
 0x12f   : > { %12612 = vst [vmem:[#allocation94_spill] sm:$0xff] %v7209_v8  ;;  %v7211_v3 = vpop.permute.xlu0 %1132 }
 0x130   : > { %12613 = vst [vmem:[#allocation95_spill] sm:$0xff] %v7211_v3  ;;  %v12676_v3 = vld [vmem:[#allocation42_spill] sm:$0xff] }
 0x133   : > { %1354 = vrot.lane.b32.xlu2 %v6680_v13, %s6538_s29 }
 0x134   : > { %1352 = vrot.lane.b32.xlu1 %v6683_v14, %s6538_s29 }
 0x135   : > { %1350 = vrot.lane.b32.xlu0 %v6662_v9, %s6538_s29  ;;  %v7219_v10 = vpop.permute.xlu2 %1224 }
 0x136   : > { %12614 = vst [vmem:[#allocation96_spill] sm:$0xff] %v7219_v10  ;;  %v7221_v11 = vpop.permute.xlu1 %1204 }
 0x137   : > { %12615 = vst [vmem:[#allocation97_spill] sm:$0xff] %v7221_v11  ;;  %v7223_v6 = vpop.permute.xlu0 %1138  ;;  %v6378_v11 = vld [vmem:[%s6620_s25 + $0xa5] sm:$0xff] }
 0x138   : > { %12616 = vst [vmem:[#allocation98_spill] sm:$0xff] %v7223_v6  ;;  %v7298_v6 = vld [vmem:[%s6620_s25 + $0x28d] sm:$0xff] }
 0x13b   : > { %1360 = vrot.lane.b32.xlu2 %v6695_v16, %s6538_s29 }
 0x13c   : > { %1358 = vrot.lane.b32.xlu1 %v6698_v17, %s6538_s29 }
 0x13d   : > { %1356 = vrot.lane.b32.xlu0 %v6677_v12, %s6538_s29  ;;  %v7231_v13 = vpop.permute.xlu2 %1230 }
 0x13e   : > { %12617 = vst [vmem:[#allocation99_spill] sm:$0xff] %v7231_v13  ;;  %v7233_v14 = vpop.permute.xlu1 %1210 }
 0x13f   : > { %12618 = vst [vmem:[#allocation100_spill] sm:$0xff] %v7233_v14  ;;  %v7235_v9 = vpop.permute.xlu0 %1208  ;;  %v8009_v14 = vld [vmem:[%s6620_s25 + $0x14a] sm:$0xff] }
 0x140   : > { %12619 = vst [vmem:[#allocation101_spill] sm:$0xff] %v7235_v9  ;;  %v8087_v9 = vld [vmem:[%s6620_s25 + $0x22a] sm:$0xff] }
 0x143   : > { %1366 = vrot.lane.b32.xlu2 %v6710_v19, %s6538_s29 }
 0x144   : > { %1364 = vrot.lane.b32.xlu1 %v6713_v20, %s6538_s29 }
 0x145   : > { %1362 = vrot.lane.b32.xlu0 %v6692_v15, %s6538_s29  ;;  %v7243_v16 = vpop.permute.xlu2 %1236 }
 0x146   : > { %12620 = vst [vmem:[#allocation102_spill] sm:$0xff] %v7243_v16  ;;  %v7245_v17 = vpop.permute.xlu1 %1216  ;;  %v5795_v16 = vld [vmem:[%s6620_s25 + $0x1ee] sm:$0xff] }
 0x147   : > { %12621 = vst [vmem:[#allocation103_spill] sm:$0xff] %v7245_v17  ;;  %v7247_v12 = vpop.permute.xlu0 %1214  ;;  %v7637_v17 = vld [vmem:[%s6620_s25 + $0x16d] sm:$0xff] }
 0x148   : > { %12622 = vst [vmem:[#allocation104_spill] sm:$0xff] %v7247_v12  ;;  %v7703_v12 = vld [vmem:[%s6620_s25 + $0x1ed] sm:$0xff] }
 0x14b   : > { %1372 = vrot.lane.b32.xlu2 %v6725_v22, %s6538_s29 }
 0x14c   : > { %1370 = vrot.lane.b32.xlu1 %v6728_v23, %s6538_s29 }
 0x14d   : > { %1368 = vrot.lane.b32.xlu0 %v6707_v18, %s6538_s29  ;;  %v7255_v19 = vpop.permute.xlu2 %1242 }
 0x14e   : > { %12623 = vst [vmem:[#allocation105_spill] sm:$0xff] %v7255_v19  ;;  %v7257_v20 = vpop.permute.xlu1 %1222  ;;  %v7616_v19 = vld [vmem:[%s6620_s25 + $0x145] sm:$0xff] }
 0x14f   : > { %12624 = vst [vmem:[#allocation106_spill] sm:$0xff] %v7257_v20  ;;  %v7259_v15 = vpop.permute.xlu0 %1220  ;;  %v8006_v20 = vld [vmem:[%s6620_s25 + $0x162] sm:$0xff] }
 0x150   : > { %12625 = vst [vmem:[#allocation107_spill] sm:$0xff] %v7259_v15  ;;  %v8090_v15 = vld [vmem:[%s6620_s25 + $0x222] sm:$0xff] }
 0x153   : > { %1378 = vrot.lane.b32.xlu2 %v6740_v25, %s6538_s29 }
 0x154   : > { %1376 = vrot.lane.b32.xlu1 %v6743_v26, %s6538_s29 }
 0x155   : > { %1374 = vrot.lane.b32.xlu0 %v6722_v21, %s6538_s29  ;;  %v7267_v22 = vpop.permute.xlu2 %1248 }
 0x156   : > { %12626 = vst [vmem:[#allocation108_spill] sm:$0xff] %v7267_v22  ;;  %v7269_v18 = vpop.permute.xlu1 %1228 }
 0x157   : > { %12627 = vst [vmem:[#allocation109_spill] sm:$0xff] %v7269_v18  ;;  %v7271_v23 = vpop.permute.xlu0 %1226  ;;  %v7643_v18 = vld [vmem:[%s6620_s25 + $0x14d] sm:$0xff] }
 0x158   : > { %12628 = vst [vmem:[#allocation110_spill] sm:$0xff] %v7271_v23  ;;  %v7706_v23 = vld [vmem:[%s6620_s25 + $0x1e5] sm:$0xff] }
 0x15b   : > { %1384 = vrot.lane.b32.xlu2 %v6755_v28, %s6538_s29 }
 0x15c   : > { %1382 = vrot.lane.b32.xlu1 %v6758_v29, %s6538_s29 }
 0x15d   : > { %1380 = vrot.lane.b32.xlu0 %v6737_v24, %s6538_s29  ;;  %v7279_v25 = vpop.permute.xlu2 %1254 }
 0x15e   : > { %12629 = vst [vmem:[#allocation111_spill] sm:$0xff] %v7279_v25  ;;  %v7281_v21 = vpop.permute.xlu1 %1234  ;;  %v7577_v25 = vld [vmem:[%s6620_s25 + $0xcd] sm:$0xff] }
 0x15f   : > { %12630 = vst [vmem:[#allocation112_spill] sm:$0xff] %v7281_v21  ;;  %v7283_v26 = vpop.permute.xlu0 %1232  ;;  %v7441_v21 = vld [vmem:[%s6620_s25 + $0x28e] sm:$0xff] }
 0x160   : > { %12631 = vst [vmem:[#allocation113_spill] sm:$0xff] %v7283_v26  ;;  %v12702_v26 = vld [vmem:[#allocation68_spill] sm:$0xff] }
 0x163   : > { %1390 = vrot.lane.b32.xlu2 %v6768_v31, %s6538_s29 }
 0x164   : > { %1388 = vrot.lane.b32.xlu1 %v6771_v32, %s6538_s29 }
 0x165   : > { %1386 = vrot.lane.b32.xlu0 %v6752_v27, %s6538_s29  ;;  %v7291_v28 = vpop.permute.xlu2 %1260 }
 0x166   : > { %12632 = vst [vmem:[#allocation114_spill] sm:$0xff] %v7291_v28  ;;  %v7293_v29 = vpop.permute.xlu1 %1240  ;;  %v5716_v28 = vld [vmem:[%s6620_s25 + $0x104] sm:$0xff] }
 0x167   : > { %12633 = vst [vmem:[#allocation115_spill] sm:$0xff] %v7293_v29  ;;  %v7295_v24 = vpop.permute.xlu0 %1238  ;;  %v7679_v29 = vld [vmem:[%s6620_s25 + $0x1cd] sm:$0xff] }
 0x168   : > { %12634 = vst [vmem:[#allocation116_spill] sm:$0xff] %v7295_v24  ;;  %v7724_v24 = vld [vmem:[%s6620_s25 + $0x225] sm:$0xff] }
 0x16b   : > { %1460 = vrot.lane.b32.xlu2 %v6782_v34, %s6539_s30 }
 0x16c   : > { %1394 = vrot.lane.b32.xlu1 %v7298_v6, %s6538_s29 }
 0x16d   : > { %1392 = vrot.lane.b32.xlu0 %v7301_v50, %s6538_s29  ;;  %v7309_v27 = vpop.permute.xlu2 %1266 }
 0x16e   : > { %12635 = vst [vmem:[#allocation117_spill] sm:$0xff] %v7309_v27  ;;  %v7311_v31 = vpop.permute.xlu1 %1246  ;;  %v12662_v27 = vld [vmem:[#allocation28_spill] sm:$0xff] }
 0x16f   : > { %12636 = vst [vmem:[#allocation118_spill] sm:$0xff] %v7311_v31  ;;  %v7313_v32 = vpop.permute.xlu0 %1244  ;;  %v12701_v31 = vld [vmem:[#allocation66_spill] sm:$0xff] }
 0x170   : > { %12637 = vst [vmem:[#allocation119_spill] sm:$0xff] %v7313_v32  ;;  %v5728_v32 = vld [vmem:[%s6620_s25 + $0x1c4] sm:$0xff] }
 0x173   : > { %1466 = vrot.lane.b32.xlu2 %v6796_v38, %s6539_s30 }
 0x174   : > { %1464 = vrot.lane.b32.xlu1 %v6799_v39, %s6539_s30 }
 0x175   : > { %1462 = vrot.lane.b32.xlu0 %v6779_v33, %s6539_s30  ;;  %v7321_v34 = vpop.permute.xlu2 %1336 }
 0x176   : > { %12638 = vst [vmem:[#allocation120_spill] sm:$0xff] %v7321_v34  ;;  %v7323_v8 = vpop.permute.xlu1 %1252  ;;  %v8069_v34 = vld [vmem:[%s6620_s25 + $0x1ea] sm:$0xff] }
 0x177   : > { %12639 = vst [vmem:[#allocation121_spill] sm:$0xff] %v7323_v8  ;;  %v7325_v44 = vpop.permute.xlu0 %1250  ;;  %v7682_v8 = vld [vmem:[%s6620_s25 + $0x1c5] sm:$0xff] }
 0x178   : > { %12640 = vst [vmem:[#allocation122_spill] sm:$0xff] %v7325_v44  ;;  %v12668_v44 = vld [vmem:[#allocation33_spill] sm:$0xff] }
 0x17b   : > { %1472 = vrot.lane.b32.xlu2 %v6813_v42, %s6539_s30 }
 0x17c   : > { %1470 = vrot.lane.b32.xlu1 %v6816_v43, %s6539_s30 }
 0x17d   : > { %1468 = vrot.lane.b32.xlu0 %v6793_v37, %s6539_s30  ;;  %v7333_v38 = vpop.permute.xlu2 %1342 }
 0x17e   : > { %12641 = vst [vmem:[#allocation123_spill] sm:$0xff] %v7333_v38  ;;  %v7335_v39 = vpop.permute.xlu1 %1258 }
 0x17f   : > { %12642 = vst [vmem:[#allocation124_spill] sm:$0xff] %v7335_v39  ;;  %v7337_v33 = vpop.permute.xlu0 %1256  ;;  %v5725_v39 = vld [vmem:[%s6620_s25 + $0x18c] sm:$0xff] }
 0x180   : > { %12643 = vst [vmem:[#allocation125_spill] sm:$0xff] %v7337_v33 }
 0x183   : > { %1478 = vrot.lane.b32.xlu2 %v6830_v46, %s6539_s30 }
 0x184   : > { %1476 = vrot.lane.b32.xlu1 %v6833_v47, %s6539_s30 }
 0x185   : > { %1474 = vrot.lane.b32.xlu0 %v6810_v41, %s6539_s30  ;;  %v7345_v42 = vpop.permute.xlu2 %1348 }
 0x186   : > { %12644 = vst [vmem:[#allocation126_spill] sm:$0xff] %v7345_v42  ;;  %v7347_v43 = vpop.permute.xlu1 %1264  ;;  %v8072_v42 = vld [vmem:[%s6620_s25 + $0x1e2] sm:$0xff] }
 0x187   : > { %12645 = vst [vmem:[#allocation127_spill] sm:$0xff] %v7347_v43  ;;  %v7349_v37 = vpop.permute.xlu0 %1262 }
 0x188   : > { %12646 = vst [vmem:[#allocation128_spill] sm:$0xff] %v7349_v37 }
 0x18b   : > { %1484 = vrot.lane.b32.xlu2 %v6851_v52, %s6539_s30 }
 0x18c   : > { %1482 = vrot.lane.b32.xlu1 %v6854_v53, %s6539_s30 }
 0x18d   : > { %1480 = vrot.lane.b32.xlu0 %v6827_v45, %s6539_s30  ;;  %v7357_v46 = vpop.permute.xlu2 %1354 }
 0x18e   : > { %12647 = vst [vmem:[#allocation129_spill] sm:$0xff] %v7357_v46  ;;  %v7359_v47 = vpop.permute.xlu1 %1334  ;;  %v7700_v46 = vld [vmem:[%s6620_s25 + $0x205] sm:$0xff] }
 0x18f   : > { %12648 = vst [vmem:[#allocation130_spill] sm:$0xff] %v7359_v47  ;;  %v7361_v41 = vpop.permute.xlu0 %1332 }
 0x190   : > { %12649 = vst [vmem:[#allocation131_spill] sm:$0xff] %v7361_v41  ;;  %v6377_v41 = vld [vmem:[%s6620_s25 + $0xad] sm:$0xff] }
 0x193   : > { %1490 = vrot.lane.b32.xlu2 %v6872_v58, %s6539_s30 }
 0x194   : > { %1488 = vrot.lane.b32.xlu1 %v6875_v59, %s6539_s30 }
 0x195   : > { %1486 = vrot.lane.b32.xlu0 %v6848_v51, %s6539_s30  ;;  %v7369_v52 = vpop.permute.xlu2 %1360 }
 0x196   : > { %12650 = vst [vmem:[#allocation132_spill] sm:$0xff] %v7369_v52  ;;  %v7371_v53 = vpop.permute.xlu1 %1340  ;;  %v12686_v52 = vld [vmem:[#allocation52_spill] sm:$0xff] }
 0x197   : > { %12651 = vst [vmem:[#allocation133_spill] sm:$0xff] %v7371_v53  ;;  %v7373_v45 = vpop.permute.xlu0 %1338  ;;  %v5769_v53 = vld [vmem:[%s6620_s25 + $0x24d] sm:$0xff] }
 0x198   : > { %12652 = vst [vmem:[#allocation134_spill] sm:$0xff] %v7373_v45  ;;  %v8003_v45 = vld [vmem:[%s6620_s25 + $0x16a] sm:$0xff] }
 0x19b   : > { %1496 = vrot.lane.b32.xlu2 %v6893_v2, %s6539_s30 }
 0x19c   : > { %1494 = vrot.lane.b32.xlu1 %v6896_v5, %s6539_s30 }
 0x19d   : > { %1492 = vrot.lane.b32.xlu0 %v6869_v57, %s6539_s30  ;;  %v7381_v58 = vpop.permute.xlu2 %1366 }
 0x19e   : > { %12653 = vst [vmem:[#allocation135_spill] sm:$0xff] %v7381_v58  ;;  %v7383_v59 = vpop.permute.xlu1 %1346  ;;  %v7721_v58 = vld [vmem:[%s6620_s25 + $0x22d] sm:$0xff] }
 0x19f   : > { %12654 = vst [vmem:[#allocation136_spill] sm:$0xff] %v7383_v59  ;;  %v7385_v51 = vpop.permute.xlu0 %1344 }
 0x1a0   : > { %12655 = vst [vmem:[#allocation137_spill] sm:$0xff] %v7385_v51  ;;  %v7622_v51 = vld [vmem:[%s6620_s25 + $0x125] sm:$0xff] }
 0x1a3   : > { %1502 = vrot.lane.b32.xlu2 %v6914_v62, %s6539_s30 }
 0x1a4   : > { %1500 = vrot.lane.b32.xlu1 %v6917_v40, %s6539_s30 }
 0x1a5   : > { %1498 = vrot.lane.b32.xlu0 %v6890_v63, %s6539_s30  ;;  %v7393_v2 = vpop.permute.xlu2 %1372 }
 0x1a6   : > { %12656 = vst [vmem:[#allocation138_spill] sm:$0xff] %v7393_v2  ;;  %v7395_v5 = vpop.permute.xlu1 %1352 }
 0x1a7   : > { %12657 = vst [vmem:[#allocation139_spill] sm:$0xff] %v7395_v5  ;;  %v7397_v57 = vpop.permute.xlu0 %1350  ;;  %v5768_v5 = vld [vmem:[%s6620_s25 + $0x245] sm:$0xff] }
 0x1a8   : > { %12658 = vst [vmem:[#allocation140_spill] sm:$0xff] %v7397_v57 }
 0x1ab   : > { %1508 = vrot.lane.b32.xlu2 %v6935_v35, %s6539_s30  ;;  %v12663_v35 = vld [vmem:[#allocation29_spill] sm:$0xff] }
 0x1ac   : > { %1506 = vrot.lane.b32.xlu1 %v6938_v61, %s6539_s30  ;;  %v12664_v61 = vld [vmem:[#allocation23_spill] sm:$0xff] }
 0x1ad   : > { %1504 = vrot.lane.b32.xlu0 %v6911_v54, %s6539_s30  ;;  %v7405_v40 = vpop.permute.xlu2 %1378 }
 0x1ae   : > { %12659 = vst [vmem:[#allocation141_spill] sm:$0xff] %v7405_v40  ;;  %v7407_v62 = vpop.permute.xlu1 %1358  ;;  %v7424_v40 = vld [vmem:[%s6620_s25 + $0x286] sm:$0xff] }
 0x1af   : > { %12660 = vst [vmem:[#allocation142_spill] sm:$0xff] %v7407_v62  ;;  %v7409_v63 = vpop.permute.xlu0 %1356  ;;  %v5722_v62 = vld [vmem:[%s6620_s25 + $0x164] sm:$0xff] }
 0x1b0   : > { %12661 = vst [vmem:[#allocation143_spill] sm:$0xff] %v7409_v63  ;;  %v7640_v63 = vld [vmem:[%s6620_s25 + $0x165] sm:$0xff] }
 0x1b3   : > { %1514 = vrot.lane.b32.xlu2 %v12662_v27, %s6539_s30  ;;  %v12669_v27 = vld [vmem:[#allocation27_spill] sm:$0xff] }
 0x1b4   : > { %1512 = vrot.lane.b32.xlu1 %v12663_v35, %s6539_s30 }
 0x1b5   : > { %1510 = vrot.lane.b32.xlu0 %v12664_v61, %s6539_s30  ;;  %v7417_v43 = vpop.permute.xlu2 %1384 }
 0x1b6   : > { %12665 = vst [vmem:[#allocation28_spill] sm:$0xff] %v7417_v43  ;;  %v7419_v54 = vpop.permute.xlu1 %1364 }
 0x1b7   : > { %12666 = vst [vmem:[#allocation29_spill] sm:$0xff] %v7419_v54  ;;  %v7421_v37 = vpop.permute.xlu0 %1362  ;;  %v5792_v54 = vld [vmem:[%s6620_s25 + $0x1c6] sm:$0xff] }
 0x1b8   : > { %12667 = vst [vmem:[#allocation23_spill] sm:$0xff] %v7421_v37  ;;  %v5712_v37 = vld [vmem:[%s6620_s25 + $0xc4] sm:$0xff] }
 0x1bb   : > { %1520 = vrot.lane.b32.xlu2 %v7424_v40, %s6539_s30 }
 0x1bc   : > { %1518 = vrot.lane.b32.xlu1 %v12668_v44, %s6539_s30 }
 0x1bd   : > { %1516 = vrot.lane.b32.xlu0 %v12669_v27, %s6539_s30  ;;  %v7432_v35 = vpop.permute.xlu2 %1390 }
 0x1be   : > { %12670 = vst [vmem:[#allocation33_spill] sm:$0xff] %v7432_v35  ;;  %v7434_v61 = vpop.permute.xlu1 %1370 }
 0x1bf   : > { %12671 = vst [vmem:[#allocation27_spill] sm:$0xff] %v7434_v61  ;;  %v7436_v22 = vpop.permute.xlu0 %1368 }
 0x1c0   : > { %12672 = vst [vmem:[#allocation144_spill] sm:$0xff] %v7436_v22 }
 0x1c3   : > { %1590 = vrot.lane.b32.xlu2 %v5713_v49, %s6540_s3  ;;  %v12677_v49 = vld [vmem:[#allocation37_spill] sm:$0xff] }
 0x1c4   : > { %1588 = vrot.lane.b32.xlu1 %v5712_v37, %s6540_s3 }
 0x1c5   : > { %1522 = vrot.lane.b32.xlu0 %v7441_v21, %s6539_s30  ;;  %v7447_v44 = vpop.permute.xlu2 %1460 }
 0x1c6   : > { %12673 = vst [vmem:[#allocation145_spill] sm:$0xff] %v7447_v44  ;;  %v7449_v27 = vpop.permute.xlu1 %1376 }
 0x1c7   : > { %12674 = vst [vmem:[#allocation146_spill] sm:$0xff] %v7449_v27  ;;  %v7451_v35 = vpop.permute.xlu0 %1374  ;;  %v5719_v27 = vld [vmem:[%s6620_s25 + $0x12c] sm:$0xff] }
 0x1c8   : > { %12675 = vst [vmem:[#allocation147_spill] sm:$0xff] %v7451_v35  ;;  %v12681_v35 = vld [vmem:[#allocation47_spill] sm:$0xff] }
 0x1cb   : > { %1596 = vrot.lane.b32.xlu2 %v5716_v28, %s6540_s3  ;;  %v12682_v28 = vld [vmem:[#allocation41_spill] sm:$0xff] }
 0x1cc   : > { %1594 = vrot.lane.b32.xlu1 %v12676_v3, %s6540_s3 }
 0x1cd   : > { %1592 = vrot.lane.b32.xlu0 %v12677_v49, %s6540_s3  ;;  %v7459_v37 = vpop.permute.xlu2 %1466 }
 0x1ce   : > { %12678 = vst [vmem:[#allocation42_spill] sm:$0xff] %v7459_v37  ;;  %v7461_v43 = vpop.permute.xlu1 %1382 }
 0x1cf   : > { %12679 = vst [vmem:[#allocation37_spill] sm:$0xff] %v7461_v43  ;;  %v7463_v2 = vpop.permute.xlu0 %1380  ;;  %v5742_v43 = vld [vmem:[%s6620_s25 + $0x2a4] sm:$0xff] }
 0x1d0   : > { %12680 = vst [vmem:[#allocation148_spill] sm:$0xff] %v7463_v2 }
 0x1d3   : > { %1602 = vrot.lane.b32.xlu2 %v5719_v27, %s6540_s3  ;;  %v12687_v27 = vld [vmem:[#allocation46_spill] sm:$0xff] }
 0x1d4   : > { %1600 = vrot.lane.b32.xlu1 %v12681_v35, %s6540_s3 }
 0x1d5   : > { %1598 = vrot.lane.b32.xlu0 %v12682_v28, %s6540_s3  ;;  %v7471_v3 = vpop.permute.xlu2 %1472 }
 0x1d6   : > { %12683 = vst [vmem:[#allocation47_spill] sm:$0xff] %v7471_v3  ;;  %v7473_v59 = vpop.permute.xlu1 %1388  ;;  %v7619_v3 = vld [vmem:[%s6620_s25 + $0x12d] sm:$0xff] }
 0x1d7   : > { %12684 = vst [vmem:[#allocation41_spill] sm:$0xff] %v7473_v59  ;;  %v7475_v49 = vpop.permute.xlu0 %1386  ;;  %v12691_v59 = vld [vmem:[#allocation57_spill] sm:$0xff] }
 0x1d8   : > { %12685 = vst [vmem:[#allocation149_spill] sm:$0xff] %v7475_v49 }
 0x1db   : > { %1608 = vrot.lane.b32.xlu2 %v5722_v62, %s6540_s3  ;;  %v12692_v62 = vld [vmem:[#allocation51_spill] sm:$0xff] }
 0x1dc   : > { %1606 = vrot.lane.b32.xlu1 %v12686_v52, %s6540_s3 }
 0x1dd   : > { %1604 = vrot.lane.b32.xlu0 %v12687_v27, %s6540_s3  ;;  %v7483_v35 = vpop.permute.xlu2 %1478 }
 0x1de   : > { %12688 = vst [vmem:[#allocation52_spill] sm:$0xff] %v7483_v35  ;;  %v7485_v33 = vpop.permute.xlu1 %1394  ;;  %v7988_v35 = vld [vmem:[%s6620_s25 + $0x122] sm:$0xff] }
 0x1df   : > { %12689 = vst [vmem:[#allocation46_spill] sm:$0xff] %v7485_v33  ;;  %v7487_v28 = vpop.permute.xlu0 %1392  ;;  %v12696_v33 = vld [vmem:[#allocation62_spill] sm:$0xff] }
 0x1e0   : > { %12690 = vst [vmem:[#allocation150_spill] sm:$0xff] %v7487_v28 }
 0x1e3   : > { %1614 = vrot.lane.b32.xlu2 %v5725_v39, %s6540_s3  ;;  %v12697_v39 = vld [vmem:[#allocation56_spill] sm:$0xff] }
 0x1e4   : > { %1612 = vrot.lane.b32.xlu1 %v12691_v59, %s6540_s3 }
 0x1e5   : > { %1610 = vrot.lane.b32.xlu0 %v12692_v62, %s6540_s3  ;;  %v7495_v49 = vpop.permute.xlu2 %1484 }
 0x1e6   : > { %12693 = vst [vmem:[#allocation57_spill] sm:$0xff] %v7495_v49  ;;  %v7497_v52 = vpop.permute.xlu1 %1464 }
 0x1e7   : > { %12694 = vst [vmem:[#allocation51_spill] sm:$0xff] %v7497_v52  ;;  %v7499_v27 = vpop.permute.xlu0 %1462  ;;  %v8051_v52 = vld [vmem:[%s6620_s25 + $0x1aa] sm:$0xff] }
 0x1e8   : > { %12695 = vst [vmem:[#allocation151_spill] sm:$0xff] %v7499_v27  ;;  %v5840_v27 = vld [vmem:[%s6620_s25 + $0x45] sm:$0xff] }
 0x1eb   : > { %1620 = vrot.lane.b32.xlu2 %v5728_v32, %s6540_s3  ;;  %v12703_v32 = vld [vmem:[#allocation61_spill] sm:$0xff] }
 0x1ec   : > { %1618 = vrot.lane.b32.xlu1 %v12696_v33, %s6540_s3 }
 0x1ed   : > { %1616 = vrot.lane.b32.xlu0 %v12697_v39, %s6540_s3  ;;  %v7507_v28 = vpop.permute.xlu2 %1490 }
 0x1ee   : > { %12698 = vst [vmem:[#allocation62_spill] sm:$0xff] %v7507_v28  ;;  %v7509_v59 = vpop.permute.xlu1 %1470  ;;  %v12707_v28 = vld [vmem:[#allocation72_spill] sm:$0xff] }
 0x1ef   : > { %12699 = vst [vmem:[#allocation56_spill] sm:$0xff] %v7509_v59  ;;  %v7511_v62 = vpop.permute.xlu0 %1468  ;;  %v7685_v59 = vld [vmem:[%s6620_s25 + $0x1ad] sm:$0xff] }
 0x1f0   : > { %12700 = vst [vmem:[#allocation152_spill] sm:$0xff] %v7511_v62 }
 0x1f3   : > { %1626 = vrot.lane.b32.xlu2 %v12701_v31, %s6540_s3  ;;  %v12709_v31 = vld [vmem:[#allocation67_spill] sm:$0xff] }
 0x1f4   : > { %1624 = vrot.lane.b32.xlu1 %v12702_v26, %s6540_s3 }
 0x1f5   : > { %1622 = vrot.lane.b32.xlu0 %v12703_v32, %s6540_s3  ;;  %v7519_v13 = vpop.permute.xlu2 %1496 }
 0x1f6   : > { %12704 = vst [vmem:[#allocation66_spill] sm:$0xff] %v7519_v13  ;;  %v7521_v33 = vpop.permute.xlu1 %1476  ;;  %v7661_v13 = vld [vmem:[%s6620_s25 + $0x18d] sm:$0xff] }
 0x1f7   : > { %12705 = vst [vmem:[#allocation68_spill] sm:$0xff] %v7521_v33  ;;  %v7523_v39 = vpop.permute.xlu0 %1474  ;;  %v8066_v33 = vld [vmem:[%s6620_s25 + $0x202] sm:$0xff] }
 0x1f8   : > { %12706 = vst [vmem:[#allocation61_spill] sm:$0xff] %v7523_v39  ;;  %v12717_v39 = vld [vmem:[#allocation83_spill] sm:$0xff] }
 0x1fb   : > { %1632 = vrot.lane.b32.xlu2 %v12707_v28, %s6540_s3  ;;  %v12713_v28 = vld [vmem:[#allocation73_spill] sm:$0xff] }
 0x1fc   : > { %1630 = vrot.lane.b32.xlu1 %v12708_v7, %s6540_s3 }
 0x1fd   : > { %1628 = vrot.lane.b32.xlu0 %v12709_v31, %s6540_s3  ;;  %v7531_v26 = vpop.permute.xlu2 %1502 }
 0x1fe   : > { %12710 = vst [vmem:[#allocation72_spill] sm:$0xff] %v7531_v26  ;;  %v7533_v32 = vpop.permute.xlu1 %1482 }
 0x1ff   : > { %12711 = vst [vmem:[#allocation74_spill] sm:$0xff] %v7533_v32  ;;  %v7535_v4 = vpop.permute.xlu0 %1480 }
 0x200   : > { %12712 = vst [vmem:[#allocation67_spill] sm:$0xff] %v7535_v4  ;;  %v5770_v4 = vld [vmem:[%s6620_s25 + $0x265] sm:$0xff] }
 0x203   : > { %1638 = vrot.lane.b32.xlu2 %v7136_v36, %s6540_s3  ;;  %v12718_v36 = vld [vmem:[#allocation78_spill] sm:$0xff] }
 0x204   : > { %1636 = vrot.lane.b32.xlu1 %v7142_v55, %s6540_s3 }
 0x205   : > { %1634 = vrot.lane.b32.xlu0 %v12713_v28, %s6540_s3  ;;  %v7543_v7 = vpop.permute.xlu2 %1508 }
 0x206   : > { %12714 = vst [vmem:[#allocation73_spill] sm:$0xff] %v7543_v7  ;;  %v7545_v31 = vpop.permute.xlu1 %1488  ;;  %v7664_v7 = vld [vmem:[%s6620_s25 + $0x185] sm:$0xff] }
 0x207   : > { %12715 = vst [vmem:[#allocation153_spill] sm:$0xff] %v7545_v31  ;;  %v7547_v26 = vpop.permute.xlu0 %1486  ;;  %v5743_v31 = vld [vmem:[%s6620_s25 + $0x2ac] sm:$0xff] }
 0x208   : > { %12716 = vst [vmem:[#allocation154_spill] sm:$0xff] %v7547_v26  ;;  %v7574_v26 = vld [vmem:[%s6620_s25 + $0xe5] sm:$0xff] }
 0x20b   : > { %1644 = vrot.lane.b32.xlu2 %v7160_v56, %s6540_s3  ;;  %v12722_v56 = vld [vmem:[#allocation82_spill] sm:$0xff] }
 0x20c   : > { %1642 = vrot.lane.b32.xlu1 %v12717_v39, %s6540_s3 }
 0x20d   : > { %1640 = vrot.lane.b32.xlu0 %v12718_v36, %s6540_s3  ;;  %v7555_v55 = vpop.permute.xlu2 %1514 }
 0x20e   : > { %12719 = vst [vmem:[#allocation83_spill] sm:$0xff] %v7555_v55  ;;  %v7557_v28 = vpop.permute.xlu1 %1494 }
 0x20f   : > { %12720 = vst [vmem:[#allocation78_spill] sm:$0xff] %v7557_v28  ;;  %v7559_v60 = vpop.permute.xlu0 %1492 }
 0x210   : > { %12721 = vst [vmem:[#allocation155_spill] sm:$0xff] %v7559_v60  ;;  %v5793_v60 = vld [vmem:[%s6620_s25 + $0x1ce] sm:$0xff] }
 0x213   : > { %1650 = vrot.lane.b32.xlu2 %v5743_v31, %s6540_s3 }
 0x214   : > { %1648 = vrot.lane.b32.xlu1 %v5742_v43, %s6540_s3 }
 0x215   : > { %1646 = vrot.lane.b32.xlu0 %v12722_v56, %s6540_s3  ;;  %v7567_v39 = vpop.permute.xlu2 %1520 }
 0x216   : > { %12723 = vst [vmem:[#allocation82_spill] sm:$0xff] %v7567_v39  ;;  %v7569_v36 = vpop.permute.xlu1 %1500  ;;  %v7595_v39 = vld [vmem:[%s6620_s25 + $0x10d] sm:$0xff] }
 0x217   : > { %12724 = vst [vmem:[#allocation156_spill] sm:$0xff] %v7569_v36  ;;  %v7571_v55 = vpop.permute.xlu0 %1498  ;;  %v7598_v36 = vld [vmem:[%s6620_s25 + $0x105] sm:$0xff] }
 0x218   : > { %12725 = vst [vmem:[#allocation157_spill] sm:$0xff] %v7571_v55  ;;  %v7601_v55 = vld [vmem:[%s6620_s25 + $0xed] sm:$0xff] }
 0x21b   : > { %1720 = vrot.lane.b32.xlu2 %v7574_v26, %s6541_s4 }
 0x21c   : > { %1718 = vrot.lane.b32.xlu1 %v7577_v25, %s6541_s4 }
 0x21d   : > { %1716 = vrot.lane.b32.xlu0 %v7580_v1, %s6541_s4  ;;  %v7588_v43 = vpop.permute.xlu2 %1590 }
 0x21e   : > { %12726 = vst [vmem:[#allocation158_spill] sm:$0xff] %v7588_v43  ;;  %v7590_v31 = vpop.permute.xlu1 %1506  ;;  %v5841_v43 = vld [vmem:[%s6620_s25 + $0x4d] sm:$0xff] }
 0x21f   : > { %12727 = vst [vmem:[#allocation159_spill] sm:$0xff] %v7590_v31  ;;  %v7592_v56 = vpop.permute.xlu0 %1504 }
 0x220   : > { %12728 = vst [vmem:[#allocation160_spill] sm:$0xff] %v7592_v56 }
 0x223   : > { %1726 = vrot.lane.b32.xlu2 %v7595_v39, %s6541_s4 }
 0x224   : > { %1724 = vrot.lane.b32.xlu1 %v7598_v36, %s6541_s4 }
 0x225   : > { %1722 = vrot.lane.b32.xlu0 %v7601_v55, %s6541_s4  ;;  %v7609_v31 = vpop.permute.xlu2 %1596 }
 0x226   : > { %12729 = vst [vmem:[#allocation161_spill] sm:$0xff] %v7609_v31  ;;  %v7611_v56 = vpop.permute.xlu1 %1512  ;;  %v7727_v31 = vld [vmem:[%s6620_s25 + $0x20d] sm:$0xff] }
 0x227   : > { %12730 = vst [vmem:[#allocation162_spill] sm:$0xff] %v7611_v56  ;;  %v7613_v61 = vpop.permute.xlu0 %1510 }
 0x228   : > { %12731 = vst [vmem:[#allocation163_spill] sm:$0xff] %v7613_v61 }
 0x22b   : > { %1732 = vrot.lane.b32.xlu2 %v7616_v19, %s6541_s4 }
 0x22c   : > { %1730 = vrot.lane.b32.xlu1 %v7619_v3, %s6541_s4 }
 0x22d   : > { %1728 = vrot.lane.b32.xlu0 %v7622_v51, %s6541_s4  ;;  %v7630_v56 = vpop.permute.xlu2 %1602 }
 0x22e   : > { %12732 = vst [vmem:[#allocation164_spill] sm:$0xff] %v7630_v56  ;;  %v7632_v61 = vpop.permute.xlu1 %1518 }
 0x22f   : > { %12733 = vst [vmem:[#allocation165_spill] sm:$0xff] %v7632_v61  ;;  %v7634_v49 = vpop.permute.xlu0 %1516 }
 0x230   : > { %12734 = vst [vmem:[#allocation166_spill] sm:$0xff] %v7634_v49 }
 0x233   : > { %1738 = vrot.lane.b32.xlu2 %v7637_v17, %s6541_s4 }
 0x234   : > { %1736 = vrot.lane.b32.xlu1 %v7640_v63, %s6541_s4 }
 0x235   : > { %1734 = vrot.lane.b32.xlu0 %v7643_v18, %s6541_s4  ;;  %v7651_v61 = vpop.permute.xlu2 %1608 }
 0x236   : > { %12735 = vst [vmem:[#allocation167_spill] sm:$0xff] %v7651_v61  ;;  %v7653_v49 = vpop.permute.xlu1 %1588 }
 0x237   : > { %12736 = vst [vmem:[#allocation168_spill] sm:$0xff] %v7653_v49  ;;  %v7655_v56 = vpop.permute.xlu0 %1522 }
 0x238   : > { %12737 = vst [vmem:[#allocation169_spill] sm:$0xff] %v7655_v56 }
 0x23b   : > { %1744 = vrot.lane.b32.xlu2 %v7658_v48, %s6541_s4 }
 0x23c   : > { %1742 = vrot.lane.b32.xlu1 %v7661_v13, %s6541_s4 }
 0x23d   : > { %1740 = vrot.lane.b32.xlu0 %v7664_v7, %s6541_s4  ;;  %v7672_v22 = vpop.permute.xlu2 %1614 }
 0x23e   : > { %12738 = vst [vmem:[#allocation170_spill] sm:$0xff] %v7672_v22  ;;  %v7674_v56 = vpop.permute.xlu1 %1594 }
 0x23f   : > { %12739 = vst [vmem:[#allocation171_spill] sm:$0xff] %v7674_v56  ;;  %v7676_v2 = vpop.permute.xlu0 %1592  ;;  %v7985_v56 = vld [vmem:[%s6620_s25 + $0x12a] sm:$0xff] }
 0x240   : > { %12740 = vst [vmem:[#allocation172_spill] sm:$0xff] %v7676_v2  ;;  %v8045_v2 = vld [vmem:[%s6620_s25 + $0x1ca] sm:$0xff] }
 0x243   : > { %1750 = vrot.lane.b32.xlu2 %v7679_v29, %s6541_s4 }
 0x244   : > { %1748 = vrot.lane.b32.xlu1 %v7682_v8, %s6541_s4 }
 0x245   : > { %1746 = vrot.lane.b32.xlu0 %v7685_v59, %s6541_s4  ;;  %v7693_v22 = vpop.permute.xlu2 %1620 }
 0x246   : > { %12741 = vst [vmem:[#allocation173_spill] sm:$0xff] %v7693_v22  ;;  %v7695_v32 = vpop.permute.xlu1 %1600  ;;  %v5789_v22 = vld [vmem:[%s6620_s25 + $0x18e] sm:$0xff] }
 0x247   : > { %12742 = vst [vmem:[#allocation174_spill] sm:$0xff] %v7695_v32  ;;  %v7697_v38 = vpop.permute.xlu0 %1598 }
 0x248   : > { %12743 = vst [vmem:[#allocation175_spill] sm:$0xff] %v7697_v38 }
 0x24b   : > { %1756 = vrot.lane.b32.xlu2 %v7700_v46, %s6541_s4 }
 0x24c   : > { %1754 = vrot.lane.b32.xlu1 %v7703_v12, %s6541_s4 }
 0x24d   : > { %1752 = vrot.lane.b32.xlu0 %v7706_v23, %s6541_s4  ;;  %v7714_v32 = vpop.permute.xlu2 %1626 }
 0x24e   : > { %12744 = vst [vmem:[#allocation176_spill] sm:$0xff] %v7714_v32  ;;  %v7716_v38 = vpop.permute.xlu1 %1606 }
 0x24f   : > { %12745 = vst [vmem:[#allocation177_spill] sm:$0xff] %v7716_v38  ;;  %v7718_v28 = vpop.permute.xlu0 %1604  ;;  %v7982_v38 = vld [vmem:[%s6620_s25 + $0x142] sm:$0xff] }
 0x250   : > { %12746 = vst [vmem:[#allocation178_spill] sm:$0xff] %v7718_v28  ;;  %v8048_v28 = vld [vmem:[%s6620_s25 + $0x1c2] sm:$0xff] }
 0x253   : > { %1762 = vrot.lane.b32.xlu2 %v7721_v58, %s6541_s4 }
 0x254   : > { %1760 = vrot.lane.b32.xlu1 %v7724_v24, %s6541_s4 }
 0x255   : > { %1758 = vrot.lane.b32.xlu0 %v7727_v31, %s6541_s4  ;;  %v7735_v32 = vpop.permute.xlu2 %1632 }
 0x256   : > { %12747 = vst [vmem:[#allocation179_spill] sm:$0xff] %v7735_v32  ;;  %v7737_v61 = vpop.permute.xlu1 %1612 }
 0x257   : > { %12748 = vst [vmem:[#allocation180_spill] sm:$0xff] %v7737_v61  ;;  %v7739_v62 = vpop.permute.xlu0 %1610  ;;  %v5771_v61 = vld [vmem:[%s6620_s25 + $0x26d] sm:$0xff] }
 0x258   : > { %12749 = vst [vmem:[#allocation181_spill] sm:$0xff] %v7739_v62  ;;  %v5777_v62 = vld [vmem:[%s6620_s25 + $0xce] sm:$0xff] }
 0x25b   : > { %1768 = vrot.lane.b32.xlu2 %v5770_v4, %s6541_s4 }
 0x25c   : > { %1766 = vrot.lane.b32.xlu1 %v5769_v53, %s6541_s4 }
 0x25d   : > { %1764 = vrot.lane.b32.xlu0 %v5768_v5, %s6541_s4  ;;  %v7747_v0 = vpop.permute.xlu2 %1638 }
 0x25e   : > { %12750 = vst [vmem:[#allocation182_spill] sm:$0xff] %v7747_v0  ;;  %v7749_v10 = vpop.permute.xlu1 %1618  ;;  %v5774_v0 = vld [vmem:[%s6620_s25 + $0x2a5] sm:$0xff] }
 0x25f   : > { %12751 = vst [vmem:[#allocation183_spill] sm:$0xff] %v7749_v10  ;;  %v7751_v32 = vpop.permute.xlu0 %1616  ;;  %v5776_v10 = vld [vmem:[%s6620_s25 + $0xc6] sm:$0xff] }
 0x260   : > { %12752 = vst [vmem:[#allocation184_spill] sm:$0xff] %v7751_v32  ;;  %v5775_v32 = vld [vmem:[%s6620_s25 + $0x2ad] sm:$0xff] }
 0x263   : > { %1774 = vrot.lane.b32.xlu2 %v7298_v6, %s6541_s4 }
 0x264   : > { %1772 = vrot.lane.b32.xlu1 %v7301_v50, %s6541_s4 }
 0x265   : > { %1770 = vrot.lane.b32.xlu0 %v5771_v61, %s6541_s4  ;;  %v7759_v4 = vpop.permute.xlu2 %1644 }
 0x266   : > { %12753 = vst [vmem:[#allocation185_spill] sm:$0xff] %v7759_v4  ;;  %v7761_v53 = vpop.permute.xlu1 %1624  ;;  %v5779_v4 = vld [vmem:[%s6620_s25 + $0xee] sm:$0xff] }
 0x267   : > { %12754 = vst [vmem:[#allocation186_spill] sm:$0xff] %v7761_v53  ;;  %v7763_v5 = vpop.permute.xlu0 %1622  ;;  %v5778_v53 = vld [vmem:[%s6620_s25 + $0xe6] sm:$0xff] }
 0x268   : > { %12755 = vst [vmem:[#allocation187_spill] sm:$0xff] %v7763_v5  ;;  %v5783_v5 = vld [vmem:[%s6620_s25 + $0x12e] sm:$0xff] }
 0x26b   : > { %1844 = vrot.lane.b32.xlu2 %v5776_v10, %s6542_s5 }
 0x26c   : > { %1778 = vrot.lane.b32.xlu1 %v5775_v32, %s6541_s4 }
 0x26d   : > { %1776 = vrot.lane.b32.xlu0 %v5774_v0, %s6541_s4  ;;  %v7771_v50 = vpop.permute.xlu2 %1650 }
 0x26e   : > { %12756 = vst [vmem:[#allocation188_spill] sm:$0xff] %v7771_v50  ;;  %v7773_v6 = vpop.permute.xlu1 %1630  ;;  %v5782_v50 = vld [vmem:[%s6620_s25 + $0x126] sm:$0xff] }
 0x26f   : > { %12757 = vst [vmem:[#allocation189_spill] sm:$0xff] %v7773_v6  ;;  %v7775_v61 = vpop.permute.xlu0 %1628  ;;  %v5781_v6 = vld [vmem:[%s6620_s25 + $0x10e] sm:$0xff] }
 0x270   : > { %12758 = vst [vmem:[#allocation190_spill] sm:$0xff] %v7775_v61  ;;  %v5780_v61 = vld [vmem:[%s6620_s25 + $0x106] sm:$0xff] }
 0x273   : > { %1850 = vrot.lane.b32.xlu2 %v5779_v4, %s6542_s5 }
 0x274   : > { %1848 = vrot.lane.b32.xlu1 %v5778_v53, %s6542_s5 }
 0x275   : > { %1846 = vrot.lane.b32.xlu0 %v5777_v62, %s6542_s5  ;;  %v7783_v10 = vpop.permute.xlu2 %1720 }
 0x276   : > { %12759 = vst [vmem:[#allocation191_spill] sm:$0xff] %v7783_v10  ;;  %v7785_v0 = vpop.permute.xlu1 %1636  ;;  %v8027_v10 = vld [vmem:[%s6620_s25 + $0x18a] sm:$0xff] }
 0x277   : > { %12760 = vst [vmem:[#allocation192_spill] sm:$0xff] %v7785_v0  ;;  %v7787_v32 = vpop.permute.xlu0 %1634  ;;  %v5785_v0 = vld [vmem:[%s6620_s25 + $0x14e] sm:$0xff] }
 0x278   : > { %12761 = vst [vmem:[#allocation193_spill] sm:$0xff] %v7787_v32  ;;  %v5784_v32 = vld [vmem:[%s6620_s25 + $0x146] sm:$0xff] }
 0x27b   : > { %1856 = vrot.lane.b32.xlu2 %v5782_v50, %s6542_s5 }
 0x27c   : > { %1854 = vrot.lane.b32.xlu1 %v5781_v6, %s6542_s5 }
 0x27d   : > { %1852 = vrot.lane.b32.xlu0 %v5780_v61, %s6542_s5  ;;  %v7795_v4 = vpop.permute.xlu2 %1726 }
 0x27e   : > { %12762 = vst [vmem:[#allocation194_spill] sm:$0xff] %v7795_v4  ;;  %v7797_v62 = vpop.permute.xlu1 %1642  ;;  %v5786_v4 = vld [vmem:[%s6620_s25 + $0x166] sm:$0xff] }
 0x27f   : > { %12763 = vst [vmem:[#allocation195_spill] sm:$0xff] %v7797_v62  ;;  %v7799_v53 = vpop.permute.xlu0 %1640  ;;  %v5788_v62 = vld [vmem:[%s6620_s25 + $0x186] sm:$0xff] }
 0x280   : > { %12764 = vst [vmem:[#allocation196_spill] sm:$0xff] %v7799_v53  ;;  %v5787_v53 = vld [vmem:[%s6620_s25 + $0x16e] sm:$0xff] }
 0x283   : > { %1862 = vrot.lane.b32.xlu2 %v5785_v0, %s6542_s5 }
 0x284   : > { %1860 = vrot.lane.b32.xlu1 %v5784_v32, %s6542_s5 }
 0x285   : > { %1858 = vrot.lane.b32.xlu0 %v5783_v5, %s6542_s5  ;;  %v7807_v50 = vpop.permute.xlu2 %1732 }
 0x286   : > { %12765 = vst [vmem:[#allocation197_spill] sm:$0xff] %v7807_v50  ;;  %v7809_v6 = vpop.permute.xlu1 %1648  ;;  %v8030_v50 = vld [vmem:[%s6620_s25 + $0x182] sm:$0xff] }
 0x287   : > { %12766 = vst [vmem:[#allocation198_spill] sm:$0xff] %v7809_v6  ;;  %v7811_v61 = vpop.permute.xlu0 %1646  ;;  %v5791_v6 = vld [vmem:[%s6620_s25 + $0x1ae] sm:$0xff] }
 0x288   : > { %12767 = vst [vmem:[#allocation199_spill] sm:$0xff] %v7811_v61  ;;  %v5790_v61 = vld [vmem:[%s6620_s25 + $0x1a6] sm:$0xff] }
 0x28b   : > { %1868 = vrot.lane.b32.xlu2 %v5788_v62, %s6542_s5 }
 0x28c   : > { %1866 = vrot.lane.b32.xlu1 %v5787_v53, %s6542_s5 }
 0x28d   : > { %1864 = vrot.lane.b32.xlu0 %v5786_v4, %s6542_s5  ;;  %v7819_v0 = vpop.permute.xlu2 %1738 }
 0x28e   : > { %12768 = vst [vmem:[#allocation200_spill] sm:$0xff] %v7819_v0  ;;  %v7821_v5 = vpop.permute.xlu1 %1718  ;;  %v5794_v0 = vld [vmem:[%s6620_s25 + $0x1e6] sm:$0xff] }
 0x28f   : > { %12769 = vst [vmem:[#allocation201_spill] sm:$0xff] %v7821_v5  ;;  %v7823_v32 = vpop.permute.xlu0 %1716  ;;  %v5842_v5 = vld [vmem:[%s6620_s25 + $0x65] sm:$0xff] }
 0x290   : > { %12770 = vst [vmem:[#allocation202_spill] sm:$0xff] %v7823_v32  ;;  %v5846_v32 = vld [vmem:[%s6620_s25 + $0xa5] sm:$0xff] }
 0x293   : > { %1874 = vrot.lane.b32.xlu2 %v5791_v6, %s6542_s5 }
 0x294   : > { %1872 = vrot.lane.b32.xlu1 %v5790_v61, %s6542_s5 }
 0x295   : > { %1870 = vrot.lane.b32.xlu0 %v5789_v22, %s6542_s5  ;;  %v7831_v62 = vpop.permute.xlu2 %1744 }
 0x296   : > { %12771 = vst [vmem:[#allocation203_spill] sm:$0xff] %v7831_v62  ;;  %v7833_v4 = vpop.permute.xlu1 %1724  ;;  %v5797_v62 = vld [vmem:[%s6620_s25 + $0x20e] sm:$0xff] }
 0x297   : > { %12772 = vst [vmem:[#allocation204_spill] sm:$0xff] %v7833_v4  ;;  %v7835_v53 = vpop.permute.xlu0 %1722  ;;  %v5796_v4 = vld [vmem:[%s6620_s25 + $0x206] sm:$0xff] }
 0x298   : > { %12773 = vst [vmem:[#allocation205_spill] sm:$0xff] %v7835_v53  ;;  %v7967_v53 = vld [vmem:[%s6620_s25 + $0xea] sm:$0xff] }
 0x29b   : > { %1880 = vrot.lane.b32.xlu2 %v5794_v0, %s6542_s5 }
 0x29c   : > { %1878 = vrot.lane.b32.xlu1 %v5793_v60, %s6542_s5 }
 0x29d   : > { %1876 = vrot.lane.b32.xlu0 %v5792_v54, %s6542_s5  ;;  %v7843_v6 = vpop.permute.xlu2 %1750 }
 0x29e   : > { %12774 = vst [vmem:[#allocation206_spill] sm:$0xff] %v7843_v6  ;;  %v7845_v22 = vpop.permute.xlu1 %1730  ;;  %v5798_v6 = vld [vmem:[%s6620_s25 + $0x226] sm:$0xff] }
 0x29f   : > { %12775 = vst [vmem:[#allocation207_spill] sm:$0xff] %v7845_v22  ;;  %v7847_v61 = vpop.permute.xlu0 %1728  ;;  %v5800_v22 = vld [vmem:[%s6620_s25 + $0x246] sm:$0xff] }
 0x2a0   : > { %12776 = vst [vmem:[#allocation208_spill] sm:$0xff] %v7847_v61  ;;  %v5799_v61 = vld [vmem:[%s6620_s25 + $0x22e] sm:$0xff] }
 0x2a3   : > { %1886 = vrot.lane.b32.xlu2 %v5797_v62, %s6542_s5 }
 0x2a4   : > { %1884 = vrot.lane.b32.xlu1 %v5796_v4, %s6542_s5 }
 0x2a5   : > { %1882 = vrot.lane.b32.xlu0 %v5795_v16, %s6542_s5  ;;  %v7855_v60 = vpop.permute.xlu2 %1756 }
 0x2a6   : > { %12777 = vst [vmem:[#allocation209_spill] sm:$0xff] %v7855_v60  ;;  %v7857_v54 = vpop.permute.xlu1 %1736  ;;  %v5803_v60 = vld [vmem:[%s6620_s25 + $0x26e] sm:$0xff] }
 0x2a7   : > { %12778 = vst [vmem:[#allocation210_spill] sm:$0xff] %v7857_v54  ;;  %v7859_v0 = vpop.permute.xlu0 %1734  ;;  %v5802_v54 = vld [vmem:[%s6620_s25 + $0x266] sm:$0xff] }
 0x2a8   : > { %12779 = vst [vmem:[#allocation211_spill] sm:$0xff] %v7859_v0  ;;  %v5801_v0 = vld [vmem:[%s6620_s25 + $0x24e] sm:$0xff] }
 0x2ab   : > { %1892 = vrot.lane.b32.xlu2 %v5800_v22, %s6542_s5 }
 0x2ac   : > { %1890 = vrot.lane.b32.xlu1 %v5799_v61, %s6542_s5 }
 0x2ad   : > { %1888 = vrot.lane.b32.xlu0 %v5798_v6, %s6542_s5  ;;  %v7867_v62 = vpop.permute.xlu2 %1762 }
 0x2ae   : > { %12780 = vst [vmem:[#allocation212_spill] sm:$0xff] %v7867_v62  ;;  %v7869_v4 = vpop.permute.xlu1 %1742  ;;  %v5806_v62 = vld [vmem:[%s6620_s25 + $0x2a6] sm:$0xff] }
 0x2af   : > { %12781 = vst [vmem:[#allocation213_spill] sm:$0xff] %v7869_v4  ;;  %v7871_v16 = vpop.permute.xlu0 %1740  ;;  %v5807_v4 = vld [vmem:[%s6620_s25 + $0x2ae] sm:$0xff] }
 0x2b0   : > { %12782 = vst [vmem:[#allocation214_spill] sm:$0xff] %v7871_v16  ;;  %v5810_v16 = vld [vmem:[%s6620_s25 + $0x62] sm:$0xff] }
 0x2b3   : > { %1898 = vrot.lane.b32.xlu2 %v5803_v60, %s6542_s5 }
 0x2b4   : > { %1896 = vrot.lane.b32.xlu1 %v5802_v54, %s6542_s5 }
 0x2b5   : > { %1894 = vrot.lane.b32.xlu0 %v5801_v0, %s6542_s5  ;;  %v7879_v22 = vpop.permute.xlu2 %1768 }
 0x2b6   : > { %12783 = vst [vmem:[#allocation215_spill] sm:$0xff] %v7879_v22  ;;  %v7881_v6 = vpop.permute.xlu1 %1748  ;;  %v5809_v22 = vld [vmem:[%s6620_s25 + $0x4a] sm:$0xff] }
 0x2b7   : > { %12784 = vst [vmem:[#allocation216_spill] sm:$0xff] %v7881_v6  ;;  %v7883_v61 = vpop.permute.xlu0 %1746  ;;  %v7946_v6 = vld [vmem:[%s6620_s25 + $0xc2] sm:$0xff] }
 0x2b8   : > { %12785 = vst [vmem:[#allocation217_spill] sm:$0xff] %v7883_v61  ;;  %v5808_v61 = vld [vmem:[%s6620_s25 + $0x42] sm:$0xff] }
 0x2bb   : > { %1904 = vrot.lane.b32.xlu2 %v5806_v62, %s6542_s5 }
 0x2bc   : > { %1902 = vrot.lane.b32.xlu1 %v7441_v21, %s6542_s5 }
 0x2bd   : > { %1900 = vrot.lane.b32.xlu0 %v7424_v40, %s6542_s5  ;;  %v7891_v60 = vpop.permute.xlu2 %1774 }
 0x2be   : > { %12786 = vst [vmem:[#allocation218_spill] sm:$0xff] %v7891_v60  ;;  %v7893_v54 = vpop.permute.xlu1 %1754  ;;  %v5812_v60 = vld [vmem:[%s6620_s25 + $0x82] sm:$0xff] }
 0x2bf   : > { %12787 = vst [vmem:[#allocation219_spill] sm:$0xff] %v7893_v54  ;;  %v7895_v0 = vpop.permute.xlu0 %1752  ;;  %v5811_v54 = vld [vmem:[%s6620_s25 + $0x6a] sm:$0xff] }
 0x2c0   : > { %12788 = vst [vmem:[#allocation220_spill] sm:$0xff] %v7895_v0  ;;  %v5813_v0 = vld [vmem:[%s6620_s25 + $0x8a] sm:$0xff] }
 0x2c3   : > { %1974 = vrot.lane.b32.xlu2 %v5809_v22, %s6543_s6 }
 0x2c4   : > { %1972 = vrot.lane.b32.xlu1 %v5808_v61, %s6543_s6 }
 0x2c5   : > { %1906 = vrot.lane.b32.xlu0 %v5807_v4, %s6542_s5  ;;  %v7903_v21 = vpop.permute.xlu2 %1844 }
 0x2c6   : > { %12789 = vst [vmem:[#allocation221_spill] sm:$0xff] %v7903_v21  ;;  %v7905_v40 = vpop.permute.xlu1 %1760  ;;  %v5843_v21 = vld [vmem:[%s6620_s25 + $0x6d] sm:$0xff] }
 0x2c7   : > { %12790 = vst [vmem:[#allocation222_spill] sm:$0xff] %v7905_v40  ;;  %v7907_v62 = vpop.permute.xlu0 %1758  ;;  %v7922_v40 = vld [vmem:[%s6620_s25 + $0xaa] sm:$0xff] }
 0x2c8   : > { %12791 = vst [vmem:[#allocation223_spill] sm:$0xff] %v7907_v62  ;;  %v7925_v62 = vld [vmem:[%s6620_s25 + $0xa2] sm:$0xff] }
 0x2cb   : > { %1980 = vrot.lane.b32.xlu2 %v5812_v60, %s6543_s6 }
 0x2cc   : > { %1978 = vrot.lane.b32.xlu1 %v5811_v54, %s6543_s6 }
 0x2cd   : > { %1976 = vrot.lane.b32.xlu0 %v5810_v16, %s6543_s6  ;;  %v7915_v22 = vpop.permute.xlu2 %1850 }
 0x2ce   : > { %12792 = vst [vmem:[#allocation224_spill] sm:$0xff] %v7915_v22  ;;  %v7917_v4 = vpop.permute.xlu1 %1766  ;;  %v7964_v22 = vld [vmem:[%s6620_s25 + $0x102] sm:$0xff] }
 0x2cf   : > { %12793 = vst [vmem:[#allocation225_spill] sm:$0xff] %v7917_v4  ;;  %v7919_v61 = vpop.permute.xlu0 %1764  ;;  %v7940_v4 = vld [vmem:[%s6620_s25 + $0xe2] sm:$0xff] }
 0x2d0   : > { %12794 = vst [vmem:[#allocation226_spill] sm:$0xff] %v7919_v61  ;;  %v7943_v61 = vld [vmem:[%s6620_s25 + $0xca] sm:$0xff] }
 0x2d3   : > { %1986 = vrot.lane.b32.xlu2 %v7922_v40, %s6543_s6 }
 0x2d4   : > { %1984 = vrot.lane.b32.xlu1 %v7925_v62, %s6543_s6 }
 0x2d5   : > { %1982 = vrot.lane.b32.xlu0 %v5813_v0, %s6543_s6  ;;  %v7933_v16 = vpop.permute.xlu2 %1856 }
 0x2d6   : > { %12795 = vst [vmem:[#allocation227_spill] sm:$0xff] %v7933_v16  ;;  %v7935_v60 = vpop.permute.xlu1 %1772  ;;  %v7961_v16 = vld [vmem:[%s6620_s25 + $0x10a] sm:$0xff] }
 0x2d7   : > { %12796 = vst [vmem:[#allocation228_spill] sm:$0xff] %v7935_v60  ;;  %v7937_v54 = vpop.permute.xlu0 %1770 }
 0x2d8   : > { %12797 = vst [vmem:[#allocation229_spill] sm:$0xff] %v7937_v54 }
 0x2db   : > { %1992 = vrot.lane.b32.xlu2 %v7940_v4, %s6543_s6 }
 0x2dc   : > { %1990 = vrot.lane.b32.xlu1 %v7943_v61, %s6543_s6 }
 0x2dd   : > { %1988 = vrot.lane.b32.xlu0 %v7946_v6, %s6543_s6  ;;  %v7954_v0 = vpop.permute.xlu2 %1862 }
 0x2de   : > { %12798 = vst [vmem:[#allocation230_spill] sm:$0xff] %v7954_v0  ;;  %v7956_v60 = vpop.permute.xlu1 %1778 }
 0x2df   : > { %12799 = vst [vmem:[#allocation231_spill] sm:$0xff] %v7956_v60  ;;  %v7958_v54 = vpop.permute.xlu0 %1776 }
 0x2e0   : > { %12800 = vst [vmem:[#allocation232_spill] sm:$0xff] %v7958_v54 }
 0x2e3   : > { %1998 = vrot.lane.b32.xlu2 %v7961_v16, %s6543_s6 }
 0x2e4   : > { %1996 = vrot.lane.b32.xlu1 %v7964_v22, %s6543_s6 }
 0x2e5   : > { %1994 = vrot.lane.b32.xlu0 %v7967_v53, %s6543_s6  ;;  %v7975_v60 = vpop.permute.xlu2 %1868 }
 0x2e6   : > { %12801 = vst [vmem:[#allocation233_spill] sm:$0xff] %v7975_v60  ;;  %v7977_v54 = vpop.permute.xlu1 %1848 }
 0x2e7   : > { %12802 = vst [vmem:[#allocation234_spill] sm:$0xff] %v7977_v54  ;;  %v7979_v0 = vpop.permute.xlu0 %1846  ;;  %v8024_v54 = vld [vmem:[%s6620_s25 + $0x1a2] sm:$0xff] }
 0x2e8   : > { %12803 = vst [vmem:[#allocation235_spill] sm:$0xff] %v7979_v0  ;;  %v8093_v0 = vld [vmem:[%s6620_s25 + $0x20a] sm:$0xff] }
 0x2eb   : > { %2004 = vrot.lane.b32.xlu2 %v7982_v38, %s6543_s6 }
 0x2ec   : > { %2002 = vrot.lane.b32.xlu1 %v7985_v56, %s6543_s6 }
 0x2ed   : > { %2000 = vrot.lane.b32.xlu0 %v7988_v35, %s6543_s6  ;;  %v7996_v60 = vpop.permute.xlu2 %1874 }
 0x2ee   : > { %12804 = vst [vmem:[#allocation236_spill] sm:$0xff] %v7996_v60  ;;  %v7998_v37 = vpop.permute.xlu1 %1854 }
 0x2ef   : > { %12805 = vst [vmem:[#allocation237_spill] sm:$0xff] %v7998_v37  ;;  %v8000_v57 = vpop.permute.xlu0 %1852 }
 0x2f0   : > { %12806 = vst [vmem:[#allocation238_spill] sm:$0xff] %v8000_v57 }
 0x2f3   : > { %2010 = vrot.lane.b32.xlu2 %v8003_v45, %s6543_s6 }
 0x2f4   : > { %2008 = vrot.lane.b32.xlu1 %v8006_v20, %s6543_s6 }
 0x2f5   : > { %2006 = vrot.lane.b32.xlu0 %v8009_v14, %s6543_s6  ;;  %v8017_v60 = vpop.permute.xlu2 %1880 }
 0x2f6   : > { %12807 = vst [vmem:[#allocation239_spill] sm:$0xff] %v8017_v60  ;;  %v8019_v37 = vpop.permute.xlu1 %1860 }
 0x2f7   : > { %12808 = vst [vmem:[#allocation240_spill] sm:$0xff] %v8019_v37  ;;  %v8021_v57 = vpop.permute.xlu0 %1858 }
 0x2f8   : > { %12809 = vst [vmem:[#allocation241_spill] sm:$0xff] %v8021_v57 }
 0x2fb   : > { %2016 = vrot.lane.b32.xlu2 %v8024_v54, %s6543_s6 }
 0x2fc   : > { %2014 = vrot.lane.b32.xlu1 %v8027_v10, %s6543_s6 }
 0x2fd   : > { %2012 = vrot.lane.b32.xlu0 %v8030_v50, %s6543_s6  ;;  %v8038_v60 = vpop.permute.xlu2 %1886 }
 0x2fe   : > { %12810 = vst [vmem:[#allocation242_spill] sm:$0xff] %v8038_v60  ;;  %v8040_v57 = vpop.permute.xlu1 %1866 }
 0x2ff   : > { %12811 = vst [vmem:[#allocation243_spill] sm:$0xff] %v8040_v57  ;;  %v8042_v37 = vpop.permute.xlu0 %1864 }
 0x300   : > { %12812 = vst [vmem:[#allocation244_spill] sm:$0xff] %v8042_v37 }
 0x303   : > { %2022 = vrot.lane.b32.xlu2 %v8045_v2, %s6543_s6 }
 0x304   : > { %2020 = vrot.lane.b32.xlu1 %v8048_v28, %s6543_s6 }
 0x305   : > { %2018 = vrot.lane.b32.xlu0 %v8051_v52, %s6543_s6  ;;  %v8059_v60 = vpop.permute.xlu2 %1892 }
 0x306   : > { %12813 = vst [vmem:[#allocation245_spill] sm:$0xff] %v8059_v60  ;;  %v8061_v57 = vpop.permute.xlu1 %1872 }
 0x307   : > { %12814 = vst [vmem:[#allocation246_spill] sm:$0xff] %v8061_v57  ;;  %v8063_v37 = vpop.permute.xlu0 %1870 }
 0x308   : > { %12815 = vst [vmem:[#allocation247_spill] sm:$0xff] %v8063_v37 }
 0x30b   : > { %2028 = vrot.lane.b32.xlu2 %v8066_v33, %s6543_s6 }
 0x30c   : > { %2026 = vrot.lane.b32.xlu1 %v8069_v34, %s6543_s6 }
 0x30d   : > { %2024 = vrot.lane.b32.xlu0 %v8072_v42, %s6543_s6  ;;  %v8080_v57 = vpop.permute.xlu2 %1898 }
 0x30e   : > { %12816 = vst [vmem:[#allocation248_spill] sm:$0xff] %v8080_v57  ;;  %v8082_v37 = vpop.permute.xlu1 %1878 }
 0x30f   : > { %12817 = vst [vmem:[#allocation249_spill] sm:$0xff] %v8082_v37  ;;  %v8084_v60 = vpop.permute.xlu0 %1876 }
 0x310   : > { %12818 = vst [vmem:[#allocation250_spill] sm:$0xff] %v8084_v60 }
 0x313   : > { %2034 = vrot.lane.b32.xlu2 %v8087_v9, %s6543_s6 }
 0x314   : > { %2032 = vrot.lane.b32.xlu1 %v8090_v15, %s6543_s6 }
 0x315   : > { %2030 = vrot.lane.b32.xlu0 %v8093_v0, %s6543_s6  ;;  %v8101_v57 = vpop.permute.xlu2 %1904 }
 0x316   : > { %12819 = vst [vmem:[#allocation251_spill] sm:$0xff] %v8101_v57  ;;  %v8103_v37 = vpop.permute.xlu1 %1884 }
 0x317   : > { %12820 = vst [vmem:[#allocation252_spill] sm:$0xff] %v8103_v37  ;;  %v8105_v60 = vpop.permute.xlu0 %1882  ;;  %v5845_v37 = vld [vmem:[%s6620_s25 + $0x8d] sm:$0xff] }
 0x318   : > { %12821 = vst [vmem:[#allocation253_spill] sm:$0xff] %v8105_v60  ;;  %v5844_v60 = vld [vmem:[%s6620_s25 + $0x85] sm:$0xff] }
 0x31b   : > { %2104 = vrot.lane.b32.xlu2 %v5842_v5, %s6544_s7 }
 0x31c   : > { %2102 = vrot.lane.b32.xlu1 %v5841_v43, %s6544_s7 }
 0x31d   : > { %2100 = vrot.lane.b32.xlu0 %v5840_v27, %s6544_s7  ;;  %v8113_v47 = vpop.permute.xlu2 %1974 }
 0x31e   : > { %12822 = vst [vmem:[#allocation254_spill] sm:$0xff] %v8113_v47  ;;  %v8115_v30 = vpop.permute.xlu1 %1890  ;;  %v5847_v47 = vld [vmem:[%s6620_s25 + $0xad] sm:$0xff] }
 0x31f   : > { %12823 = vst [vmem:[#allocation255_spill] sm:$0xff] %v8115_v30  ;;  %v8117_v57 = vpop.permute.xlu0 %1888  ;;  %v5874_v30 = vld [vmem:[%s6620_s25 + $0x68] sm:$0xff] }
 0x320   : > { %12824 = vst [vmem:[#allocation256_spill] sm:$0xff] %v8117_v57  ;;  %v5877_v57 = vld [vmem:[%s6620_s25 + $0x90] sm:$0xff] }
 0x323   : > { %2110 = vrot.lane.b32.xlu2 %v5845_v37, %s6544_s7 }
 0x324   : > { %2108 = vrot.lane.b32.xlu1 %v5844_v60, %s6544_s7 }
 0x325   : > { %2106 = vrot.lane.b32.xlu0 %v5843_v21, %s6544_s7  ;;  %v8125_v5 = vpop.permute.xlu2 %1980 }
 0x326   : > { %12825 = vst [vmem:[#allocation257_spill] sm:$0xff] %v8125_v5  ;;  %v8127_v43 = vpop.permute.xlu1 %1896  ;;  %v8378_v5 = vld [vmem:[%s6620_s25 + $0x1a8] sm:$0xff] }
 0x327   : > { %12826 = vst [vmem:[#allocation258_spill] sm:$0xff] %v8127_v43  ;;  %v8129_v27 = vpop.permute.xlu0 %1894  ;;  %v8309_v43 = vld [vmem:[%s6620_s25 + $0x130] sm:$0xff] }
 0x328   : > { %12827 = vst [vmem:[#allocation259_spill] sm:$0xff] %v8129_v27 }
 0x32b   : > { %2116 = vrot.lane.b32.xlu2 %v7580_v1, %s6544_s7 }
 0x32c   : > { %2114 = vrot.lane.b32.xlu1 %v5847_v47, %s6544_s7 }
 0x32d   : > { %2112 = vrot.lane.b32.xlu0 %v5846_v32, %s6544_s7  ;;  %v8137_v37 = vpop.permute.xlu2 %1986 }
 0x32e   : > { %12828 = vst [vmem:[#allocation260_spill] sm:$0xff] %v8137_v37  ;;  %v8139_v60 = vpop.permute.xlu1 %1902  ;;  %v8312_v37 = vld [vmem:[%s6620_s25 + $0x128] sm:$0xff] }
 0x32f   : > { %12829 = vst [vmem:[#allocation261_spill] sm:$0xff] %v8139_v60  ;;  %v8141_v21 = vpop.permute.xlu0 %1900  ;;  %v5875_v60 = vld [vmem:[%s6620_s25 + $0x70] sm:$0xff] }
 0x330   : > { %12830 = vst [vmem:[#allocation262_spill] sm:$0xff] %v8141_v21  ;;  %v8273_v21 = vld [vmem:[%s6620_s25 + $0xb0] sm:$0xff] }
 0x333   : > { %2122 = vrot.lane.b32.xlu2 %v7601_v55, %s6544_s7 }
 0x334   : > { %2120 = vrot.lane.b32.xlu1 %v7574_v26, %s6544_s7 }
 0x335   : > { %2118 = vrot.lane.b32.xlu0 %v7577_v25, %s6544_s7  ;;  %v8149_v1 = vpop.permute.xlu2 %1992 }
 0x336   : > { %12831 = vst [vmem:[#allocation263_spill] sm:$0xff] %v8149_v1  ;;  %v8151_v47 = vpop.permute.xlu1 %1972 }
 0x337   : > { %12832 = vst [vmem:[#allocation264_spill] sm:$0xff] %v8151_v47  ;;  %v8153_v32 = vpop.permute.xlu0 %1906  ;;  %v9602_v47 = vld [vmem:[%s6620_s25 + $0x1ea] sm:$0xff] }
 0x338   : > { %12833 = vst [vmem:[#allocation265_spill] sm:$0xff] %v8153_v32  ;;  %v5872_v32 = vld [vmem:[%s6620_s25 + $0x48] sm:$0xff] }
 0x33b   : > { %2128 = vrot.lane.b32.xlu2 %v7622_v51, %s6544_s7 }
 0x33c   : > { %2126 = vrot.lane.b32.xlu1 %v7595_v39, %s6544_s7 }
 0x33d   : > { %2124 = vrot.lane.b32.xlu0 %v7598_v36, %s6544_s7  ;;  %v8161_v55 = vpop.permute.xlu2 %1998 }
 0x33e   : > { %12834 = vst [vmem:[#allocation266_spill] sm:$0xff] %v8161_v55  ;;  %v8163_v26 = vpop.permute.xlu1 %1978  ;;  %v8315_v55 = vld [vmem:[%s6620_s25 + $0x110] sm:$0xff] }
 0x33f   : > { %12835 = vst [vmem:[#allocation267_spill] sm:$0xff] %v8163_v26  ;;  %v8165_v25 = vpop.permute.xlu0 %1976  ;;  %v8417_v26 = vld [vmem:[%s6620_s25 + $0x210] sm:$0xff] }
 0x340   : > { %12836 = vst [vmem:[#allocation268_spill] sm:$0xff] %v8165_v25 }
 0x343   : > { %2134 = vrot.lane.b32.xlu2 %v7643_v18, %s6544_s7 }
 0x344   : > { %2132 = vrot.lane.b32.xlu1 %v7616_v19, %s6544_s7 }
 0x345   : > { %2130 = vrot.lane.b32.xlu0 %v7619_v3, %s6544_s7  ;;  %v8173_v51 = vpop.permute.xlu2 %2004 }
 0x346   : > { %12837 = vst [vmem:[#allocation269_spill] sm:$0xff] %v8173_v51  ;;  %v8175_v39 = vpop.permute.xlu1 %1984  ;;  %v8393_v51 = vld [vmem:[%s6620_s25 + $0x1f0] sm:$0xff] }
 0x347   : > { %12838 = vst [vmem:[#allocation270_spill] sm:$0xff] %v8175_v39  ;;  %v8177_v36 = vpop.permute.xlu0 %1982  ;;  %v8330_v39 = vld [vmem:[%s6620_s25 + $0x168] sm:$0xff] }
 0x348   : > { %12839 = vst [vmem:[#allocation271_spill] sm:$0xff] %v8177_v36  ;;  %v8354_v36 = vld [vmem:[%s6620_s25 + $0x188] sm:$0xff] }
 0x34b   : > { %2140 = vrot.lane.b32.xlu2 %v7664_v7, %s6544_s7 }
 0x34c   : > { %2138 = vrot.lane.b32.xlu1 %v7637_v17, %s6544_s7 }
 0x34d   : > { %2136 = vrot.lane.b32.xlu0 %v7640_v63, %s6544_s7  ;;  %v8185_v18 = vpop.permute.xlu2 %2010 }
 0x34e   : > { %12840 = vst [vmem:[#allocation272_spill] sm:$0xff] %v8185_v18  ;;  %v8187_v19 = vpop.permute.xlu1 %1990 }
 0x34f   : > { %12841 = vst [vmem:[#allocation273_spill] sm:$0xff] %v8187_v19  ;;  %v8189_v3 = vpop.permute.xlu0 %1988  ;;  %v8414_v19 = vld [vmem:[%s6620_s25 + $0x228] sm:$0xff] }
 0x350   : > { %12842 = vst [vmem:[#allocation274_spill] sm:$0xff] %v8189_v3 }
 0x353   : > { %2146 = vrot.lane.b32.xlu2 %v7685_v59, %s6544_s7 }
 0x354   : > { %2144 = vrot.lane.b32.xlu1 %v7658_v48, %s6544_s7 }
 0x355   : > { %2142 = vrot.lane.b32.xlu0 %v7661_v13, %s6544_s7  ;;  %v8197_v17 = vpop.permute.xlu2 %2016 }
 0x356   : > { %12843 = vst [vmem:[#allocation275_spill] sm:$0xff] %v8197_v17  ;;  %v8199_v7 = vpop.permute.xlu1 %1996  ;;  %v5873_v17 = vld [vmem:[%s6620_s25 + $0x50] sm:$0xff] }
 0x357   : > { %12844 = vst [vmem:[#allocation276_spill] sm:$0xff] %v8199_v7  ;;  %v8201_v63 = vpop.permute.xlu0 %1994  ;;  %v8333_v7 = vld [vmem:[%s6620_s25 + $0x150] sm:$0xff] }
 0x358   : > { %12845 = vst [vmem:[#allocation277_spill] sm:$0xff] %v8201_v63  ;;  %v8357_v63 = vld [vmem:[%s6620_s25 + $0x170] sm:$0xff] }
 0x35b   : > { %2152 = vrot.lane.b32.xlu2 %v7706_v23, %s6544_s7 }
 0x35c   : > { %2150 = vrot.lane.b32.xlu1 %v7679_v29, %s6544_s7 }
 0x35d   : > { %2148 = vrot.lane.b32.xlu0 %v7682_v8, %s6544_s7  ;;  %v8209_v48 = vpop.permute.xlu2 %2022 }
 0x35e   : > { %12846 = vst [vmem:[#allocation278_spill] sm:$0xff] %v8209_v48  ;;  %v8211_v59 = vpop.permute.xlu1 %2002 }
 0x35f   : > { %12847 = vst [vmem:[#allocation279_spill] sm:$0xff] %v8211_v59  ;;  %v8213_v13 = vpop.permute.xlu0 %2000  ;;  %v5876_v59 = vld [vmem:[%s6620_s25 + $0x88] sm:$0xff] }
 0x360   : > { %12848 = vst [vmem:[#allocation280_spill] sm:$0xff] %v8213_v13 }
 0x363   : > { %2158 = vrot.lane.b32.xlu2 %v7727_v31, %s6544_s7 }
 0x364   : > { %2156 = vrot.lane.b32.xlu1 %v7700_v46, %s6544_s7 }
 0x365   : > { %2154 = vrot.lane.b32.xlu0 %v7703_v12, %s6544_s7  ;;  %v8221_v23 = vpop.permute.xlu2 %2028 }
 0x366   : > { %12849 = vst [vmem:[#allocation281_spill] sm:$0xff] %v8221_v23  ;;  %v8223_v8 = vpop.permute.xlu1 %2008  ;;  %v8270_v23 = vld [vmem:[%s6620_s25 + $0xc8] sm:$0xff] }
 0x367   : > { %12850 = vst [vmem:[#allocation282_spill] sm:$0xff] %v8223_v8  ;;  %v8225_v29 = vpop.permute.xlu0 %2006  ;;  %v8336_v8 = vld [vmem:[%s6620_s25 + $0x148] sm:$0xff] }
 0x368   : > { %12851 = vst [vmem:[#allocation283_spill] sm:$0xff] %v8225_v29  ;;  %v8372_v29 = vld [vmem:[%s6620_s25 + $0x1c8] sm:$0xff] }
 0x36b   : > { %2228 = vrot.lane.b32.xlu2 %v5872_v32, %s6545_s8 }
 0x36c   : > { %2162 = vrot.lane.b32.xlu1 %v7721_v58, %s6544_s7 }
 0x36d   : > { %2160 = vrot.lane.b32.xlu0 %v7724_v24, %s6544_s7  ;;  %v8233_v12 = vpop.permute.xlu2 %2034 }
 0x36e   : > { %12852 = vst [vmem:[#allocation284_spill] sm:$0xff] %v8233_v12  ;;  %v8235_v46 = vpop.permute.xlu1 %2014  ;;  %v8252_v12 = vld [vmem:[%s6620_s25 + $0xa8] sm:$0xff] }
 0x36f   : > { %12853 = vst [vmem:[#allocation285_spill] sm:$0xff] %v8235_v46  ;;  %v8237_v31 = vpop.permute.xlu0 %2012  ;;  %v8288_v46 = vld [vmem:[%s6620_s25 + $0x108] sm:$0xff] }
 0x370   : > { %12854 = vst [vmem:[#allocation286_spill] sm:$0xff] %v8237_v31  ;;  %v8294_v31 = vld [vmem:[%s6620_s25 + $0xe8] sm:$0xff] }
 0x373   : > { %2234 = vrot.lane.b32.xlu2 %v5875_v60, %s6545_s8 }
 0x374   : > { %2232 = vrot.lane.b32.xlu1 %v5874_v30, %s6545_s8 }
 0x375   : > { %2230 = vrot.lane.b32.xlu0 %v5873_v17, %s6545_s8  ;;  %v8245_v58 = vpop.permute.xlu2 %2104 }
 0x376   : > { %12855 = vst [vmem:[#allocation287_spill] sm:$0xff] %v8245_v58  ;;  %v8247_v24 = vpop.permute.xlu1 %2020  ;;  %v8420_v58 = vld [vmem:[%s6620_s25 + $0x208] sm:$0xff] }
 0x377   : > { %12856 = vst [vmem:[#allocation288_spill] sm:$0xff] %v8247_v24  ;;  %v8249_v32 = vpop.permute.xlu0 %2018 }
 0x378   : > { %12857 = vst [vmem:[#allocation289_spill] sm:$0xff] %v8249_v32  ;;  %v8267_v32 = vld [vmem:[%s6620_s25 + $0xd0] sm:$0xff] }
 0x37b   : > { %2240 = vrot.lane.b32.xlu2 %v8252_v12, %s6545_s8 }
 0x37c   : > { %2238 = vrot.lane.b32.xlu1 %v5877_v57, %s6545_s8 }
 0x37d   : > { %2236 = vrot.lane.b32.xlu0 %v5876_v59, %s6545_s8  ;;  %v8260_v30 = vpop.permute.xlu2 %2110 }
 0x37e   : > { %12858 = vst [vmem:[#allocation290_spill] sm:$0xff] %v8260_v30  ;;  %v8262_v60 = vpop.permute.xlu1 %2026 }
 0x37f   : > { %12859 = vst [vmem:[#allocation291_spill] sm:$0xff] %v8262_v60  ;;  %v8264_v17 = vpop.permute.xlu0 %2024  ;;  %v8291_v60 = vld [vmem:[%s6620_s25 + $0xf0] sm:$0xff] }
 0x380   : > { %12860 = vst [vmem:[#allocation292_spill] sm:$0xff] %v8264_v17 }
 0x383   : > { %2246 = vrot.lane.b32.xlu2 %v8267_v32, %s6545_s8 }
 0x384   : > { %2244 = vrot.lane.b32.xlu1 %v8270_v23, %s6545_s8 }
 0x385   : > { %2242 = vrot.lane.b32.xlu0 %v8273_v21, %s6545_s8  ;;  %v8281_v57 = vpop.permute.xlu2 %2116 }
 0x386   : > { %12861 = vst [vmem:[#allocation293_spill] sm:$0xff] %v8281_v57  ;;  %v8283_v59 = vpop.permute.xlu1 %2032  ;;  %v8435_v57 = vld [vmem:[%s6620_s25 + $0x230] sm:$0xff] }
 0x387   : > { %12862 = vst [vmem:[#allocation294_spill] sm:$0xff] %v8283_v59  ;;  %v8285_v13 = vpop.permute.xlu0 %2030 }
 0x388   : > { %12863 = vst [vmem:[#allocation295_spill] sm:$0xff] %v8285_v13 }
 0x38b   : > { %2252 = vrot.lane.b32.xlu2 %v8288_v46, %s6545_s8 }
 0x38c   : > { %2250 = vrot.lane.b32.xlu1 %v8291_v60, %s6545_s8 }
 0x38d   : > { %2248 = vrot.lane.b32.xlu0 %v8294_v31, %s6545_s8  ;;  %v8302_v59 = vpop.permute.xlu2 %2122 }
 0x38e   : > { %12864 = vst [vmem:[#allocation296_spill] sm:$0xff] %v8302_v59  ;;  %v8304_v13 = vpop.permute.xlu1 %2102  ;;  %v8351_v59 = vld [vmem:[%s6620_s25 + $0x190] sm:$0xff] }
 0x38f   : > { %12865 = vst [vmem:[#allocation297_spill] sm:$0xff] %v8304_v13  ;;  %v8306_v17 = vpop.permute.xlu0 %2100  ;;  %v756_v13 = vld [vmem:[%s6620_s25 + $0x12] sm:$0xff] }
 0x390   : > { %12866 = vst [vmem:[#allocation298_spill] sm:$0xff] %v8306_v17  ;;  %v9581_v17 = vld [vmem:[%s6620_s25 + $0x1ca] sm:$0xff] }
 0x393   : > { %2258 = vrot.lane.b32.xlu2 %v8309_v43, %s6545_s8 }
 0x394   : > { %2256 = vrot.lane.b32.xlu1 %v8312_v37, %s6545_s8 }
 0x395   : > { %2254 = vrot.lane.b32.xlu0 %v8315_v55, %s6545_s8  ;;  %v8323_v48 = vpop.permute.xlu2 %2128 }
 0x396   : > { %12867 = vst [vmem:[#allocation299_spill] sm:$0xff] %v8323_v48  ;;  %v8325_v27 = vpop.permute.xlu1 %2108 }
 0x397   : > { %12868 = vst [vmem:[#allocation300_spill] sm:$0xff] %v8325_v27  ;;  %v8327_v18 = vpop.permute.xlu0 %2106  ;;  %v8375_v27 = vld [vmem:[%s6620_s25 + $0x1b0] sm:$0xff] }
 0x398   : > { %12869 = vst [vmem:[#allocation301_spill] sm:$0xff] %v8327_v18  ;;  %v8399_v18 = vld [vmem:[%s6620_s25 + $0x1d0] sm:$0xff] }
 0x39b   : > { %2264 = vrot.lane.b32.xlu2 %v8330_v39, %s6545_s8 }
 0x39c   : > { %2262 = vrot.lane.b32.xlu1 %v8333_v7, %s6545_s8 }
 0x39d   : > { %2260 = vrot.lane.b32.xlu0 %v8336_v8, %s6545_s8  ;;  %v8344_v48 = vpop.permute.xlu2 %2134 }
 0x39e   : > { %12870 = vst [vmem:[#allocation302_spill] sm:$0xff] %v8344_v48  ;;  %v8346_v24 = vpop.permute.xlu1 %2114 }
 0x39f   : > { %12871 = vst [vmem:[#allocation303_spill] sm:$0xff] %v8346_v24  ;;  %v8348_v30 = vpop.permute.xlu0 %2112 }
 0x3a0   : > { %12872 = vst [vmem:[#allocation304_spill] sm:$0xff] %v8348_v30 }
 0x3a3   : > { %2270 = vrot.lane.b32.xlu2 %v8351_v59, %s6545_s8 }
 0x3a4   : > { %2268 = vrot.lane.b32.xlu1 %v8354_v36, %s6545_s8 }
 0x3a5   : > { %2266 = vrot.lane.b32.xlu0 %v8357_v63, %s6545_s8  ;;  %v8365_v24 = vpop.permute.xlu2 %2140 }
 0x3a6   : > { %12873 = vst [vmem:[#allocation305_spill] sm:$0xff] %v8365_v24  ;;  %v8367_v30 = vpop.permute.xlu1 %2120 }
 0x3a7   : > { %12874 = vst [vmem:[#allocation306_spill] sm:$0xff] %v8367_v30  ;;  %v8369_v48 = vpop.permute.xlu0 %2118 }
 0x3a8   : > { %12875 = vst [vmem:[#allocation307_spill] sm:$0xff] %v8369_v48  ;;  %v8396_v48 = vld [vmem:[%s6620_s25 + $0x1e8] sm:$0xff] }
 0x3ab   : > { %2276 = vrot.lane.b32.xlu2 %v8372_v29, %s6545_s8 }
 0x3ac   : > { %2274 = vrot.lane.b32.xlu1 %v8375_v27, %s6545_s8 }
 0x3ad   : > { %2272 = vrot.lane.b32.xlu0 %v8378_v5, %s6545_s8  ;;  %v8386_v24 = vpop.permute.xlu2 %2146 }
 0x3ae   : > { %12876 = vst [vmem:[#allocation308_spill] sm:$0xff] %v8386_v24  ;;  %v8388_v30 = vpop.permute.xlu1 %2126 }
 0x3af   : > { %12877 = vst [vmem:[#allocation309_spill] sm:$0xff] %v8388_v30  ;;  %v8390_v1 = vpop.permute.xlu0 %2124 }
 0x3b0   : > { %12878 = vst [vmem:[#allocation310_spill] sm:$0xff] %v8390_v1 }
 0x3b3   : > { %2282 = vrot.lane.b32.xlu2 %v8393_v51, %s6545_s8 }
 0x3b4   : > { %2280 = vrot.lane.b32.xlu1 %v8396_v48, %s6545_s8 }
 0x3b5   : > { %2278 = vrot.lane.b32.xlu0 %v8399_v18, %s6545_s8  ;;  %v8407_v24 = vpop.permute.xlu2 %2152 }
 0x3b6   : > { %12879 = vst [vmem:[#allocation311_spill] sm:$0xff] %v8407_v24  ;;  %v8409_v30 = vpop.permute.xlu1 %2132 }
 0x3b7   : > { %12880 = vst [vmem:[#allocation312_spill] sm:$0xff] %v8409_v30  ;;  %v8411_v1 = vpop.permute.xlu0 %2130 }
 0x3b8   : > { %12881 = vst [vmem:[#allocation313_spill] sm:$0xff] %v8411_v1 }
 0x3bb   : > { %2288 = vrot.lane.b32.xlu2 %v8414_v19, %s6545_s8 }
 0x3bc   : > { %2286 = vrot.lane.b32.xlu1 %v8417_v26, %s6545_s8 }
 0x3bd   : > { %2284 = vrot.lane.b32.xlu0 %v8420_v58, %s6545_s8  ;;  %v8428_v24 = vpop.permute.xlu2 %2158 }
 0x3be   : > { %12882 = vst [vmem:[#allocation314_spill] sm:$0xff] %v8428_v24  ;;  %v8430_v30 = vpop.permute.xlu1 %2138 }
 0x3bf   : > { %12883 = vst [vmem:[#allocation315_spill] sm:$0xff] %v8430_v30  ;;  %v8432_v1 = vpop.permute.xlu0 %2136 }
 0x3c0   : > { %12884 = vst [vmem:[#allocation316_spill] sm:$0xff] %v8432_v1  ;;  %v6345_v1 = vld [vmem:[%s6620_s25 + $0x1ad] sm:$0xff] }
 0x3c3   : > { %2358 = vrot.lane.b32.xlu2 %v7922_v40, %s6546_s14 }
 0x3c4   : > { %2356 = vrot.lane.b32.xlu1 %v7925_v62, %s6546_s14 }
 0x3c5   : > { %2290 = vrot.lane.b32.xlu0 %v8435_v57, %s6545_s8  ;;  %v8443_v25 = vpop.permute.xlu2 %2228 }
 0x3c6   : > { %12885 = vst [vmem:[#allocation317_spill] sm:$0xff] %v8443_v25  ;;  %v8445_v3 = vpop.permute.xlu1 %2144 }
 0x3c7   : > { %12886 = vst [vmem:[#allocation318_spill] sm:$0xff] %v8445_v3  ;;  %v8447_v24 = vpop.permute.xlu0 %2142  ;;  %v8552_v3 = vld [vmem:[%s6620_s25 + $0x242] sm:$0xff] }
 0x3c8   : > { %12887 = vst [vmem:[#allocation319_spill] sm:$0xff] %v8447_v24 }
 0x3cb   : > { %2364 = vrot.lane.b32.xlu2 %v7940_v4, %s6546_s14 }
 0x3cc   : > { %2362 = vrot.lane.b32.xlu1 %v7943_v61, %s6546_s14 }
 0x3cd   : > { %2360 = vrot.lane.b32.xlu0 %v7946_v6, %s6546_s14  ;;  %v8455_v40 = vpop.permute.xlu2 %2234 }
 0x3ce   : > { %12888 = vst [vmem:[#allocation320_spill] sm:$0xff] %v8455_v40  ;;  %v8457_v62 = vpop.permute.xlu1 %2150  ;;  %v726_v40 = vld [vmem:[%s6620_s25 + $0x2d] sm:$0xff] }
 0x3cf   : > { %12889 = vst [vmem:[#allocation321_spill] sm:$0xff] %v8457_v62  ;;  %v8459_v30 = vpop.permute.xlu0 %2148 }
 0x3d0   : > { %12890 = vst [vmem:[#allocation322_spill] sm:$0xff] %v8459_v30  ;;  %v6348_v30 = vld [vmem:[%s6620_s25 + $0x1e5] sm:$0xff] }
 0x3d3   : > { %2370 = vrot.lane.b32.xlu2 %v7961_v16, %s6546_s14 }
 0x3d4   : > { %2368 = vrot.lane.b32.xlu1 %v7964_v22, %s6546_s14 }
 0x3d5   : > { %2366 = vrot.lane.b32.xlu0 %v7967_v53, %s6546_s14  ;;  %v8467_v4 = vpop.permute.xlu2 %2240 }
 0x3d6   : > { %12891 = vst [vmem:[#allocation323_spill] sm:$0xff] %v8467_v4  ;;  %v8469_v61 = vpop.permute.xlu1 %2156  ;;  %v6334_v4 = vld [vmem:[%s6620_s25 + $0xe5] sm:$0xff] }
 0x3d7   : > { %12892 = vst [vmem:[#allocation324_spill] sm:$0xff] %v8469_v61  ;;  %v8471_v6 = vpop.permute.xlu0 %2154  ;;  %v8570_v61 = vld [vmem:[%s6620_s25 + $0x282] sm:$0xff] }
 0x3d8   : > { %12893 = vst [vmem:[#allocation325_spill] sm:$0xff] %v8471_v6  ;;  %v6330_v6 = vld [vmem:[%s6620_s25 + $0xc5] sm:$0xff] }
 0x3db   : > { %2376 = vrot.lane.b32.xlu2 %v7982_v38, %s6546_s14 }
 0x3dc   : > { %2374 = vrot.lane.b32.xlu1 %v7985_v56, %s6546_s14 }
 0x3dd   : > { %2372 = vrot.lane.b32.xlu0 %v7988_v35, %s6546_s14  ;;  %v8479_v16 = vpop.permute.xlu2 %2246 }
 0x3de   : > { %12894 = vst [vmem:[#allocation326_spill] sm:$0xff] %v8479_v16  ;;  %v8481_v22 = vpop.permute.xlu1 %2162  ;;  %v727_v16 = vld [vmem:[%s6620_s25 + $0x45] sm:$0xff] }
 0x3df   : > { %12895 = vst [vmem:[#allocation327_spill] sm:$0xff] %v8481_v22  ;;  %v8483_v53 = vpop.permute.xlu0 %2160  ;;  %v8546_v22 = vld [vmem:[%s6620_s25 + $0x262] sm:$0xff] }
 0x3e0   : > { %12896 = vst [vmem:[#allocation328_spill] sm:$0xff] %v8483_v53  ;;  %v8549_v53 = vld [vmem:[%s6620_s25 + $0x24a] sm:$0xff] }
 0x3e3   : > { %2382 = vrot.lane.b32.xlu2 %v8003_v45, %s6546_s14 }
 0x3e4   : > { %2380 = vrot.lane.b32.xlu1 %v8006_v20, %s6546_s14 }
 0x3e5   : > { %2378 = vrot.lane.b32.xlu0 %v8009_v14, %s6546_s14  ;;  %v8491_v38 = vpop.permute.xlu2 %2252 }
 0x3e6   : > { %12897 = vst [vmem:[#allocation329_spill] sm:$0xff] %v8491_v38  ;;  %v8493_v56 = vpop.permute.xlu1 %2232 }
 0x3e7   : > { %12898 = vst [vmem:[#allocation330_spill] sm:$0xff] %v8493_v56  ;;  %v8495_v35 = vpop.permute.xlu0 %2230  ;;  %v6006_v56 = vld [vmem:[%s6620_s25 + $0x165] sm:$0xff] }
 0x3e8   : > { %12899 = vst [vmem:[#allocation331_spill] sm:$0xff] %v8495_v35  ;;  %v6013_v35 = vld [vmem:[%s6620_s25 + $0x1cd] sm:$0xff] }
 0x3eb   : > { %2388 = vrot.lane.b32.xlu2 %v8024_v54, %s6546_s14 }
 0x3ec   : > { %2386 = vrot.lane.b32.xlu1 %v8027_v10, %s6546_s14 }
 0x3ed   : > { %2384 = vrot.lane.b32.xlu0 %v8030_v50, %s6546_s14  ;;  %v8503_v45 = vpop.permute.xlu2 %2258 }
 0x3ee   : > { %12900 = vst [vmem:[#allocation332_spill] sm:$0xff] %v8503_v45  ;;  %v8505_v20 = vpop.permute.xlu1 %2238  ;;  %v8567_v45 = vld [vmem:[%s6620_s25 + $0x28a] sm:$0xff] }
 0x3ef   : > { %12901 = vst [vmem:[#allocation333_spill] sm:$0xff] %v8505_v20  ;;  %v8507_v14 = vpop.permute.xlu0 %2236  ;;  %v6349_v20 = vld [vmem:[%s6620_s25 + $0x1cd] sm:$0xff] }
 0x3f0   : > { %12902 = vst [vmem:[#allocation334_spill] sm:$0xff] %v8507_v14 }
 0x3f3   : > { %2394 = vrot.lane.b32.xlu2 %v8045_v2, %s6546_s14 }
 0x3f4   : > { %2392 = vrot.lane.b32.xlu1 %v8048_v28, %s6546_s14 }
 0x3f5   : > { %2390 = vrot.lane.b32.xlu0 %v8051_v52, %s6546_s14  ;;  %v8515_v10 = vpop.permute.xlu2 %2264 }
 0x3f6   : > { %12903 = vst [vmem:[#allocation335_spill] sm:$0xff] %v8515_v10  ;;  %v8517_v50 = vpop.permute.xlu1 %2244 }
 0x3f7   : > { %12904 = vst [vmem:[#allocation336_spill] sm:$0xff] %v8517_v50  ;;  %v8519_v54 = vpop.permute.xlu0 %2242 }
 0x3f8   : > { %12905 = vst [vmem:[#allocation337_spill] sm:$0xff] %v8519_v54  ;;  %v6331_v54 = vld [vmem:[%s6620_s25 + $0xad] sm:$0xff] }
 0x3fb   : > { %2400 = vrot.lane.b32.xlu2 %v8066_v33, %s6546_s14 }
 0x3fc   : > { %2398 = vrot.lane.b32.xlu1 %v8069_v34, %s6546_s14 }
 0x3fd   : > { %2396 = vrot.lane.b32.xlu0 %v8072_v42, %s6546_s14  ;;  %v8527_v2 = vpop.permute.xlu2 %2270 }
 0x3fe   : > { %12906 = vst [vmem:[#allocation338_spill] sm:$0xff] %v8527_v2  ;;  %v8529_v52 = vpop.permute.xlu1 %2250 }
 0x3ff   : > { %12907 = vst [vmem:[#allocation339_spill] sm:$0xff] %v8529_v52  ;;  %v8531_v28 = vpop.permute.xlu0 %2248 }
 0x400   : > { %12908 = vst [vmem:[#allocation340_spill] sm:$0xff] %v8531_v28 }
 0x403   : > { %2406 = vrot.lane.b32.xlu2 %v8087_v9, %s6546_s14 }
 0x404   : > { %2404 = vrot.lane.b32.xlu1 %v8090_v15, %s6546_s14 }
 0x405   : > { %2402 = vrot.lane.b32.xlu0 %v8093_v0, %s6546_s14  ;;  %v8539_v34 = vpop.permute.xlu2 %2276 }
 0x406   : > { %12909 = vst [vmem:[#allocation341_spill] sm:$0xff] %v8539_v34  ;;  %v8541_v42 = vpop.permute.xlu1 %2256 }
 0x407   : > { %12910 = vst [vmem:[#allocation342_spill] sm:$0xff] %v8541_v42  ;;  %v8543_v33 = vpop.permute.xlu0 %2254  ;;  %v8573_v42 = vld [vmem:[%s6620_s25 + $0x26a] sm:$0xff] }
 0x408   : > { %12911 = vst [vmem:[#allocation343_spill] sm:$0xff] %v8543_v33  ;;  %v6332_v33 = vld [vmem:[%s6620_s25 + $0xa5] sm:$0xff] }
 0x40b   : > { %2412 = vrot.lane.b32.xlu2 %v8546_v22, %s6546_s14 }
 0x40c   : > { %2410 = vrot.lane.b32.xlu1 %v8549_v53, %s6546_s14 }
 0x40d   : > { %2408 = vrot.lane.b32.xlu0 %v8552_v3, %s6546_s14  ;;  %v8560_v9 = vpop.permute.xlu2 %2282 }
 0x40e   : > { %12912 = vst [vmem:[#allocation344_spill] sm:$0xff] %v8560_v9  ;;  %v8562_v15 = vpop.permute.xlu1 %2262 }
 0x40f   : > { %12913 = vst [vmem:[#allocation345_spill] sm:$0xff] %v8562_v15  ;;  %v8564_v0 = vpop.permute.xlu0 %2260  ;;  %v6354_v15 = vld [vmem:[%s6620_s25 + $0x245] sm:$0xff] }
 0x410   : > { %12914 = vst [vmem:[#allocation346_spill] sm:$0xff] %v8564_v0 }
 0x413   : > { %2418 = vrot.lane.b32.xlu2 %v8567_v45, %s6546_s14 }
 0x414   : > { %2416 = vrot.lane.b32.xlu1 %v8570_v61, %s6546_s14 }
 0x415   : > { %2414 = vrot.lane.b32.xlu0 %v8573_v42, %s6546_s14  ;;  %v8581_v2 = vpop.permute.xlu2 %2288  ;;  %s6491_s14 = scalar_lea.hbm %s12487_s2, 16 }
 0x416   : > { %12915 = vst [vmem:[#allocation347_spill] sm:$0xff] %v8581_v2  ;;  %v8583_v24 = vpop.permute.xlu1 %2268 }
 0x417   : > { %12916 = vst [vmem:[#allocation348_spill] sm:$0xff] %v8583_v24  ;;  %v8585_v9 = vpop.permute.xlu0 %2266 }
 0x418   : > { %12917 = vst [vmem:[#allocation349_spill] sm:$0xff] %v8585_v9  ;;  %v6333_v9 = vld [vmem:[%s6620_s25 + $0xed] sm:$0xff] }
 0x41b   : > { %2456 = vrot.lane.b32.xlu2 %v6330_v6, %s6547_s16  ;;  %v6335_v6 = vld [vmem:[%s6620_s25 + $0xcd] sm:$0xff] }
 0x41c   : > { %2454 = vrot.lane.b32.xlu1 %v6331_v54, %s6547_s16 }
 0x41d   : > { %2452 = vrot.lane.b32.xlu0 %v6332_v33, %s6547_s16  ;;  %v8593_v62 = vpop.permute.xlu2 %2358 }
 0x41e   : > { %12918 = vst [vmem:[#allocation350_spill] sm:$0xff] %v8593_v62  ;;  %v8595_v2 = vpop.permute.xlu1 %2274  ;;  %v6010_v62 = vld [vmem:[%s6620_s25 + $0x1a5] sm:$0xff] }
 0x41f   : > { %12919 = vst [vmem:[#allocation351_spill] sm:$0xff] %v8595_v2  ;;  %v8597_v24 = vpop.permute.xlu0 %2272  ;;  %v6336_v2 = vld [vmem:[%s6620_s25 + $0x125] sm:$0xff] }
 0x420   : > { %12920 = vst [vmem:[#allocation352_spill] sm:$0xff] %v8597_v24  ;;  %v6337_v24 = vld [vmem:[%s6620_s25 + $0x10d] sm:$0xff] }
 0x423   : > { %2462 = vrot.lane.b32.xlu2 %v6333_v9, %s6547_s16  ;;  %v6338_v9 = vld [vmem:[%s6620_s25 + $0x105] sm:$0xff] }
 0x424   : > { %2460 = vrot.lane.b32.xlu1 %v6334_v4, %s6547_s16 }
 0x425   : > { %2458 = vrot.lane.b32.xlu0 %v6335_v6, %s6547_s16  ;;  %v8605_v54 = vpop.permute.xlu2 %2364 }
 0x426   : > { %12921 = vst [vmem:[#allocation353_spill] sm:$0xff] %v8605_v54  ;;  %v8607_v33 = vpop.permute.xlu1 %2280  ;;  %v6355_v54 = vld [vmem:[%s6620_s25 + $0x22d] sm:$0xff] }
 0x427   : > { %12922 = vst [vmem:[#allocation354_spill] sm:$0xff] %v8607_v33  ;;  %v8609_v38 = vpop.permute.xlu0 %2278  ;;  %v6339_v33 = vld [vmem:[%s6620_s25 + $0x14d] sm:$0xff] }
 0x428   : > { %12923 = vst [vmem:[#allocation355_spill] sm:$0xff] %v8609_v38  ;;  %v6340_v38 = vld [vmem:[%s6620_s25 + $0x145] sm:$0xff] }
 0x42b   : > { %2468 = vrot.lane.b32.xlu2 %v6336_v2, %s6547_s16  ;;  %v6341_v2 = vld [vmem:[%s6620_s25 + $0x12d] sm:$0xff] }
 0x42c   : > { %2466 = vrot.lane.b32.xlu1 %v6337_v24, %s6547_s16 }
 0x42d   : > { %2464 = vrot.lane.b32.xlu0 %v6338_v9, %s6547_s16  ;;  %v8617_v4 = vpop.permute.xlu2 %2370 }
 0x42e   : > { %12924 = vst [vmem:[#allocation356_spill] sm:$0xff] %v8617_v4  ;;  %v8619_v6 = vpop.permute.xlu1 %2286 }
 0x42f   : > { %12925 = vst [vmem:[#allocation357_spill] sm:$0xff] %v8619_v6  ;;  %v8621_v10 = vpop.permute.xlu0 %2284  ;;  %v6342_v6 = vld [vmem:[%s6620_s25 + $0x185] sm:$0xff] }
 0x430   : > { %12926 = vst [vmem:[#allocation358_spill] sm:$0xff] %v8621_v10  ;;  %v6343_v10 = vld [vmem:[%s6620_s25 + $0x16d] sm:$0xff] }
 0x433   : > { %2474 = vrot.lane.b32.xlu2 %v6339_v33, %s6547_s16  ;;  %v6344_v33 = vld [vmem:[%s6620_s25 + $0x165] sm:$0xff] }
 0x434   : > { %2472 = vrot.lane.b32.xlu1 %v6340_v38, %s6547_s16 }
 0x435   : > { %2470 = vrot.lane.b32.xlu0 %v6341_v2, %s6547_s16  ;;  %v8629_v24 = vpop.permute.xlu2 %2376 }
 0x436   : > { %12927 = vst [vmem:[#allocation359_spill] sm:$0xff] %v8629_v24  ;;  %v8631_v9 = vpop.permute.xlu1 %2356 }
 0x437   : > { %12928 = vst [vmem:[#allocation360_spill] sm:$0xff] %v8631_v9  ;;  %v8633_v4 = vpop.permute.xlu0 %2290  ;;  %v9524_v9 = vld [vmem:[%s6620_s25 + $0x132] sm:$0xff] }
 0x438   : > { %12929 = vst [vmem:[#allocation361_spill] sm:$0xff] %v8633_v4  ;;  %v6346_v4 = vld [vmem:[%s6620_s25 + $0x1a5] sm:$0xff] }
 0x43b   : > { %2480 = vrot.lane.b32.xlu2 %v6342_v6, %s6547_s16  ;;  %v6347_v6 = vld [vmem:[%s6620_s25 + $0x18d] sm:$0xff] }
 0x43c   : > { %2478 = vrot.lane.b32.xlu1 %v6343_v10, %s6547_s16 }
 0x43d   : > { %2476 = vrot.lane.b32.xlu0 %v6344_v33, %s6547_s16  ;;  %v8641_v38 = vpop.permute.xlu2 %2382 }
 0x43e   : > { %12930 = vst [vmem:[#allocation362_spill] sm:$0xff] %v8641_v38  ;;  %v8643_v2 = vpop.permute.xlu1 %2362 }
 0x43f   : > { %12931 = vst [vmem:[#allocation363_spill] sm:$0xff] %v8643_v2  ;;  %v8645_v34 = vpop.permute.xlu0 %2360  ;;  %v9284_v2 = vld [vmem:[%s6620_s25 + $0x1c0] sm:$0xff] }
 0x440   : > { %12932 = vst [vmem:[#allocation364_spill] sm:$0xff] %v8645_v34  ;;  %v6003_v34 = vld [vmem:[%s6620_s25 + $0x12d] sm:$0xff] }
 0x443   : > { %2486 = vrot.lane.b32.xlu2 %v6345_v1, %s6547_s16  ;;  %v6350_v1 = vld [vmem:[%s6620_s25 + $0x1c5] sm:$0xff] }
 0x444   : > { %2484 = vrot.lane.b32.xlu1 %v6346_v4, %s6547_s16 }
 0x445   : > { %2482 = vrot.lane.b32.xlu0 %v6347_v6, %s6547_s16  ;;  %v8653_v10 = vpop.permute.xlu2 %2388 }
 0x446   : > { %12933 = vst [vmem:[#allocation365_spill] sm:$0xff] %v8653_v10  ;;  %v8655_v33 = vpop.permute.xlu1 %2368  ;;  %v9233_v10 = vld [vmem:[%s6620_s25 + $0x140] sm:$0xff] }
 0x447   : > { %12934 = vst [vmem:[#allocation366_spill] sm:$0xff] %v8655_v33  ;;  %v8657_v38 = vpop.permute.xlu0 %2366  ;;  %v6351_v33 = vld [vmem:[%s6620_s25 + $0x20d] sm:$0xff] }
 0x448   : > { %12935 = vst [vmem:[#allocation367_spill] sm:$0xff] %v8657_v38  ;;  %v6352_v38 = vld [vmem:[%s6620_s25 + $0x205] sm:$0xff] }
 0x44b   : > { %2492 = vrot.lane.b32.xlu2 %v6348_v30, %s6547_s16  ;;  %v6353_v30 = vld [vmem:[%s6620_s25 + $0x1ed] sm:$0xff] }
 0x44c   : > { %2490 = vrot.lane.b32.xlu1 %v6349_v20, %s6547_s16 }
 0x44d   : > { %2488 = vrot.lane.b32.xlu0 %v6350_v1, %s6547_s16  ;;  %v8665_v4 = vpop.permute.xlu2 %2394 }
 0x44e   : > { %12936 = vst [vmem:[#allocation368_spill] sm:$0xff] %v8665_v4  ;;  %v8667_v6 = vpop.permute.xlu1 %2374 }
 0x44f   : > { %12937 = vst [vmem:[#allocation369_spill] sm:$0xff] %v8667_v6  ;;  %v8669_v52 = vpop.permute.xlu0 %2372  ;;  %v723_v6 = vld [vmem:[%s6620_s25 + $0x5] sm:$0xff] }
 0x450   : > { %12938 = vst [vmem:[#allocation370_spill] sm:$0xff] %v8669_v52  ;;  %v6005_v52 = vld [vmem:[%s6620_s25 + $0x14d] sm:$0xff] }
 0x453   : > { %2498 = vrot.lane.b32.xlu2 %v6351_v33, %s6547_s16  ;;  %v6356_v33 = vld [vmem:[%s6620_s25 + $0x225] sm:$0xff] }
 0x454   : > { %2496 = vrot.lane.b32.xlu1 %v6352_v38, %s6547_s16 }
 0x455   : > { %2494 = vrot.lane.b32.xlu0 %v6353_v30, %s6547_s16  ;;  %v8677_v20 = vpop.permute.xlu2 %2400 }
 0x456   : > { %12939 = vst [vmem:[#allocation371_spill] sm:$0xff] %v8677_v20  ;;  %v8679_v1 = vpop.permute.xlu1 %2380 }
 0x457   : > { %12940 = vst [vmem:[#allocation372_spill] sm:$0xff] %v8679_v1  ;;  %v8681_v4 = vpop.permute.xlu0 %2378  ;;  %v6357_v1 = vld [vmem:[%s6620_s25 + $0x26d] sm:$0xff] }
 0x458   : > { %12941 = vst [vmem:[#allocation373_spill] sm:$0xff] %v8681_v4  ;;  %v6358_v4 = vld [vmem:[%s6620_s25 + $0x265] sm:$0xff] }
 0x45b   : > { %2504 = vrot.lane.b32.xlu2 %v6354_v15, %s6547_s16  ;;  %v6359_v15 = vld [vmem:[%s6620_s25 + $0x24d] sm:$0xff] }
 0x45c   : > { %2502 = vrot.lane.b32.xlu1 %v6355_v54, %s6547_s16 }
 0x45d   : > { %2500 = vrot.lane.b32.xlu0 %v6356_v33, %s6547_s16  ;;  %v8689_v38 = vpop.permute.xlu2 %2406 }
 0x45e   : > { %12942 = vst [vmem:[#allocation374_spill] sm:$0xff] %v8689_v38  ;;  %v8691_v30 = vpop.permute.xlu1 %2386  ;;  %v5973_v38 = vld [vmem:[%s6620_s25 + $0x14a] sm:$0xff] }
 0x45f   : > { %12943 = vst [vmem:[#allocation375_spill] sm:$0xff] %v8691_v30  ;;  %v8693_v20 = vpop.permute.xlu0 %2384  ;;  %v6360_v30 = vld [vmem:[%s6620_s25 + $0x28d] sm:$0xff] }
 0x460   : > { %12944 = vst [vmem:[#allocation376_spill] sm:$0xff] %v8693_v20 }
 0x463   : > { %2510 = vrot.lane.b32.xlu2 %v6357_v1, %s6547_s16  ;;  %v6361_v1 = vld [vmem:[%s6620_s25 + $0x285] sm:$0xff] }
 0x464   : > { %2508 = vrot.lane.b32.xlu1 %v6358_v4, %s6547_s16 }
 0x465   : > { %2506 = vrot.lane.b32.xlu0 %v6359_v15, %s6547_s16  ;;  %v8701_v54 = vpop.permute.xlu2 %2412 }
 0x466   : > { %12945 = vst [vmem:[#allocation377_spill] sm:$0xff] %v8701_v54  ;;  %v8703_v14 = vpop.permute.xlu1 %2392 }
 0x467   : > { %12946 = vst [vmem:[#allocation378_spill] sm:$0xff] %v8703_v14  ;;  %v8705_v33 = vpop.permute.xlu0 %2390  ;;  %v8994_v14 = vld [vmem:[%s6620_s25 + $0x108] sm:$0xff] }
 0x468   : > { %12947 = vst [vmem:[#allocation379_spill] sm:$0xff] %v8705_v33  ;;  %v6049_v33 = vld [vmem:[%s6620_s25 + $0x210] sm:$0xff] }
 0x46b   : > { %2580 = vrot.lane.b32.xlu2 %v8252_v12, %s6548_s17 }
 0x46c   : > { %2514 = vrot.lane.b32.xlu1 %v6360_v30, %s6547_s16 }
 0x46d   : > { %2512 = vrot.lane.b32.xlu0 %v6361_v1, %s6547_s16  ;;  %v8713_v4 = vpop.permute.xlu2 %2418 }
 0x46e   : > { %12948 = vst [vmem:[#allocation380_spill] sm:$0xff] %v8713_v4  ;;  %v8715_v20 = vpop.permute.xlu1 %2398  ;;  %v8816_v4 = vld [vmem:[%s6620_s25 + $0x250] sm:$0xff] }
 0x46f   : > { %12949 = vst [vmem:[#allocation381_spill] sm:$0xff] %v8715_v20  ;;  %v8717_v15 = vpop.permute.xlu0 %2396  ;;  %v5968_v20 = vld [vmem:[%s6620_s25 + $0x102] sm:$0xff] }
 0x470   : > { %12950 = vst [vmem:[#allocation382_spill] sm:$0xff] %v8717_v15 }
 0x473   : > { %2586 = vrot.lane.b32.xlu2 %v8267_v32, %s6548_s17 }
 0x474   : > { %2584 = vrot.lane.b32.xlu1 %v8270_v23, %s6548_s17 }
 0x475   : > { %2582 = vrot.lane.b32.xlu0 %v8273_v21, %s6548_s17  ;;  %v8725_v12 = vpop.permute.xlu2 %2456 }
 0x476   : > { %12951 = vst [vmem:[#allocation383_spill] sm:$0xff] %v8725_v12  ;;  %v8727_v30 = vpop.permute.xlu1 %2404  ;;  %v9361_v12 = vld [vmem:[%s6620_s25 + $0x105] sm:$0xff] }
 0x477   : > { %12952 = vst [vmem:[#allocation384_spill] sm:$0xff] %v8727_v30  ;;  %v8729_v1 = vpop.permute.xlu0 %2402 }
 0x478   : > { %12953 = vst [vmem:[#allocation385_spill] sm:$0xff] %v8729_v1  ;;  %v8840_v1 = vld [vmem:[%s6620_s25 + $0x268] sm:$0xff] }
 0x47b   : > { %2592 = vrot.lane.b32.xlu2 %v8288_v46, %s6548_s17 }
 0x47c   : > { %2590 = vrot.lane.b32.xlu1 %v8291_v60, %s6548_s17 }
 0x47d   : > { %2588 = vrot.lane.b32.xlu0 %v8294_v31, %s6548_s17  ;;  %v8737_v32 = vpop.permute.xlu2 %2462 }
 0x47e   : > { %12954 = vst [vmem:[#allocation386_spill] sm:$0xff] %v8737_v32  ;;  %v8739_v23 = vpop.permute.xlu1 %2410  ;;  %v9042_v32 = vld [vmem:[%s6620_s25 + $0x1a8] sm:$0xff] }
 0x47f   : > { %12955 = vst [vmem:[#allocation387_spill] sm:$0xff] %v8739_v23  ;;  %v8741_v21 = vpop.permute.xlu0 %2408  ;;  %v8857_v23 = vld [vmem:[%s6620_s25 + $0x290] sm:$0xff] }
 0x480   : > { %12956 = vst [vmem:[#allocation388_spill] sm:$0xff] %v8741_v21  ;;  %v5971_v21 = vld [vmem:[%s6620_s25 + $0x12a] sm:$0xff] }
 0x483   : > { %2598 = vrot.lane.b32.xlu2 %v8309_v43, %s6548_s17 }
 0x484   : > { %2596 = vrot.lane.b32.xlu1 %v8312_v37, %s6548_s17 }
 0x485   : > { %2594 = vrot.lane.b32.xlu0 %v8315_v55, %s6548_s17  ;;  %v8749_v46 = vpop.permute.xlu2 %2468 }
 0x486   : > { %12957 = vst [vmem:[#allocation389_spill] sm:$0xff] %v8749_v46  ;;  %v8751_v60 = vpop.permute.xlu1 %2416  ;;  %v6002_v46 = vld [vmem:[%s6620_s25 + $0x125] sm:$0xff] }
 0x487   : > { %12958 = vst [vmem:[#allocation390_spill] sm:$0xff] %v8751_v60  ;;  %v8753_v31 = vpop.permute.xlu0 %2414  ;;  %v8819_v60 = vld [vmem:[%s6620_s25 + $0x248] sm:$0xff] }
 0x488   : > { %12959 = vst [vmem:[#allocation391_spill] sm:$0xff] %v8753_v31  ;;  %v8834_v31 = vld [vmem:[%s6620_s25 + $0x288] sm:$0xff] }
 0x48b   : > { %2604 = vrot.lane.b32.xlu2 %v8330_v39, %s6548_s17 }
 0x48c   : > { %2602 = vrot.lane.b32.xlu1 %v8333_v7, %s6548_s17 }
 0x48d   : > { %2600 = vrot.lane.b32.xlu0 %v8336_v8, %s6548_s17  ;;  %v8761_v43 = vpop.permute.xlu2 %2474 }
 0x48e   : > { %12960 = vst [vmem:[#allocation392_spill] sm:$0xff] %v8761_v43  ;;  %v8763_v37 = vpop.permute.xlu1 %2454  ;;  %v6041_v43 = vld [vmem:[%s6620_s25 + $0x190] sm:$0xff] }
 0x48f   : > { %12961 = vst [vmem:[#allocation393_spill] sm:$0xff] %v8763_v37  ;;  %v8765_v55 = vpop.permute.xlu0 %2452  ;;  %v6012_v37 = vld [vmem:[%s6620_s25 + $0x1c5] sm:$0xff] }
 0x490   : > { %12962 = vst [vmem:[#allocation394_spill] sm:$0xff] %v8765_v55  ;;  %v9521_v55 = vld [vmem:[%s6620_s25 + $0x14a] sm:$0xff] }
 0x493   : > { %2610 = vrot.lane.b32.xlu2 %v8351_v59, %s6548_s17 }
 0x494   : > { %2608 = vrot.lane.b32.xlu1 %v8354_v36, %s6548_s17 }
 0x495   : > { %2606 = vrot.lane.b32.xlu0 %v8357_v63, %s6548_s17  ;;  %v8773_v39 = vpop.permute.xlu2 %2480 }
 0x496   : > { %12963 = vst [vmem:[#allocation395_spill] sm:$0xff] %v8773_v39  ;;  %v8775_v7 = vpop.permute.xlu1 %2460  ;;  %v5969_v39 = vld [vmem:[%s6620_s25 + $0x10a] sm:$0xff] }
 0x497   : > { %12964 = vst [vmem:[#allocation396_spill] sm:$0xff] %v8775_v7  ;;  %v8777_v8 = vpop.permute.xlu0 %2458 }
 0x498   : > { %12965 = vst [vmem:[#allocation397_spill] sm:$0xff] %v8777_v8 }
 0x49b   : > { %2616 = vrot.lane.b32.xlu2 %v8372_v29, %s6548_s17 }
 0x49c   : > { %2614 = vrot.lane.b32.xlu1 %v8375_v27, %s6548_s17 }
 0x49d   : > { %2612 = vrot.lane.b32.xlu0 %v8378_v5, %s6548_s17  ;;  %v8785_v36 = vpop.permute.xlu2 %2486 }
 0x49e   : > { %12966 = vst [vmem:[#allocation398_spill] sm:$0xff] %v8785_v36  ;;  %v8787_v63 = vpop.permute.xlu1 %2466  ;;  %v9060_v36 = vld [vmem:[%s6620_s25 + $0x1c8] sm:$0xff] }
 0x49f   : > { %12967 = vst [vmem:[#allocation399_spill] sm:$0xff] %v8787_v63  ;;  %v8789_v59 = vpop.permute.xlu0 %2464  ;;  %v5970_v63 = vld [vmem:[%s6620_s25 + $0x122] sm:$0xff] }
 0x4a0   : > { %12968 = vst [vmem:[#allocation400_spill] sm:$0xff] %v8789_v59  ;;  %v5976_v59 = vld [vmem:[%s6620_s25 + $0x182] sm:$0xff] }
 0x4a3   : > { %2622 = vrot.lane.b32.xlu2 %v8393_v51, %s6548_s17 }
 0x4a4   : > { %2620 = vrot.lane.b32.xlu1 %v8396_v48, %s6548_s17 }
 0x4a5   : > { %2618 = vrot.lane.b32.xlu0 %v8399_v18, %s6548_s17  ;;  %v8797_v27 = vpop.permute.xlu2 %2492 }
 0x4a6   : > { %12969 = vst [vmem:[#allocation401_spill] sm:$0xff] %v8797_v27  ;;  %v8799_v5 = vpop.permute.xlu1 %2472 }
 0x4a7   : > { %12970 = vst [vmem:[#allocation402_spill] sm:$0xff] %v8799_v5  ;;  %v8801_v29 = vpop.permute.xlu0 %2470  ;;  %v704_v5 = vld [vmem:[%s6620_s25 + $0xc8] sm:$0xff] }
 0x4a8   : > { %12971 = vst [vmem:[#allocation403_spill] sm:$0xff] %v8801_v29  ;;  %v9281_v29 = vld [vmem:[%s6620_s25 + $0x1e0] sm:$0xff] }
 0x4ab   : > { %2628 = vrot.lane.b32.xlu2 %v8414_v19, %s6548_s17 }
 0x4ac   : > { %2626 = vrot.lane.b32.xlu1 %v8417_v26, %s6548_s17 }
 0x4ad   : > { %2624 = vrot.lane.b32.xlu0 %v8420_v58, %s6548_s17  ;;  %v8809_v51 = vpop.permute.xlu2 %2498 }
 0x4ae   : > { %12972 = vst [vmem:[#allocation404_spill] sm:$0xff] %v8809_v51  ;;  %v8811_v18 = vpop.permute.xlu1 %2478  ;;  %v8837_v51 = vld [vmem:[%s6620_s25 + $0x270] sm:$0xff] }
 0x4af   : > { %12973 = vst [vmem:[#allocation405_spill] sm:$0xff] %v8811_v18  ;;  %v8813_v48 = vpop.permute.xlu0 %2476 }
 0x4b0   : > { %12974 = vst [vmem:[#allocation406_spill] sm:$0xff] %v8813_v48  ;;  %v5982_v48 = vld [vmem:[%s6620_s25 + $0x1e2] sm:$0xff] }
 0x4b3   : > { %2634 = vrot.lane.b32.xlu2 %v8816_v4, %s6548_s17 }
 0x4b4   : > { %2632 = vrot.lane.b32.xlu1 %v8819_v60, %s6548_s17 }
 0x4b5   : > { %2630 = vrot.lane.b32.xlu0 %v8435_v57, %s6548_s17  ;;  %v8827_v26 = vpop.permute.xlu2 %2504 }
 0x4b6   : > { %12975 = vst [vmem:[#allocation407_spill] sm:$0xff] %v8827_v26  ;;  %v8829_v19 = vpop.permute.xlu1 %2484  ;;  %v5972_v26 = vld [vmem:[%s6620_s25 + $0x142] sm:$0xff] }
 0x4b7   : > { %12976 = vst [vmem:[#allocation408_spill] sm:$0xff] %v8829_v19  ;;  %v8831_v58 = vpop.permute.xlu0 %2482 }
 0x4b8   : > { %12977 = vst [vmem:[#allocation409_spill] sm:$0xff] %v8831_v58 }
 0x4bb   : > { %2640 = vrot.lane.b32.xlu2 %v8834_v31, %s6548_s17 }
 0x4bc   : > { %2638 = vrot.lane.b32.xlu1 %v8837_v51, %s6548_s17 }
 0x4bd   : > { %2636 = vrot.lane.b32.xlu0 %v8840_v1, %s6548_s17  ;;  %v8848_v57 = vpop.permute.xlu2 %2510 }
 0x4be   : > { %12978 = vst [vmem:[#allocation410_spill] sm:$0xff] %v8848_v57  ;;  %v8850_v58 = vpop.permute.xlu1 %2490 }
 0x4bf   : > { %12979 = vst [vmem:[#allocation411_spill] sm:$0xff] %v8850_v58  ;;  %v8852_v54 = vpop.permute.xlu0 %2488  ;;  %v5977_v58 = vld [vmem:[%s6620_s25 + $0x18a] sm:$0xff] }
 0x4c0   : > { %12980 = vst [vmem:[#allocation412_spill] sm:$0xff] %v8852_v54  ;;  %v5986_v54 = vld [vmem:[%s6620_s25 + $0x222] sm:$0xff] }
 0x4c3   : > { %2710 = vrot.lane.b32.xlu2 %v5969_v39, %s6549_s21 }
 0x4c4   : > { %2708 = vrot.lane.b32.xlu1 %v5968_v20, %s6549_s21 }
 0x4c5   : > { %2642 = vrot.lane.b32.xlu0 %v8857_v23, %s6548_s17  ;;  %v8863_v57 = vpop.permute.xlu2 %2580 }
 0x4c6   : > { %12981 = vst [vmem:[#allocation413_spill] sm:$0xff] %v8863_v57  ;;  %v8865_v27 = vpop.permute.xlu1 %2496  ;;  %v9507_v57 = vld [vmem:[%s6620_s25 + $0xf2] sm:$0xff] }
 0x4c7   : > { %12982 = vst [vmem:[#allocation414_spill] sm:$0xff] %v8865_v27  ;;  %v8867_v15 = vpop.permute.xlu0 %2494  ;;  %v5975_v27 = vld [vmem:[%s6620_s25 + $0x16a] sm:$0xff] }
 0x4c8   : > { %12983 = vst [vmem:[#allocation415_spill] sm:$0xff] %v8867_v15  ;;  %v5974_v15 = vld [vmem:[%s6620_s25 + $0x162] sm:$0xff] }
 0x4cb   : > { %2716 = vrot.lane.b32.xlu2 %v5972_v26, %s6549_s21 }
 0x4cc   : > { %2714 = vrot.lane.b32.xlu1 %v5971_v21, %s6549_s21 }
 0x4cd   : > { %2712 = vrot.lane.b32.xlu0 %v5970_v63, %s6549_s21  ;;  %v8875_v20 = vpop.permute.xlu2 %2586 }
 0x4ce   : > { %12984 = vst [vmem:[#allocation416_spill] sm:$0xff] %v8875_v20  ;;  %v8877_v39 = vpop.permute.xlu1 %2502 }
 0x4cf   : > { %12985 = vst [vmem:[#allocation417_spill] sm:$0xff] %v8877_v39  ;;  %v8879_v18 = vpop.permute.xlu0 %2500  ;;  %v5978_v39 = vld [vmem:[%s6620_s25 + $0x1a2] sm:$0xff] }
 0x4d0   : > { %12986 = vst [vmem:[#allocation418_spill] sm:$0xff] %v8879_v18  ;;  %v5985_v18 = vld [vmem:[%s6620_s25 + $0x20a] sm:$0xff] }
 0x4d3   : > { %2722 = vrot.lane.b32.xlu2 %v5975_v27, %s6549_s21 }
 0x4d4   : > { %2720 = vrot.lane.b32.xlu1 %v5974_v15, %s6549_s21 }
 0x4d5   : > { %2718 = vrot.lane.b32.xlu0 %v5973_v38, %s6549_s21  ;;  %v8887_v21 = vpop.permute.xlu2 %2592 }
 0x4d6   : > { %12987 = vst [vmem:[#allocation419_spill] sm:$0xff] %v8887_v21  ;;  %v8889_v63 = vpop.permute.xlu1 %2508  ;;  %v5979_v21 = vld [vmem:[%s6620_s25 + $0x1aa] sm:$0xff] }
 0x4d7   : > { %12988 = vst [vmem:[#allocation420_spill] sm:$0xff] %v8889_v63  ;;  %v8891_v26 = vpop.permute.xlu0 %2506  ;;  %v5981_v63 = vld [vmem:[%s6620_s25 + $0x1ca] sm:$0xff] }
 0x4d8   : > { %12989 = vst [vmem:[#allocation421_spill] sm:$0xff] %v8891_v26  ;;  %v5980_v26 = vld [vmem:[%s6620_s25 + $0x1c2] sm:$0xff] }
 0x4db   : > { %2728 = vrot.lane.b32.xlu2 %v5978_v39, %s6549_s21 }
 0x4dc   : > { %2726 = vrot.lane.b32.xlu1 %v5977_v58, %s6549_s21 }
 0x4dd   : > { %2724 = vrot.lane.b32.xlu0 %v5976_v59, %s6549_s21  ;;  %v8899_v15 = vpop.permute.xlu2 %2598 }
 0x4de   : > { %12990 = vst [vmem:[#allocation422_spill] sm:$0xff] %v8899_v15  ;;  %v8901_v38 = vpop.permute.xlu1 %2514  ;;  %v9266_v15 = vld [vmem:[%s6620_s25 + $0x1a0] sm:$0xff] }
 0x4df   : > { %12991 = vst [vmem:[#allocation423_spill] sm:$0xff] %v8901_v38  ;;  %v8903_v27 = vpop.permute.xlu0 %2512  ;;  %v5984_v38 = vld [vmem:[%s6620_s25 + $0x202] sm:$0xff] }
 0x4e0   : > { %12992 = vst [vmem:[#allocation424_spill] sm:$0xff] %v8903_v27  ;;  %v5983_v27 = vld [vmem:[%s6620_s25 + $0x1ea] sm:$0xff] }
 0x4e3   : > { %2734 = vrot.lane.b32.xlu2 %v5981_v63, %s6549_s21 }
 0x4e4   : > { %2732 = vrot.lane.b32.xlu1 %v5980_v26, %s6549_s21 }
 0x4e5   : > { %2730 = vrot.lane.b32.xlu0 %v5979_v21, %s6549_s21  ;;  %v8911_v58 = vpop.permute.xlu2 %2604 }
 0x4e6   : > { %12993 = vst [vmem:[#allocation425_spill] sm:$0xff] %v8911_v58  ;;  %v8913_v59 = vpop.permute.xlu1 %2584  ;;  %v5987_v58 = vld [vmem:[%s6620_s25 + $0x22a] sm:$0xff] }
 0x4e7   : > { %12994 = vst [vmem:[#allocation426_spill] sm:$0xff] %v8913_v59  ;;  %v8915_v39 = vpop.permute.xlu0 %2582  ;;  %v731_v59 = vld [vmem:[%s6620_s25 + $0x85] sm:$0xff] }
 0x4e8   : > { %12995 = vst [vmem:[#allocation427_spill] sm:$0xff] %v8915_v39  ;;  %v6007_v39 = vld [vmem:[%s6620_s25 + $0x16d] sm:$0xff] }
 0x4eb   : > { %2740 = vrot.lane.b32.xlu2 %v5984_v38, %s6549_s21 }
 0x4ec   : > { %2738 = vrot.lane.b32.xlu1 %v5983_v27, %s6549_s21 }
 0x4ed   : > { %2736 = vrot.lane.b32.xlu0 %v5982_v48, %s6549_s21  ;;  %v8923_v63 = vpop.permute.xlu2 %2610 }
 0x4ee   : > { %12996 = vst [vmem:[#allocation428_spill] sm:$0xff] %v8923_v63  ;;  %v8925_v26 = vpop.permute.xlu1 %2590  ;;  %v5996_v63 = vld [vmem:[%s6620_s25 + $0x2c2] sm:$0xff] }
 0x4ef   : > { %12997 = vst [vmem:[#allocation429_spill] sm:$0xff] %v8925_v26  ;;  %v8927_v21 = vpop.permute.xlu0 %2588  ;;  %v6039_v26 = vld [vmem:[%s6620_s25 + $0x170] sm:$0xff] }
 0x4f0   : > { %12998 = vst [vmem:[#allocation430_spill] sm:$0xff] %v8927_v21  ;;  %v6047_v21 = vld [vmem:[%s6620_s25 + $0x1f0] sm:$0xff] }
 0x4f3   : > { %2746 = vrot.lane.b32.xlu2 %v5987_v58, %s6549_s21 }
 0x4f4   : > { %2744 = vrot.lane.b32.xlu1 %v5986_v54, %s6549_s21 }
 0x4f5   : > { %2742 = vrot.lane.b32.xlu0 %v5985_v18, %s6549_s21  ;;  %v8935_v38 = vpop.permute.xlu2 %2616 }
 0x4f6   : > { %12999 = vst [vmem:[#allocation431_spill] sm:$0xff] %v8935_v38  ;;  %v8937_v48 = vpop.permute.xlu1 %2596  ;;  %v5997_v38 = vld [vmem:[%s6620_s25 + $0x2ca] sm:$0xff] }
 0x4f7   : > { %13000 = vst [vmem:[#allocation432_spill] sm:$0xff] %v8937_v48  ;;  %v8939_v27 = vpop.permute.xlu0 %2594  ;;  %v734_v48 = vld [vmem:[%s6620_s25 + $0xad] sm:$0xff] }
 0x4f8   : > { %13001 = vst [vmem:[#allocation433_spill] sm:$0xff] %v8939_v27  ;;  %v5994_v27 = vld [vmem:[%s6620_s25 + $0x2a2] sm:$0xff] }
 0x4fb   : > { %2752 = vrot.lane.b32.xlu2 %v8546_v22, %s6549_s21 }
 0x4fc   : > { %2750 = vrot.lane.b32.xlu1 %v8549_v53, %s6549_s21 }
 0x4fd   : > { %2748 = vrot.lane.b32.xlu0 %v8552_v3, %s6549_s21  ;;  %v8947_v54 = vpop.permute.xlu2 %2622 }
 0x4fe   : > { %13002 = vst [vmem:[#allocation434_spill] sm:$0xff] %v8947_v54  ;;  %v8949_v18 = vpop.permute.xlu1 %2602  ;;  %v5995_v54 = vld [vmem:[%s6620_s25 + $0x2aa] sm:$0xff] }
 0x4ff   : > { %13003 = vst [vmem:[#allocation435_spill] sm:$0xff] %v8949_v18  ;;  %v8951_v58 = vpop.permute.xlu0 %2600  ;;  %v9027_v18 = vld [vmem:[%s6620_s25 + $0x168] sm:$0xff] }
 0x500   : > { %13004 = vst [vmem:[#allocation436_spill] sm:$0xff] %v8951_v58  ;;  %v6050_v58 = vld [vmem:[%s6620_s25 + $0x228] sm:$0xff] }
 0x503   : > { %2758 = vrot.lane.b32.xlu2 %v8567_v45, %s6549_s21 }
 0x504   : > { %2756 = vrot.lane.b32.xlu1 %v8570_v61, %s6549_s21 }
 0x505   : > { %2754 = vrot.lane.b32.xlu0 %v8573_v42, %s6549_s21  ;;  %v8959_v22 = vpop.permute.xlu2 %2628 }
 0x506   : > { %13005 = vst [vmem:[#allocation437_spill] sm:$0xff] %v8959_v22  ;;  %v8961_v3 = vpop.permute.xlu1 %2608  ;;  %v6033_v22 = vld [vmem:[%s6620_s25 + $0x110] sm:$0xff] }
 0x507   : > { %13006 = vst [vmem:[#allocation438_spill] sm:$0xff] %v8961_v3  ;;  %v8963_v53 = vpop.permute.xlu0 %2606  ;;  %v5999_v3 = vld [vmem:[%s6620_s25 + $0x2ea] sm:$0xff] }
 0x508   : > { %13007 = vst [vmem:[#allocation439_spill] sm:$0xff] %v8963_v53  ;;  %v5998_v53 = vld [vmem:[%s6620_s25 + $0x2e2] sm:$0xff] }
 0x50b   : > { %2764 = vrot.lane.b32.xlu2 %v5996_v63, %s6549_s21 }
 0x50c   : > { %2762 = vrot.lane.b32.xlu1 %v5995_v54, %s6549_s21 }
 0x50d   : > { %2760 = vrot.lane.b32.xlu0 %v5994_v27, %s6549_s21  ;;  %v8971_v61 = vpop.permute.xlu2 %2634 }
 0x50e   : > { %13008 = vst [vmem:[#allocation440_spill] sm:$0xff] %v8971_v61  ;;  %v8973_v45 = vpop.permute.xlu1 %2614  ;;  %v8990_v61 = vld [vmem:[%s6620_s25 + $0x128] sm:$0xff] }
 0x50f   : > { %13009 = vst [vmem:[#allocation441_spill] sm:$0xff] %v8973_v45  ;;  %v8975_v42 = vpop.permute.xlu0 %2612  ;;  %v6045_v45 = vld [vmem:[%s6620_s25 + $0x1d0] sm:$0xff] }
 0x510   : > { %13010 = vst [vmem:[#allocation442_spill] sm:$0xff] %v8975_v42  ;;  %v9218_v42 = vld [vmem:[%s6620_s25 + $0x100] sm:$0xff] }
 0x513   : > { %2770 = vrot.lane.b32.xlu2 %v5999_v3, %s6549_s21 }
 0x514   : > { %2768 = vrot.lane.b32.xlu1 %v5998_v53, %s6549_s21 }
 0x515   : > { %2766 = vrot.lane.b32.xlu0 %v5997_v38, %s6549_s21  ;;  %v8983_v63 = vpop.permute.xlu2 %2640 }
 0x516   : > { %13011 = vst [vmem:[#allocation443_spill] sm:$0xff] %v8983_v63  ;;  %v8985_v27 = vpop.permute.xlu1 %2620  ;;  %v6037_v63 = vld [vmem:[%s6620_s25 + $0x150] sm:$0xff] }
 0x517   : > { %13012 = vst [vmem:[#allocation444_spill] sm:$0xff] %v8985_v27  ;;  %v8987_v54 = vpop.permute.xlu0 %2618  ;;  %v9009_v27 = vld [vmem:[%s6620_s25 + $0x148] sm:$0xff] }
 0x518   : > { %13013 = vst [vmem:[#allocation445_spill] sm:$0xff] %v8987_v54  ;;  %v6035_v54 = vld [vmem:[%s6620_s25 + $0x130] sm:$0xff] }
 0x51b   : > { %3335 = vrot.lane.b32.xlu2 %v8990_v61, %s6535_s26 }
 0x51c   : > { %3333 = vrot.lane.b32.xlu1 %v6033_v22, %s6535_s26 }
 0x51d   : > { %3331 = vrot.lane.b32.xlu0 %v8994_v14, %s6535_s26  ;;  %v9001_v38 = vpop.permute.xlu2 %2710 }
 0x51e   : > { %13014 = vst [vmem:[#allocation446_spill] sm:$0xff] %v9001_v38  ;;  %v9003_v3 = vpop.permute.xlu1 %2626  ;;  %v6008_v38 = vld [vmem:[%s6620_s25 + $0x185] sm:$0xff] }
 0x51f   : > { %13015 = vst [vmem:[#allocation447_spill] sm:$0xff] %v9003_v3  ;;  %v9005_v53 = vpop.permute.xlu0 %2624 }
 0x520   : > { %13016 = vst [vmem:[#allocation448_spill] sm:$0xff] %v9005_v53  ;;  %v9023_v53 = vld [vmem:[%s6620_s25 + $0x188] sm:$0xff] }
 0x523   : > { %3341 = vrot.lane.b32.xlu2 %v6037_v63, %s6535_s26 }
 0x524   : > { %3339 = vrot.lane.b32.xlu1 %v9009_v27, %s6535_s26 }
 0x525   : > { %3337 = vrot.lane.b32.xlu0 %v6035_v54, %s6535_s26  ;;  %v9016_v22 = vpop.permute.xlu2 %2716 }
 0x526   : > { %13017 = vst [vmem:[#allocation449_spill] sm:$0xff] %v9016_v22  ;;  %v9018_v30 = vpop.permute.xlu1 %2632  ;;  %v6048_v22 = vld [vmem:[%s6620_s25 + $0x208] sm:$0xff] }
 0x527   : > { %13018 = vst [vmem:[#allocation450_spill] sm:$0xff] %v9018_v30  ;;  %v9020_v3 = vpop.permute.xlu0 %2630 }
 0x528   : > { %13019 = vst [vmem:[#allocation451_spill] sm:$0xff] %v9020_v3  ;;  %v6043_v3 = vld [vmem:[%s6620_s25 + $0x1b0] sm:$0xff] }
 0x52b   : > { %3347 = vrot.lane.b32.xlu2 %v9023_v53, %s6535_s26 }
 0x52c   : > { %3345 = vrot.lane.b32.xlu1 %v6039_v26, %s6535_s26 }
 0x52d   : > { %3343 = vrot.lane.b32.xlu0 %v9027_v18, %s6535_s26  ;;  %v9034_v63 = vpop.permute.xlu2 %2722 }
 0x52e   : > { %13020 = vst [vmem:[#allocation452_spill] sm:$0xff] %v9034_v63  ;;  %v9036_v54 = vpop.permute.xlu1 %2638 }
 0x52f   : > { %13021 = vst [vmem:[#allocation453_spill] sm:$0xff] %v9036_v54  ;;  %v9038_v30 = vpop.permute.xlu0 %2636 }
 0x530   : > { %13022 = vst [vmem:[#allocation454_spill] sm:$0xff] %v9038_v30  ;;  %v9056_v30 = vld [vmem:[%s6620_s25 + $0x1e8] sm:$0xff] }
 0x533   : > { %3353 = vrot.lane.b32.xlu2 %v6043_v3, %s6535_s26 }
 0x534   : > { %3351 = vrot.lane.b32.xlu1 %v9042_v32, %s6535_s26 }
 0x535   : > { %3349 = vrot.lane.b32.xlu0 %v6041_v43, %s6535_s26  ;;  %v9049_v26 = vpop.permute.xlu2 %2728 }
 0x536   : > { %13023 = vst [vmem:[#allocation455_spill] sm:$0xff] %v9049_v26  ;;  %v9051_v63 = vpop.permute.xlu1 %2708 }
 0x537   : > { %13024 = vst [vmem:[#allocation456_spill] sm:$0xff] %v9051_v63  ;;  %v9053_v54 = vpop.permute.xlu0 %2642  ;;  %v771_v63 = vld [vmem:[%s6620_s25 + $0x10a] sm:$0xff] }
 0x538   : > { %13025 = vst [vmem:[#allocation457_spill] sm:$0xff] %v9053_v54 }
 0x53b   : > { %3359 = vrot.lane.b32.xlu2 %v9056_v30, %s6535_s26 }
 0x53c   : > { %3357 = vrot.lane.b32.xlu1 %v6045_v45, %s6535_s26 }
 0x53d   : > { %3355 = vrot.lane.b32.xlu0 %v9060_v36, %s6535_s26  ;;  %v9067_v43 = vpop.permute.xlu2 %2734 }
 0x53e   : > { %13026 = vst [vmem:[#allocation458_spill] sm:$0xff] %v9067_v43  ;;  %v9069_v3 = vpop.permute.xlu1 %2714  ;;  %v6051_v43 = vld [vmem:[%s6620_s25 + $0x230] sm:$0xff] }
 0x53f   : > { %13027 = vst [vmem:[#allocation459_spill] sm:$0xff] %v9069_v3  ;;  %v9071_v54 = vpop.permute.xlu0 %2712  ;;  %v9248_v3 = vld [vmem:[%s6620_s25 + $0x180] sm:$0xff] }
 0x540   : > { %13028 = vst [vmem:[#allocation460_spill] sm:$0xff] %v9071_v54  ;;  %v733_v54 = vld [vmem:[%s6620_s25 + $0xa5] sm:$0xff] }
 0x543   : > { %3365 = vrot.lane.b32.xlu2 %v6049_v33, %s6535_s26 }
 0x544   : > { %3363 = vrot.lane.b32.xlu1 %v6048_v22, %s6535_s26 }
 0x545   : > { %3361 = vrot.lane.b32.xlu0 %v6047_v21, %s6535_s26  ;;  %v9079_v26 = vpop.permute.xlu2 %2740 }
 0x546   : > { %13029 = vst [vmem:[#allocation461_spill] sm:$0xff] %v9079_v26  ;;  %v9081_v45 = vpop.permute.xlu1 %2720  ;;  %v9215_v26 = vld [vmem:[%s6620_s25 + $0x120] sm:$0xff] }
 0x547   : > { %13030 = vst [vmem:[#allocation462_spill] sm:$0xff] %v9081_v45  ;;  %v9083_v7 = vpop.permute.xlu0 %2718  ;;  %v6060_v45 = vld [vmem:[%s6620_s25 + $0x2c8] sm:$0xff] }
 0x548   : > { %13031 = vst [vmem:[#allocation463_spill] sm:$0xff] %v9083_v7  ;;  %v692_v7 = vld [vmem:[%s6620_s25 + $0x8] sm:$0xff] }
 0x54b   : > { %3371 = vrot.lane.b32.xlu2 %v8819_v60, %s6535_s26 }
 0x54c   : > { %3369 = vrot.lane.b32.xlu1 %v6051_v43, %s6535_s26 }
 0x54d   : > { %3367 = vrot.lane.b32.xlu0 %v6050_v58, %s6535_s26  ;;  %v9091_v33 = vpop.permute.xlu2 %2746 }
 0x54e   : > { %13032 = vst [vmem:[#allocation464_spill] sm:$0xff] %v9091_v33  ;;  %v9093_v21 = vpop.permute.xlu1 %2726  ;;  %v6058_v33 = vld [vmem:[%s6620_s25 + $0x2a8] sm:$0xff] }
 0x54f   : > { %13033 = vst [vmem:[#allocation465_spill] sm:$0xff] %v9093_v21  ;;  %v9095_v22 = vpop.permute.xlu0 %2724  ;;  %v9251_v21 = vld [vmem:[%s6620_s25 + $0x160] sm:$0xff] }
 0x550   : > { %13034 = vst [vmem:[#allocation466_spill] sm:$0xff] %v9095_v22  ;;  %v732_v22 = vld [vmem:[%s6620_s25 + $0x8d] sm:$0xff] }
 0x553   : > { %3377 = vrot.lane.b32.xlu2 %v8837_v51, %s6535_s26 }
 0x554   : > { %3375 = vrot.lane.b32.xlu1 %v8840_v1, %s6535_s26 }
 0x555   : > { %3373 = vrot.lane.b32.xlu0 %v8816_v4, %s6535_s26  ;;  %v9103_v60 = vpop.permute.xlu2 %2752 }
 0x556   : > { %13035 = vst [vmem:[#allocation467_spill] sm:$0xff] %v9103_v60  ;;  %v9105_v58 = vpop.permute.xlu1 %2732  ;;  %v6061_v60 = vld [vmem:[%s6620_s25 + $0x2d0] sm:$0xff] }
 0x557   : > { %13036 = vst [vmem:[#allocation468_spill] sm:$0xff] %v9105_v58  ;;  %v9107_v43 = vpop.permute.xlu0 %2730  ;;  %v6059_v58 = vld [vmem:[%s6620_s25 + $0x2b0] sm:$0xff] }
 0x558   : > { %13037 = vst [vmem:[#allocation469_spill] sm:$0xff] %v9107_v43  ;;  %v698_v43 = vld [vmem:[%s6620_s25 + $0x68] sm:$0xff] }
 0x55b   : > { %3383 = vrot.lane.b32.xlu2 %v6058_v33, %s6535_s26 }
 0x55c   : > { %3381 = vrot.lane.b32.xlu1 %v8857_v23, %s6535_s26 }
 0x55d   : > { %3379 = vrot.lane.b32.xlu0 %v8834_v31, %s6535_s26  ;;  %v9115_v1 = vpop.permute.xlu2 %2758 }
 0x55e   : > { %13038 = vst [vmem:[#allocation470_spill] sm:$0xff] %v9115_v1  ;;  %v9117_v4 = vpop.permute.xlu1 %2738  ;;  %v6062_v1 = vld [vmem:[%s6620_s25 + $0x2e8] sm:$0xff] }
 0x55f   : > { %13039 = vst [vmem:[#allocation471_spill] sm:$0xff] %v9117_v4  ;;  %v9119_v51 = vpop.permute.xlu0 %2736  ;;  %v691_v4 = vld [vmem:[%s6620_s25] sm:$0xff] }
 0x560   : > { %13040 = vst [vmem:[#allocation472_spill] sm:$0xff] %v9119_v51  ;;  %v6063_v51 = vld [vmem:[%s6620_s25 + $0x2f0] sm:$0xff] }
 0x563   : > { %3389 = vrot.lane.b32.xlu2 %v6061_v60, %s6535_s26 }
 0x564   : > { %3387 = vrot.lane.b32.xlu1 %v6060_v45, %s6535_s26 }
 0x565   : > { %3385 = vrot.lane.b32.xlu0 %v6059_v58, %s6535_s26  ;;  %v9127_v23 = vpop.permute.xlu2 %2764 }
 0x566   : > { %13041 = vst [vmem:[#allocation473_spill] sm:$0xff] %v9127_v23  ;;  %v9129_v31 = vpop.permute.xlu1 %2744  ;;  %v694_v23 = vld [vmem:[%s6620_s25 + $0x28] sm:$0xff] }
 0x567   : > { %13042 = vst [vmem:[#allocation474_spill] sm:$0xff] %v9129_v31  ;;  %v9131_v33 = vpop.permute.xlu0 %2742  ;;  %v693_v31 = vld [vmem:[%s6620_s25 + $0x20] sm:$0xff] }
 0x568   : > { %13043 = vst [vmem:[#allocation475_spill] sm:$0xff] %v9131_v33  ;;  %v9186_v33 = vld [vmem:[%s6620_s25 + $0xa0] sm:$0xff] }
 0x56b   : > { %3459 = vrot.lane.b32.xlu2 %v691_v4, %s6536_s27 }
 0x56c   : > { %3393 = vrot.lane.b32.xlu1 %v6063_v51, %s6535_s26 }
 0x56d   : > { %3391 = vrot.lane.b32.xlu0 %v6062_v1, %s6535_s26  ;;  %v9139_v45 = vpop.permute.xlu2 %2770 }
 0x56e   : > { %13044 = vst [vmem:[#allocation476_spill] sm:$0xff] %v9139_v45  ;;  %v9141_v60 = vpop.permute.xlu1 %2750  ;;  %v697_v45 = vld [vmem:[%s6620_s25 + $0x60] sm:$0xff] }
 0x56f   : > { %13045 = vst [vmem:[#allocation477_spill] sm:$0xff] %v9141_v60  ;;  %v9143_v58 = vpop.permute.xlu0 %2748  ;;  %v696_v60 = vld [vmem:[%s6620_s25 + $0x48] sm:$0xff] }
 0x570   : > { %13046 = vst [vmem:[#allocation478_spill] sm:$0xff] %v9143_v58  ;;  %v695_v58 = vld [vmem:[%s6620_s25 + $0x40] sm:$0xff] }
 0x573   : > { %3465 = vrot.lane.b32.xlu2 %v694_v23, %s6536_s27 }
 0x574   : > { %3463 = vrot.lane.b32.xlu1 %v693_v31, %s6536_s27 }
 0x575   : > { %3461 = vrot.lane.b32.xlu0 %v692_v7, %s6536_s27  ;;  %v9151_v4 = vpop.permute.xlu2 %3335 }
 0x576   : > { %v9153_v1 = vpop.permute.xlu1 %2756 }
 0x577   : > { %13047 = vst [vmem:[#allocation479_spill] sm:$0xff] %v9153_v1  ;;  %v9155_v51 = vpop.permute.xlu0 %2754  ;;  %v700_v1 = vld [vmem:[%s6620_s25 + $0x88] sm:$0xff] }
 0x578   : > { %13048 = vst [vmem:[#allocation480_spill] sm:$0xff] %v9155_v51  ;;  %v699_v51 = vld [vmem:[%s6620_s25 + $0x80] sm:$0xff] }
 0x57b   : > { %3471 = vrot.lane.b32.xlu2 %v697_v45, %s6536_s27 }
 0x57c   : > { %3469 = vrot.lane.b32.xlu1 %v696_v60, %s6536_s27 }
 0x57d   : > { %3467 = vrot.lane.b32.xlu0 %v695_v58, %s6536_s27  ;;  %v9163_v23 = vpop.permute.xlu2 %3341 }
 0x57e   : > { %v9165_v7 = vpop.permute.xlu1 %2762 }
 0x57f   : > { %13049 = vst [vmem:[#allocation481_spill] sm:$0xff] %v9165_v7  ;;  %v9167_v31 = vpop.permute.xlu0 %2760  ;;  %v9182_v7 = vld [vmem:[%s6620_s25 + $0xc0] sm:$0xff] }
 0x580   : > { %13050 = vst [vmem:[#allocation482_spill] sm:$0xff] %v9167_v31  ;;  %v702_v31 = vld [vmem:[%s6620_s25 + $0xa8] sm:$0xff] }
 0x583   : > { %3477 = vrot.lane.b32.xlu2 %v700_v1, %s6536_s27 }
 0x584   : > { %3475 = vrot.lane.b32.xlu1 %v699_v51, %s6536_s27 }
 0x585   : > { %3473 = vrot.lane.b32.xlu0 %v698_v43, %s6536_s27  ;;  %v9175_v45 = vpop.permute.xlu2 %3347 }
 0x586   : > { %v9177_v60 = vpop.permute.xlu1 %2768 }
 0x587   : > { %13051 = vst [vmem:[#allocation483_spill] sm:$0xff] %v9177_v60  ;;  %v9179_v58 = vpop.permute.xlu0 %2766  ;;  %v706_v60 = vld [vmem:[%s6620_s25 + $0xe8] sm:$0xff] }
 0x588   : > { %13052 = vst [vmem:[#allocation484_spill] sm:$0xff] %v9179_v58  ;;  %v9201_v58 = vld [vmem:[%s6620_s25 + $0xe0] sm:$0xff] }
 0x58b   : > { %3483 = vrot.lane.b32.xlu2 %v9182_v7, %s6536_s27 }
 0x58c   : > { %3481 = vrot.lane.b32.xlu1 %v702_v31, %s6536_s27 }
 0x58d   : > { %3479 = vrot.lane.b32.xlu0 %v9186_v33, %s6536_s27  ;;  %v9193_v43 = vpop.permute.xlu2 %3353 }
 0x58e   : > { %13053 = vst [vmem:[#allocation485_spill] sm:$0xff] %v9193_v43  ;;  %v9195_v1 = vpop.permute.xlu1 %3333  ;;  %v9564_v43 = vld [vmem:[%s6620_s25 + $0x18a] sm:$0xff] }
 0x58f   : > { %v9197_v51 = vpop.permute.xlu0 %3331 }
 0x593   : > { %3489 = vrot.lane.b32.xlu2 %v706_v60, %s6536_s27 }
 0x594   : > { %3487 = vrot.lane.b32.xlu1 %v9201_v58, %s6536_s27 }
 0x595   : > { %3485 = vrot.lane.b32.xlu0 %v704_v5, %s6536_s27  ;;  %v9208_v31 = vpop.permute.xlu2 %3359 }
 0x596   : > { %13054 = vst [vmem:[#allocation486_spill] sm:$0xff] %v9208_v31  ;;  %v9210_v24 = vpop.permute.xlu1 %3339 }
 0x597   : > { %v9212_v28 = vpop.permute.xlu0 %3337 }
 0x598   : > { %13055 = vst [vmem:[#allocation487_spill] sm:$0xff] %v9212_v28  ;;  %v9539_v28 = vld [vmem:[%s6620_s25 + $0x172] sm:$0xff] }
 0x59b   : > { %3495 = vrot.lane.b32.xlu2 %v9215_v26, %s6536_s27 }
 0x59c   : > { %3493 = vrot.lane.b32.xlu1 %v8994_v14, %s6536_s27 }
 0x59d   : > { %3491 = vrot.lane.b32.xlu0 %v9218_v42, %s6536_s27  ;;  %v9226_v5 = vpop.permute.xlu2 %3365 }
 0x59e   : > { %13056 = vst [vmem:[#allocation488_spill] sm:$0xff] %v9226_v5  ;;  %v9228_v60 = vpop.permute.xlu1 %3345  ;;  %v6396_v5 = vld [vmem:[%s6620_s25 + $0x1c5] sm:$0xff] }
 0x59f   : > { %13057 = vst [vmem:[#allocation489_spill] sm:$0xff] %v9228_v60  ;;  %v9230_v19 = vpop.permute.xlu0 %3343  ;;  %v725_v60 = vld [vmem:[%s6620_s25 + $0x25] sm:$0xff] }
 0x5a0   : > { %13058 = vst [vmem:[#allocation490_spill] sm:$0xff] %v9230_v19  ;;  %v6004_v19 = vld [vmem:[%s6620_s25 + $0x145] sm:$0xff] }
 0x5a3   : > { %3501 = vrot.lane.b32.xlu2 %v9009_v27, %s6536_s27 }
 0x5a4   : > { %3499 = vrot.lane.b32.xlu1 %v9233_v10, %s6536_s27 }
 0x5a5   : > { %3497 = vrot.lane.b32.xlu0 %v8990_v61, %s6536_s27  ;;  %v9241_v14 = vpop.permute.xlu2 %3371 }
 0x5a6   : > { %13059 = vst [vmem:[#allocation491_spill] sm:$0xff] %v9241_v14  ;;  %v9243_v0 = vpop.permute.xlu1 %3351 }
 0x5a7   : > { %v9245_v31 = vpop.permute.xlu0 %3349 }
 0x5a8   : > { %13060 = vst [vmem:[#allocation492_spill] sm:$0xff] %v9245_v31  ;;  %v9584_v31 = vld [vmem:[%s6620_s25 + $0x1b2] sm:$0xff] }
 0x5ab   : > { %3507 = vrot.lane.b32.xlu2 %v9248_v3, %s6536_s27 }
 0x5ac   : > { %3505 = vrot.lane.b32.xlu1 %v9027_v18, %s6536_s27 }
 0x5ad   : > { %3503 = vrot.lane.b32.xlu0 %v9251_v21, %s6536_s27  ;;  %v9259_v61 = vpop.permute.xlu2 %3377 }
 0x5ae   : > { %13061 = vst [vmem:[#allocation493_spill] sm:$0xff] %v9259_v61  ;;  %v9261_v27 = vpop.permute.xlu1 %3357 }
 0x5af   : > { %13062 = vst [vmem:[#allocation494_spill] sm:$0xff] %v9261_v27  ;;  %v9263_v20 = vpop.permute.xlu0 %3355  ;;  %v728_v27 = vld [vmem:[%s6620_s25 + $0x4d] sm:$0xff] }
 0x5b0   : > { %13063 = vst [vmem:[#allocation495_spill] sm:$0xff] %v9263_v20 }
 0x5b3   : > { %3513 = vrot.lane.b32.xlu2 %v9042_v32, %s6536_s27 }
 0x5b4   : > { %3511 = vrot.lane.b32.xlu1 %v9266_v15, %s6536_s27 }
 0x5b5   : > { %3509 = vrot.lane.b32.xlu0 %v9023_v53, %s6536_s27  ;;  %v9274_v18 = vpop.permute.xlu2 %3383 }
 0x5b6   : > { %13064 = vst [vmem:[#allocation496_spill] sm:$0xff] %v9274_v18  ;;  %v9276_v61 = vpop.permute.xlu1 %3363  ;;  %v724_v18 = vld [vmem:[%s6620_s25 + $0xd] sm:$0xff] }
 0x5b7   : > { %v9278_v8 = vpop.permute.xlu0 %3361 }
 0x5b8   : > { %13065 = vst [vmem:[#allocation497_spill] sm:$0xff] %v9278_v8 }
 0x5bb   : > { %3519 = vrot.lane.b32.xlu2 %v9281_v29, %s6536_s27 }
 0x5bc   : > { %3517 = vrot.lane.b32.xlu1 %v9060_v36, %s6536_s27 }
 0x5bd   : > { %3515 = vrot.lane.b32.xlu0 %v9284_v2, %s6536_s27  ;;  %v9292_v32 = vpop.permute.xlu2 %3389 }
 0x5be   : > { %13066 = vst [vmem:[#allocation498_spill] sm:$0xff] %v9292_v32  ;;  %v9294_v53 = vpop.permute.xlu1 %3369 }
 0x5bf   : > { %13067 = vst [vmem:[#allocation499_spill] sm:$0xff] %v9294_v53  ;;  %v9296_v8 = vpop.permute.xlu0 %3367  ;;  %v755_v53 = vld [vmem:[%s6620_s25 + $0xa] sm:$0xff] }
 0x5c0   : > { %13068 = vst [vmem:[#allocation500_spill] sm:$0xff] %v9296_v8  ;;  %v9561_v8 = vld [vmem:[%s6620_s25 + $0x192] sm:$0xff] }
 0x5c3   : > { %3589 = vrot.lane.b32.xlu2 %v724_v18, %s6537_s28 }
 0x5c4   : > { %3587 = vrot.lane.b32.xlu1 %v723_v6, %s6537_s28 }
 0x5c5   : > { %3521 = vrot.lane.b32.xlu0 %v9056_v30, %s6536_s27  ;;  %v9304_v36 = vpop.permute.xlu2 %3459 }
 0x5c6   : > { %v9306_v14 = vpop.permute.xlu1 %3375 }
 0x5c7   : > { %13069 = vst [vmem:[#allocation501_spill] sm:$0xff] %v9306_v14  ;;  %v9308_v32 = vpop.permute.xlu0 %3373  ;;  %v730_v14 = vld [vmem:[%s6620_s25 + $0x6d] sm:$0xff] }
 0x5c8   : > { %13070 = vst [vmem:[#allocation502_spill] sm:$0xff] %v9308_v32  ;;  %v729_v32 = vld [vmem:[%s6620_s25 + $0x65] sm:$0xff] }
 0x5cb   : > { %3595 = vrot.lane.b32.xlu2 %v727_v16, %s6537_s28 }
 0x5cc   : > { %3593 = vrot.lane.b32.xlu1 %v726_v40, %s6537_s28 }
 0x5cd   : > { %3591 = vrot.lane.b32.xlu0 %v725_v60, %s6537_s28  ;;  %v9316_v6 = vpop.permute.xlu2 %3465 }
 0x5ce   : > { %13071 = vst [vmem:[#allocation503_spill] sm:$0xff] %v9316_v6  ;;  %v9318_v30 = vpop.permute.xlu1 %3381 }
 0x5cf   : > { %13072 = vst [vmem:[#allocation504_spill] sm:$0xff] %v9318_v30  ;;  %v9320_v18 = vpop.permute.xlu0 %3379  ;;  %v761_v30 = vld [vmem:[%s6620_s25 + $0x6a] sm:$0xff] }
 0x5d0   : > { %13073 = vst [vmem:[#allocation505_spill] sm:$0xff] %v9320_v18 }
 0x5d3   : > { %3601 = vrot.lane.b32.xlu2 %v730_v14, %s6537_s28 }
 0x5d4   : > { %3599 = vrot.lane.b32.xlu1 %v729_v32, %s6537_s28 }
 0x5d5   : > { %3597 = vrot.lane.b32.xlu0 %v728_v27, %s6537_s28  ;;  %v9328_v40 = vpop.permute.xlu2 %3471 }
 0x5d6   : > { %13074 = vst [vmem:[#allocation506_spill] sm:$0xff] %v9328_v40  ;;  %v9330_v16 = vpop.permute.xlu1 %3387  ;;  %v9376_v40 = vld [vmem:[%s6620_s25 + $0x10d] sm:$0xff] }
 0x5d7   : > { %13075 = vst [vmem:[#allocation507_spill] sm:$0xff] %v9330_v16  ;;  %v9332_v60 = vpop.permute.xlu0 %3385  ;;  %v736_v16 = vld [vmem:[%s6620_s25 + $0xcd] sm:$0xff] }
 0x5d8   : > { %13076 = vst [vmem:[#allocation508_spill] sm:$0xff] %v9332_v60  ;;  %v735_v60 = vld [vmem:[%s6620_s25 + $0xc5] sm:$0xff] }
 0x5db   : > { %3607 = vrot.lane.b32.xlu2 %v733_v54, %s6537_s28 }
 0x5dc   : > { %3605 = vrot.lane.b32.xlu1 %v732_v22, %s6537_s28 }
 0x5dd   : > { %3603 = vrot.lane.b32.xlu0 %v731_v59, %s6537_s28  ;;  %v9340_v14 = vpop.permute.xlu2 %3477 }
 0x5de   : > { %13077 = vst [vmem:[#allocation509_spill] sm:$0xff] %v9340_v14  ;;  %v9342_v27 = vpop.permute.xlu1 %3393  ;;  %v9578_v14 = vld [vmem:[%s6620_s25 + $0x1d2] sm:$0xff] }
 0x5df   : > { %13078 = vst [vmem:[#allocation510_spill] sm:$0xff] %v9342_v27  ;;  %v9344_v32 = vpop.permute.xlu0 %3391  ;;  %v738_v27 = vld [vmem:[%s6620_s25 + $0xed] sm:$0xff] }
 0x5e0   : > { %13079 = vst [vmem:[#allocation511_spill] sm:$0xff] %v9344_v32  ;;  %v737_v32 = vld [vmem:[%s6620_s25 + $0xe5] sm:$0xff] }
 0x5e3   : > { %3613 = vrot.lane.b32.xlu2 %v736_v16, %s6537_s28 }
 0x5e4   : > { %3611 = vrot.lane.b32.xlu1 %v735_v60, %s6537_s28 }
 0x5e5   : > { %3609 = vrot.lane.b32.xlu0 %v734_v48, %s6537_s28  ;;  %v9352_v54 = vpop.permute.xlu2 %3483 }
 0x5e6   : > { %13080 = vst [vmem:[#allocation512_spill] sm:$0xff] %v9352_v54  ;;  %v9354_v59 = vpop.permute.xlu1 %3463  ;;  %v764_v54 = vld [vmem:[%s6620_s25 + $0x92] sm:$0xff] }
 0x5e7   : > { %v9356_v22 = vpop.permute.xlu0 %3461 }
 0x5eb   : > { %3619 = vrot.lane.b32.xlu2 %v9361_v12, %s6537_s28 }
 0x5ec   : > { %3617 = vrot.lane.b32.xlu1 %v738_v27, %s6537_s28 }
 0x5ed   : > { %3615 = vrot.lane.b32.xlu0 %v737_v32, %s6537_s28  ;;  %v9367_v48 = vpop.permute.xlu2 %3489 }
 0x5ee   : > { %13081 = vst [vmem:[#allocation513_spill] sm:$0xff] %v9367_v48  ;;  %v9369_v16 = vpop.permute.xlu1 %3469 }
 0x5ef   : > { %v9371_v60 = vpop.permute.xlu0 %3467 }
 0x5f3   : > { %3625 = vrot.lane.b32.xlu2 %v6003_v34, %s6537_s28 }
 0x5f4   : > { %3623 = vrot.lane.b32.xlu1 %v6002_v46, %s6537_s28 }
 0x5f5   : > { %3621 = vrot.lane.b32.xlu0 %v9376_v40, %s6537_s28  ;;  %v9382_v27 = vpop.permute.xlu2 %3495 }
 0x5f6   : > { %13082 = vst [vmem:[#allocation514_spill] sm:$0xff] %v9382_v27  ;;  %v9384_v32 = vpop.permute.xlu1 %3475  ;;  %v9545_v27 = vld [vmem:[%s6620_s25 + $0x152] sm:$0xff] }
 0x5f7   : > { %v9386_v48 = vpop.permute.xlu0 %3473 }
 0x5f8   : > { %13083 = vst [vmem:[#allocation515_spill] sm:$0xff] %v9386_v48  ;;  %v6009_v48 = vld [vmem:[%s6620_s25 + $0x18d] sm:$0xff] }
 0x5fb   : > { %3631 = vrot.lane.b32.xlu2 %v6006_v56, %s6537_s28 }
 0x5fc   : > { %3629 = vrot.lane.b32.xlu1 %v6005_v52, %s6537_s28 }
 0x5fd   : > { %3627 = vrot.lane.b32.xlu0 %v6004_v19, %s6537_s28  ;;  %v9394_v34 = vpop.permute.xlu2 %3501 }
 0x5fe   : > { %13084 = vst [vmem:[#allocation516_spill] sm:$0xff] %v9394_v34  ;;  %v9396_v46 = vpop.permute.xlu1 %3481  ;;  %v6011_v34 = vld [vmem:[%s6620_s25 + $0x1ad] sm:$0xff] }
 0x5ff   : > { %13085 = vst [vmem:[#allocation517_spill] sm:$0xff] %v9396_v46  ;;  %v9398_v50 = vpop.permute.xlu0 %3479  ;;  %v9542_v46 = vld [vmem:[%s6620_s25 + $0x16a] sm:$0xff] }
 0x603   : > { %3637 = vrot.lane.b32.xlu2 %v6009_v48, %s6537_s28 }
 0x604   : > { %3635 = vrot.lane.b32.xlu1 %v6008_v38, %s6537_s28 }
 0x605   : > { %3633 = vrot.lane.b32.xlu0 %v6007_v39, %s6537_s28  ;;  %v9406_v56 = vpop.permute.xlu2 %3507 }
 0x606   : > { %13086 = vst [vmem:[#allocation518_spill] sm:$0xff] %v9406_v56  ;;  %v9408_v52 = vpop.permute.xlu1 %3487  ;;  %v6362_v56 = vld [vmem:[%s6620_s25 + $0xc8] sm:$0xff] }
 0x607   : > { %13087 = vst [vmem:[#allocation519_spill] sm:$0xff] %v9408_v52  ;;  %v9410_v19 = vpop.permute.xlu0 %3485  ;;  %v6014_v52 = vld [vmem:[%s6620_s25 + $0x1e5] sm:$0xff] }
 0x608   : > { %13088 = vst [vmem:[#allocation520_spill] sm:$0xff] %v9410_v19  ;;  %v6015_v19 = vld [vmem:[%s6620_s25 + $0x1ed] sm:$0xff] }
 0x60b   : > { %3643 = vrot.lane.b32.xlu2 %v6012_v37, %s6537_s28 }
 0x60c   : > { %3641 = vrot.lane.b32.xlu1 %v6011_v34, %s6537_s28 }
 0x60d   : > { %3639 = vrot.lane.b32.xlu0 %v6010_v62, %s6537_s28  ;;  %v9418_v38 = vpop.permute.xlu2 %3513 }
 0x60e   : > { %13089 = vst [vmem:[#allocation521_spill] sm:$0xff] %v9418_v38  ;;  %v9420_v39 = vpop.permute.xlu1 %3493  ;;  %v757_v38 = vld [vmem:[%s6620_s25 + $0x2a] sm:$0xff] }
 0x60f   : > { %13090 = vst [vmem:[#allocation522_spill] sm:$0xff] %v9420_v39  ;;  %v9422_v48 = vpop.permute.xlu0 %3491  ;;  %v6395_v39 = vld [vmem:[%s6620_s25 + $0x1cd] sm:$0xff] }
 0x613   : > { %3649 = vrot.lane.b32.xlu2 %v6015_v19, %s6537_s28 }
 0x614   : > { %3647 = vrot.lane.b32.xlu1 %v6014_v52, %s6537_s28 }
 0x615   : > { %3645 = vrot.lane.b32.xlu0 %v6013_v35, %s6537_s28  ;;  %v9430_v37 = vpop.permute.xlu2 %3519 }
 0x616   : > { %13091 = vst [vmem:[#allocation523_spill] sm:$0xff] %v9430_v37  ;;  %v9432_v62 = vpop.permute.xlu1 %3499  ;;  %v760_v37 = vld [vmem:[%s6620_s25 + $0x52] sm:$0xff] }
 0x617   : > { %13092 = vst [vmem:[#allocation524_spill] sm:$0xff] %v9432_v62  ;;  %v9434_v34 = vpop.permute.xlu0 %3497  ;;  %v759_v62 = vld [vmem:[%s6620_s25 + $0x4a] sm:$0xff] }
 0x618   : > { %13093 = vst [vmem:[#allocation525_spill] sm:$0xff] %v9434_v34  ;;  %v758_v34 = vld [vmem:[%s6620_s25 + $0x32] sm:$0xff] }
 0x61b   : > { %3719 = vrot.lane.b32.xlu2 %v757_v38, %s6538_s29 }
 0x61c   : > { %3717 = vrot.lane.b32.xlu1 %v756_v13, %s6538_s29 }
 0x61d   : > { %3715 = vrot.lane.b32.xlu0 %v755_v53, %s6538_s29  ;;  %v9442_v52 = vpop.permute.xlu2 %3589 }
 0x61e   : > { %v9444_v35 = vpop.permute.xlu1 %3505 }
 0x61f   : > { %13094 = vst [vmem:[#allocation526_spill] sm:$0xff] %v9444_v35  ;;  %v9446_v19 = vpop.permute.xlu0 %3503  ;;  %v763_v35 = vld [vmem:[%s6620_s25 + $0x8a] sm:$0xff] }
 0x620   : > { %13095 = vst [vmem:[#allocation527_spill] sm:$0xff] %v9446_v19  ;;  %v762_v19 = vld [vmem:[%s6620_s25 + $0x72] sm:$0xff] }
 0x623   : > { %3725 = vrot.lane.b32.xlu2 %v760_v37, %s6538_s29 }
 0x624   : > { %3723 = vrot.lane.b32.xlu1 %v759_v62, %s6538_s29 }
 0x625   : > { %3721 = vrot.lane.b32.xlu0 %v758_v34, %s6538_s29  ;;  %v9454_v13 = vpop.permute.xlu2 %3595 }
 0x626   : > { %v9456_v53 = vpop.permute.xlu1 %3511 }
 0x627   : > { %13096 = vst [vmem:[#allocation528_spill] sm:$0xff] %v9456_v53  ;;  %v9458_v38 = vpop.permute.xlu0 %3509  ;;  %v9473_v53 = vld [vmem:[%s6620_s25 + $0xb2] sm:$0xff] }
 0x628   : > { %13097 = vst [vmem:[#allocation529_spill] sm:$0xff] %v9458_v38  ;;  %v765_v38 = vld [vmem:[%s6620_s25 + $0xaa] sm:$0xff] }
 0x62b   : > { %3731 = vrot.lane.b32.xlu2 %v763_v35, %s6538_s29 }
 0x62c   : > { %3729 = vrot.lane.b32.xlu1 %v762_v19, %s6538_s29 }
 0x62d   : > { %3727 = vrot.lane.b32.xlu0 %v761_v30, %s6538_s29  ;;  %v9466_v37 = vpop.permute.xlu2 %3601 }
 0x62e   : > { %13098 = vst [vmem:[#allocation530_spill] sm:$0xff] %v9466_v37  ;;  %v9468_v62 = vpop.permute.xlu1 %3517  ;;  %v767_v37 = vld [vmem:[%s6620_s25 + $0xca] sm:$0xff] }
 0x62f   : > { %13099 = vst [vmem:[#allocation531_spill] sm:$0xff] %v9468_v62  ;;  %v9470_v34 = vpop.permute.xlu0 %3515  ;;  %v769_v62 = vld [vmem:[%s6620_s25 + $0xea] sm:$0xff] }
 0x630   : > { %13100 = vst [vmem:[#allocation532_spill] sm:$0xff] %v9470_v34  ;;  %v9489_v34 = vld [vmem:[%s6620_s25 + $0xd2] sm:$0xff] }
 0x633   : > { %3737 = vrot.lane.b32.xlu2 %v9473_v53, %s6538_s29 }
 0x634   : > { %3735 = vrot.lane.b32.xlu1 %v765_v38, %s6538_s29 }
 0x635   : > { %3733 = vrot.lane.b32.xlu0 %v764_v54, %s6538_s29  ;;  %v9481_v30 = vpop.permute.xlu2 %3607 }
 0x636   : > { %v9483_v35 = vpop.permute.xlu1 %3587 }
 0x637   : > { %v9485_v19 = vpop.permute.xlu0 %3521 }
 0x638   : > { %13101 = vst [vmem:[#allocation533_spill] sm:$0xff] %v9485_v19  ;;  %v9503_v19 = vld [vmem:[%s6620_s25 + $0x112] sm:$0xff] }
 0x63b   : > { %3743 = vrot.lane.b32.xlu2 %v769_v62, %s6538_s29 }
 0x63c   : > { %3741 = vrot.lane.b32.xlu1 %v9489_v34, %s6538_s29 }
 0x63d   : > { %3739 = vrot.lane.b32.xlu0 %v767_v37, %s6538_s29  ;;  %v9496_v54 = vpop.permute.xlu2 %3613 }
 0x63e   : > { %13102 = vst [vmem:[#allocation534_spill] sm:$0xff] %v9496_v54  ;;  %v9498_v38 = vpop.permute.xlu1 %3593 }
 0x63f   : > { %13103 = vst [vmem:[#allocation535_spill] sm:$0xff] %v9498_v38  ;;  %v9500_v20 = vpop.permute.xlu0 %3591  ;;  %v773_v38 = vld [vmem:[%s6620_s25 + $0x12a] sm:$0xff] }
 0x643   : > { %3749 = vrot.lane.b32.xlu2 %v9503_v19, %s6538_s29 }
 0x644   : > { %3747 = vrot.lane.b32.xlu1 %v771_v63, %s6538_s29 }
 0x645   : > { %3745 = vrot.lane.b32.xlu0 %v9507_v57, %s6538_s29  ;;  %v9514_v37 = vpop.permute.xlu2 %3619 }
 0x646   : > { %v9516_v62 = vpop.permute.xlu1 %3599 }
 0x647   : > { %13104 = vst [vmem:[#allocation536_spill] sm:$0xff] %v9516_v62  ;;  %v9518_v54 = vpop.permute.xlu0 %3597 }
 0x64b   : > { %3755 = vrot.lane.b32.xlu2 %v9521_v55, %s6538_s29 }
 0x64c   : > { %3753 = vrot.lane.b32.xlu1 %v9524_v9, %s6538_s29 }
 0x64d   : > { %3751 = vrot.lane.b32.xlu0 %v773_v38, %s6538_s29  ;;  %v9532_v63 = vpop.permute.xlu2 %3625 }
 0x64e   : > { %13105 = vst [vmem:[#allocation537_spill] sm:$0xff] %v9532_v63  ;;  %v9534_v62 = vpop.permute.xlu1 %3605 }
 0x64f   : > { %13106 = vst [vmem:[#allocation538_spill] sm:$0xff] %v9534_v62  ;;  %v9536_v6 = vpop.permute.xlu0 %3603  ;;  %v781_v62 = vld [vmem:[%s6620_s25 + $0x1aa] sm:$0xff] }
 0x653   : > { %3761 = vrot.lane.b32.xlu2 %v9539_v28, %s6538_s29 }
 0x654   : > { %3759 = vrot.lane.b32.xlu1 %v9542_v46, %s6538_s29 }
 0x655   : > { %3757 = vrot.lane.b32.xlu0 %v9545_v27, %s6538_s29  ;;  %v9553_v38 = vpop.permute.xlu2 %3631 }
 0x656   : > { %13107 = vst [vmem:[#allocation539_spill] sm:$0xff] %v9553_v38  ;;  %v9555_v63 = vpop.permute.xlu1 %3611 }
 0x657   : > { %13108 = vst [vmem:[#allocation540_spill] sm:$0xff] %v9555_v63  ;;  %v9557_v25 = vpop.permute.xlu0 %3609 }
 0x658   : > { %13109 = vst [vmem:[#allocation541_spill] sm:$0xff] %v9557_v25 }
 0x65b   : > { %3767 = vrot.lane.b32.xlu2 %v781_v62, %s6538_s29 }
 0x65c   : > { %3765 = vrot.lane.b32.xlu1 %v9561_v8, %s6538_s29 }
 0x65d   : > { %3763 = vrot.lane.b32.xlu0 %v9564_v43, %s6538_s29  ;;  %v9571_v38 = vpop.permute.xlu2 %3637 }
 0x65e   : > { %13110 = vst [vmem:[#allocation542_spill] sm:$0xff] %v9571_v38  ;;  %v9573_v63 = vpop.permute.xlu1 %3617  ;;  %v9599_v38 = vld [vmem:[%s6620_s25 + $0x1f2] sm:$0xff] }
 0x65f   : > { %13111 = vst [vmem:[#allocation543_spill] sm:$0xff] %v9573_v63  ;;  %v9575_v25 = vpop.permute.xlu0 %3615 }
 0x660   : > { %13112 = vst [vmem:[#allocation544_spill] sm:$0xff] %v9575_v25 }
 0x663   : > { %3773 = vrot.lane.b32.xlu2 %v9578_v14, %s6538_s29 }
 0x664   : > { %3771 = vrot.lane.b32.xlu1 %v9581_v17, %s6538_s29 }
 0x665   : > { %3769 = vrot.lane.b32.xlu0 %v9584_v31, %s6538_s29  ;;  %v9592_v62 = vpop.permute.xlu2 %3643 }
 0x666   : > { %13113 = vst [vmem:[#allocation545_spill] sm:$0xff] %v9592_v62  ;;  %v9594_v63 = vpop.permute.xlu1 %3623 }
 0x667   : > { %13114 = vst [vmem:[#allocation546_spill] sm:$0xff] %v9594_v63  ;;  %v9596_v25 = vpop.permute.xlu0 %3621 }
 0x668   : > { %13115 = vst [vmem:[#allocation547_spill] sm:$0xff] %v9596_v25 }
 0x66b   : > { %3827 = vrot.lane.b32.xlu2 %v9186_v33, %s6539_s30  ;;  %v6363_v33 = vld [vmem:[%s6620_s25 + $0xa8] sm:$0xff] }
 0x66c   : > { %3777 = vrot.lane.b32.xlu1 %v9599_v38, %s6538_s29 }
 0x66d   : > { %3775 = vrot.lane.b32.xlu0 %v9602_v47, %s6538_s29  ;;  %v9610_v49 = vpop.permute.xlu2 %3649 }
 0x66e   : > { %13116 = vst [vmem:[#allocation548_spill] sm:$0xff] %v9610_v49  ;;  %v9612_v62 = vpop.permute.xlu1 %3629 }
 0x66f   : > { %13117 = vst [vmem:[#allocation549_spill] sm:$0xff] %v9612_v62  ;;  %v9614_v63 = vpop.permute.xlu0 %3627  ;;  %v6364_v62 = vld [vmem:[%s6620_s25 + $0xe8] sm:$0xff] }
 0x670   : > { %13118 = vst [vmem:[#allocation550_spill] sm:$0xff] %v9614_v63  ;;  %v6365_v63 = vld [vmem:[%s6620_s25 + $0x128] sm:$0xff] }
 0x673   : > { %3833 = vrot.lane.b32.xlu2 %v6362_v56, %s6539_s30 }
 0x674   : > { %3831 = vrot.lane.b32.xlu1 %v9182_v7, %s6539_s30 }
 0x675   : > { %3829 = vrot.lane.b32.xlu0 %v6363_v33, %s6539_s30  ;;  %v9622_v44 = vpop.permute.xlu2 %3719 }
 0x676   : > { %v9624_v18 = vpop.permute.xlu1 %3635 }
 0x677   : > { %13119 = vst [vmem:[#allocation551_spill] sm:$0xff] %v9624_v18  ;;  %v9626_v49 = vpop.permute.xlu0 %3633  ;;  %v9734_v18 = vld [vmem:[%s6620_s25 + $0x260] sm:$0xff] }
 0x678   : > { %13120 = vst [vmem:[#allocation552_spill] sm:$0xff] %v9626_v49 }
 0x67b   : > { %3839 = vrot.lane.b32.xlu2 %v9218_v42, %s6539_s30  ;;  %v6366_v42 = vld [vmem:[%s6620_s25 + $0x108] sm:$0xff] }
 0x67c   : > { %3837 = vrot.lane.b32.xlu1 %v6364_v62, %s6539_s30 }
 0x67d   : > { %3835 = vrot.lane.b32.xlu0 %v9201_v58, %s6539_s30  ;;  %v9634_v7 = vpop.permute.xlu2 %3725 }
 0x67e   : > { %v9636_v56 = vpop.permute.xlu1 %3641 }
 0x67f   : > { %13121 = vst [vmem:[#allocation553_spill] sm:$0xff] %v9636_v56  ;;  %v9638_v33 = vpop.permute.xlu0 %3639  ;;  %v6367_v56 = vld [vmem:[%s6620_s25 + $0x148] sm:$0xff] }
 0x680   : > { %13122 = vst [vmem:[#allocation554_spill] sm:$0xff] %v9638_v33  ;;  %v6370_v33 = vld [vmem:[%s6620_s25 + $0x1a8] sm:$0xff] }
 0x683   : > { %3845 = vrot.lane.b32.xlu2 %v6365_v63, %s6539_s30 }
 0x684   : > { %3843 = vrot.lane.b32.xlu1 %v9215_v26, %s6539_s30 }
 0x685   : > { %3841 = vrot.lane.b32.xlu0 %v6366_v42, %s6539_s30  ;;  %v9646_v62 = vpop.permute.xlu2 %3731 }
 0x686   : > { %v9648_v58 = vpop.permute.xlu1 %3647 }
 0x687   : > { %13123 = vst [vmem:[#allocation555_spill] sm:$0xff] %v9648_v58  ;;  %v9650_v49 = vpop.permute.xlu0 %3645  ;;  %v6368_v58 = vld [vmem:[%s6620_s25 + $0x188] sm:$0xff] }
 0x688   : > { %13124 = vst [vmem:[#allocation556_spill] sm:$0xff] %v9650_v49 }
 0x68b   : > { %3851 = vrot.lane.b32.xlu2 %v9251_v21, %s6539_s30  ;;  %v6369_v21 = vld [vmem:[%s6620_s25 + $0x168] sm:$0xff] }
 0x68c   : > { %3849 = vrot.lane.b32.xlu1 %v6367_v56, %s6539_s30 }
 0x68d   : > { %3847 = vrot.lane.b32.xlu0 %v9233_v10, %s6539_s30  ;;  %v9658_v26 = vpop.permute.xlu2 %3737 }
 0x68e   : > { %13125 = vst [vmem:[#allocation557_spill] sm:$0xff] %v9658_v26  ;;  %v9660_v63 = vpop.permute.xlu1 %3717  ;;  %v9716_v26 = vld [vmem:[%s6620_s25 + $0x240] sm:$0xff] }
 0x68f   : > { %v9662_v42 = vpop.permute.xlu0 %3715 }
 0x693   : > { %3857 = vrot.lane.b32.xlu2 %v6368_v58, %s6539_s30 }
 0x694   : > { %3855 = vrot.lane.b32.xlu1 %v9248_v3, %s6539_s30 }
 0x695   : > { %3853 = vrot.lane.b32.xlu0 %v6369_v21, %s6539_s30  ;;  %v9670_v56 = vpop.permute.xlu2 %3743 }
 0x696   : > { %13126 = vst [vmem:[#allocation558_spill] sm:$0xff] %v9670_v56  ;;  %v9672_v10 = vpop.permute.xlu1 %3723  ;;  %v6371_v56 = vld [vmem:[%s6620_s25 + $0x1e8] sm:$0xff] }
 0x697   : > { %v9674_v49 = vpop.permute.xlu0 %3721 }
 0x698   : > { %13127 = vst [vmem:[#allocation559_spill] sm:$0xff] %v9674_v49 }
 0x69b   : > { %3863 = vrot.lane.b32.xlu2 %v9284_v2, %s6539_s30  ;;  %v6372_v2 = vld [vmem:[%s6620_s25 + $0x1c8] sm:$0xff] }
 0x69c   : > { %3861 = vrot.lane.b32.xlu1 %v6370_v33, %s6539_s30 }
 0x69d   : > { %3859 = vrot.lane.b32.xlu0 %v9266_v15, %s6539_s30  ;;  %v9682_v3 = vpop.permute.xlu2 %3749 }
 0x69e   : > { %13128 = vst [vmem:[#allocation560_spill] sm:$0xff] %v9682_v3  ;;  %v9684_v58 = vpop.permute.xlu1 %3729 }
 0x69f   : > { %13129 = vst [vmem:[#allocation561_spill] sm:$0xff] %v9684_v58  ;;  %v9686_v21 = vpop.permute.xlu0 %3727  ;;  %v6076_v58 = vld [vmem:[%s6620_s25 + $0x220] sm:$0xff] }
 0x6a0   : > { %13130 = vst [vmem:[#allocation562_spill] sm:$0xff] %v9686_v21  ;;  %v9702_v21 = vld [vmem:[%s6620_s25 + $0x200] sm:$0xff] }
 0x6a3   : > { %3869 = vrot.lane.b32.xlu2 %v6371_v56, %s6539_s30  ;;  %v6373_v56 = vld [vmem:[%s6620_s25 + $0x208] sm:$0xff] }
 0x6a4   : > { %3867 = vrot.lane.b32.xlu1 %v9281_v29, %s6539_s30 }
 0x6a5   : > { %3865 = vrot.lane.b32.xlu0 %v6372_v2, %s6539_s30  ;;  %v9694_v33 = vpop.permute.xlu2 %3755 }
 0x6a6   : > { %13131 = vst [vmem:[#allocation563_spill] sm:$0xff] %v9694_v33  ;;  %v9696_v15 = vpop.permute.xlu1 %3735 }
 0x6a7   : > { %v9698_v49 = vpop.permute.xlu0 %3733 }
 0x6a8   : > { %13132 = vst [vmem:[#allocation564_spill] sm:$0xff] %v9698_v49  ;;  %v6374_v49 = vld [vmem:[%s6620_s25 + $0x248] sm:$0xff] }
 0x6ab   : > { %3875 = vrot.lane.b32.xlu2 %v6076_v58, %s6539_s30  ;;  %v6375_v58 = vld [vmem:[%s6620_s25 + $0x228] sm:$0xff] }
 0x6ac   : > { %3873 = vrot.lane.b32.xlu1 %v6373_v56, %s6539_s30 }
 0x6ad   : > { %3871 = vrot.lane.b32.xlu0 %v9702_v21, %s6539_s30  ;;  %v9709_v29 = vpop.permute.xlu2 %3761 }
 0x6ae   : > { %13133 = vst [vmem:[#allocation565_spill] sm:$0xff] %v9709_v29  ;;  %v9711_v2 = vpop.permute.xlu1 %3741 }
 0x6af   : > { %13134 = vst [vmem:[#allocation566_spill] sm:$0xff] %v9711_v2  ;;  %v9713_v33 = vpop.permute.xlu0 %3739 }
 0x6b0   : > { %13135 = vst [vmem:[#allocation567_spill] sm:$0xff] %v9713_v33  ;;  %v9731_v33 = vld [vmem:[%s6620_s25 + $0x280] sm:$0xff] }
 0x6b1   : > { %13138 = vst [vmem:[#allocation570_spill] sm:$0xff] %v9731_v33 }
 0x6b3   : > { %3881 = vrot.lane.b32.xlu2 %v6374_v49, %s6539_s30  ;;  %v6376_v49 = vld [vmem:[%s6620_s25 + $0x268] sm:$0xff] }
 0x6b4   : > { %3879 = vrot.lane.b32.xlu1 %v9716_v26, %s6539_s30 }
 0x6b5   : > { %3877 = vrot.lane.b32.xlu0 %v6375_v58, %s6539_s30  ;;  %v9724_v56 = vpop.permute.xlu2 %3767 }
 0x6b6   : > { %13136 = vst [vmem:[#allocation568_spill] sm:$0xff] %v9724_v56  ;;  %v9726_v29 = vpop.permute.xlu1 %3747 }
 0x6b7   : > { %v9728_v2 = vpop.permute.xlu0 %3745 }
 0x6b8   : > { %13137 = vst [vmem:[#allocation569_spill] sm:$0xff] %v9728_v2 }
 0x6bb   : > { %3887 = vrot.lane.b32.xlu2 %v9731_v33, %s6539_s30  ;;  %v6379_v33 = vld [vmem:[%s6620_s25 + $0x288] sm:$0xff] }
 0x6bc   : > { %3885 = vrot.lane.b32.xlu1 %v6376_v49, %s6539_s30 }
 0x6bd   : > { %3883 = vrot.lane.b32.xlu0 %v9734_v18, %s6539_s30  ;;  %v9742_v58 = vpop.permute.xlu2 %3773 }
 0x6be   : > { %13139 = vst [vmem:[#allocation571_spill] sm:$0xff] %v9742_v58  ;;  %v9744_v56 = vpop.permute.xlu1 %3753 }
 0x6bf   : > { %13140 = vst [vmem:[#allocation572_spill] sm:$0xff] %v9744_v56  ;;  %v9746_v2 = vpop.permute.xlu0 %3751  ;;  %v6380_v56 = vld [vmem:[%s6620_s25 + $0xe5] sm:$0xff] }
 0x6c0   : > { %13141 = vst [vmem:[#allocation573_spill] sm:$0xff] %v9746_v2  ;;  %v6381_v2 = vld [vmem:[%s6620_s25 + $0xcd] sm:$0xff] }
 0x6c3   : > { %3925 = vrot.lane.b32.xlu2 %v6377_v41, %s6540_s3  ;;  %v6382_v41 = vld [vmem:[%s6620_s25 + $0xc5] sm:$0xff] }
 0x6c4   : > { %3923 = vrot.lane.b32.xlu1 %v6378_v11, %s6540_s3 }
 0x6c5   : > { %3889 = vrot.lane.b32.xlu0 %v6379_v33, %s6539_s30  ;;  %v9754_v49 = vpop.permute.xlu2 %3827 }
 0x6c6   : > { %v9756_v58 = vpop.permute.xlu1 %3759 }
 0x6c7   : > { %13142 = vst [vmem:[#allocation574_spill] sm:$0xff] %v9756_v58  ;;  %v9758_v3 = vpop.permute.xlu0 %3757  ;;  %v6383_v58 = vld [vmem:[%s6620_s25 + $0x10d] sm:$0xff] }
 0x6c8   : > { %13143 = vst [vmem:[#allocation575_spill] sm:$0xff] %v9758_v3  ;;  %v6384_v3 = vld [vmem:[%s6620_s25 + $0x105] sm:$0xff] }
 0x6cb   : > { %3931 = vrot.lane.b32.xlu2 %v6380_v56, %s6540_s3  ;;  %v6385_v56 = vld [vmem:[%s6620_s25 + $0xed] sm:$0xff] }
 0x6cc   : > { %3929 = vrot.lane.b32.xlu1 %v6381_v2, %s6540_s3 }
 0x6cd   : > { %3927 = vrot.lane.b32.xlu0 %v6382_v41, %s6540_s3  ;;  %v9766_v11 = vpop.permute.xlu2 %3833 }
 0x6ce   : > { %13144 = vst [vmem:[#allocation576_spill] sm:$0xff] %v9766_v11  ;;  %v9768_v33 = vpop.permute.xlu1 %3765 }
 0x6cf   : > { %13145 = vst [vmem:[#allocation577_spill] sm:$0xff] %v9768_v33  ;;  %v9770_v25 = vpop.permute.xlu0 %3763  ;;  %v6386_v33 = vld [vmem:[%s6620_s25 + $0x145] sm:$0xff] }
 0x6d0   : > { %13146 = vst [vmem:[#allocation578_spill] sm:$0xff] %v9770_v25  ;;  %v6387_v25 = vld [vmem:[%s6620_s25 + $0x12d] sm:$0xff] }
 0x6d3   : > { %3937 = vrot.lane.b32.xlu2 %v6383_v58, %s6540_s3  ;;  %v6388_v58 = vld [vmem:[%s6620_s25 + $0x125] sm:$0xff] }
 0x6d4   : > { %3935 = vrot.lane.b32.xlu1 %v6384_v3, %s6540_s3 }
 0x6d5   : > { %3933 = vrot.lane.b32.xlu0 %v6385_v56, %s6540_s3  ;;  %v9778_v2 = vpop.permute.xlu2 %3839 }
 0x6d6   : > { %13147 = vst [vmem:[#allocation579_spill] sm:$0xff] %v9778_v2  ;;  %v9780_v41 = vpop.permute.xlu1 %3771 }
 0x6d7   : > { %13148 = vst [vmem:[#allocation580_spill] sm:$0xff] %v9780_v41  ;;  %v9782_v11 = vpop.permute.xlu0 %3769  ;;  %v6389_v41 = vld [vmem:[%s6620_s25 + $0x16d] sm:$0xff] }
 0x6d8   : > { %13149 = vst [vmem:[#allocation581_spill] sm:$0xff] %v9782_v11  ;;  %v6390_v11 = vld [vmem:[%s6620_s25 + $0x165] sm:$0xff] }
 0x6db   : > { %3943 = vrot.lane.b32.xlu2 %v6386_v33, %s6540_s3  ;;  %v6391_v33 = vld [vmem:[%s6620_s25 + $0x14d] sm:$0xff] }
 0x6dc   : > { %3941 = vrot.lane.b32.xlu1 %v6387_v25, %s6540_s3 }
 0x6dd   : > { %3939 = vrot.lane.b32.xlu0 %v6388_v58, %s6540_s3  ;;  %v9790_v3 = vpop.permute.xlu2 %3845 }
 0x6de   : > { %13150 = vst [vmem:[#allocation582_spill] sm:$0xff] %v9790_v3  ;;  %v9792_v56 = vpop.permute.xlu1 %3777 }
 0x6df   : > { %13151 = vst [vmem:[#allocation583_spill] sm:$0xff] %v9792_v56  ;;  %v9794_v2 = vpop.permute.xlu0 %3775  ;;  %v6392_v56 = vld [vmem:[%s6620_s25 + $0x1a5] sm:$0xff] }
 0x6e0   : > { %13152 = vst [vmem:[#allocation584_spill] sm:$0xff] %v9794_v2  ;;  %v6393_v2 = vld [vmem:[%s6620_s25 + $0x18d] sm:$0xff] }
 0x6e3   : > { %3949 = vrot.lane.b32.xlu2 %v6389_v41, %s6540_s3  ;;  %v6394_v41 = vld [vmem:[%s6620_s25 + $0x185] sm:$0xff] }
 0x6e4   : > { %3947 = vrot.lane.b32.xlu1 %v6390_v11, %s6540_s3 }
 0x6e5   : > { %3945 = vrot.lane.b32.xlu0 %v6391_v33, %s6540_s3  ;;  %v9802_v25 = vpop.permute.xlu2 %3851 }
 0x6e6   : > { %13153 = vst [vmem:[#allocation585_spill] sm:$0xff] %v9802_v25  ;;  %v9804_v58 = vpop.permute.xlu1 %3831 }
 0x6e7   : > { %13154 = vst [vmem:[#allocation586_spill] sm:$0xff] %v9804_v58  ;;  %v9806_v3 = vpop.permute.xlu0 %3829 }
 0x6eb   : > { %3955 = vrot.lane.b32.xlu2 %v6392_v56, %s6540_s3  ;;  %v6397_v56 = vld [vmem:[%s6620_s25 + $0x1ad] sm:$0xff] }
 0x6ec   : > { %3953 = vrot.lane.b32.xlu1 %v6393_v2, %s6540_s3 }
 0x6ed   : > { %3951 = vrot.lane.b32.xlu0 %v6394_v41, %s6540_s3  ;;  %v9814_v11 = vpop.permute.xlu2 %3857 }
 0x6ee   : > { %13155 = vst [vmem:[#allocation587_spill] sm:$0xff] %v9814_v11  ;;  %v9816_v33 = vpop.permute.xlu1 %3837 }
 0x6ef   : > { %13156 = vst [vmem:[#allocation588_spill] sm:$0xff] %v9816_v33  ;;  %v9818_v25 = vpop.permute.xlu0 %3835  ;;  %v6398_v33 = vld [vmem:[%s6620_s25 + $0x205] sm:$0xff] }
 0x6f0   : > { %13157 = vst [vmem:[#allocation589_spill] sm:$0xff] %v9818_v25  ;;  %v6399_v25 = vld [vmem:[%s6620_s25 + $0x1ed] sm:$0xff] }
 0x6f3   : > { %3961 = vrot.lane.b32.xlu2 %v6395_v39, %s6540_s3  ;;  %v6400_v39 = vld [vmem:[%s6620_s25 + $0x1e5] sm:$0xff] }
 0x6f4   : > { %3959 = vrot.lane.b32.xlu1 %v6396_v5, %s6540_s3 }
 0x6f5   : > { %3957 = vrot.lane.b32.xlu0 %v6397_v56, %s6540_s3  ;;  %v9826_v2 = vpop.permute.xlu2 %3863 }
 0x6f6   : > { %13158 = vst [vmem:[#allocation590_spill] sm:$0xff] %v9826_v2  ;;  %v9828_v41 = vpop.permute.xlu1 %3843 }
 0x6f7   : > { %13159 = vst [vmem:[#allocation591_spill] sm:$0xff] %v9828_v41  ;;  %v9830_v11 = vpop.permute.xlu0 %3841  ;;  %v6401_v41 = vld [vmem:[%s6620_s25 + $0x22d] sm:$0xff] }
 0x6f8   : > { %13160 = vst [vmem:[#allocation592_spill] sm:$0xff] %v9830_v11  ;;  %v6402_v11 = vld [vmem:[%s6620_s25 + $0x225] sm:$0xff] }
 0x6fb   : > { %3967 = vrot.lane.b32.xlu2 %v6398_v33, %s6540_s3  ;;  %v6403_v33 = vld [vmem:[%s6620_s25 + $0x20d] sm:$0xff] }
 0x6fc   : > { %3965 = vrot.lane.b32.xlu1 %v6399_v25, %s6540_s3 }
 0x6fd   : > { %3963 = vrot.lane.b32.xlu0 %v6400_v39, %s6540_s3  ;;  %v9838_v5 = vpop.permute.xlu2 %3869 }
 0x6fe   : > { %13161 = vst [vmem:[#allocation593_spill] sm:$0xff] %v9838_v5  ;;  %v9840_v56 = vpop.permute.xlu1 %3849 }
 0x6ff   : > { %13162 = vst [vmem:[#allocation594_spill] sm:$0xff] %v9840_v56  ;;  %v9842_v2 = vpop.permute.xlu0 %3847  ;;  %v6404_v56 = vld [vmem:[%s6620_s25 + $0x265] sm:$0xff] }
 0x700   : > { %13163 = vst [vmem:[#allocation595_spill] sm:$0xff] %v9842_v2  ;;  %v6405_v2 = vld [vmem:[%s6620_s25 + $0x24d] sm:$0xff] }
 0x703   : > { %3973 = vrot.lane.b32.xlu2 %v6401_v41, %s6540_s3  ;;  %v6406_v41 = vld [vmem:[%s6620_s25 + $0x245] sm:$0xff] }
 0x704   : > { %3971 = vrot.lane.b32.xlu1 %v6402_v11, %s6540_s3 }
 0x705   : > { %3969 = vrot.lane.b32.xlu0 %v6403_v33, %s6540_s3  ;;  %v9850_v25 = vpop.permute.xlu2 %3875 }
 0x706   : > { %13164 = vst [vmem:[#allocation596_spill] sm:$0xff] %v9850_v25  ;;  %v9852_v39 = vpop.permute.xlu1 %3855 }
 0x707   : > { %13165 = vst [vmem:[#allocation597_spill] sm:$0xff] %v9852_v39  ;;  %v9854_v5 = vpop.permute.xlu0 %3853  ;;  %v6407_v39 = vld [vmem:[%s6620_s25 + $0x28d] sm:$0xff] }
 0x708   : > { %13166 = vst [vmem:[#allocation598_spill] sm:$0xff] %v9854_v5  ;;  %v6408_v5 = vld [vmem:[%s6620_s25 + $0x285] sm:$0xff] }
 0x70b   : > { %3979 = vrot.lane.b32.xlu2 %v6404_v56, %s6540_s3  ;;  %v6409_v56 = vld [vmem:[%s6620_s25 + $0x26d] sm:$0xff] }
 0x70c   : > { %3977 = vrot.lane.b32.xlu1 %v6405_v2, %s6540_s3 }
 0x70d   : > { %3975 = vrot.lane.b32.xlu0 %v6406_v41, %s6540_s3  ;;  %v9862_v11 = vpop.permute.xlu2 %3881 }
 0x70e   : > { %13167 = vst [vmem:[#allocation599_spill] sm:$0xff] %v9862_v11  ;;  %v9864_v33 = vpop.permute.xlu1 %3861  ;;  %v6410_v11 = vld [vmem:[%s6620_s25 + $0xca] sm:$0xff] }
 0x70f   : > { %13168 = vst [vmem:[#allocation600_spill] sm:$0xff] %v9864_v33  ;;  %v9866_v25 = vpop.permute.xlu0 %3859  ;;  %v6421_v33 = vld [vmem:[%s6620_s25 + $0x20a] sm:$0xff] }
 0x713   : > { %3985 = vrot.lane.b32.xlu2 %v6407_v39, %s6540_s3  ;;  %v6411_v39 = vld [vmem:[%s6620_s25 + $0xaa] sm:$0xff] }
 0x714   : > { %3983 = vrot.lane.b32.xlu1 %v6408_v5, %s6540_s3 }
 0x715   : > { %3981 = vrot.lane.b32.xlu0 %v6409_v56, %s6540_s3  ;;  %v9874_v2 = vpop.permute.xlu2 %3887 }
 0x716   : > { %13169 = vst [vmem:[#allocation601_spill] sm:$0xff] %v9874_v2  ;;  %v9876_v41 = vpop.permute.xlu1 %3867 }
 0x717   : > { %13170 = vst [vmem:[#allocation602_spill] sm:$0xff] %v9876_v41  ;;  %v9878_v58 = vpop.permute.xlu0 %3865  ;;  %v6412_v41 = vld [vmem:[%s6620_s25 + $0xea] sm:$0xff] }
 0x718   : > { %13171 = vst [vmem:[#allocation603_spill] sm:$0xff] %v9878_v58  ;;  %v6419_v58 = vld [vmem:[%s6620_s25 + $0x1ea] sm:$0xff] }
 0x71b   : > { %4039 = vrot.lane.b32.xlu2 %v6410_v11, %s6541_s4 }
 0x71c   : > { %4037 = vrot.lane.b32.xlu1 %v9473_v53, %s6541_s4 }
 0x71d   : > { %4035 = vrot.lane.b32.xlu0 %v6411_v39, %s6541_s4  ;;  %v9886_v5 = vpop.permute.xlu2 %3925 }
 0x71e   : > { %v9888_v56 = vpop.permute.xlu1 %3873 }
 0x71f   : > { %13172 = vst [vmem:[#allocation604_spill] sm:$0xff] %v9888_v56  ;;  %v9890_v2 = vpop.permute.xlu0 %3871  ;;  %v6413_v56 = vld [vmem:[%s6620_s25 + $0x12a] sm:$0xff] }
 0x720   : > { %13173 = vst [vmem:[#allocation605_spill] sm:$0xff] %v9890_v2 }
 0x723   : > { %4045 = vrot.lane.b32.xlu2 %v9507_v57, %s6541_s4  ;;  %v6414_v57 = vld [vmem:[%s6620_s25 + $0x10a] sm:$0xff] }
 0x724   : > { %4043 = vrot.lane.b32.xlu1 %v6412_v41, %s6541_s4 }
 0x725   : > { %4041 = vrot.lane.b32.xlu0 %v9489_v34, %s6541_s4  ;;  %v9898_v53 = vpop.permute.xlu2 %3931 }
 0x726   : > { %v9900_v11 = vpop.permute.xlu1 %3879 }
 0x727   : > { %13174 = vst [vmem:[#allocation606_spill] sm:$0xff] %v9900_v11  ;;  %v9902_v39 = vpop.permute.xlu0 %3877  ;;  %v6415_v11 = vld [vmem:[%s6620_s25 + $0x14a] sm:$0xff] }
 0x728   : > { %13175 = vst [vmem:[#allocation607_spill] sm:$0xff] %v9902_v39 }
 0x72b   : > { %4051 = vrot.lane.b32.xlu2 %v6413_v56, %s6541_s4 }
 0x72c   : > { %4049 = vrot.lane.b32.xlu1 %v9503_v19, %s6541_s4 }
 0x72d   : > { %4047 = vrot.lane.b32.xlu0 %v6414_v57, %s6541_s4  ;;  %v9910_v41 = vpop.permute.xlu2 %3937 }
 0x72e   : > { %13176 = vst [vmem:[#allocation608_spill] sm:$0xff] %v9910_v41  ;;  %v9912_v34 = vpop.permute.xlu1 %3885 }
 0x72f   : > { %13177 = vst [vmem:[#allocation609_spill] sm:$0xff] %v9912_v34  ;;  %v9914_v2 = vpop.permute.xlu0 %3883  ;;  %v6416_v34 = vld [vmem:[%s6620_s25 + $0x18a] sm:$0xff] }
 0x730   : > { %13178 = vst [vmem:[#allocation610_spill] sm:$0xff] %v9914_v2  ;;  %v6417_v2 = vld [vmem:[%s6620_s25 + $0x16a] sm:$0xff] }
 0x733   : > { %4057 = vrot.lane.b32.xlu2 %v9545_v27, %s6541_s4 }
 0x734   : > { %4055 = vrot.lane.b32.xlu1 %v6415_v11, %s6541_s4 }
 0x735   : > { %4053 = vrot.lane.b32.xlu0 %v9524_v9, %s6541_s4  ;;  %v9922_v19 = vpop.permute.xlu2 %3943 }
 0x736   : > { %v9924_v56 = vpop.permute.xlu1 %3923 }
 0x737   : > { %v9926_v57 = vpop.permute.xlu0 %3889 }
 0x738   : > { %13179 = vst [vmem:[#allocation611_spill] sm:$0xff] %v9926_v57  ;;  %v6418_v57 = vld [vmem:[%s6620_s25 + $0x1aa] sm:$0xff] }
 0x73b   : > { %4063 = vrot.lane.b32.xlu2 %v6416_v34, %s6541_s4 }
 0x73c   : > { %4061 = vrot.lane.b32.xlu1 %v9539_v28, %s6541_s4 }
 0x73d   : > { %4059 = vrot.lane.b32.xlu0 %v6417_v2, %s6541_s4  ;;  %v9934_v11 = vpop.permute.xlu2 %3949 }
 0x73e   : > { %13180 = vst [vmem:[#allocation612_spill] sm:$0xff] %v9934_v11  ;;  %v9936_v9 = vpop.permute.xlu1 %3929 }
 0x73f   : > { %13181 = vst [vmem:[#allocation613_spill] sm:$0xff] %v9936_v9  ;;  %v9938_v41 = vpop.permute.xlu0 %3927 }
 0x740   : > { %13182 = vst [vmem:[#allocation614_spill] sm:$0xff] %v9938_v41  ;;  %v6128_v41 = vld [vmem:[%s6620_s25 + $0x145] sm:$0xff] }
 0x743   : > { %4069 = vrot.lane.b32.xlu2 %v9584_v31, %s6541_s4  ;;  %v6420_v31 = vld [vmem:[%s6620_s25 + $0x1ca] sm:$0xff] }
 0x744   : > { %4067 = vrot.lane.b32.xlu1 %v6418_v57, %s6541_s4 }
 0x745   : > { %4065 = vrot.lane.b32.xlu0 %v9561_v8, %s6541_s4  ;;  %v9946_v34 = vpop.permute.xlu2 %3955 }
 0x746   : > { %v9948_v2 = vpop.permute.xlu1 %3935 }
 0x747   : > { %13183 = vst [vmem:[#allocation615_spill] sm:$0xff] %v9948_v2  ;;  %v9950_v11 = vpop.permute.xlu0 %3933  ;;  %v6096_v2 = vld [vmem:[%s6620_s25 + $0x140] sm:$0xff] }
 0x74b   : > { %4075 = vrot.lane.b32.xlu2 %v6419_v58, %s6541_s4 }
 0x74c   : > { %4073 = vrot.lane.b32.xlu1 %v9578_v14, %s6541_s4 }
 0x74d   : > { %4071 = vrot.lane.b32.xlu0 %v6420_v31, %s6541_s4  ;;  %v9958_v57 = vpop.permute.xlu2 %3961 }
 0x74e   : > { %13184 = vst [vmem:[#allocation616_spill] sm:$0xff] %v9958_v57  ;;  %v9960_v39 = vpop.permute.xlu1 %3941 }
 0x74f   : > { %13185 = vst [vmem:[#allocation617_spill] sm:$0xff] %v9960_v39  ;;  %v9962_v9 = vpop.permute.xlu0 %3939  ;;  %v6097_v39 = vld [vmem:[%s6620_s25 + $0x148] sm:$0xff] }
 0x753   : > { %4163 = vrot.lane.b32.xlu2 %v6096_v2, %s6542_s5 }
 0x754   : > { %4079 = vrot.lane.b32.xlu1 %v6421_v33, %s6541_s4 }
 0x755   : > { %4077 = vrot.lane.b32.xlu0 %v9599_v38, %s6541_s4  ;;  %v9970_v58 = vpop.permute.xlu2 %3967 }
 0x756   : > { %13186 = vst [vmem:[#allocation618_spill] sm:$0xff] %v9970_v58  ;;  %v9972_v31 = vpop.permute.xlu1 %3947 }
 0x757   : > { %13187 = vst [vmem:[#allocation619_spill] sm:$0xff] %v9972_v31  ;;  %v9974_v57 = vpop.permute.xlu0 %3945  ;;  %v6098_v31 = vld [vmem:[%s6620_s25 + $0x160] sm:$0xff] }
 0x758   : > { %13188 = vst [vmem:[#allocation620_spill] sm:$0xff] %v9974_v57  ;;  %v6129_v57 = vld [vmem:[%s6620_s25 + $0x14d] sm:$0xff] }
 0x75b   : > { %4165 = vrot.lane.b32.xlu2 %v6097_v39, %s6542_s5 }
 0x75c   : > { %4419 = vrot.lane.b32.xlu1 %v9521_v55, %s6544_s7 }
 0x75d   : > { %4291 = vrot.lane.b32.xlu0 %v6128_v41, %s6543_s6  ;;  %v9982_v33 = vpop.permute.xlu2 %3973 }
 0x75e   : > { %13189 = vst [vmem:[#allocation621_spill] sm:$0xff] %v9982_v33  ;;  %v9984_v2 = vpop.permute.xlu1 %3953  ;;  %v6136_v33 = vld [vmem:[%s6620_s25 + $0x1c5] sm:$0xff] }
 0x75f   : > { %13190 = vst [vmem:[#allocation622_spill] sm:$0xff] %v9984_v2  ;;  %v9986_v58 = vpop.permute.xlu0 %3951  ;;  %v6130_v2 = vld [vmem:[%s6620_s25 + $0x165] sm:$0xff] }
 0x760   : > { %13191 = vst [vmem:[#allocation623_spill] sm:$0xff] %v9986_v58  ;;  %v6104_v58 = vld [vmem:[%s6620_s25 + $0x1c0] sm:$0xff] }
 0x763   : > { %4167 = vrot.lane.b32.xlu2 %v6098_v31, %s6542_s5 }
 0x764   : > { %4421 = vrot.lane.b32.xlu1 %v9545_v27, %s6544_s7 }
 0x765   : > { %4293 = vrot.lane.b32.xlu0 %v6129_v57, %s6543_s6  ;;  %v9994_v39 = vpop.permute.xlu2 %3979 }
 0x766   : > { %13192 = vst [vmem:[#allocation624_spill] sm:$0xff] %v9994_v39  ;;  %v9996_v55 = vpop.permute.xlu1 %3959  ;;  %v6099_v39 = vld [vmem:[%s6620_s25 + $0x168] sm:$0xff] }
 0x767   : > { %13193 = vst [vmem:[#allocation625_spill] sm:$0xff] %v9996_v55  ;;  %v9998_v41 = vpop.permute.xlu0 %3957  ;;  %v6138_v55 = vld [vmem:[%s6620_s25 + $0x1e5] sm:$0xff] }
 0x768   : > { %13194 = vst [vmem:[#allocation626_spill] sm:$0xff] %v9998_v41  ;;  %v6139_v41 = vld [vmem:[%s6620_s25 + $0x1ed] sm:$0xff] }
 0x76b   : > { %4307 = vrot.lane.b32.xlu2 %v6136_v33, %s6543_s6 }
 0x76c   : > { %4295 = vrot.lane.b32.xlu1 %v6130_v2, %s6543_s6 }
 0x76d   : > { %4179 = vrot.lane.b32.xlu0 %v6104_v58, %s6542_s5  ;;  %v10006_v27 = vpop.permute.xlu2 %3985 }
 0x76e   : > { %13195 = vst [vmem:[#allocation627_spill] sm:$0xff] %v10006_v27  ;;  %v10008_v57 = vpop.permute.xlu1 %3965  ;;  %v6137_v27 = vld [vmem:[%s6620_s25 + $0x1cd] sm:$0xff] }
 0x76f   : > { %13196 = vst [vmem:[#allocation628_spill] sm:$0xff] %v10008_v57  ;;  %v10010_v31 = vpop.permute.xlu0 %3963  ;;  %v6131_v57 = vld [vmem:[%s6620_s25 + $0x16d] sm:$0xff] }
 0x770   : > { %13197 = vst [vmem:[#allocation629_spill] sm:$0xff] %v10010_v31  ;;  %v6105_v31 = vld [vmem:[%s6620_s25 + $0x1c8] sm:$0xff] }
 0x773   : > { %4169 = vrot.lane.b32.xlu2 %v6099_v39, %s6542_s5 }
 0x774   : > { %4435 = vrot.lane.b32.xlu1 %v9581_v17, %s6544_s7 }
 0x775   : > { %4423 = vrot.lane.b32.xlu0 %v9542_v46, %s6544_s7  ;;  %v10018_v33 = vpop.permute.xlu2 %4039 }
 0x776   : > { %v10020_v2 = vpop.permute.xlu1 %3971 }
 0x777   : > { %13198 = vst [vmem:[#allocation630_spill] sm:$0xff] %v10020_v2  ;;  %v10022_v58 = vpop.permute.xlu0 %3969  ;;  %v6145_v2 = vld [vmem:[%s6620_s25 + $0x24d] sm:$0xff] }
 0x778   : > { %13199 = vst [vmem:[#allocation631_spill] sm:$0xff] %v10022_v58  ;;  %v6100_v58 = vld [vmem:[%s6620_s25 + $0x180] sm:$0xff] }
 0x77b   : > { %4309 = vrot.lane.b32.xlu2 %v6137_v27, %s6543_s6 }
 0x77c   : > { %4297 = vrot.lane.b32.xlu1 %v6131_v57, %s6543_s6 }
 0x77d   : > { %4181 = vrot.lane.b32.xlu0 %v6105_v31, %s6542_s5  ;;  %v10030_v17 = vpop.permute.xlu2 %4045 }
 0x77e   : > { %v10032_v46 = vpop.permute.xlu1 %3977 }
 0x77f   : > { %13200 = vst [vmem:[#allocation632_spill] sm:$0xff] %v10032_v46  ;;  %v10034_v39 = vpop.permute.xlu0 %3975  ;;  %v6176_v46 = vld [vmem:[%s6620_s25 + $0x24a] sm:$0xff] }
 0x780   : > { %13201 = vst [vmem:[#allocation633_spill] sm:$0xff] %v10034_v39  ;;  %v6144_v39 = vld [vmem:[%s6620_s25 + $0x245] sm:$0xff] }
 0x783   : > { %4437 = vrot.lane.b32.xlu2 %v9578_v14, %s6544_s7 }
 0x784   : > { %4425 = vrot.lane.b32.xlu1 %v9539_v28, %s6544_s7 }
 0x785   : > { %4195 = vrot.lane.b32.xlu0 %v9716_v26, %s6542_s5  ;;  %v10042_v27 = vpop.permute.xlu2 %4051 }
 0x786   : > { %v10044_v57 = vpop.permute.xlu1 %3983 }
 0x787   : > { %13202 = vst [vmem:[#allocation634_spill] sm:$0xff] %v10044_v57  ;;  %v10046_v31 = vpop.permute.xlu0 %3981  ;;  %v6132_v57 = vld [vmem:[%s6620_s25 + $0x185] sm:$0xff] }
 0x788   : > { %13203 = vst [vmem:[#allocation635_spill] sm:$0xff] %v10046_v31  ;;  %v6106_v31 = vld [vmem:[%s6620_s25 + $0x1e0] sm:$0xff] }
 0x78b   : > { %4171 = vrot.lane.b32.xlu2 %v6100_v58, %s6542_s5 }
 0x78c   : > { %4451 = vrot.lane.b32.xlu1 %v6176_v46, %s6544_s7 }
 0x78d   : > { %4323 = vrot.lane.b32.xlu0 %v6144_v39, %s6543_s6  ;;  %v10054_v28 = vpop.permute.xlu2 %4057 }
 0x78e   : > { %13204 = vst [vmem:[#allocation636_spill] sm:$0xff] %v10054_v28  ;;  %v10056_v14 = vpop.permute.xlu1 %4037  ;;  %v6113_v28 = vld [vmem:[%s6620_s25 + $0x248] sm:$0xff] }
 0x78f   : > { %v10058_v26 = vpop.permute.xlu0 %4035 }
 0x793   : > { %4311 = vrot.lane.b32.xlu2 %v6138_v55, %s6543_s6 }
 0x794   : > { %4299 = vrot.lane.b32.xlu1 %v6132_v57, %s6543_s6 }
 0x795   : > { %4183 = vrot.lane.b32.xlu0 %v6106_v31, %s6542_s5  ;;  %v10066_v58 = vpop.permute.xlu2 %4063 }
 0x796   : > { %13205 = vst [vmem:[#allocation637_spill] sm:$0xff] %v10066_v58  ;;  %v10068_v46 = vpop.permute.xlu1 %4043  ;;  %v6101_v58 = vld [vmem:[%s6620_s25 + $0x188] sm:$0xff] }
 0x797   : > { %v10070_v39 = vpop.permute.xlu0 %4041 }
 0x798   : > { %13206 = vst [vmem:[#allocation638_spill] sm:$0xff] %v10070_v39  ;;  %v10086_v39 = vld [vmem:[%s6620_s25 + $0x252] sm:$0xff] }
 0x799   : > { %13210 = vst [vmem:[#allocation642_spill] sm:$0xff] %v10086_v39 }
 0x79b   : > { %4439 = vrot.lane.b32.xlu2 %v9602_v47, %s6544_s7 }
 0x79c   : > { %4427 = vrot.lane.b32.xlu1 %v9564_v43, %s6544_s7 }
 0x79d   : > { %4197 = vrot.lane.b32.xlu0 %v6113_v28, %s6542_s5  ;;  %v10078_v55 = vpop.permute.xlu2 %4069 }
 0x79e   : > { %13207 = vst [vmem:[#allocation639_spill] sm:$0xff] %v10078_v55  ;;  %v10080_v57 = vpop.permute.xlu1 %4049  ;;  %v6422_v55 = vld [vmem:[%s6620_s25 + $0x22a] sm:$0xff] }
 0x79f   : > { %13208 = vst [vmem:[#allocation640_spill] sm:$0xff] %v10080_v57  ;;  %v10082_v31 = vpop.permute.xlu0 %4047  ;;  %v6133_v57 = vld [vmem:[%s6620_s25 + $0x18d] sm:$0xff] }
 0x7a0   : > { %13209 = vst [vmem:[#allocation641_spill] sm:$0xff] %v10082_v31  ;;  %v6107_v31 = vld [vmem:[%s6620_s25 + $0x1e8] sm:$0xff] }
 0x7a3   : > { %4173 = vrot.lane.b32.xlu2 %v6101_v58, %s6542_s5 }
 0x7a4   : > { %4453 = vrot.lane.b32.xlu1 %v10086_v39, %s6544_s7 }
 0x7a5   : > { %4325 = vrot.lane.b32.xlu0 %v6145_v2, %s6543_s6  ;;  %v10093_v47 = vpop.permute.xlu2 %4075 }
 0x7a6   : > { %13211 = vst [vmem:[#allocation643_spill] sm:$0xff] %v10093_v47  ;;  %v10095_v43 = vpop.permute.xlu1 %4055  ;;  %v6120_v47 = vld [vmem:[%s6620_s25 + $0x2c0] sm:$0xff] }
 0x7a7   : > { %v10097_v28 = vpop.permute.xlu0 %4053 }
 0x7a8   : > { %13212 = vst [vmem:[#allocation644_spill] sm:$0xff] %v10097_v28  ;;  %v6102_v28 = vld [vmem:[%s6620_s25 + $0x1a0] sm:$0xff] }
 0x7ab   : > { %4301 = vrot.lane.b32.xlu2 %v6133_v57, %s6543_s6 }
 0x7ac   : > { %4083 = vrot.lane.b32.xlu1 %v6422_v55, %s6541_s4 }
 0x7ad   : > { %4185 = vrot.lane.b32.xlu0 %v6107_v31, %s6542_s5  ;;  %v4164_v58 = vpop.permute.xlu2 %4163 }
 0x7ae   : > { %v10105_v39 = vpop.permute.xlu1 %4061 }
 0x7af   : > { %13213 = vst [vmem:[#allocation645_spill] sm:$0xff] %v10105_v39  ;;  %v10107_v2 = vpop.permute.xlu0 %4059 }
 0x7b0   : > { %13214 = vst [vmem:[#allocation646_spill] sm:$0xff] %v10107_v2  ;;  %v6146_v2 = vld [vmem:[%s6620_s25 + $0x265] sm:$0xff] }
 0x7b3   : > { %4211 = vrot.lane.b32.xlu2 %v6120_v47, %s6542_s5 }
 0x7b4   : > { %4199 = vrot.lane.b32.xlu1 %v9734_v18, %s6542_s5 }
 0x7b5   : > { %4313 = vrot.lane.b32.xlu0 %v6139_v41, %s6543_s6  ;;  %v10115_v57 = vpop.permute.xlu2 %4165  ;;  %v6152_v41 = vld [vmem:[%s6620_s25 + $0x2c5] sm:$0xff] }
 0x7b6   : > { %v10117_v55 = vpop.permute.xlu1 %4067 }
 0x7b7   : > { %v10119_v31 = vpop.permute.xlu0 %4065 }
 0x7b8   : > { %13215 = vst [vmem:[#allocation647_spill] sm:$0xff] %v10119_v31 }
 0x7bc   : > { %4441 = vrot.lane.b32.xlu1 %v9599_v38, %s6544_s7 }
 0x7bd   : > { %4429 = vrot.lane.b32.xlu0 %v9561_v8, %s6544_s7  ;;  %v10125_v39 = vpop.permute.xlu2 %4167 }
 0x7be   : > { %v10127_v18 = vpop.permute.xlu1 %4073 }
 0x7bf   : > { %13216 = vst [vmem:[#allocation648_spill] sm:$0xff] %v10127_v18  ;;  %v10129_v47 = vpop.permute.xlu0 %4071  ;;  %v4515_v18 = vsel %vm2804_vm0, %v9361_v12, %v9197_v51 }
 0x7c0   : > { %13217 = vst [vmem:[#allocation649_spill] sm:$0xff] %v10129_v47  ;;  %v4547_v47 = vsel %vm2837_vm1, %v4515_v18, %v9304_v36  ;;  %v6134_v18 = vld [vmem:[%s6620_s25 + $0x1a5] sm:$0xff] }
 0x7c4   : > { %4339 = vrot.lane.b32.xlu1 %v6152_v41, %s6543_s6  ;;  %v6184_v41 = vld [vmem:[%s6620_s25 + $0x2ca] sm:$0xff] }
 0x7c5   : > { %4327 = vrot.lane.b32.xlu0 %v6146_v2, %s6543_s6  ;;  %v10135_v31 = vpop.permute.xlu2 %4307  ;;  %v4579_v2 = vsel %vm2870_vm2, %v4547_v47, %v9483_v35 }
 0x7c6   : > { %v10137_v38 = vpop.permute.xlu1 %4079 }
 0x7c7   : > { %13218 = vst [vmem:[#allocation650_spill] sm:$0xff] %v10137_v38  ;;  %v10139_v8 = vpop.permute.xlu0 %4077  ;;  %v4611_v38 = vsel %vm2903_vm3, %v4579_v2, %v9662_v42  ;;  %v4516_v2 = vsel %vm2804_vm0, %v9376_v40, %v9195_v1 }
 0x7c8   : > { %13219 = vst [vmem:[#allocation651_spill] sm:$0xff] %v10139_v8  ;;  %v4643_v8 = vsel %vm12520_vm4, %v4611_v38, %v9754_v49 }
 0x7c9   : > { %v4675_v12 = vsel %vm2969_vm5, %v4643_v8, %v9924_v56  ;;  %v6178_v8 = vld [vmem:[%s6620_s25 + $0x26a] sm:$0xff] }
 0x7ca   : > { %v4707_v51 = vsel %vm12516_vm6, %v4675_v12, %v10058_v26  ;;  %v10168_v26 = vld [vmem:[%s6620_s25 + $0x232] sm:$0xff]  ;;  %v6121_v12 = vld [vmem:[%s6620_s25 + $0x2c8] sm:$0xff] }
 0x7cb   : > { %v4739_v42 = vsel %vm3035_vm7, %v4707_v51, %v4164_v58 }
 0x7cc   : > { %4175 = vrot.lane.b32.xlu1 %v6102_v28, %s6542_s5 }
 0x7cd   : > { %4467 = vrot.lane.b32.xlu0 %v6184_v41, %s6544_s7  ;;  %v10160_v36 = vpop.permute.xlu2 %4169  ;;  %v4548_v41 = vsel %vm2837_vm1, %v4516_v2, %v9356_v22 }
 0x7ce   : > { %v4420_v35 = vpop.permute.xlu1 %4419  ;;  %v4580_v51 = vsel %vm2870_vm2, %v4548_v41, %v9442_v52 }
 0x7cf   : > { %v4292_v49 = vpop.permute.xlu0 %4291 }
 0x7d0   : > { %v4771_v28 = vsel %vm3068_vm8, %v4739_v42, %v4292_v49  ;;  %v4612_v42 = vsel %vm2903_vm3, %v4580_v51, %v9660_v63  ;;  %v6166_v51 = vld [vmem:[%s6620_s25 + $0x1aa] sm:$0xff] }
 0x7d1   : > { %v4803_v56 = vsel %vm3101_vm9, %v4771_v28, %v4420_v35  ;;  %v6115_v35 = vld [vmem:[%s6620_s25 + $0x268] sm:$0xff]  ;;  %v4644_v49 = vsel %vm12520_vm4, %v4612_v42, %v9806_v3 }
 0x7d2   : > { %4867 = vrot.lane.b32.xlu2 %v4803_v56, %s6550_s22  ;;  %v4676_v1 = vsel %vm2969_vm5, %v4644_v49, %v9886_v5  ;;  %v6172_v28 = vld [vmem:[%s6620_s25 + $0x20a] sm:$0xff] }
 0x7d3   : > { %v4708_v40 = vsel %vm12516_vm6, %v4676_v1, %v10056_v14  ;;  %v6109_v42 = vld [vmem:[%s6620_s25 + $0x208] sm:$0xff] }
 0x7d4   : > { %4303 = vrot.lane.b32.xlu1 %v6134_v18, %s6543_s6  ;;  %v4740_v63 = vsel %vm3035_vm7, %v4708_v40, %v10115_v57  ;;  %v6103_v1 = vld [vmem:[%s6620_s25 + $0x1a8] sm:$0xff] }
 0x7d5   : > { %4085 = vrot.lane.b32.xlu0 %v10168_v26, %s6541_s4  ;;  %v10173_v58 = vpop.permute.xlu2 %4309  ;;  %v5009_v40 = vld [vmem:[%s12486_s1 + $0x68] sm:$0xf] }
 0x7d6   : > { %v4422_v47 = vpop.permute.xlu1 %4421  ;;  %6192 = vmatpush.msk.msra.mxu0 %vm5107_vm10, %v5009_v40  ;;  %6229 = vmatpush.msk.msra.mxu1 %vm5107_vm10, %v5009_v40 }
 0x7d7   : > { %v4294_v38 = vpop.permute.xlu0 %4293  ;;  %6230 = vmatpush.msk.msra.mxu2 %vm5107_vm10, %v5009_v40  ;;  %6231 = vmatpush.msk.msra.mxu3 %vm5107_vm10, %v5009_v40  ;;  %v6424_v40 = vld [vmem:[%s6620_s25 + $0x14d] sm:$0xff]  ;;  %vm12518_vm10 = vcmask 490496  }
 0x7d8   : > { %v4772_v5 = vsel %vm3068_vm8, %v4740_v63, %v4294_v38  ;;  %v6140_v38 = vld [vmem:[%s6620_s25 + $0x205] sm:$0xff] }
 0x7d9   : > { %v4804_v56 = vsel %vm3101_vm9, %v4772_v5, %v4422_v47  ;;  %v6016_v47 = vld [vmem:[%s6620_s25 + $0x205] sm:$0xff] }
 0x7da   : > { %4455 = vrot.lane.b32.xlu2 %v6178_v8, %s6544_s7  ;;  %v10219_v8 = vld [vmem:[%s6620_s25 + $0x272] sm:$0xff]  ;;  %v5008_v63 = vld [vmem:[%s12486_s1 + $0x60] sm:$0xff] }
 0x7db   : > { %5114 = vmatpush.msra.mxu0 %v5008_v63  ;;  %6232 = vmatpush.msra.mxu1 %v5008_v63 }
 0x7dc   : > { %4213 = vrot.lane.b32.xlu1 %v6121_v12, %s6542_s5  ;;  %6233 = vmatpush.msra.mxu2 %v5008_v63 }
 0x7dd   : > { %4201 = vrot.lane.b32.xlu0 %v6115_v35, %s6542_s5  ;;  %v10196_v22 = vpop.permute.xlu2 %4437  ;;  %v4531_v35 = vsel %vm2804_vm0, %v6016_v47, %v9276_v61  ;;  %6234 = vmatpush.msra.mxu3 %v5008_v63  ;;  %v4520_v63 = vsel %vm2804_vm0, %v6424_v40, %v9163_v23 }
 0x7de   : > { %v10198_v52 = vpop.permute.xlu1 %4295  ;;  %v4563_v49 = vsel %vm2837_vm1, %v4531_v35, %v9422_v48  ;;  %v10283_v35 = vld [vmem:[%s12486_s1 + $0x48] sm:$0xff]  ;;  %v4552_v23 = vsel %vm2837_vm1, %v4520_v63, %v9369_v16 }
 0x7df   : > { %v10202_v3 = vpop.permute.xlu0 %4179  ;;  %v4595_v5 = vsel %vm2870_vm2, %v4563_v49, %v9514_v37  ;;  %v5007_v37 = vld [vmem:[%s12486_s1 + $0x58] sm:$0xff]  ;;  %v6423_v49 = vld [vmem:[%s6620_s25 + $0x125] sm:$0xff] }
 0x7e0   : > { %v4627_v61 = vsel %vm2903_vm3, %v4595_v5, %v9726_v29  ;;  %5115 = vmatpush.msra.mxu0 %v5007_v37  ;;  %6235 = vmatpush.msra.mxu1 %v5007_v37  ;;  %v6425_v5 = vld [vmem:[%s6620_s25 + $0x185] sm:$0xff] }
 0x7e1   : > { %v4659_v48 = vsel %vm12520_vm4, %v4627_v61, %v9866_v25  ;;  %6236 = vmatpush.msra.mxu2 %v5007_v37  ;;  %v4523_v61 = vsel %vm2804_vm0, %v6425_v5, %v9175_v45  ;;  %6237 = vmatpush.msra.mxu3 %v5007_v37  ;;  %v6167_v37 = vld [vmem:[%s6620_s25 + $0x1b2] sm:$0xff]  ;;  %v13221_v63 = vld [vmem:[#allocation588_spill] sm:$0xff] }
 0x7e2   : > { %4187 = vrot.lane.b32.xlu2 %v9702_v21, %s6542_s5  ;;  %v6153_v21 = vld [vmem:[%s6620_s25 + $0x2cd] sm:$0xff] }
 0x7e4   : > { %4869 = vrot.lane.b32.xlu1 %v4804_v56, %s6550_s22 }
 0x7e5   : > { %4443 = vrot.lane.b32.xlu0 %v6172_v28, %s6544_s7  ;;  %v10211_v14 = vpop.permute.xlu2 %4171  ;;  %v4691_v28 = vsel %vm2969_vm5, %v4659_v48, %v9946_v34  ;;  %v5006_v34 = vld [vmem:[%s12486_s1 + $0x50] sm:$0xff]  ;;  %v6426_v48 = vld [vmem:[%s6620_s25 + $0x145] sm:$0xff] }
 0x7e6   : > { %v10213_v57 = vpop.permute.xlu1 %4435  ;;  %v4723_v25 = vsel %vm12516_vm6, %v4691_v28, %v10117_v55  ;;  %5116 = vmatpush.msra.mxu0 %v5006_v34  ;;  %v6135_v55 = vld [vmem:[%s6620_s25 + $0x1ad] sm:$0xff]  ;;  %6238 = vmatpush.msra.mxu1 %v5006_v34  ;;  %v4519_v28 = vsel %vm2804_vm0, %v6426_v48, %v9210_v24  ;;  %v4555_v24 = vsel %vm2837_vm1, %v4523_v61, %v9384_v32 }
 0x7e7   : > { %v10215_v18 = vpop.permute.xlu0 %4423  ;;  %6239 = vmatpush.msra.mxu2 %v5006_v34  ;;  %v4551_v45 = vsel %vm2837_vm1, %v4519_v28, %v9371_v60  ;;  %6240 = vmatpush.msra.mxu3 %v5006_v34  ;;  %v13222_v61 = vld [vmem:[#allocation589_spill] sm:$0xff]  ;;  %v13223_v34 = vld [vmem:[#allocation591_spill] sm:$0xff] }
 0x7e8   : > { %5117 = vmatpush.msra.mxu0 %v10283_v35  ;;  %6241 = vmatpush.msra.mxu1 %v10283_v35  ;;  %v4583_v16 = vsel %vm2870_vm2, %v4551_v45, %v9454_v13  ;;  %v6185_v13 = vld [vmem:[%s6620_s25 + $0x2d2] sm:$0xff] }
 0x7e9   : > { %6242 = vmatpush.msra.mxu2 %v10283_v35  ;;  %6243 = vmatpush.msra.mxu3 %v10283_v35 }
 0x7ea   : > { %4315 = vrot.lane.b32.xlu2 %v6140_v38, %s6543_s6 }
 0x7ec   : > { %4457 = vrot.lane.b32.xlu1 %v10219_v8, %s6544_s7 }
 0x7ed   : > { %4341 = vrot.lane.b32.xlu0 %v6153_v21, %s6543_s6  ;;  %v10227_v2 = vpop.permute.xlu2 %4311  ;;  %v6147_v21 = vld [vmem:[%s6620_s25 + $0x26d] sm:$0xff] }
 0x7ee   : > { %v10229_v41 = vpop.permute.xlu1 %4297 }
 0x7ef   : > { %v10231_v12 = vpop.permute.xlu0 %4181 }
 0x7f2   : > { %4431 = vrot.lane.b32.xlu2 %v6166_v51, %s6544_s7  ;;  %v6141_v51 = vld [vmem:[%s6620_s25 + $0x20d] sm:$0xff] }
 0x7f4   : > { %4189 = vrot.lane.b32.xlu1 %v6109_v42, %s6542_s5  ;;  %v10288_v42 = vld [vmem:[%s12486_s1 + $0x40] sm:$0xff] }
 0x7f5   : > { %4177 = vrot.lane.b32.xlu0 %v6103_v1, %s6542_s5  ;;  %v10263_v56 = vpop.permute.xlu2 %4439  ;;  %v4517_v1 = vsel %vm2804_vm0, %v6423_v49, %v9151_v4  ;;  %5118 = vmatpush.msra.mxu0 %v10288_v42  ;;  %v4587_v49 = vsel %vm2870_vm2, %v4555_v24, %v9536_v6  ;;  %v4615_v6 = vsel %vm2903_vm3, %v4583_v16, %v9672_v10  ;;  %v10373_v10 = vld [vmem:[%s12486_s1 + $0x28] sm:$0xff] }
 0x7f6   : > { %v10265_v29 = vpop.permute.xlu1 %4425  ;;  %v4549_v4 = vsel %vm2837_vm1, %v4517_v1, %v9354_v59  ;;  %6244 = vmatpush.msra.mxu1 %v10288_v42  ;;  %6245 = vmatpush.msra.mxu2 %v10288_v42  ;;  %v4647_v48 = vsel %vm12520_vm4, %v4615_v6, %v13222_v61 }
 0x7f7   : > { %v4196_v38 = vpop.permute.xlu0 %4195  ;;  %v4581_v32 = vsel %vm2870_vm2, %v4549_v4, %v9500_v20  ;;  %v10350_v20 = vld [vmem:[%s12486_s1 + $0x30] sm:$0xff]  ;;  %v4679_v4 = vsel %vm2969_vm5, %v4647_v48, %v9898_v53  ;;  %6246 = vmatpush.msra.mxu3 %v10288_v42  ;;  %v4996_v48 = vld [vmem:[%s12486_s1] sm:$0xff] }
 0x7f8   : > { %v10272_v47 = vsel %vm3035_vm7, %v4723_v25, %v4196_v38  ;;  %v6427_v25 = vld [vmem:[%s6620_s25 + $0x1a5] sm:$0xff] }
 0x7f9   : > { %v4525_v38 = vsel %vm2804_vm0, %v6427_v25, %v9243_v0  ;;  %v10319_v0 = vld [vmem:[%s12486_s1 + $0x38] sm:$0xff]  ;;  %v13224_v25 = vld [vmem:[#allocation595_spill] sm:$0xff] }
 0x7fa   : > { %4329 = vrot.lane.b32.xlu2 %v6147_v21, %s6543_s6  ;;  %v4557_v59 = vsel %vm2837_vm1, %v4525_v38, %v9398_v50  ;;  %v4584_v50 = vsel %vm2870_vm2, %v4552_v23, %v9518_v54  ;;  %5119 = vmatpush.msra.mxu0 %v10319_v0  ;;  %v4619_v54 = vsel %vm2903_vm3, %v4587_v49, %v9646_v62  ;;  %v6122_v62 = vld [vmem:[%s6620_s25 + $0x2e0] sm:$0xff]  ;;  %v13226_v49 = vld [vmem:[#allocation614_spill] sm:$0xff] }
 0x7fb   : > { %v4616_v1 = vsel %vm2903_vm3, %v4584_v50, %v9634_v7  ;;  %6247 = vmatpush.msra.mxu1 %v10319_v0  ;;  %v13220_v7 = vld [vmem:[#allocation586_spill] sm:$0xff]  ;;  %v4651_v28 = vsel %vm12520_vm4, %v4619_v54, %v13223_v34  ;;  %6248 = vmatpush.msra.mxu2 %v10319_v0 }
 0x7fc   : > { %4317 = vrot.lane.b32.xlu1 %v6141_v51, %s6543_s6  ;;  %v4589_v51 = vsel %vm2870_vm2, %v4557_v59, %v9481_v30  ;;  %v4613_v30 = vsel %vm2903_vm3, %v4581_v32, %v9622_v44  ;;  %5120 = vmatpush.msra.mxu0 %v10350_v20  ;;  %v4648_v5 = vsel %vm12520_vm4, %v4616_v1, %v13221_v63  ;;  %v6017_v59 = vld [vmem:[%s6620_s25 + $0x20d] sm:$0xff]  ;;  %v13227_v54 = vld [vmem:[#allocation522_spill] sm:$0xff] }
 0x7fd   : > { %4305 = vrot.lane.b32.xlu0 %v6135_v55, %s6543_s6  ;;  %v4174_v21 = vpop.permute.xlu2 %4173  ;;  %v4621_v44 = vsel %vm2903_vm3, %v4589_v51, %v9696_v15  ;;  %v4645_v40 = vsel %vm12520_vm4, %v4613_v30, %v13220_v7  ;;  %v10378_v15 = vld [vmem:[%s12486_s1 + $0x20] sm:$0xff]  ;;  %6250 = vmatpush.msra.mxu1 %v10350_v20  ;;  %v4680_v45 = vsel %vm2969_vm5, %v4648_v5, %v9950_v11  ;;  %v10409_v11 = vld [vmem:[%s12486_s1 + $0x18] sm:$0xff]  ;;  %v4998_v1 = vld [vmem:[%s12486_s1 + $0x10] sm:$0xff] }
 0x7fe   : > { %v10327_v60 = vpop.permute.xlu1 %4451  ;;  %v4653_v38 = vsel %vm12520_vm4, %v4621_v44, %v13224_v25  ;;  %5121 = vmatpush.msra.mxu0 %v10373_v10  ;;  %v4683_v24 = vsel %vm2969_vm5, %v4651_v28, %v9962_v9  ;;  %v4712_v53 = vsel %vm12516_vm6, %v4680_v45, %v10030_v17  ;;  %6251 = vmatpush.msra.mxu2 %v10350_v20  ;;  %v4997_v63 = vld [vmem:[%s12486_s1 + $0x8] sm:$0xff]  ;;  %v13232_v28 = vld [vmem:[#allocation639_spill] sm:$0xff]  ;;  %v13233_v45 = vld [vmem:[#allocation570_spill] sm:$0xff] }
 0x7ff   : > { %v10337_v55 = vpop.permute.xlu0 %4323  ;;  %v4685_v23 = vsel %vm2969_vm5, %v4653_v38, %v9922_v19  ;;  %6253 = vmatpush.msra.mxu1 %v10373_v10  ;;  %v4715_v16 = vsel %vm12516_vm6, %v4683_v24, %v10042_v27  ;;  %v4711_v19 = vsel %vm12516_vm6, %v4679_v4, %v10068_v46  ;;  %v4744_v27 = vsel %vm3035_vm7, %v4712_v53, %v4174_v21  ;;  %v13229_v5 = vld [vmem:[#allocation560_spill] sm:$0xff] }
 0x800   : > { %5122 = vmatpush.msra.mxu0 %v10378_v15  ;;  %v4717_v9 = vsel %vm12516_vm6, %v4685_v23, %v10095_v43  ;;  %v4743_v17 = vsel %vm3035_vm7, %v4711_v19, %v10211_v14  ;;  %v4747_v46 = vsel %vm3035_vm7, %v4715_v16, %v10202_v3  ;;  %v13225_v14 = vld [vmem:[#allocation488_spill] sm:$0xff]  ;;  %v4677_v30 = vsel %vm2969_vm5, %v4645_v40, %v13226_v49  ;;  %v13235_v19 = vld [vmem:[#allocation34_spill] sm:$0xff]  ;;  %v13239_v49 = vld [vmem:[#allocation145_spill] sm:$0xff] }
 0x801   : > { %6256 = vmatpush.msra.mxu1 %v10378_v15  ;;  %v4532_v21 = vsel %vm2804_vm0, %v6017_v59, %v13225_v14  ;;  %6254 = vmatpush.msra.mxu2 %v10373_v10  ;;  %v4709_v35 = vsel %vm12516_vm6, %v4677_v30, %v10018_v33  ;;  %v4779_v7 = vsel %vm3068_vm8, %v4747_v46, %v10135_v31  ;;  %v6428_v40 = vld [vmem:[%s6620_s25 + $0x24a] sm:$0xff]  ;;  %v13240_v30 = vld [vmem:[#allocation518_spill] sm:$0xff] }
 0x802   : > { %4469 = vrot.lane.b32.xlu2 %v6185_v13, %s6544_s7  ;;  %5123 = vmatpush.msra.mxu0 %v10409_v11  ;;  %v4564_v6 = vsel %vm2837_vm1, %v4532_v21, %v13227_v54  ;;  %v4811_v31 = vsel %vm3101_vm9, %v4779_v7, %v10213_v57  ;;  %v6180_v23 = vld [vmem:[%s6620_s25 + $0x28a] sm:$0xff]  ;;  %v13244_v7 = vld [vmem:[#allocation578_spill] sm:$0xff] }
 0x803   : > { %6259 = vmatpush.msra.mxu1 %v10409_v11  ;;  %6257 = vmatpush.msra.mxu2 %v10378_v15  ;;  %v6154_v24 = vld [vmem:[%s6620_s25 + $0x2e5] sm:$0xff] }
 0x804   : > { %4433 = vrot.lane.b32.xlu1 %v6167_v37, %s6544_s7  ;;  %5124 = vmatpush.msra.mxu0 %v4998_v1  ;;  %v4741_v37 = vsel %vm3035_vm7, %v4709_v35, %v10125_v39  ;;  %v5520_v59 = vld [vmem:[%s6620_s25 + $0x84] sm:$0xff] }
 0x805   : > { %4215 = vrot.lane.b32.xlu0 %v6122_v62, %s6542_s5  ;;  %v4302_v51 = vpop.permute.xlu2 %4301  ;;  %6262 = vmatpush.msra.mxu1 %v4998_v1  ;;  %v4773_v39 = vsel %vm3068_vm8, %v4741_v37, %v10198_v52  ;;  %v13230_v52 = vld [vmem:[#allocation600_spill] sm:$0xff]  ;;  %v13231_v62 = vld [vmem:[#allocation626_spill] sm:$0xff]  ;;  %v13242_v35 = vld [vmem:[#allocation551_spill] sm:$0xff] }
 0x806   : > { %v4300_v32 = vpop.permute.xlu1 %4299  ;;  %v10421_v50 = vsel %vm3068_vm8, %v4744_v27, %v4302_v51  ;;  %5125 = vmatpush.msra.mxu0 %v4997_v63  ;;  %6260 = vmatpush.msra.mxu2 %v10409_v11  ;;  %v6024_v16 = vld [vmem:[%s6620_s25 + $0x285] sm:$0xff]  ;;  %v10501_v27 = vld [vmem:[%s6620_s25 + $0x212] sm:$0xff] }
 0x807   : > { %v10424_v13 = vsel %vm3068_vm8, %v4743_v17, %v4300_v32  ;;  %v4184_v43 = vpop.permute.xlu0 %4183  ;;  %6265 = vmatpush.msra.mxu1 %v4997_v63  ;;  %6249 = vmatpush.msra.mxu3 %v10319_v0  ;;  %v13234_v0 = vld [vmem:[#allocation10_spill] sm:$0xff]  ;;  %v13241_v54 = vld [vmem:[#allocation168_spill] sm:$0xff] }
 0x808   : > { %v4749_v3 = vsel %vm3035_vm7, %v4717_v9, %v4184_v43  ;;  %5126 = vmatpush.msra.mxu0 %v4996_v48  ;;  %6263 = vmatpush.msra.mxu2 %v4998_v1  ;;  %v2805_v53 = vsel %vm2804_vm0, %v5520_v59, %v13234_v0  ;;  %v13238_v43 = vld [vmem:[#allocation505_spill] sm:$0xff]  ;;  %v13243_v37 = vld [vmem:[#allocation202_spill] sm:$0xff] }
 0x809   : > { %v4781_v44 = vsel %vm3068_vm8, %v4749_v3, %v10227_v2  ;;  %v13228_v2 = vld [vmem:[#allocation547_spill] sm:$0xff]  ;;  %6268 = vmatpush.msra.mxu1 %v4996_v48  ;;  %6252 = vmatpush.msra.mxu3 %v10350_v20  ;;  %v2838_v9 = vsel %vm2837_vm1, %v2805_v53, %v13235_v19  ;;  %v4539_v14 = vsel %vm2804_vm0, %v6024_v16, %v13238_v43  ;;  %v6431_v16 = vld [vmem:[%s6620_s25 + $0x1ad] sm:$0xff]  ;;  %v13257_v43 = vld [vmem:[#allocation514_spill] sm:$0xff] }
 0x80a   : > { %4087 = vrot.lane.b32.xlu2 %v6428_v40, %s6541_s4  ;;  %v10456_v33 = vsel %vm3101_vm9, %v4781_v44, %v10263_v56  ;;  %v4596_v42 = vsel %vm2870_vm2, %v4564_v6, %v13228_v2  ;;  %v4805_v56 = vsel %vm3101_vm9, %v4773_v39, %v10215_v18  ;;  %6266 = vmatpush.msra.mxu2 %v4997_v63  ;;  %v13245_v2 = vld [vmem:[#allocation642_spill] sm:$0xff]  ;;  %v6148_v53 = vld [vmem:[%s6620_s25 + $0x285] sm:$0xff] }
 0x80b   : > { %v4628_v61 = vsel %vm2903_vm3, %v4596_v42, %v13229_v5  ;;  %6255 = vmatpush.msra.mxu3 %v10373_v10  ;;  %v13236_v10 = vld [vmem:[#allocation97_spill] sm:$0xff]  ;;  %v4571_v3 = vsel %vm2837_vm1, %v4539_v14, %v13240_v30  ;;  %v13247_v5 = vld [vmem:[#allocation596_spill] sm:$0xff] }
 0x80c   : > { %4883 = vrot.lane.b32.xlu1 %v4811_v31, %s6550_s22  ;;  %v4660_v57 = vsel %vm12520_vm4, %v4628_v61, %v13230_v52  ;;  %6269 = vmatpush.msra.mxu2 %v4996_v48  ;;  %v2871_v51 = vsel %vm2870_vm2, %v2838_v9, %v13236_v10  ;;  %v4603_v44 = vsel %vm2870_vm2, %v4571_v3, %v13242_v35  ;;  %v13246_v42 = vld [vmem:[#allocation221_spill] sm:$0xff]  ;;  %v6018_v31 = vld [vmem:[%s6620_s25 + $0x225] sm:$0xff]  ;;  %v13255_v10 = vld [vmem:[#allocation538_spill] sm:$0xff] }
 0x80d   : > { %4871 = vrot.lane.b32.xlu0 %v4805_v56, %s6550_s22  ;;  %v4692_v34 = vsel %vm2969_vm5, %v4660_v57, %v13231_v62  ;;  %6258 = vmatpush.msra.mxu3 %v10378_v15  ;;  %v13237_v15 = vld [vmem:[#allocation131_spill] sm:$0xff]  ;;  %v4635_v40 = vsel %vm2903_vm3, %v4603_v44, %v13244_v7  ;;  %v13248_v52 = vld [vmem:[#allocation264_spill] sm:$0xff]  ;;  %v13261_v44 = vld [vmem:[#allocation546_spill] sm:$0xff] }
 0x80e   : > { %v10478_v18 = vpop.permute.xlu1 %4427  ;;  %v4724_v25 = vsel %vm12516_vm6, %v4692_v34, %v13232_v28  ;;  %v2904_v46 = vsel %vm2903_vm3, %v2871_v51, %v13237_v15  ;;  %v4667_v61 = vsel %vm12520_vm4, %v4635_v40, %v13247_v5  ;;  %v6429_v56 = vld [vmem:[%s6620_s25 + $0x220] sm:$0xff]  ;;  %v6430_v62 = vld [vmem:[%s6620_s25 + $0x18d] sm:$0xff] }
 0x80f   : > { %v4198_v38 = vpop.permute.xlu0 %4197  ;;  %6261 = vmatpush.msra.mxu3 %v10409_v11  ;;  %v2937_v11 = vsel %vm12520_vm4, %v2904_v46, %v13239_v49  ;;  %v13249_v34 = vld [vmem:[#allocation492_spill] sm:$0xff]  ;;  %v13256_v15 = vld [vmem:[#allocation317_spill] sm:$0xff] }
 0x810   : > { %v4756_v4 = vsel %vm3035_vm7, %v4724_v25, %v4198_v38  ;;  %v2970_v6 = vsel %vm2969_vm5, %v2937_v11, %v13241_v54  ;;  %v4524_v28 = vsel %vm2804_vm0, %v6430_v62, %v13249_v34  ;;  %v13250_v25 = vld [vmem:[#allocation630_spill] sm:$0xff]  ;;  %v13254_v9 = vld [vmem:[#allocation500_spill] sm:$0xff]  ;;  %v13258_v49 = vld [vmem:[#allocation517_spill] sm:$0xff] }
 0x811   : > { %6264 = vmatpush.msra.mxu3 %v4998_v1  ;;  %v3003_v1 = vsel %vm12516_vm6, %v2970_v6, %v13243_v37  ;;  %v4699_v38 = vsel %vm2969_vm5, %v4667_v61, %v13250_v25  ;;  %v13259_v30 = vld [vmem:[#allocation564_spill] sm:$0xff]  ;;  %v13260_v6 = vld [vmem:[#allocation541_spill] sm:$0xff]  ;;  %v13268_v34 = vld [vmem:[#allocation590_spill] sm:$0xff] }
 0x812   : > { %4203 = vrot.lane.b32.xlu2 %v13233_v45, %s6542_s5  ;;  %v3036_v39 = vsel %vm3035_vm7, %v3003_v1, %v13246_v42  ;;  %v6123_v54 = vld [vmem:[%s6620_s25 + $0x2e8] sm:$0xff]  ;;  %v13262_v1 = vld [vmem:[#allocation582_spill] sm:$0xff]  ;;  %v13263_v42 = vld [vmem:[#allocation487_spill] sm:$0xff] }
 0x813   : > { %6267 = vmatpush.msra.mxu3 %v4997_v63  ;;  %v4212_v63 = vpop.permute.xlu2 %4211  ;;  %v3069_v57 = vsel %vm3068_vm8, %v3036_v39, %v13248_v52  ;;  %v6117_v40 = vld [vmem:[%s6620_s25 + $0x288] sm:$0xff]  ;;  %v13265_v61 = vld [vmem:[#allocation573_spill] sm:$0xff]  ;;  %v13269_v25 = vld [vmem:[#allocation594_spill] sm:$0xff] }
 0x814   : > { %4459 = vrot.lane.b32.xlu1 %v6180_v23, %s6544_s7  ;;  %v13251_v23 = vld [vmem:[#allocation298_spill] sm:$0xff] }
 0x815   : > { %4343 = vrot.lane.b32.xlu0 %v6154_v24, %s6543_s6  ;;  %6270 = vmatpush.msra.mxu3 %v4996_v48  ;;  %v3102_v45 = vsel %vm3101_vm9, %v3069_v57, %v13251_v23  ;;  %v13252_v24 = vld [vmem:[#allocation509_spill] sm:$0xff]  ;;  %v13267_v57 = vld [vmem:[#allocation503_spill] sm:$0xff] }
 0x816   : > { %v4454_v20 = vpop.permute.xlu1 %4453  ;;  %v4556_v59 = vsel %vm2837_vm1, %v4524_v28, %v13252_v24  ;;  %v3135_v46 = vsel %vm3134_vm11, %v3102_v45, %v13256_v15  ;;  %v13271_v45 = vld [vmem:[#allocation535_spill] sm:$0xff] }
 0x817   : > { %v4326_v17 = vpop.permute.xlu0 %4325  ;;  %v4588_v51 = vsel %vm2870_vm2, %v4556_v59, %v13255_v10  ;;  %v13272_v59 = vld [vmem:[#allocation620_spill] sm:$0xff] }
 0x818   : > { %v4788_v32 = vsel %vm3068_vm8, %v4756_v4, %v4326_v17  ;;  %v4533_v17 = vsel %vm2804_vm0, %v6018_v31, %v13254_v9  ;;  %v4620_v3 = vsel %vm2903_vm3, %v4588_v51, %v13259_v30  ;;  %v13264_v31 = vld [vmem:[#allocation557_spill] sm:$0xff]  ;;  %v13276_v51 = vld [vmem:[#allocation636_spill] sm:$0xff] }
 0x819   : > { %v10512_v21 = vsel %vm3101_vm9, %v4788_v32, %v4454_v20  ;;  %v13253_v20 = vld [vmem:[#allocation485_spill] sm:$0xff]  ;;  %v4565_v14 = vsel %vm2837_vm1, %v4533_v17, %v13257_v43  ;;  %v4652_v7 = vsel %vm12520_vm4, %v4620_v3, %v13262_v1  ;;  %v13275_v17 = vld [vmem:[#allocation559_spill] sm:$0xff]  ;;  %v13280_v1 = vld [vmem:[#allocation394_spill] sm:$0xff] }
 0x81a   : > { %4445 = vrot.lane.b32.xlu2 %v10501_v27, %s6544_s7  ;;  %v4526_v19 = vsel %vm2804_vm0, %v6431_v16, %v13253_v20  ;;  %v4597_v37 = vsel %vm2870_vm2, %v4565_v14, %v13261_v44  ;;  %v13277_v43 = vld [vmem:[#allocation649_spill] sm:$0xff] }
 0x81b   : > { %v4558_v11 = vsel %vm2837_vm1, %v4526_v19, %v13258_v49  ;;  %v13274_v19 = vld [vmem:[#allocation360_spill] sm:$0xff] }
 0x81c   : > { %4089 = vrot.lane.b32.xlu1 %v13245_v2, %s6541_s4  ;;  %v4590_v35 = vsel %vm2870_vm2, %v4558_v11, %v13260_v6  ;;  %v6432_v2 = vld [vmem:[%s6620_s25 + $0x12d] sm:$0xff]  ;;  %v3168_v9 = vsel %vm12519_vm12, %v3135_v46, %v13274_v19 }
 0x81d   : > { %4191 = vrot.lane.b32.xlu0 %v6429_v56, %s6542_s5  ;;  %v4518_v39 = vsel %vm2804_vm0, %v6432_v2, %v13263_v42  ;;  %v4622_v5 = vsel %vm2903_vm3, %v4590_v35, %v13264_v31  ;;  %v4629_v56 = vsel %vm2903_vm3, %v4597_v37, %v13265_v61  ;;  %v13278_v11 = vld [vmem:[#allocation576_spill] sm:$0xff]  ;;  %v13279_v6 = vld [vmem:[#allocation613_spill] sm:$0xff] }
 0x81e   : > { %v4084_v4 = vpop.permute.xlu1 %4083  ;;  %v4550_v62 = vsel %vm2837_vm1, %v4518_v39, %v13267_v57  ;;  %v4661_v28 = vsel %vm12520_vm4, %v4629_v56, %v13268_v34  ;;  %v6186_v46 = vld [vmem:[%s6620_s25 + $0x2ea] sm:$0xff]  ;;  %v10651_v57 = vld [vmem:[%s6620_s25 + $0x292] sm:$0xff] }
 0x81f   : > { %v4731_v48 = vsel %vm12516_vm6, %v4699_v38, %v4084_v4  ;;  %v4186_v0 = vpop.permute.xlu0 %4185  ;;  %v4654_v38 = vsel %vm12520_vm4, %v4622_v5, %v13269_v25  ;;  %v13270_v4 = vld [vmem:[#allocation644_spill] sm:$0xff]  ;;  %v4582_v24 = vsel %vm2870_vm2, %v4550_v62, %v13271_v45  ;;  %v13282_v2 = vld [vmem:[#allocation413_spill] sm:$0xff] }
 0x820   : > { %v10558_v32 = vsel %vm3035_vm7, %v4731_v48, %v4212_v63  ;;  %v13266_v63 = vld [vmem:[#allocation617_spill] sm:$0xff]  ;;  %v4686_v48 = vsel %vm2969_vm5, %v4654_v38, %v13272_v59  ;;  %v4614_v10 = vsel %vm2903_vm3, %v4582_v24, %v13275_v17  ;;  %v13283_v5 = vld [vmem:[#allocation456_spill] sm:$0xff] }
 0x821   : > { %v4684_v52 = vsel %vm2969_vm5, %v4652_v7, %v13266_v63  ;;  %v4718_v15 = vsel %vm12516_vm6, %v4686_v48, %v13276_v51  ;;  %v4646_v30 = vsel %vm12520_vm4, %v4614_v10, %v13278_v11  ;;  %v3201_v7 = vsel %vm12515_vm14, %v3168_v9, %v13280_v1  ;;  %v6174_v38 = vld [vmem:[%s6620_s25 + $0x22a] sm:$0xff]  ;;  %v13287_v10 = vld [vmem:[#allocation567_spill] sm:$0xff] }
 0x822   : > { %4331 = vrot.lane.b32.xlu2 %v6148_v53, %s6543_s6  ;;  %v4716_v23 = vsel %vm12516_vm6, %v4684_v52, %v13270_v4  ;;  %v13273_v53 = vld [vmem:[#allocation625_spill] sm:$0xff]  ;;  %v4678_v35 = vsel %vm2969_vm5, %v4646_v30, %v13279_v6  ;;  %v3234_v42 = vsel %vm3233_vm13, %v3201_v7, %v13282_v2  ;;  %vm12517_vm14 = vcmask 883712   ;;  %v6142_v52 = vld [vmem:[%s6620_s25 + $0x225] sm:$0xff] }
 0x823   : > { %v4693_v16 = vsel %vm2969_vm5, %v4661_v28, %v13273_v53  ;;  %v4748_v20 = vsel %vm3035_vm7, %v4716_v23, %v10231_v12  ;;  %v4750_v12 = vsel %vm3035_vm7, %v4718_v15, %v4186_v0  ;;  %v3267_v61 = vsel %vm12518_vm10, %v3234_v42, %v13283_v5  ;;  %v6111_v45 = vld [vmem:[%s6620_s25 + $0x228] sm:$0xff]  ;;  %v13284_v53 = vld [vmem:[#allocation495_spill] sm:$0xff]  ;;  %v13288_v15 = vld [vmem:[#allocation585_spill] sm:$0xff] }
 0x824   : > { %4217 = vrot.lane.b32.xlu1 %v6123_v54, %s6542_s5  ;;  %v4725_v14 = vsel %vm12516_vm6, %v4693_v16, %v13277_v43  ;;  %v4780_v44 = vsel %vm3068_vm8, %v4748_v20, %v10173_v58  ;;  %v4787_v23 = vsel %vm3068_vm8, %v10272_v47, %v10337_v55  ;;  %v6433_v48 = vld [vmem:[%s6620_s25 + $0x1c5] sm:$0xff]  ;;  %v6143_v30 = vld [vmem:[%s6620_s25 + $0x22d] sm:$0xff] }
 0x825   : > { %4205 = vrot.lane.b32.xlu0 %v6117_v40, %s6542_s5  ;;  %v13281_v40 = vld [vmem:[#allocation638_spill] sm:$0xff]  ;;  %v4812_v31 = vsel %vm3101_vm9, %v4780_v44, %v10196_v22  ;;  %v4527_v16 = vsel %vm2804_vm0, %v6433_v48, %v13284_v53  ;;  %v13285_v47 = vld [vmem:[#allocation512_spill] sm:$0xff]  ;;  %v13291_v2 = vld [vmem:[#allocation13_spill] sm:$0xff]  ;;  %v4807_v53 = vsel %vm3101_vm9, %v10424_v13, %v10478_v18 }
 0x826   : > { %v4200_v49 = vpop.permute.xlu1 %4199  ;;  %v4710_v0 = vsel %vm12516_vm6, %v4678_v35, %v13281_v40  ;;  %v4559_v55 = vsel %vm2837_vm1, %v4527_v16, %v13285_v47  ;;  %v13286_v19 = vld [vmem:[#allocation540_spill] sm:$0xff]  ;;  %v13302_v16 = vld [vmem:[#allocation151_spill] sm:$0xff]  ;;  %v13307_v18 = vld [vmem:[#allocation621_spill] sm:$0xff] }
 0x827   : > { %v4757_v3 = vsel %vm3035_vm7, %v4725_v14, %v4200_v49  ;;  %v4314_v54 = vpop.permute.xlu0 %4313  ;;  %v4742_v39 = vsel %vm3035_vm7, %v4710_v0, %v10160_v36  ;;  %v4591_v9 = vsel %vm2870_vm2, %v4559_v55, %v13286_v19  ;;  %v6118_v14 = vld [vmem:[%s6620_s25 + $0x2a0] sm:$0xff]  ;;  %v5521_v6 = vld [vmem:[%s6620_s25 + $0x8c] sm:$0xff] }
 0x828   : > { %v10622_v37 = vsel %vm3068_vm8, %v4750_v12, %v4314_v54  ;;  %v4774_v58 = vsel %vm3068_vm8, %v4742_v39, %v10229_v41  ;;  %v4623_v51 = vsel %vm2903_vm3, %v4591_v9, %v13287_v10  ;;  %v13289_v49 = vld [vmem:[#allocation619_spill] sm:$0xff]  ;;  %v13290_v12 = vld [vmem:[#allocation646_spill] sm:$0xff]  ;;  %v6025_v35 = vld [vmem:[%s6620_s25 + $0x28d] sm:$0xff]  ;;  %v2806_v42 = vsel %vm2804_vm0, %v5521_v6, %v13291_v2 }
 0x829   : > { %v4806_v36 = vsel %vm3101_vm9, %v4774_v58, %v10265_v29  ;;  %v6155_v29 = vld [vmem:[%s6620_s25 + $0x2ed] sm:$0xff]  ;;  %v4655_v43 = vsel %vm12520_vm4, %v4623_v51, %v13288_v15  ;;  %v13304_v9 = vld [vmem:[#allocation607_spill] sm:$0xff]  ;;  %v13305_v51 = vld [vmem:[#allocation158_spill] sm:$0xff] }
 0x82a   : > { %4471 = vrot.lane.b32.xlu2 %v6186_v46, %s6544_s7  ;;  %v4687_v11 = vsel %vm2969_vm5, %v4655_v43, %v13289_v49  ;;  %v6019_v1 = vld [vmem:[%s6620_s25 + $0x22d] sm:$0xff]  ;;  %v13306_v43 = vld [vmem:[#allocation603_spill] sm:$0xff]  ;;  %v13312_v2 = vld [vmem:[#allocation254_spill] sm:$0xff] }
 0x82b   : > { %v6187_v0 = vld [vmem:[%s6620_s25 + $0x2f2] sm:$0xff]  ;;  %v13292_v39 = vld [vmem:[#allocation504_spill] sm:$0xff] }
 0x82c   : > { %v4868_v56 = vpop.permute.xlu2 %4867  ;;  %4885 = vrot.lane.b32.xlu1 %v4812_v31, %s6550_s22  ;;  %v4540_v58 = vsel %vm2804_vm0, %v6025_v35, %v13292_v39  ;;  %v13293_v31 = vld [vmem:[#allocation55_spill] sm:$0xff]  ;;  %v13303_v55 = vld [vmem:[#allocation572_spill] sm:$0xff]  ;;  %v13308_v49 = vld [vmem:[#allocation201_spill] sm:$0xff] }
 0x82d   : > { %4873 = vrot.lane.b32.xlu0 %v4806_v36, %s6550_s22  ;;  %v4964_v63 = vsel %vm4963_vm15, %v3267_v61, %v4868_v56  ;;  %v2839_v5 = vsel %vm2837_vm1, %v2806_v42, %v13293_v31  ;;  %v13294_v61 = vld [vmem:[#allocation499_spill] sm:$0xff]  ;;  %v13295_v56 = vld [vmem:[#allocation529_spill] sm:$0xff]  ;;  %v13311_v35 = vld [vmem:[#allocation648_spill] sm:$0xff] }
 0x82e   : > { %6193 = vmatmul.msk.f32.vlgmr.msra.gmra.mxu0 %vm12517_vm14, %v4964_v63  ;;  %v10645_v41 = vpop.permute.xlu1 %4441  ;;  %v4534_v36 = vsel %vm2804_vm0, %v6019_v1, %v13294_v61  ;;  %v4572_v63 = vsel %vm2837_vm1, %v4540_v58, %v13295_v56  ;;  %v13313_v58 = vld [vmem:[#allocation297_spill] sm:$0xff]  ;;  %v6150_v56 = vld [vmem:[%s6620_s25 + $0x2a5] sm:$0xff] }
 0x82f   : > { %v10647_v22 = vpop.permute.xlu0 %4429 }
 0x832   : > { %4319 = vrot.lane.b32.xlu2 %v6142_v52, %s6543_s6  ;;  %v13296_v52 = vld [vmem:[#allocation87_spill] sm:$0xff] }
 0x834   : > { %v4456_v62 = vpop.permute.xlu2 %4455  ;;  %4461 = vrot.lane.b32.xlu1 %v10651_v57, %s6544_s7 }
 0x835   : > { %4345 = vrot.lane.b32.xlu0 %v6155_v29, %s6543_s6  ;;  %v2872_v29 = vsel %vm2870_vm2, %v2839_v5, %v13296_v52  ;;  %v13314_v5 = vld [vmem:[#allocation331_spill] sm:$0xff] }
 0x836   : > { %v4340_v34 = vpop.permute.xlu1 %4339 }
 0x837   : > { %v10660_v28 = vsel %vm3068_vm8, %v10558_v32, %v4340_v34  ;;  %v4328_v25 = vpop.permute.xlu0 %4327  ;;  %v4819_v32 = vsel %vm3101_vm9, %v4787_v23, %v10327_v60  ;;  %v6149_v60 = vld [vmem:[%s6620_s25 + $0x28d] sm:$0xff] }
 0x838   : > { %v4789_v4 = vsel %vm3068_vm8, %v4757_v3, %v4328_v25  ;;  %v4719_v3 = vsel %vm12516_vm6, %v4687_v11, %v13290_v12  ;;  %v13298_v25 = vld [vmem:[#allocation542_spill] sm:$0xff] }
 0x839   : > { %v10669_v24 = vsel %vm3101_vm9, %v4789_v4, %v4456_v62  ;;  %v13297_v62 = vld [vmem:[#allocation525_spill] sm:$0xff]  ;;  %v13299_v4 = vld [vmem:[#allocation130_spill] sm:$0xff] }
 0x83a   : > { %4447 = vrot.lane.b32.xlu2 %v6174_v38, %s6544_s7  ;;  %v4566_v34 = vsel %vm2837_vm1, %v4534_v36, %v13297_v62  ;;  %v4604_v38 = vsel %vm2870_vm2, %v4572_v63, %v13298_v25  ;;  %v2905_v23 = vsel %vm2903_vm3, %v2872_v29, %v13299_v4  ;;  %v6434_v36 = vld [vmem:[%s6620_s25 + $0x26a] sm:$0xff]  ;;  %v13315_v63 = vld [vmem:[#allocation350_spill] sm:$0xff]  ;;  %v13318_v25 = vld [vmem:[#allocation427_spill] sm:$0xff] }
 0x83b   : > { %v2938_v47 = vsel %vm12520_vm4, %v2905_v23, %v13302_v16  ;;  %v13316_v29 = vld [vmem:[#allocation393_spill] sm:$0xff]  ;;  %v13319_v23 = vld [vmem:[#allocation446_spill] sm:$0xff] }
 0x83c   : > { %v4188_v59 = vpop.permute.xlu2 %4187  ;;  %4193 = vrot.lane.b32.xlu1 %v6111_v45, %s6542_s5  ;;  %v13300_v45 = vld [vmem:[#allocation537_spill] sm:$0xff]  ;;  %v2971_v15 = vsel %vm2969_vm5, %v2938_v47, %v13305_v51 }
 0x83d   : > { %4899 = vrot.lane.b32.xlu0 %v4819_v32, %s6550_s22  ;;  %v4751_v54 = vsel %vm3035_vm7, %v4719_v3, %v4188_v59  ;;  %v4598_v59 = vsel %vm2870_vm2, %v4566_v34, %v13300_v45  ;;  %v13301_v32 = vld [vmem:[#allocation577_spill] sm:$0xff]  ;;  %v3004_v11 = vsel %vm12516_vm6, %v2971_v15, %v13308_v49  ;;  %v6435_v49 = vld [vmem:[%s6620_s25 + $0x104] sm:$0xff] }
 0x83e   : > { %v10681_v20 = vpop.permute.xlu1 %4175  ;;  %v4636_v48 = vsel %vm2903_vm3, %v4604_v38, %v13301_v32  ;;  %v4630_v19 = vsel %vm2903_vm3, %v4598_v59, %v13303_v55  ;;  %v6188_v47 = vld [vmem:[%s6620_s25 + $0x30a] sm:$0xff] }
 0x83f   : > { %v10685_v17 = vpop.permute.xlu0 %4467  ;;  %v4662_v13 = vsel %vm12520_vm4, %v4630_v19, %v13306_v43  ;;  %v6182_v43 = vld [vmem:[%s6620_s25 + $0x2aa] sm:$0xff] }
 0x842   : > { %4333 = vrot.lane.b32.xlu2 %v6149_v60, %s6543_s6  ;;  %v4668_v60 = vsel %vm12520_vm4, %v4636_v48, %v13304_v9 }
 0x844   : > { %v4316_v46 = vpop.permute.xlu2 %4315  ;;  %4207 = vrot.lane.b32.xlu1 %v6118_v14, %s6542_s5  ;;  %v4700_v14 = vsel %vm2969_vm5, %v4668_v60, %v13307_v18 }
 0x845   : > { %v4783_v44 = vsel %vm3068_vm8, %v4751_v54, %v4316_v46  ;;  %4321 = vrot.lane.b32.xlu0 %v6143_v30, %s6543_s6  ;;  %v13309_v30 = vld [vmem:[#allocation616_spill] sm:$0xff]  ;;  %v13310_v46 = vld [vmem:[#allocation235_spill] sm:$0xff] }
 0x846   : > { %v10706_v7 = vpop.permute.xlu1 %4303  ;;  %v4694_v12 = vsel %vm2969_vm5, %v4662_v13, %v13309_v30  ;;  %v3037_v6 = vsel %vm3035_vm7, %v3004_v11, %v13310_v46  ;;  %v4808_v13 = vsel %vm3101_vm9, %v10421_v50, %v10647_v22  ;;  %v13320_v11 = vld [vmem:[#allocation7_spill] sm:$0xff]  ;;  %v6183_v22 = vld [vmem:[%s6620_s25 + $0x2b2] sm:$0xff] }
 0x847   : > { %v4086_v40 = vpop.permute.xlu0 %4085  ;;  %v4726_v1 = vsel %vm12516_vm6, %v4694_v12, %v13311_v35  ;;  %v3070_v42 = vsel %vm3068_vm8, %v3037_v6, %v13312_v2  ;;  %v2813_v30 = vsel %vm2804_vm0, %v6435_v49, %v13320_v11  ;;  %v13324_v6 = vld [vmem:[#allocation107_spill] sm:$0xff] }
 0x848   : > { %v4732_v3 = vsel %vm12516_vm6, %v4700_v14, %v4086_v40  ;;  %v3103_v31 = vsel %vm3101_vm9, %v3070_v42, %v13313_v58  ;;  %v6156_v40 = vld [vmem:[%s6620_s25 + $0x305] sm:$0xff]  ;;  %vm13317_vm6 = vcmask 424960   ;;  %v13326_v42 = vld [vmem:[#allocation126_spill] sm:$0xff] }
 0x849   : > { %v3136_v61 = vsel %vm3134_vm11, %v3103_v31, %v13314_v5  ;;  %v13327_v58 = vld [vmem:[#allocation120_spill] sm:$0xff]  ;;  %v13341_v49 = vld [vmem:[#allocation287_spill] sm:$0xff] }
 0x84a   : > { %4473 = vrot.lane.b32.xlu2 %v6187_v0, %s6544_s7  ;;  %v3169_v52 = vsel %vm12519_vm12, %v3136_v61, %v13315_v63 }
 0x84b   : > { %v3202_v62 = vsel %vm13317_vm6, %v3169_v52, %v13316_v29  ;;  %v13331_v52 = vld [vmem:[#allocation172_spill] sm:$0xff]  ;;  %vm13333_vm6 = vcmask 228352  }
 0x84c   : > { %v10741_v10 = vpop.permute.xlu2 %4431  ;;  %4875 = vrot.lane.b32.xlu1 %v4807_v53, %s6550_s22  ;;  %v3235_v38 = vsel %vm3233_vm13, %v3202_v62, %v13318_v25  ;;  %v6124_v53 = vld [vmem:[%s6620_s25 + $0x300] sm:$0xff]  ;;  %v13332_v62 = vld [vmem:[#allocation197_spill] sm:$0xff] }
 0x84d   : > { %4449 = vrot.lane.b32.xlu0 %v10168_v26, %s6544_s7  ;;  %v3268_v45 = vsel %vm12518_vm10, %v3235_v38, %v13319_v23  ;;  %v13334_v38 = vld [vmem:[#allocation191_spill] sm:$0xff]  ;;  %v13336_v23 = vld [vmem:[#allocation240_spill] sm:$0xff] }
 0x84e   : > { %v4214_v54 = vpop.permute.xlu1 %4213 }
 0x84f   : > { %v10762_v0 = vsel %vm3035_vm7, %v4732_v3, %v4214_v54  ;;  %v4202_v26 = vpop.permute.xlu0 %4201  ;;  %v13322_v3 = vld [vmem:[#allocation64_spill] sm:$0xff]  ;;  %v13323_v54 = vld [vmem:[#allocation54_spill] sm:$0xff] }
 0x850   : > { %v4758_v39 = vsel %vm3035_vm7, %v4726_v1, %v4202_v26  ;;  %v2846_v50 = vsel %vm2837_vm1, %v2813_v30, %v13322_v3  ;;  %v6157_v1 = vld [vmem:[%s6620_s25 + $0x30d] sm:$0xff] }
 0x851   : > { %v2879_v35 = vsel %vm2870_vm2, %v2846_v50, %v13324_v6  ;;  %v13325_v26 = vld [vmem:[#allocation101_spill] sm:$0xff]  ;;  %v13342_v30 = vld [vmem:[#allocation336_spill] sm:$0xff]  ;;  %v13344_v50 = vld [vmem:[#allocation330_spill] sm:$0xff] }
 0x852   : > { %4091 = vrot.lane.b32.xlu2 %v6434_v36, %s6541_s4  ;;  %v13329_v36 = vld [vmem:[#allocation51_spill] sm:$0xff]  ;;  %v13346_v6 = vld [vmem:[#allocation506_spill] sm:$0xff] }
 0x854   : > { %v4330_v34 = vpop.permute.xlu2 %4329  ;;  %4347 = vrot.lane.b32.xlu1 %v6156_v40, %s6543_s6  ;;  %v13328_v40 = vld [vmem:[#allocation68_spill] sm:$0xff] }
 0x855   : > { %v4790_v4 = vsel %vm3068_vm8, %v4758_v39, %v4330_v34  ;;  %4335 = vrot.lane.b32.xlu0 %v6150_v56, %s6543_s6  ;;  %v2912_v39 = vsel %vm2903_vm3, %v2879_v35, %v13326_v42  ;;  %v13330_v56 = vld [vmem:[#allocation178_spill] sm:$0xff]  ;;  %v13348_v42 = vld [vmem:[#allocation389_spill] sm:$0xff] }
 0x856   : > { %v4870_v59 = vpop.permute.xlu1 %4869  ;;  %v2945_v5 = vsel %vm12520_vm4, %v2912_v39, %v13328_v40 }
 0x857   : > { %v4444_v32 = vpop.permute.xlu0 %4443  ;;  %v4965_v48 = vsel %vm4963_vm15, %v3268_v45, %v4870_v59  ;;  %v2978_v63 = vsel %vm2969_vm5, %v2945_v5, %v13330_v56  ;;  %v13351_v5 = vld [vmem:[#allocation383_spill] sm:$0xff] }
 0x858   : > { %v10789_v16 = vsel %vm3101_vm9, %v4783_v44, %v4444_v32  ;;  %6194 = vmatmul.msk.f32.gmra.mxu0 %vm12517_vm14, %v4965_v48  ;;  %v6119_v44 = vld [vmem:[%s6620_s25 + $0x2a8] sm:$0xff]  ;;  %v3011_v34 = vsel %vm13333_vm6, %v2978_v63, %v13332_v62  ;;  %vm13335_vm14 = vmmov %vm13333_vm6  ;;  %v13337_v48 = vld [vmem:[#allocation234_spill] sm:$0xff] }
 0x859   : > { %v3044_v45 = vsel %vm3035_vm7, %v3011_v34, %v13336_v23  ;;  %v6125_v32 = vld [vmem:[%s6620_s25 + $0x308] sm:$0xff]  ;;  %v13355_v63 = vld [vmem:[#allocation426_spill] sm:$0xff]  ;;  %v13357_v34 = vld [vmem:[#allocation579_spill] sm:$0xff] }
 0x85a   : > { %4219 = vrot.lane.b32.xlu2 %v6124_v53, %s6542_s5  ;;  %v13358_v23 = vld [vmem:[#allocation460_spill] sm:$0xff] }
 0x85c   : > { %v10794_v55 = vpop.permute.xlu2 %4469  ;;  %4901 = vrot.lane.b32.xlu1 %v10512_v21, %s6550_s22 }
 0x85d   : > { %4475 = vrot.lane.b32.xlu0 %v6188_v47, %s6544_s7  ;;  %v13338_v47 = vld [vmem:[#allocation274_spill] sm:$0xff] }
 0x85e   : > { %v4458_v19 = vpop.permute.xlu1 %4457 }
 0x85f   : > { %v10800_v9 = vsel %vm3101_vm9, %v4790_v4, %v4458_v19  ;;  %v10802_v60 = vpop.permute.xlu0 %4341  ;;  %v3077_v19 = vsel %vm3068_vm8, %v3044_v45, %v13338_v47  ;;  %v6151_v47 = vld [vmem:[%s6620_s25 + $0x2ad] sm:$0xff] }
 0x862   : > { %4887 = vrot.lane.b32.xlu2 %v10456_v33, %s6550_s22  ;;  %v4814_v33 = vsel %vm3101_vm9, %v10622_v37, %v10645_v41  ;;  %v6436_v37 = vld [vmem:[%s6620_s25 + $0xa4] sm:$0xff]  ;;  %v13321_v41 = vld [vmem:[#allocation9_spill] sm:$0xff] }
 0x863   : > { %v2807_v12 = vsel %vm2804_vm0, %v6436_v37, %v13321_v41  ;;  %v6437_v41 = vld [vmem:[%s6620_s25 + $0x165] sm:$0xff] }
 0x864   : > { %v10807_v51 = vpop.permute.xlu2 %4087  ;;  %4209 = vrot.lane.b32.xlu1 %v6119_v44, %s6542_s5  ;;  %v2840_v46 = vsel %vm2837_vm1, %v2807_v12, %v13323_v54  ;;  %v13339_v44 = vld [vmem:[#allocation268_spill] sm:$0xff]  ;;  %v13343_v12 = vld [vmem:[#allocation490_spill] sm:$0xff] }
 0x865   : > { %4093 = vrot.lane.b32.xlu0 %v10219_v8, %s6541_s4  ;;  %v2873_v2 = vsel %vm2870_vm2, %v2840_v46, %v13325_v26  ;;  %v4521_v3 = vsel %vm2804_vm0, %v6437_v41, %v13343_v12  ;;  %v13345_v54 = vld [vmem:[#allocation370_spill] sm:$0xff]  ;;  %v13347_v26 = vld [vmem:[#allocation364_spill] sm:$0xff] }
 0x866   : > { %v10812_v21 = vpop.permute.xlu1 %4189  ;;  %v2906_v31 = vsel %vm2903_vm3, %v2873_v2, %v13327_v58  ;;  %v4553_v35 = vsel %vm2837_vm1, %v4521_v3, %v13346_v6  ;;  %v13350_v58 = vld [vmem:[#allocation536_spill] sm:$0xff]  ;;  %v6189_v41 = vld [vmem:[%s6620_s25 + $0x312] sm:$0xff]  ;;  %v13365_v6 = vld [vmem:[#allocation19_spill] sm:$0xff] }
 0x867   : > { %v10814_v15 = vpop.permute.xlu0 %4177  ;;  %v6158_v12 = vld [vmem:[%s6620_s25 + $0x325] sm:$0xff] }
 0x86a   : > { %4463 = vrot.lane.b32.xlu2 %v6182_v43, %s6544_s7 }
 0x86c   : > { %v10824_v18 = vpop.permute.xlu2 %4203  ;;  %4889 = vrot.lane.b32.xlu1 %v4814_v33, %s6550_s22  ;;  %v13340_v33 = vld [vmem:[#allocation293_spill] sm:$0xff] }
 0x86d   : > { %4877 = vrot.lane.b32.xlu0 %v4808_v13, %s6550_s22  ;;  %v3110_v13 = vsel %vm3101_vm9, %v3077_v19, %v13340_v33  ;;  %v13360_v19 = vld [vmem:[#allocation641_spill] sm:$0xff] }
 0x86e   : > { %v10828_v8 = vpop.permute.xlu1 %4317  ;;  %v3143_v37 = vsel %vm3134_vm11, %v3110_v13, %v13342_v30 }
 0x86f   : > { %v10830_v14 = vpop.permute.xlu0 %4305  ;;  %v3176_v46 = vsel %vm12519_vm12, %v3143_v37, %v13345_v54 }
 0x872   : > { %4081 = vrot.lane.b32.xlu2 %v10501_v27, %s6541_s4  ;;  %v2939_v27 = vsel %vm12520_vm4, %v2906_v31, %v13329_v36  ;;  %v4585_v31 = vsel %vm2870_vm2, %v4553_v35, %v13350_v58  ;;  %v13368_v58 = vld [vmem:[#allocation100_spill] sm:$0xff] }
 0x873   : > { %v2972_v29 = vsel %vm2969_vm5, %v2939_v27, %v13331_v52  ;;  %v13353_v27 = vld [vmem:[#allocation432_spill] sm:$0xff] }
 0x874   : > { %v10856_v61 = vpop.permute.xlu2 %4445  ;;  %4465 = vrot.lane.b32.xlu1 %v6183_v22, %s6544_s7  ;;  %v3005_v4 = vsel %vm13335_vm14, %v2972_v29, %v13334_v38  ;;  %vm13349_vm14 = vcmask 424960   ;;  %v13356_v29 = vld [vmem:[#allocation466_spill] sm:$0xff] }
 0x875   : > { %4349 = vrot.lane.b32.xlu0 %v6157_v1, %s6543_s6  ;;  %v3038_v53 = vsel %vm3035_vm7, %v3005_v4, %v13337_v48  ;;  %v4827_v1 = vsel %vm3101_vm9, %v10660_v28, %v10685_v17  ;;  %v3209_v39 = vsel %vm13349_vm14, %v3176_v46, %v13348_v42  ;;  %vm13352_vm6 = vmmov %vm13349_vm14  ;;  %v13354_v17 = vld [vmem:[#allocation562_spill] sm:$0xff]  ;;  %vm13361_vm14 = vcmask 228352   ;;  %v6439_v46 = vld [vmem:[%s6620_s25 + $0x10c] sm:$0xff] }
 0x876   : > { %v10868_v25 = vpop.permute.xlu1 %4433  ;;  %v3071_v43 = vsel %vm3068_vm8, %v3038_v53, %v13339_v44  ;;  %v3242_v28 = vsel %vm3233_vm13, %v3209_v39, %v13353_v27  ;;  %v4617_v56 = vsel %vm2903_vm3, %v4585_v31, %v13354_v17  ;;  %v2814_v35 = vsel %vm2804_vm0, %v6439_v46, %v13365_v6  ;;  %v13367_v42 = vld [vmem:[#allocation48_spill] sm:$0xff]  ;;  %v13385_v6 = vld [vmem:[#allocation211_spill] sm:$0xff] }
 0x877   : > { %v10874_v59 = vpop.permute.xlu0 %4215  ;;  %v3104_v11 = vsel %vm3101_vm9, %v3071_v43, %v13341_v49  ;;  %v3275_v62 = vsel %vm12518_vm10, %v3242_v28, %v13356_v29  ;;  %v4649_v38 = vsel %vm12520_vm4, %v4617_v56, %v13357_v34  ;;  %v6126_v49 = vld [vmem:[%s6620_s25 + $0x320] sm:$0xff]  ;;  %v2847_v39 = vsel %vm2837_vm1, %v2814_v35, %v13367_v42  ;;  %v13370_v28 = vld [vmem:[#allocation134_spill] sm:$0xff]  ;;  %v13371_v56 = vld [vmem:[#allocation140_spill] sm:$0xff] }
 0x878   : > { %v3137_v22 = vsel %vm3134_vm11, %v3104_v11, %v13344_v50  ;;  %v6438_v50 = vld [vmem:[%s6620_s25 + $0xac] sm:$0xff]  ;;  %v4796_v27 = vsel %vm3068_vm8, %v10762_v0, %v10802_v60  ;;  %v13372_v29 = vld [vmem:[#allocation494_spill] sm:$0xff] }
 0x879   : > { %v3170_v2 = vsel %vm12519_vm12, %v3137_v22, %v13347_v26  ;;  %v13364_v22 = vld [vmem:[#allocation12_spill] sm:$0xff]  ;;  %v13366_v26 = vld [vmem:[#allocation38_spill] sm:$0xff]  ;;  %v13375_v60 = vld [vmem:[#allocation489_spill] sm:$0xff] }
 0x87a   : > { %4221 = vrot.lane.b32.xlu2 %v6125_v32, %s6542_s5  ;;  %v3203_v36 = vsel %vm13352_vm6, %v3170_v2, %v13351_v5  ;;  %v13359_v32 = vld [vmem:[#allocation615_spill] sm:$0xff]  ;;  %vm13362_vm6 = vcmask 883712   ;;  %v2808_v54 = vsel %vm2804_vm0, %v6438_v50, %v13364_v22  ;;  %v13369_v5 = vld [vmem:[#allocation106_spill] sm:$0xff]  ;;  %v6441_v34 = vld [vmem:[%s6620_s25 + $0x28a] sm:$0xff] }
 0x87b   : > { %v3236_v52 = vsel %vm3233_vm13, %v3203_v36, %v13355_v63  ;;  %v4681_v48 = vsel %vm2969_vm5, %v4649_v38, %v13359_v32  ;;  %v2841_v2 = vsel %vm2837_vm1, %v2808_v54, %v13366_v26  ;;  %v2880_v36 = vsel %vm2870_vm2, %v2847_v39, %v13369_v5  ;;  %v13373_v38 = vld [vmem:[#allocation42_spill] sm:$0xff]  ;;  %v6442_v0 = vld [vmem:[%s6620_s25 + $0x16d] sm:$0xff] }
 0x87c   : > { %v10908_v40 = vpop.permute.xlu2 %4331  ;;  %4915 = vrot.lane.b32.xlu1 %v4827_v1, %s6550_s22  ;;  %v3269_v45 = vsel %vm12518_vm10, %v3236_v52, %v13358_v23  ;;  %v4713_v44 = vsel %vm13361_vm14, %v4681_v48, %v13360_v19  ;;  %vm13363_vm10 = vmmov %vm13362_vm6  ;;  %v2874_v31 = vsel %vm2870_vm2, %v2841_v2, %v13368_v58  ;;  %v2913_v63 = vsel %vm2903_vm3, %v2880_v36, %v13371_v56  ;;  %v6440_v52 = vld [vmem:[%s6620_s25 + $0x1cd] sm:$0xff]  ;;  %v13378_v19 = vld [vmem:[#allocation515_spill] sm:$0xff] }
 0x87d   : > { %4903 = vrot.lane.b32.xlu0 %v10669_v24, %s6550_s22  ;;  %v4745_v33 = vsel %vm3035_vm7, %v4713_v44, %v10681_v20  ;;  %v2907_v17 = vsel %vm2903_vm3, %v2874_v31, %v13370_v28  ;;  %v13374_v23 = vld [vmem:[#allocation52_spill] sm:$0xff]  ;;  %v4522_v32 = vsel %vm2804_vm0, %v6442_v0, %v13375_v60  ;;  %v13383_v50 = vld [vmem:[#allocation530_spill] sm:$0xff]  ;;  %v13388_v26 = vld [vmem:[#allocation561_spill] sm:$0xff] }
 0x87e   : > { %v4884_v4 = vpop.permute.xlu1 %4883  ;;  %v4777_v13 = vsel %vm3068_vm8, %v4745_v33, %v10706_v7  ;;  %v6190_v7 = vld [vmem:[%s6620_s25 + $0x32a] sm:$0xff]  ;;  %v4554_v44 = vsel %vm2837_vm1, %v4522_v32, %v13378_v19  ;;  %v13384_v54 = vld [vmem:[#allocation566_spill] sm:$0xff]  ;;  %v13391_v36 = vld [vmem:[#allocation267_spill] sm:$0xff] }
 0x87f   : > { %v4872_v53 = vpop.permute.xlu0 %4871  ;;  %v4972_v24 = vsel %vm4963_vm15, %v3275_v62, %v4884_v4  ;;  %v4809_v11 = vsel %vm3101_vm9, %v4777_v13, %v10741_v10  ;;  %v4528_v62 = vsel %vm2804_vm0, %v6440_v52, %v13372_v29  ;;  %v2940_v4 = vsel %vm12520_vm4, %v2907_v17, %v13373_v38  ;;  %v13376_v48 = vld [vmem:[#allocation520_spill] sm:$0xff]  ;;  %v13389_v42 = vld [vmem:[#allocation598_spill] sm:$0xff]  ;;  %v13395_v38 = vld [vmem:[#allocation301_spill] sm:$0xff] }
 0x880   : > { %v4966_v43 = vsel %vm4963_vm15, %v3269_v45, %v4872_v53  ;;  %6201 = vmatmul.msk.f32.vlgmr.msra.gmra.mxu1 %vm13362_vm6, %v4972_v24  ;;  %v2946_v45 = vsel %vm12520_vm4, %v2913_v63, %v13374_v23  ;;  %v4560_v53 = vsel %vm2837_vm1, %v4528_v62, %v13376_v48  ;;  %v13377_v24 = vld [vmem:[#allocation171_spill] sm:$0xff]  ;;  %v4586_v22 = vsel %vm2870_vm2, %v4554_v44, %v13383_v50  ;;  %v13387_v35 = vld [vmem:[#allocation224_spill] sm:$0xff]  ;;  %v13390_v31 = vld [vmem:[#allocation230_spill] sm:$0xff] }
 0x881   : > { %6195 = vmatmul.msk.f32.gmra.mxu0 %vm13363_vm10, %v4966_v43  ;;  %v13379_v43 = vld [vmem:[#allocation534_spill] sm:$0xff]  ;;  %vm13382_vm10 = vmmov %vm13361_vm14  ;;  %v4618_v2 = vsel %vm2903_vm3, %v4586_v22, %v13388_v26  ;;  %v6020_v28 = vld [vmem:[%s6620_s25 + $0x245] sm:$0xff] }
 0x882   : > { %4337 = vrot.lane.b32.xlu2 %v6151_v47, %s6543_s6  ;;  %v2973_v47 = vsel %vm2969_vm5, %v2940_v4, %v13377_v24  ;;  %v4592_v33 = vsel %vm2870_vm2, %v4560_v53, %v13379_v43  ;;  %vm13386_vm14 = vmmov %vm13382_vm10  ;;  %v13392_v17 = vld [vmem:[#allocation592_spill] sm:$0xff]  ;;  %v13394_v62 = vld [vmem:[#allocation273_spill] sm:$0xff] }
 0x883   : > { %v4624_v46 = vsel %vm2903_vm3, %v4592_v33, %v13384_v54  ;;  %v4650_v56 = vsel %vm12520_vm4, %v4618_v2, %v13392_v17  ;;  %v13393_v63 = vld [vmem:[#allocation612_spill] sm:$0xff]  ;;  %v13397_v0 = vld [vmem:[#allocation645_spill] sm:$0xff]  ;;  %vm13398_vm6 = vmmov %vm13382_vm10 }
 0x884   : > { %v10944_v30 = vpop.permute.xlu2 %4471  ;;  %4879 = vrot.lane.b32.xlu1 %v4809_v11, %s6550_s22  ;;  %v13380_v11 = vld [vmem:[#allocation177_spill] sm:$0xff]  ;;  %v4656_v39 = vsel %vm12520_vm4, %v4624_v46, %v13389_v42  ;;  %v13396_v23 = vld [vmem:[#allocation608_spill] sm:$0xff]  ;;  %v13399_v32 = vld [vmem:[#allocation307_spill] sm:$0xff] }
 0x885   : > { %4223 = vrot.lane.b32.xlu0 %v6126_v49, %s6542_s5  ;;  %v4828_v49 = vsel %vm3101_vm9, %v4796_v27, %v10794_v55  ;;  %v4688_v52 = vsel %vm2969_vm5, %v4656_v39, %v13393_v63  ;;  %v13400_v53 = vld [vmem:[#allocation320_spill] sm:$0xff]  ;;  %v13403_v43 = vld [vmem:[#allocation326_spill] sm:$0xff]  ;;  %v13414_v39 = vld [vmem:[#allocation563_spill] sm:$0xff] }
 0x886   : > { %v10948_v20 = vpop.permute.xlu1 %4459  ;;  %v4720_v60 = vsel %vm13398_vm6, %v4688_v52, %v13397_v0  ;;  %v13406_v22 = vld [vmem:[#allocation524_spill] sm:$0xff]  ;;  %v13419_v63 = vld [vmem:[#allocation459_spill] sm:$0xff] }
 0x887   : > { %v10950_v37 = vpop.permute.xlu0 %4343  ;;  %v4752_v44 = vsel %vm3035_vm7, %v4720_v60, %v10812_v21 }
 0x88a   : > { %4477 = vrot.lane.b32.xlu2 %v6189_v41, %s6544_s7  ;;  %v2979_v41 = vsel %vm2969_vm5, %v2946_v45, %v13380_v11  ;;  %v4682_v45 = vsel %vm2969_vm5, %v4650_v56, %v13396_v23 }
 0x88c   : > { %v10956_v3 = vpop.permute.xlu2 %4319  ;;  %4479 = vrot.lane.b32.xlu1 %v6190_v7, %s6544_s7  ;;  %v13381_v7 = vld [vmem:[#allocation205_spill] sm:$0xff] }
 0x88d   : > { %4351 = vrot.lane.b32.xlu0 %v6158_v12, %s6543_s6  ;;  %v3006_v12 = vsel %vm13382_vm10, %v2973_v47, %v13381_v7  ;;  %v13401_v47 = vld [vmem:[#allocation640_spill] sm:$0xff]  ;;  %vm13402_vm10 = vmmov %vm13398_vm6  ;;  %v4784_v7 = vsel %vm3068_vm8, %v4752_v44, %v10828_v8  ;;  %v13408_v8 = vld [vmem:[#allocation403_spill] sm:$0xff] }
 0x88e   : > { %v10960_v10 = vpop.permute.xlu1 %4089  ;;  %v3039_v55 = vsel %vm3035_vm7, %v3006_v12, %v13387_v35  ;;  %v4714_v19 = vsel %vm13402_vm10, %v4682_v45, %v13401_v47  ;;  %v13405_v12 = vld [vmem:[#allocation369_spill] sm:$0xff]  ;;  %v4816_v46 = vsel %vm3101_vm9, %v4784_v7, %v10856_v61  ;;  %v13413_v61 = vld [vmem:[#allocation422_spill] sm:$0xff]  ;;  %vm13417_vm10 = vcmask 490496   ;;  %v13422_v45 = vld [vmem:[#allocation643_spill] sm:$0xff] }
 0x88f   : > { %v10968_v1 = vpop.permute.xlu0 %4191  ;;  %v3072_v27 = vsel %vm3068_vm8, %v3039_v55, %v13391_v36  ;;  %v13426_v47 = vld [vmem:[#allocation486_spill] sm:$0xff] }
 0x890   : > { %v3105_v4 = vsel %vm3101_vm9, %v3072_v27, %v13395_v38 }
 0x891   : > { %v3138_v24 = vsel %vm3134_vm11, %v3105_v4, %v13400_v53 }
 0x892   : > { %4095 = vrot.lane.b32.xlu2 %v6441_v34, %s6541_s4 }
 0x894   : > { %v11005_v13 = vpop.permute.xlu2 %4447  ;;  %4097 = vrot.lane.b32.xlu1 %v10651_v57, %s6541_s4  ;;  %v3012_v57 = vsel %vm13386_vm14, %v2979_v41, %v13385_v6  ;;  %v4746_v41 = vsel %vm3035_vm7, %v4714_v19, %v10814_v15  ;;  %v13407_v6 = vld [vmem:[#allocation363_spill] sm:$0xff]  ;;  %vm13409_vm14 = vcmask 424960  }
 0x895   : > { %4917 = vrot.lane.b32.xlu0 %v4828_v49, %s6550_s22  ;;  %v3045_v5 = vsel %vm3035_vm7, %v3012_v57, %v13390_v31  ;;  %v13404_v49 = vld [vmem:[#allocation491_spill] sm:$0xff]  ;;  %v4778_v54 = vsel %vm3068_vm8, %v4746_v41, %v10830_v14  ;;  %v3171_v15 = vsel %vm12519_vm12, %v3138_v24, %v13407_v6  ;;  %v13411_v14 = vld [vmem:[#allocation397_spill] sm:$0xff]  ;;  %vm13412_vm6 = vmmov %vm13409_vm14 }
 0x896   : > { %v11028_v58 = vpop.permute.xlu1 %4217  ;;  %v3078_v34 = vsel %vm3068_vm8, %v3045_v5, %v13394_v62  ;;  %v4535_v11 = vsel %vm2804_vm0, %v6020_v28, %v13404_v49  ;;  %v4810_v55 = vsel %vm3101_vm9, %v4778_v54, %v10868_v25  ;;  %v3204_v2 = vsel %vm13412_vm6, %v3171_v15, %v13411_v14  ;;  %v13415_v5 = vld [vmem:[#allocation416_spill] sm:$0xff]  ;;  %v13416_v25 = vld [vmem:[#allocation465_spill] sm:$0xff]  ;;  %v13418_v28 = vld [vmem:[#allocation602_spill] sm:$0xff] }
 0x897   : > { %v11039_v29 = vpop.permute.xlu0 %4205  ;;  %v3111_v48 = vsel %vm3101_vm9, %v3078_v34, %v13399_v32  ;;  %v4567_v21 = vsel %vm2837_vm1, %v4535_v11, %v13406_v22  ;;  %v3237_v36 = vsel %vm3233_vm13, %v3204_v2, %v13415_v5  ;;  %v6021_v62 = vld [vmem:[%s6620_s25 + $0x24d] sm:$0xff]  ;;  %vm13423_vm6 = vcmask 228352   ;;  %v6443_v32 = vld [vmem:[%s6620_s25 + $0x184] sm:$0xff]  ;;  %v13429_v49 = vld [vmem:[#allocation502_spill] sm:$0xff] }
 0x898   : > { %v3144_v33 = vsel %vm3134_vm11, %v3111_v48, %v13403_v43  ;;  %v13421_v34 = vld [vmem:[#allocation629_spill] sm:$0xff]  ;;  %v6444_v24 = vld [vmem:[%s6620_s25 + $0x1e5] sm:$0xff]  ;;  %v4536_v11 = vsel %vm2804_vm0, %v6021_v62, %v13429_v49  ;;  %v13431_v22 = vld [vmem:[#allocation102_spill] sm:$0xff] }
 0x899   : > { %v3177_v50 = vsel %vm12519_vm12, %v3144_v33, %v13405_v12  ;;  %v13425_v48 = vld [vmem:[#allocation25_spill] sm:$0xff]  ;;  %v4529_v19 = vsel %vm2804_vm0, %v6444_v24, %v13426_v47  ;;  %v13430_v41 = vld [vmem:[#allocation519_spill] sm:$0xff] }
 0x89a   : > { %4891 = vrot.lane.b32.xlu2 %v10789_v16, %s6550_s22  ;;  %v3210_v57 = vsel %vm13409_vm14, %v3177_v50, %v13408_v8  ;;  %v13410_v16 = vld [vmem:[#allocation550_spill] sm:$0xff]  ;;  %vm13420_vm14 = vmmov %vm13417_vm10  ;;  %v2821_v53 = vsel %vm2804_vm0, %v6443_v32, %v13425_v48  ;;  %v13428_v43 = vld [vmem:[#allocation81_spill] sm:$0xff]  ;;  %v4561_v7 = vsel %vm2837_vm1, %v4529_v19, %v13430_v41 }
 0x89b   : > { %v4599_v35 = vsel %vm2870_vm2, %v4567_v21, %v13410_v16  ;;  %v3243_v42 = vsel %vm3233_vm13, %v3210_v57, %v13413_v61  ;;  %v3270_v52 = vsel %vm13420_vm14, %v3237_v36, %v13419_v63  ;;  %v2854_v33 = vsel %vm2837_vm1, %v2821_v53, %v13428_v43  ;;  %v6191_v50 = vld [vmem:[%s6620_s25 + $0x332] sm:$0xff]  ;;  %v13432_v21 = vld [vmem:[#allocation516_spill] sm:$0xff]  ;;  %v13437_v14 = vld [vmem:[#allocation155_spill] sm:$0xff] }
 0x89c   : > { %v4334_v26 = vpop.permute.xlu2 %4333  ;;  %4893 = vrot.lane.b32.xlu1 %v4816_v46, %s6550_s22  ;;  %v4631_v31 = vsel %vm2903_vm3, %v4599_v35, %v13414_v39  ;;  %v3276_v27 = vsel %vm13417_vm10, %v3243_v42, %v13416_v25  ;;  %vm13424_vm10 = vcmask 883712   ;;  %v4568_v54 = vsel %vm2837_vm1, %v4536_v11, %v13432_v21  ;;  %v13433_v46 = vld [vmem:[#allocation544_spill] sm:$0xff]  ;;  %v13434_v8 = vld [vmem:[#allocation29_spill] sm:$0xff]  ;;  %v13438_v61 = vld [vmem:[#allocation575_spill] sm:$0xff] }
 0x89d   : > { %4881 = vrot.lane.b32.xlu0 %v4810_v55, %s6550_s22  ;;  %v4663_v17 = vsel %vm12520_vm4, %v4631_v31, %v13418_v28  ;;  %vm13427_vm14 = vmmov %vm13424_vm10  ;;  %v4593_v6 = vsel %vm2870_vm2, %v4561_v7, %v13433_v46  ;;  %v13439_v42 = vld [vmem:[#allocation597_spill] sm:$0xff]  ;;  %v13451_v19 = vld [vmem:[#allocation312_spill] sm:$0xff] }
 0x89e   : > { %v4886_v56 = vpop.permute.xlu1 %4885  ;;  %v4695_v38 = vsel %vm2969_vm5, %v4663_v17, %v13421_v34  ;;  %v13440_v31 = vld [vmem:[#allocation173_spill] sm:$0xff]  ;;  %v6026_v11 = vld [vmem:[%s6620_s25 + $0x2a5] sm:$0xff] }
 0x89f   : > { %v4874_v4 = vpop.permute.xlu0 %4873  ;;  %v4973_v23 = vsel %vm4963_vm15, %v3276_v27, %v4886_v56  ;;  %v4727_v0 = vsel %vm13423_vm6, %v4695_v38, %v13422_v45  ;;  %v13441_v36 = vld [vmem:[#allocation593_spill] sm:$0xff]  ;;  %v13442_v27 = vld [vmem:[#allocation623_spill] sm:$0xff]  ;;  %v13443_v56 = vld [vmem:[#allocation216_spill] sm:$0xff] }
 0x8a0   : > { %v4967_v60 = vsel %vm4963_vm15, %v3270_v52, %v4874_v4  ;;  %6202 = vmatmul.msk.f32.gmra.mxu1 %vm13424_vm10, %v4973_v23  ;;  %v4759_v44 = vsel %vm3035_vm7, %v4727_v0, %v10824_v18  ;;  %v2887_v18 = vsel %vm2870_vm2, %v2854_v33, %v13431_v22  ;;  %v13444_v52 = vld [vmem:[#allocation628_spill] sm:$0xff]  ;;  %v13445_v34 = vld [vmem:[#allocation637_spill] sm:$0xff]  ;;  %vm13446_vm10 = vmmov %vm13423_vm6 }
 0x8a1   : > { %6196 = vmatmul.msk.f32.gmra.mxu0 %vm13427_vm14, %v4967_v60  ;;  %v4791_v12 = vsel %vm3068_vm8, %v4759_v44, %v10908_v40  ;;  %v2920_v57 = vsel %vm2903_vm3, %v2887_v18, %v13434_v8  ;;  %v13435_v40 = vld [vmem:[#allocation549_spill] sm:$0xff]  ;;  %v6127_v23 = vld [vmem:[%s6620_s25 + $0x328] sm:$0xff]  ;;  %v13447_v45 = vld [vmem:[#allocation250_spill] sm:$0xff] }
 0x8a2   : > { %4905 = vrot.lane.b32.xlu2 %v10800_v9, %s6550_s22  ;;  %v4823_v15 = vsel %vm3101_vm9, %v4791_v12, %v10948_v20  ;;  %v4600_v16 = vsel %vm2870_vm2, %v4568_v54, %v13435_v40  ;;  %v13436_v9 = vld [vmem:[#allocation558_spill] sm:$0xff]  ;;  %v2953_v2 = vsel %vm12520_vm4, %v2920_v57, %v13437_v14  ;;  %v13448_v60 = vld [vmem:[#allocation651_spill] sm:$0xff]  ;;  %vm13449_vm14 = vmmov %vm13423_vm6 }
 0x8a3   : > { %v4625_v35 = vsel %vm2903_vm3, %v4593_v6, %v13436_v9  ;;  %v4632_v20 = vsel %vm2903_vm3, %v4600_v16, %v13438_v61  ;;  %v2986_v5 = vsel %vm2969_vm5, %v2953_v2, %v13440_v31  ;;  %v13450_v53 = vld [vmem:[#allocation269_spill] sm:$0xff]  ;;  %v13452_v33 = vld [vmem:[#allocation346_spill] sm:$0xff]  ;;  %v6445_v18 = vld [vmem:[%s6620_s25 + $0x124] sm:$0xff] }
 0x8a4   : > { %v11141_v55 = vpop.permute.xlu2 %4473  ;;  %4907 = vrot.lane.b32.xlu1 %v4823_v15, %s6550_s22  ;;  %v4657_v39 = vsel %vm12520_vm4, %v4625_v35, %v13439_v42  ;;  %v4664_v25 = vsel %vm12520_vm4, %v4632_v20, %v13441_v36  ;;  %v3019_v63 = vsel %vm13423_vm6, %v2986_v5, %v13443_v56  ;;  %v13453_v7 = vld [vmem:[#allocation365_spill] sm:$0xff]  ;;  %vm13455_vm6 = vcmask 424960   ;;  %v13457_v54 = vld [vmem:[#allocation442_spill] sm:$0xff]  ;;  %v13458_v6 = vld [vmem:[#allocation496_spill] sm:$0xff] }
 0x8a5   : > { %4481 = vrot.lane.b32.xlu0 %v6191_v50, %s6544_s7  ;;  %v4689_v28 = vsel %vm2969_vm5, %v4657_v39, %v13442_v27  ;;  %v4696_v62 = vsel %vm2969_vm5, %v4664_v25, %v13444_v52  ;;  %v3052_v0 = vsel %vm3035_vm7, %v3019_v63, %v13447_v45  ;;  %v13454_v50 = vld [vmem:[#allocation408_spill] sm:$0xff]  ;;  %v13459_v57 = vld [vmem:[#allocation5_spill] sm:$0xff]  ;;  %v13460_v16 = vld [vmem:[#allocation71_spill] sm:$0xff] }
 0x8a6   : > { %v4462_v17 = vpop.permute.xlu1 %4461  ;;  %v4721_v38 = vsel %vm13446_vm10, %v4689_v28, %v13445_v34  ;;  %v4728_v32 = vsel %vm13449_vm14, %v4696_v62, %v13448_v60  ;;  %v3085_v24 = vsel %vm3068_vm8, %v3052_v0, %v13450_v53  ;;  %v6446_v8 = vld [vmem:[%s6620_s25 + $0xc4] sm:$0xff]  ;;  %v13461_v35 = vld [vmem:[#allocation461_spill] sm:$0xff]  ;;  %vm13462_vm10 = vcmask 490496   ;;  %v13466_v25 = vld [vmem:[#allocation554_spill] sm:$0xff] }
 0x8a7   : > { %v11163_v4 = vpop.permute.xlu0 %4345  ;;  %v4753_v48 = vsel %vm3035_vm7, %v4721_v38, %v10968_v1  ;;  %v4760_v47 = vsel %vm3035_vm7, %v4728_v32, %v11039_v29  ;;  %v3118_v44 = vsel %vm3101_vm9, %v3085_v24, %v13451_v19  ;;  %v2809_v40 = vsel %vm2804_vm0, %v6446_v8, %v13459_v57  ;;  %v13463_v2 = vld [vmem:[#allocation528_spill] sm:$0xff]  ;;  %v13468_v63 = vld [vmem:[#allocation139_spill] sm:$0xff]  ;;  %v13471_v38 = vld [vmem:[#allocation133_spill] sm:$0xff] }
 0x8a8   : > { %v4792_v43 = vsel %vm3068_vm8, %v4760_v47, %v4334_v26  ;;  %v3151_v49 = vsel %vm3134_vm11, %v3118_v44, %v13452_v33  ;;  %v4785_v1 = vsel %vm3068_vm8, %v4753_v48, %v10956_v3  ;;  %v13456_v3 = vld [vmem:[#allocation18_spill] sm:$0xff]  ;;  %v6159_v42 = vld [vmem:[%s6620_s25 + $0x32d] sm:$0xff]  ;;  %vm13470_vm14 = vcmask 883712   ;;  %v13472_v45 = vld [vmem:[#allocation67_spill] sm:$0xff] }
 0x8a9   : > { %v4824_v41 = vsel %vm3101_vm9, %v4792_v43, %v4462_v17  ;;  %v3184_v29 = vsel %vm12519_vm12, %v3151_v49, %v13453_v7  ;;  %v4817_v12 = vsel %vm3101_vm9, %v4785_v1, %v11005_v13  ;;  %v2815_v21 = vsel %vm2804_vm0, %v6445_v18, %v13456_v3  ;;  %v13464_v39 = vld [vmem:[#allocation60_spill] sm:$0xff]  ;;  %v13467_v17 = vld [vmem:[#allocation90_spill] sm:$0xff]  ;;  %v13475_v24 = vld [vmem:[#allocation167_spill] sm:$0xff] }
 0x8aa   : > { %4225 = vrot.lane.b32.xlu2 %v6127_v23, %s6542_s5  ;;  %v3217_v22 = vsel %vm13455_vm6, %v3184_v29, %v13454_v50  ;;  %v4541_v13 = vsel %vm2804_vm0, %v6026_v11, %v13458_v6  ;;  %v2848_v9 = vsel %vm2837_vm1, %v2815_v21, %v13460_v16  ;;  %v2842_v31 = vsel %vm2837_vm1, %v2809_v40, %v13464_v39  ;;  %v13465_v5 = vld [vmem:[#allocation96_spill] sm:$0xff]  ;;  %v13473_v60 = vld [vmem:[#allocation606_spill] sm:$0xff]  ;;  %v13476_v44 = vld [vmem:[#allocation633_spill] sm:$0xff]  ;;  %s6226_s5 = sshll.u32 %s6588_s13, 3 }
 0x8ab   : > { %v3250_v46 = vsel %vm3233_vm13, %v3217_v22, %v13457_v54  ;;  %v4573_v61 = vsel %vm2837_vm1, %v4541_v13, %v13463_v2  ;;  %v2881_v36 = vsel %vm2870_vm2, %v2848_v9, %v13465_v5  ;;  %v2875_v56 = vsel %vm2870_vm2, %v2842_v31, %v13467_v17  ;;  %v13469_v62 = vld [vmem:[#allocation568_spill] sm:$0xff]  ;;  %v13477_v33 = vld [vmem:[#allocation161_spill] sm:$0xff]  ;;  %v13478_v11 = vld [vmem:[#allocation210_spill] sm:$0xff] }
 0x8ac   : > { %v11190_v26 = vpop.permute.xlu2 %4091  ;;  %4909 = vrot.lane.b32.xlu1 %v4824_v41, %s6550_s22  ;;  %v3283_v14 = vsel %vm13462_vm10, %v3250_v46, %v13461_v35  ;;  %v4605_v27 = vsel %vm2870_vm2, %v4573_v61, %v13466_v25  ;;  %v2914_v52 = vsel %vm2903_vm3, %v2881_v36, %v13468_v63  ;;  %v2908_v23 = vsel %vm2903_vm3, %v2875_v56, %v13471_v38  ;;  %v13474_v48 = vld [vmem:[#allocation152_spill] sm:$0xff]  ;;  %v13484_v3 = vld [vmem:[#allocation238_spill] sm:$0xff]  ;;  %v13485_v54 = vld [vmem:[#allocation263_spill] sm:$0xff] }
 0x8ad   : > { %4895 = vrot.lane.b32.xlu0 %v4817_v12, %s6550_s22  ;;  %v4637_v34 = vsel %vm2903_vm3, %v4605_v27, %v13469_v62  ;;  %v2947_v0 = vsel %vm12520_vm4, %v2914_v52, %v13472_v45  ;;  %v2941_v53 = vsel %vm12520_vm4, %v2908_v23, %v13474_v48  ;;  %v6027_v19 = vld [vmem:[%s6620_s25 + $0x2ad] sm:$0xff]  ;;  %vm13479_vm6 = vcmask 228352   ;;  %v13488_v16 = vld [vmem:[#allocation306_spill] sm:$0xff]  ;;  %v13496_v56 = vld [vmem:[#allocation543_spill] sm:$0xff] }
 0x8ae   : > { %v11203_v15 = vpop.permute.xlu1 %4193  ;;  %v4669_v32 = vsel %vm12520_vm4, %v4637_v34, %v13473_v60  ;;  %v2980_v47 = vsel %vm2969_vm5, %v2947_v0, %v13475_v24  ;;  %v2974_v49 = vsel %vm2969_vm5, %v2941_v53, %v13477_v33  ;;  %vm13480_vm10 = vmmov %vm13479_vm6  ;;  %v13481_v29 = vld [vmem:[#allocation204_spill] sm:$0xff]  ;;  %v13487_v57 = vld [vmem:[#allocation257_spill] sm:$0xff] }
 0x8af   : > { %v4900_v20 = vpop.permute.xlu0 %4899  ;;  %v4701_v43 = vsel %vm2969_vm5, %v4669_v32, %v13476_v44  ;;  %v3013_v1 = vsel %vm13479_vm6, %v2980_v47, %v13478_v11  ;;  %v13483_v50 = vld [vmem:[#allocation244_spill] sm:$0xff]  ;;  %v13489_v35 = vld [vmem:[#allocation497_spill] sm:$0xff]  ;;  %v13498_v38 = vld [vmem:[#allocation334_spill] sm:$0xff] }
 0x8b0   : > { %v4980_v28 = vsel %vm4963_vm15, %v3283_v14, %v4900_v20  ;;  %v4733_v41 = vsel %vm13480_vm10, %v4701_v43, %v10807_v51  ;;  %v3046_v22 = vsel %vm3035_vm7, %v3013_v1, %v13483_v50  ;;  %v13486_v6 = vld [vmem:[#allocation508_spill] sm:$0xff]  ;;  %v13490_v2 = vld [vmem:[#allocation521_spill] sm:$0xff]  ;;  %v13499_v45 = vld [vmem:[#allocation402_spill] sm:$0xff] }
 0x8b1   : > { %6209 = vmatmul.msk.f32.vlgmr.msra.gmra.mxu2 %vm13470_vm14, %v4980_v28  ;;  %vm13482_vm14 = vmmov %vm13479_vm6  ;;  %v4765_v18 = vsel %vm3035_vm7, %v4733_v41, %v10874_v59  ;;  %v3079_v46 = vsel %vm3068_vm8, %v3046_v22, %v13485_v54  ;;  %v4542_v51 = vsel %vm2804_vm0, %v6027_v19, %v13486_v6  ;;  %v6447_v9 = vld [vmem:[%s6620_s25 + $0x1ed] sm:$0xff]  ;;  %v13495_v28 = vld [vmem:[#allocation359_spill] sm:$0xff]  ;;  %vm13500_vm6 = vcmask 424960  }
 0x8b2   : > { %4353 = vrot.lane.b32.xlu2 %v6159_v42, %s6543_s6  ;;  %v3007_v12 = vsel %vm13482_vm14, %v2974_v49, %v13481_v29  ;;  %v4797_v13 = vsel %vm3068_vm8, %v4765_v18, %v10950_v37  ;;  %v3112_v59 = vsel %vm3101_vm9, %v3079_v46, %v13488_v16  ;;  %v4530_v14 = vsel %vm2804_vm0, %v6447_v9, %v13489_v35  ;;  %v13491_v42 = vld [vmem:[#allocation300_spill] sm:$0xff]  ;;  %v13493_v5 = vld [vmem:[#allocation513_spill] sm:$0xff]  ;;  %v13502_v48 = vld [vmem:[#allocation599_spill] sm:$0xff] }
 0x8b3   : > { %v3040_v21 = vsel %vm3035_vm7, %v3007_v12, %v13484_v3  ;;  %v4574_v61 = vsel %vm2837_vm1, %v4542_v51, %v13490_v2  ;;  %v13492_v37 = vld [vmem:[#allocation340_spill] sm:$0xff]  ;;  %v4562_v36 = vsel %vm2837_vm1, %v4530_v14, %v13493_v5  ;;  %v13494_v25 = vld [vmem:[#allocation553_spill] sm:$0xff]  ;;  %v4829_v34 = vsel %vm3101_vm9, %v4797_v13, %v10944_v30  ;;  %v13505_v44 = vld [vmem:[#allocation587_spill] sm:$0xff] }
 0x8b4   : > { %v11249_v7 = vpop.permute.xlu2 %4219  ;;  %v3073_v40 = vsel %vm3068_vm8, %v3040_v21, %v13487_v57  ;;  %v3145_v31 = vsel %vm3134_vm11, %v3112_v59, %v13492_v37  ;;  %v4606_v27 = vsel %vm2870_vm2, %v4574_v61, %v13494_v25  ;;  %v4594_v63 = vsel %vm2870_vm2, %v4562_v36, %v13496_v56  ;;  %v13497_v52 = vld [vmem:[#allocation581_spill] sm:$0xff]  ;;  %v13504_v19 = vld [vmem:[#allocation436_spill] sm:$0xff]  ;;  %vm13508_vm10 = vmmov %vm13500_vm6 }
 0x8b5   : > { %v3106_v39 = vsel %vm3101_vm9, %v3073_v40, %v13491_v42  ;;  %v3178_v17 = vsel %vm12519_vm12, %v3145_v31, %v13495_v28  ;;  %v4638_v62 = vsel %vm2903_vm3, %v4606_v27, %v13497_v52  ;;  %v13501_v60 = vld [vmem:[#allocation569_spill] sm:$0xff]  ;;  %v13506_v33 = vld [vmem:[#allocation632_spill] sm:$0xff]  ;;  %v13509_v41 = vld [vmem:[#allocation455_spill] sm:$0xff]  ;;  %vm13510_vm14 = vcmask 490496  }
 0x8b6   : > { %v11265_v8 = vpop.permute.xlu1 %4207  ;;  %v3139_v23 = vsel %vm3134_vm11, %v3106_v39, %v13498_v38  ;;  %v3211_v0 = vsel %vm13500_vm6, %v3178_v17, %v13499_v45  ;;  %v4626_v32 = vsel %vm2903_vm3, %v4594_v63, %v13501_v60  ;;  %v4670_v53 = vsel %vm12520_vm4, %v4638_v62, %v13502_v48  ;;  %v13503_v24 = vld [vmem:[#allocation353_spill] sm:$0xff]  ;;  %v13507_v11 = vld [vmem:[#allocation396_spill] sm:$0xff]  ;;  %v13511_v12 = vld [vmem:[#allocation622_spill] sm:$0xff] }
 0x8b7   : > { %v4322_v20 = vpop.permute.xlu0 %4321  ;;  %v3172_v47 = vsel %vm12519_vm12, %v3139_v23, %v13503_v24  ;;  %v3244_v30 = vsel %vm3233_vm13, %v3211_v0, %v13504_v19  ;;  %v4658_v43 = vsel %vm12520_vm4, %v4626_v32, %v13505_v44  ;;  %v4702_v49 = vsel %vm2969_vm5, %v4670_v53, %v13506_v33  ;;  %v13513_v3 = vld [vmem:[#allocation430_spill] sm:$0xff]  ;;  %v6022_v54 = vld [vmem:[%s6620_s25 + $0x265] sm:$0xff]  ;;  %v13516_v57 = vld [vmem:[#allocation449_spill] sm:$0xff] }
 0x8b8   : > { %v3205_v1 = vsel %vm13508_vm10, %v3172_v47, %v13507_v11  ;;  %v3277_v29 = vsel %vm13510_vm14, %v3244_v30, %v13509_v41  ;;  %v4690_v50 = vsel %vm2969_vm5, %v4658_v43, %v13511_v12  ;;  %vm13512_vm6 = vcmask 228352   ;;  %v13514_v46 = vld [vmem:[#allocation647_spill] sm:$0xff]  ;;  %vm13517_vm10 = vmmov %vm13510_vm14  ;;  %v13519_v2 = vld [vmem:[#allocation14_spill] sm:$0xff] }
 0x8b9   : > { %v4734_v22 = vsel %vm13512_vm6, %v4702_v49, %v10960_v10  ;;  %v3238_v21 = vsel %vm3233_vm13, %v3205_v1, %v13513_v3  ;;  %vm13515_vm12 = vmmov %vm13512_vm6  ;;  %vm13518_vm14 = vcmask 883712   ;;  %v13520_v42 = vld [vmem:[#allocation501_spill] sm:$0xff]  ;;  %v13523_v31 = vld [vmem:[#allocation527_spill] sm:$0xff] }
 0x8ba   : > { %4919 = vrot.lane.b32.xlu2 %v4829_v34, %s6550_s22  ;;  %v4722_v6 = vsel %vm13515_vm12, %v4690_v50, %v13514_v46  ;;  %v4766_v51 = vsel %vm3035_vm7, %v4734_v22, %v11028_v58  ;;  %v3271_v40 = vsel %vm13517_vm10, %v3238_v21, %v13516_v57  ;;  %v6448_v58 = vld [vmem:[%s6620_s25 + $0x18c] sm:$0xff]  ;;  %v4537_v39 = vsel %vm2804_vm0, %v6022_v54, %v13520_v42  ;;  %vm13521_vm12 = vmmov %vm13518_vm14  ;;  %v13525_v27 = vld [vmem:[#allocation539_spill] sm:$0xff] }
 0x8bb   : > { %v4798_v16 = vsel %vm3068_vm8, %v4766_v51, %v11163_v4  ;;  %v4754_v10 = vsel %vm3035_vm7, %v4722_v6, %v11203_v15  ;;  %v2822_v61 = vsel %vm2804_vm0, %v6448_v58, %v13519_v2  ;;  %v13522_v15 = vld [vmem:[#allocation80_spill] sm:$0xff]  ;;  %v13526_v17 = vld [vmem:[#allocation135_spill] sm:$0xff]  ;;  %v13527_v63 = vld [vmem:[#allocation574_spill] sm:$0xff] }
 0x8bc   : > { %v4888_v18 = vpop.permute.xlu2 %4887  ;;  %v4786_v9 = vsel %vm3068_vm8, %v4754_v10, %v4322_v20  ;;  %v2855_v37 = vsel %vm2837_vm1, %v2822_v61, %v13522_v15  ;;  %v4569_v20 = vsel %vm2837_vm1, %v4537_v39, %v13523_v31  ;;  %v4830_v5 = vsel %vm3101_vm9, %v4798_v16, %v11141_v55  ;;  %v13524_v36 = vld [vmem:[#allocation116_spill] sm:$0xff]  ;;  %v13528_v62 = vld [vmem:[#allocation78_spill] sm:$0xff]  ;;  %v13529_v23 = vld [vmem:[#allocation605_spill] sm:$0xff] }
 0x8bd   : > { %v4974_v13 = vsel %vm4963_vm15, %v3277_v29, %v4888_v18  ;;  %v2888_v25 = vsel %vm2870_vm2, %v2855_v37, %v13524_v36  ;;  %v4601_v28 = vsel %vm2870_vm2, %v4569_v20, %v13525_v27  ;;  %v6028_v38 = vld [vmem:[%s6620_s25 + $0x2c5] sm:$0xff]  ;;  %v13531_v32 = vld [vmem:[#allocation618_spill] sm:$0xff]  ;;  %vm13534_vm10 = vmmov %vm13512_vm6 }
 0x8be   : > { %6203 = vmatmul.msk.f32.gmra.mxu1 %vm13518_vm14, %v4974_v13  ;;  %v4876_v59 = vpop.permute.xlu1 %4875  ;;  %v2921_v56 = vsel %vm2903_vm3, %v2888_v25, %v13526_v17  ;;  %v4633_v52 = vsel %vm2903_vm3, %v4601_v28, %v13527_v63  ;;  %v13530_v0 = vld [vmem:[#allocation187_spill] sm:$0xff]  ;;  %v13532_v53 = vld [vmem:[#allocation206_spill] sm:$0xff]  ;;  %v13535_v44 = vld [vmem:[#allocation249_spill] sm:$0xff]  ;;  %vm13544_vm14 = vcmask 392192  }
 0x8bf   : > { %v4450_v35 = vpop.permute.xlu0 %4449  ;;  %v4968_v14 = vsel %vm4963_vm15, %v3271_v40, %v4876_v59  ;;  %v2954_v34 = vsel %vm12520_vm4, %v2921_v56, %v13528_v62  ;;  %v4665_v55 = vsel %vm12520_vm4, %v4633_v52, %v13529_v23  ;;  %v13533_v47 = vld [vmem:[#allocation650_spill] sm:$0xff]  ;;  %v13536_v33 = vld [vmem:[#allocation507_spill] sm:$0xff]  ;;  %v13538_v12 = vld [vmem:[#allocation532_spill] sm:$0xff] }
 0x8c0   : > { %v4818_v4 = vsel %vm3101_vm9, %v4786_v9, %v4450_v35  ;;  %6197 = vmatmul.msk.f32.gmra.mxu0 %vm13521_vm12, %v4968_v14  ;;  %v2987_v60 = vsel %vm2969_vm5, %v2954_v34, %v13530_v0  ;;  %v4697_v48 = vsel %vm2969_vm5, %v4665_v55, %v13531_v32  ;;  %v4543_v49 = vsel %vm2804_vm0, %v6028_v38, %v13536_v33  ;;  %v13537_v41 = vld [vmem:[#allocation283_spill] sm:$0xff]  ;;  %v13539_v18 = vld [vmem:[#allocation302_spill] sm:$0xff]  ;;  %v13540_v21 = vld [vmem:[#allocation545_spill] sm:$0xff] }
 0x8c1   : > { %4897 = vrot.lane.b32.xlu0 %v4818_v4, %s6550_s22  ;;  %v3020_v24 = vsel %vm13512_vm6, %v2987_v60, %v13532_v53  ;;  %v4729_v19 = vsel %vm13534_vm10, %v4697_v48, %v13533_v47  ;;  %v4575_v50 = vsel %vm2837_vm1, %v4543_v49, %v13538_v12  ;;  %v13541_v6 = vld [vmem:[#allocation345_spill] sm:$0xff]  ;;  %v13542_v51 = vld [vmem:[#allocation580_spill] sm:$0xff]  ;;  %v13543_v57 = vld [vmem:[#allocation379_spill] sm:$0xff]  ;;  %vm13547_vm12 = vcmask 424960  }
 0x8c2   : > { %4921 = vrot.lane.b32.xlu2 %v4830_v5, %s6550_s22  ;;  %v3053_v43 = vsel %vm3035_vm7, %v3020_v24, %v13535_v44  ;;  %v4761_v11 = vsel %vm3035_vm7, %v4729_v19, %v11265_v8  ;;  %v4607_v54 = vsel %vm2870_vm2, %v4575_v50, %v13540_v21  ;;  %v13545_v16 = vld [vmem:[#allocation610_spill] sm:$0xff]  ;;  %v13548_v35 = vld [vmem:[#allocation624_spill] sm:$0xff]  ;;  %v13549_v2 = vld [vmem:[#allocation441_spill] sm:$0xff]  ;;  %vm13551_vm10 = vcmask 490496  }
 0x8c3   : > { %v3086_v29 = vsel %vm3068_vm8, %v3053_v43, %v13537_v41  ;;  %v4639_v13 = vsel %vm2903_vm3, %v4607_v54, %v13542_v51  ;;  %v13546_v59 = vld [vmem:[#allocation398_spill] sm:$0xff]  ;;  %v13550_v39 = vld [vmem:[#allocation475_spill] sm:$0xff]  ;;  %v6449_v36 = vld [vmem:[%s6620_s25 + $0x12c] sm:$0xff] }
 0x8c4   : > { %v4464_v45 = vpop.permute.xlu2 %4463  ;;  %v3119_v3 = vsel %vm3101_vm9, %v3086_v29, %v13539_v18  ;;  %v4671_v10 = vsel %vm12520_vm4, %v4639_v13, %v13545_v16  ;;  %v13552_v25 = vld [vmem:[#allocation8_spill] sm:$0xff]  ;;  %v13554_v17 = vld [vmem:[#allocation6_spill] sm:$0xff]  ;;  %v13556_v52 = vld [vmem:[#allocation59_spill] sm:$0xff] }
 0x8c5   : > { %v3152_v8 = vsel %vm3134_vm11, %v3119_v3, %v13541_v6  ;;  %v4703_v14 = vsel %vm2969_vm5, %v4671_v10, %v13548_v35  ;;  %v2816_v27 = vsel %vm2804_vm0, %v6449_v36, %v13552_v25  ;;  %v13555_v63 = vld [vmem:[#allocation70_spill] sm:$0xff]  ;;  %v13558_v23 = vld [vmem:[#allocation104_spill] sm:$0xff]  ;;  %v13560_v60 = vld [vmem:[#allocation123_spill] sm:$0xff] }
 0x8c6   : > { %v4348_v30 = vpop.permute.xlu1 %4347  ;;  %v3185_v40 = vsel %vm13544_vm14, %v3152_v8, %v13543_v57  ;;  %v4735_v42 = vsel %vm13512_vm6, %v4703_v14, %v11190_v26  ;;  %vm13553_vm14 = vcmask 883712   ;;  %v6450_v26 = vld [vmem:[%s6620_s25 + $0xcc] sm:$0xff]  ;;  %v13557_v34 = vld [vmem:[#allocation110_spill] sm:$0xff]  ;;  %v13564_v43 = vld [vmem:[#allocation175_spill] sm:$0xff] }
 0x8c7   : > { %v4336_v1 = vpop.permute.xlu0 %4335  ;;  %v3218_v9 = vsel %vm13547_vm12, %v3185_v40, %v13546_v59  ;;  %v4767_v15 = vsel %vm3035_vm7, %v4735_v42, %v11249_v7  ;;  %v2810_v56 = vsel %vm2804_vm0, %v6450_v26, %v13554_v17  ;;  %v2849_v7 = vsel %vm2837_vm1, %v2816_v27, %v13555_v63  ;;  %v13561_v48 = vld [vmem:[#allocation74_spill] sm:$0xff]  ;;  %v13562_v47 = vld [vmem:[#allocation56_spill] sm:$0xff]  ;;  %vm13566_vm12 = vmmov %vm13512_vm6 }
 0x8c8   : > { %v4793_v22 = vsel %vm3068_vm8, %v4761_v11, %v4336_v1  ;;  %v3251_v61 = vsel %vm3233_vm13, %v3218_v9, %v13549_v2  ;;  %v4799_v31 = vsel %vm3068_vm8, %v4767_v15, %v4348_v30  ;;  %v2843_v62 = vsel %vm2837_vm1, %v2810_v56, %v13556_v52  ;;  %v13563_v30 = vld [vmem:[#allocation181_spill] sm:$0xff]  ;;  %v13565_v49 = vld [vmem:[#allocation200_spill] sm:$0xff]  ;;  %v13567_v41 = vld [vmem:[#allocation194_spill] sm:$0xff] }
 0x8c9   : > { %v4825_v46 = vsel %vm3101_vm9, %v4793_v22, %v4464_v45  ;;  %v3284_v4 = vsel %vm13551_vm10, %v3251_v61, %v13550_v39  ;;  %v2882_v38 = vsel %vm2870_vm2, %v2849_v7, %v13557_v34  ;;  %v2876_v55 = vsel %vm2870_vm2, %v2843_v62, %v13558_v23  ;;  %v13559_v45 = vld [vmem:[#allocation129_spill] sm:$0xff]  ;;  %v13568_v12 = vld [vmem:[#allocation243_spill] sm:$0xff]  ;;  %v13572_v8 = vld [vmem:[#allocation296_spill] sm:$0xff] }
 0x8ca   : > { %4911 = vrot.lane.b32.xlu1 %v4825_v46, %s6550_s22  ;;  %v2915_v0 = vsel %vm2903_vm3, %v2882_v38, %v13559_v45  ;;  %v2909_v32 = vsel %vm2903_vm3, %v2876_v55, %v13560_v60  ;;  %v13569_v18 = vld [vmem:[#allocation237_spill] sm:$0xff]  ;;  %v13571_v46 = vld [vmem:[#allocation271_spill] sm:$0xff]  ;;  %v13573_v13 = vld [vmem:[#allocation290_spill] sm:$0xff]  ;;  %vm13577_vm10 = vcmask 392192  }
 0x8cb   : > { %v2948_v53 = vsel %vm12520_vm4, %v2915_v0, %v13561_v48  ;;  %v2942_v19 = vsel %vm12520_vm4, %v2909_v32, %v13562_v47  ;;  %v13570_v21 = vld [vmem:[#allocation277_spill] sm:$0xff]  ;;  %v13574_v40 = vld [vmem:[#allocation339_spill] sm:$0xff]  ;;  %v13578_v42 = vld [vmem:[#allocation16_spill] sm:$0xff] }
 0x8cc   : > { %v11399_v58 = vpop.permute.xlu2 %4081  ;;  %v2981_v44 = vsel %vm2969_vm5, %v2948_v53, %v13563_v30  ;;  %v2975_v33 = vsel %vm2969_vm5, %v2942_v19, %v13564_v43  ;;  %v13575_v10 = vld [vmem:[#allocation333_spill] sm:$0xff]  ;;  %v6451_v61 = vld [vmem:[%s6620_s25 + $0xe4] sm:$0xff]  ;;  %v13579_v15 = vld [vmem:[#allocation22_spill] sm:$0xff] }
 0x8cd   : > { %v3014_v11 = vsel %vm13566_vm12, %v2981_v44, %v13565_v49  ;;  %v3008_v29 = vsel %vm13512_vm6, %v2975_v33, %v13567_v41  ;;  %v13576_v9 = vld [vmem:[#allocation373_spill] sm:$0xff]  ;;  %v2811_v39 = vsel %vm2804_vm0, %v6451_v61, %v13578_v42  ;;  %vm13583_vm12 = vcmask 424960   ;;  %v6454_v17 = vld [vmem:[%s6620_s25 + $0x1a4] sm:$0xff]  ;;  %v13586_v7 = vld [vmem:[#allocation386_spill] sm:$0xff] }
 0x8ce   : > { %v4902_v37 = vpop.permute.xlu1 %4901  ;;  %v3047_v50 = vsel %vm3035_vm7, %v3014_v11, %v13568_v12  ;;  %v3041_v3 = vsel %vm3035_vm7, %v3008_v29, %v13569_v18  ;;  %v6023_v14 = vld [vmem:[%s6620_s25 + $0x26d] sm:$0xff]  ;;  %vm13587_vm6 = vmmov %vm13583_vm12  ;;  %v13588_v62 = vld [vmem:[#allocation435_spill] sm:$0xff] }
 0x8cf   : > { %v4476_v20 = vpop.permute.xlu0 %4475  ;;  %v4981_v5 = vsel %vm4963_vm15, %v3284_v4, %v4902_v37  ;;  %v3080_v54 = vsel %vm3068_vm8, %v3047_v50, %v13570_v21  ;;  %v3074_v6 = vsel %vm3068_vm8, %v3041_v3, %v13571_v46  ;;  %v6029_v2 = vld [vmem:[%s6620_s25 + $0x2cd] sm:$0xff]  ;;  %v6452_v4 = vld [vmem:[%s6620_s25 + $0x144] sm:$0xff]  ;;  %v13593_v32 = vld [vmem:[#allocation498_spill] sm:$0xff] }
 0x8d0   : > { %v4831_v28 = vsel %vm3101_vm9, %v4799_v31, %v4476_v20  ;;  %6210 = vmatmul.msk.f32.gmra.mxu2 %vm13553_vm14, %v4981_v5  ;;  %v3113_v51 = vsel %vm3101_vm9, %v3080_v54, %v13572_v8  ;;  %v3107_v57 = vsel %vm3101_vm9, %v3074_v6, %v13573_v13  ;;  %v2817_v37 = vsel %vm2804_vm0, %v6452_v4, %v13579_v15  ;;  %v13580_v31 = vld [vmem:[#allocation367_spill] sm:$0xff]  ;;  %vm13581_vm14 = vmmov %vm13577_vm10  ;;  %v13582_v5 = vld [vmem:[#allocation392_spill] sm:$0xff] }
 0x8d1   : > { %4923 = vrot.lane.b32.xlu2 %v4831_v28, %s6550_s22  ;;  %v3146_v16 = vsel %vm3134_vm11, %v3113_v51, %v13574_v40  ;;  %v3140_v59 = vsel %vm3134_vm11, %v3107_v57, %v13575_v10  ;;  %v6453_v27 = vld [vmem:[%s6620_s25 + $0x1ac] sm:$0xff]  ;;  %v13584_v28 = vld [vmem:[#allocation31_spill] sm:$0xff]  ;;  %v4544_v48 = vsel %vm2804_vm0, %v6029_v2, %v13593_v32  ;;  %v13596_v30 = vld [vmem:[#allocation526_spill] sm:$0xff] }
 0x8d2   : > { %v3179_v35 = vsel %vm13577_vm10, %v3146_v16, %v13576_v9  ;;  %v3173_v20 = vsel %vm13581_vm14, %v3140_v59, %v13580_v31  ;;  %v2824_v26 = vsel %vm2804_vm0, %v6453_v27, %v13584_v28  ;;  %v13585_v56 = vld [vmem:[#allocation32_spill] sm:$0xff]  ;;  %v13589_v38 = vld [vmem:[#allocation429_spill] sm:$0xff]  ;;  %vm13591_vm10 = vcmask 490496   ;;  %v13594_v47 = vld [vmem:[#allocation463_spill] sm:$0xff] }
 0x8d3   : > { %v3212_v36 = vsel %vm13583_vm12, %v3179_v35, %v13582_v5  ;;  %v2823_v63 = vsel %vm2804_vm0, %v6454_v17, %v13585_v56  ;;  %v3206_v52 = vsel %vm13587_vm6, %v3173_v20, %v13586_v7  ;;  %v13590_v55 = vld [vmem:[#allocation469_spill] sm:$0xff]  ;;  %vm13595_vm14 = vmmov %vm13591_vm10  ;;  %v13597_v43 = vld [vmem:[#allocation531_spill] sm:$0xff]  ;;  %vm13601_vm12 = vcmask 883712  }
 0x8d4   : > { %v11434_v24 = vpop.permute.xlu2 %4221  ;;  %v3245_v34 = vsel %vm3233_vm13, %v3212_v36, %v13588_v62  ;;  %v3239_v23 = vsel %vm3233_vm13, %v3206_v52, %v13589_v38  ;;  %v13592_v0 = vld [vmem:[#allocation493_spill] sm:$0xff]  ;;  %v4576_v33 = vsel %vm2837_vm1, %v4544_v48, %v13597_v43  ;;  %v6455_v41 = vld [vmem:[%s6620_s25 + $0x204] sm:$0xff]  ;;  %vm13606_vm6 = vmmov %vm13601_vm12 }
 0x8d5   : > { %v3278_v45 = vsel %vm13591_vm10, %v3245_v34, %v13590_v55  ;;  %v4538_v60 = vsel %vm2804_vm0, %v6023_v14, %v13592_v0  ;;  %v3272_v19 = vsel %vm13595_vm14, %v3239_v23, %v13594_v47  ;;  %v13598_v29 = vld [vmem:[#allocation40_spill] sm:$0xff]  ;;  %v13602_v46 = vld [vmem:[#allocation43_spill] sm:$0xff]  ;;  %v13604_v13 = vld [vmem:[#allocation565_spill] sm:$0xff]  ;;  %vm13617_vm10 = vcmask 228352  }
 0x8d6   : > { %v11444_v1 = vpop.permute.xlu1 %4209  ;;  %v4570_v44 = vsel %vm2837_vm1, %v4538_v60, %v13596_v30  ;;  %v2829_v12 = vsel %vm2804_vm0, %v6455_v41, %v13598_v29  ;;  %v13599_v50 = vld [vmem:[#allocation552_spill] sm:$0xff]  ;;  %v2844_v6 = vsel %vm2837_vm1, %v2811_v39, %v13602_v46  ;;  %v13603_v8 = vld [vmem:[#allocation75_spill] sm:$0xff]  ;;  %v13608_v9 = vld [vmem:[#allocation121_spill] sm:$0xff] }
 0x8d7   : > { %v4094_v22 = vpop.permute.xlu0 %4093  ;;  %v4602_v18 = vsel %vm2870_vm2, %v4570_v44, %v13599_v50  ;;  %v13600_v3 = vld [vmem:[#allocation556_spill] sm:$0xff]  ;;  %v2862_v51 = vsel %vm2837_vm1, %v2829_v12, %v13603_v8  ;;  %v13605_v40 = vld [vmem:[#allocation571_spill] sm:$0xff]  ;;  %v13610_v61 = vld [vmem:[#allocation609_spill] sm:$0xff] }
 0x8d8   : > { %v4608_v21 = vsel %vm2870_vm2, %v4576_v33, %v13600_v3  ;;  %v4634_v57 = vsel %vm2903_vm3, %v4602_v18, %v13604_v13  ;;  %v13607_v10 = vld [vmem:[#allocation63_spill] sm:$0xff]  ;;  %v2895_v35 = vsel %vm2870_vm2, %v2862_v51, %v13608_v9  ;;  %v13609_v14 = vld [vmem:[#allocation604_spill] sm:$0xff]  ;;  %v13616_v56 = vld [vmem:[#allocation73_spill] sm:$0xff] }
 0x8d9   : > { %v4640_v16 = vsel %vm2903_vm3, %v4608_v21, %v13605_v40  ;;  %v2856_v59 = vsel %vm2837_vm1, %v2823_v63, %v13607_v10  ;;  %v4666_v2 = vsel %vm12520_vm4, %v4634_v57, %v13609_v14  ;;  %v13611_v39 = vld [vmem:[#allocation115_spill] sm:$0xff]  ;;  %v13612_v15 = vld [vmem:[#allocation148_spill] sm:$0xff]  ;;  %vm13618_vm14 = vmmov %vm13617_vm10 }
 0x8da   : > { %v4672_v42 = vsel %vm12520_vm4, %v4640_v16, %v13610_v61  ;;  %v2889_v4 = vsel %vm2870_vm2, %v2856_v59, %v13611_v39  ;;  %v2928_v31 = vsel %vm2903_vm3, %v2895_v35, %v13612_v15  ;;  %v13613_v20 = vld [vmem:[#allocation631_spill] sm:$0xff]  ;;  %v13615_v28 = vld [vmem:[#allocation144_spill] sm:$0xff]  ;;  %v13619_v34 = vld [vmem:[#allocation53_spill] sm:$0xff] }
 0x8db   : > { %v4698_v5 = vsel %vm2969_vm5, %v4666_v2, %v13613_v20  ;;  %v13614_v36 = vld [vmem:[#allocation635_spill] sm:$0xff]  ;;  %v2922_v17 = vsel %vm2903_vm3, %v2889_v4, %v13615_v28  ;;  %v2961_v63 = vsel %vm12520_vm4, %v2928_v31, %v13616_v56  ;;  %v2850_v38 = vsel %vm2837_vm1, %v2817_v37, %v13619_v34  ;;  %v13620_v23 = vld [vmem:[#allocation66_spill] sm:$0xff]  ;;  %v13626_v30 = vld [vmem:[#allocation220_spill] sm:$0xff] }
 0x8dc   : > { %v4338_v25 = vpop.permute.xlu2 %4337  ;;  %v4704_v27 = vsel %vm2969_vm5, %v4672_v42, %v13614_v36  ;;  %v4730_v7 = vsel %vm13617_vm10, %v4698_v5, %v11399_v58  ;;  %v2955_v55 = vsel %vm12520_vm4, %v2922_v17, %v13620_v23  ;;  %v13622_v32 = vld [vmem:[#allocation86_spill] sm:$0xff]  ;;  %v13628_v43 = vld [vmem:[#allocation245_spill] sm:$0xff]  ;;  %v13630_v29 = vld [vmem:[#allocation239_spill] sm:$0xff] }
 0x8dd   : > { %v4736_v52 = vsel %vm13618_vm14, %v4704_v27, %v4094_v22  ;;  %v4762_v60 = vsel %vm3035_vm7, %v4730_v7, %v11444_v1  ;;  %v2857_v48 = vsel %vm2837_vm1, %v2824_v26, %v13622_v32  ;;  %v13624_v22 = vld [vmem:[#allocation226_spill] sm:$0xff]  ;;  %v13632_v3 = vld [vmem:[#allocation143_spill] sm:$0xff]  ;;  %v13636_v40 = vld [vmem:[#allocation57_spill] sm:$0xff] }
 0x8de   : > { %v4890_v53 = vpop.permute.xlu1 %4889  ;;  %v4794_v37 = vsel %vm3068_vm8, %v4762_v60, %v4338_v25  ;;  %v4768_v26 = vsel %vm3035_vm7, %v4736_v52, %v11434_v24  ;;  %v13631_v25 = vld [vmem:[#allocation288_spill] sm:$0xff]  ;;  %v13634_v46 = vld [vmem:[#allocation322_spill] sm:$0xff]  ;;  %v13635_v13 = vld [vmem:[#allocation103_spill] sm:$0xff] }
 0x8df   : > { %v4878_v49 = vpop.permute.xlu0 %4877  ;;  %v4975_v11 = vsel %vm4963_vm15, %v3278_v45, %v4890_v53  ;;  %v13621_v45 = vld [vmem:[#allocation192_spill] sm:$0xff]  ;;  %v13623_v53 = vld [vmem:[#allocation186_spill] sm:$0xff]  ;;  %v2877_v57 = vsel %vm2870_vm2, %v2844_v6, %v13635_v13  ;;  %v13638_v9 = vld [vmem:[#allocation341_spill] sm:$0xff] }
 0x8e0   : > { %v4969_v54 = vsel %vm4963_vm15, %v3272_v19, %v4878_v49  ;;  %6204 = vmatmul.msk.f32.gmra.mxu1 %vm13601_vm12, %v4975_v11  ;;  %v2994_v0 = vsel %vm2969_vm5, %v2961_v63, %v13621_v45  ;;  %v2988_v58 = vsel %vm2969_vm5, %v2955_v55, %v13623_v53  ;;  %vm13625_vm12 = vmmov %vm13617_vm10  ;;  %v13629_v11 = vld [vmem:[#allocation109_spill] sm:$0xff]  ;;  %v13637_v10 = vld [vmem:[#allocation316_spill] sm:$0xff] }
 0x8e1   : > { %6198 = vmatmul.msk.f32.gmra.mxu0 %vm13606_vm6, %v4969_v54  ;;  %v3027_v47 = vsel %vm13625_vm12, %v2994_v0, %v13624_v22  ;;  %vm13627_vm6 = vmmov %vm13617_vm10  ;;  %v2883_v41 = vsel %vm2870_vm2, %v2850_v38, %v13629_v11  ;;  %v13633_v54 = vld [vmem:[#allocation282_spill] sm:$0xff]  ;;  %v13639_v14 = vld [vmem:[#allocation137_spill] sm:$0xff]  ;;  %vm13643_vm10 = vcmask 392192  }
 0x8e2   : > { %v3021_v44 = vsel %vm13627_vm6, %v2988_v58, %v13626_v30  ;;  %v3060_v33 = vsel %vm3035_vm7, %v3027_v47, %v13628_v43  ;;  %v2916_v21 = vsel %vm2903_vm3, %v2883_v41, %v13632_v3  ;;  %v2910_v2 = vsel %vm2903_vm3, %v2877_v57, %v13639_v14  ;;  %v13640_v61 = vld [vmem:[#allocation180_spill] sm:$0xff]  ;;  %v13641_v39 = vld [vmem:[#allocation335_spill] sm:$0xff]  ;;  %v13645_v5 = vld [vmem:[#allocation214_spill] sm:$0xff] }
 0x8e3   : > { %v3054_v12 = vsel %vm3035_vm7, %v3021_v44, %v13630_v29  ;;  %v3093_v50 = vsel %vm3068_vm8, %v3060_v33, %v13631_v25  ;;  %v2949_v16 = vsel %vm12520_vm4, %v2916_v21, %v13636_v40  ;;  %v13642_v4 = vld [vmem:[#allocation384_spill] sm:$0xff]  ;;  %v13644_v31 = vld [vmem:[#allocation47_spill] sm:$0xff]  ;;  %vm13646_vm14 = vmmov %vm13627_vm6  ;;  %vm13650_vm6 = vcmask 424960  }
 0x8e4   : > { %v4478_v62 = vpop.permute.xlu2 %4477  ;;  %v3087_v24 = vsel %vm3068_vm8, %v3054_v12, %v13633_v54  ;;  %v3126_v8 = vsel %vm3101_vm9, %v3093_v50, %v13634_v46  ;;  %v2982_v42 = vsel %vm2969_vm5, %v2949_v16, %v13640_v61  ;;  %v2943_v20 = vsel %vm12520_vm4, %v2910_v2, %v13644_v31  ;;  %v13647_v27 = vld [vmem:[#allocation378_spill] sm:$0xff]  ;;  %vm13648_vm12 = vmmov %vm13643_vm10  ;;  %v13653_v38 = vld [vmem:[#allocation412_spill] sm:$0xff] }
 0x8e5   : > { %v3120_v59 = vsel %vm3101_vm9, %v3087_v24, %v13637_v10  ;;  %v3159_v35 = vsel %vm3134_vm11, %v3126_v8, %v13638_v9  ;;  %v3015_v36 = vsel %vm13646_vm14, %v2982_v42, %v13645_v5  ;;  %v13649_v17 = vld [vmem:[#allocation418_spill] sm:$0xff]  ;;  %v13655_v55 = vld [vmem:[#allocation437_spill] sm:$0xff]  ;;  %v13656_v0 = vld [vmem:[#allocation208_spill] sm:$0xff] }
 0x8e6   : > { %v4466_v19 = vpop.permute.xlu1 %4465  ;;  %v3153_v6 = vsel %vm3134_vm11, %v3120_v59, %v13641_v39  ;;  %v3192_v15 = vsel %vm13643_vm10, %v3159_v35, %v13642_v4  ;;  %v13651_v7 = vld [vmem:[#allocation174_spill] sm:$0xff]  ;;  %vm13654_vm10 = vmmov %vm13650_vm6  ;;  %v13657_v32 = vld [vmem:[#allocation276_spill] sm:$0xff] }
 0x8e7   : > { %v4826_v1 = vsel %vm3101_vm9, %v4794_v37, %v4466_v19  ;;  %v4350_v49 = vpop.permute.xlu0 %4349  ;;  %v3186_v28 = vsel %vm13648_vm12, %v3153_v6, %v13647_v27  ;;  %v3225_v56 = vsel %vm13650_vm6, %v3192_v15, %v13649_v17  ;;  %v2976_v52 = vsel %vm2969_vm5, %v2943_v20, %v13651_v7  ;;  %v13658_v58 = vld [vmem:[#allocation431_spill] sm:$0xff]  ;;  %v13662_v43 = vld [vmem:[#allocation310_spill] sm:$0xff]  ;;  %v13665_v41 = vld [vmem:[#allocation105_spill] sm:$0xff] }
 0x8e8   : > { %v4800_v18 = vsel %vm3068_vm8, %v4768_v26, %v4350_v49  ;;  %4913 = vrot.lane.b32.xlu0 %v4826_v1, %s6550_s22  ;;  %v3219_v23 = vsel %vm13654_vm10, %v3186_v28, %v13653_v38  ;;  %v3258_v45 = vsel %vm3233_vm13, %v3225_v56, %v13655_v55  ;;  %v3009_v60 = vsel %vm13646_vm14, %v2976_v52, %v13656_v0  ;;  %v13659_v47 = vld [vmem:[#allocation479_spill] sm:$0xff]  ;;  %v13663_v1 = vld [vmem:[#allocation474_spill] sm:$0xff]  ;;  %v13667_v50 = vld [vmem:[#allocation329_spill] sm:$0xff] }
 0x8e9   : > { %v4832_v51 = vsel %vm3101_vm9, %v4800_v18, %v4478_v62  ;;  %v13652_v62 = vld [vmem:[#allocation233_spill] sm:$0xff]  ;;  %v3252_v22 = vsel %vm3233_vm13, %v3219_v23, %v13658_v58  ;;  %vm13660_vm12 = vcmask 490496   ;;  %v13661_v30 = vld [vmem:[#allocation227_spill] sm:$0xff]  ;;  %v2890_v29 = vsel %vm2870_vm2, %v2857_v48, %v13665_v41  ;;  %v13666_v12 = vld [vmem:[#allocation270_spill] sm:$0xff] }
 0x8ea   : > { %4925 = vrot.lane.b32.xlu1 %v4832_v51, %s6550_s22  ;;  %v3048_v34 = vsel %vm3035_vm7, %v3015_v36, %v13652_v62  ;;  %v3291_v37 = vsel %vm13660_vm12, %v3258_v45, %v13659_v47  ;;  %v3042_v44 = vsel %vm3035_vm7, %v3009_v60, %v13661_v30  ;;  %vm13664_vm6 = vmmov %vm13660_vm12  ;;  %vm13668_vm10 = vcmask 883712   ;;  %v13669_v21 = vld [vmem:[#allocation27_spill] sm:$0xff]  ;;  %v13670_v24 = vld [vmem:[#allocation304_spill] sm:$0xff] }
 0x8eb   : > { %v3081_v53 = vsel %vm3068_vm8, %v3048_v34, %v13657_v32  ;;  %v3285_v26 = vsel %vm13664_vm6, %v3252_v22, %v13663_v1  ;;  %v3075_v25 = vsel %vm3068_vm8, %v3042_v44, %v13666_v12  ;;  %v2923_v54 = vsel %vm2903_vm3, %v2890_v29, %v13669_v21  ;;  %v13671_v8 = vld [vmem:[#allocation372_spill] sm:$0xff]  ;;  %vm13673_vm12 = vmmov %vm13668_vm10  ;;  %v13674_v51 = vld [vmem:[#allocation157_spill] sm:$0xff] }
 0x8ec   : > { %v11606_v63 = vpop.permute.xlu2 %4095  ;;  %v3114_v33 = vsel %vm3101_vm9, %v3081_v53, %v13662_v43  ;;  %v3108_v46 = vsel %vm3101_vm9, %v3075_v25, %v13670_v24  ;;  %vm13672_vm14 = vcmask 392192   ;;  %v2956_v13 = vsel %vm12520_vm4, %v2923_v54, %v13674_v51  ;;  %v13675_v57 = vld [vmem:[#allocation323_spill] sm:$0xff]  ;;  %v13676_v16 = vld [vmem:[#allocation406_spill] sm:$0xff]  ;;  %v13678_v59 = vld [vmem:[#allocation176_spill] sm:$0xff] }
 0x8ed   : > { %v3147_v18 = vsel %vm3134_vm11, %v3114_v33, %v13667_v50  ;;  %v3141_v40 = vsel %vm3134_vm11, %v3108_v46, %v13675_v57  ;;  %vm13677_vm6 = vcmask 424960   ;;  %v2989_v9 = vsel %vm2969_vm5, %v2956_v13, %v13678_v59  ;;  %v13679_v35 = vld [vmem:[#allocation366_spill] sm:$0xff]  ;;  %v13681_v2 = vld [vmem:[#allocation425_spill] sm:$0xff]  ;;  %v13682_v42 = vld [vmem:[#allocation219_spill] sm:$0xff] }
 0x8ee   : > { %v4916_v19 = vpop.permute.xlu1 %4915  ;;  %v3180_v48 = vsel %vm13672_vm14, %v3147_v18, %v13671_v8  ;;  %v13684_v6 = vld [vmem:[#allocation400_spill] sm:$0xff]  ;;  %vm13687_vm4 = vcmask 490496   ;;  %v13688_v5 = vld [vmem:[#allocation253_spill] sm:$0xff]  ;;  %v13689_v27 = vld [vmem:[#allocation419_spill] sm:$0xff] }
 0x8ef   : > { %v4904_v49 = vpop.permute.xlu0 %4903  ;;  %v4988_v11 = vsel %vm4963_vm15, %v3291_v37, %v4916_v19  ;;  %v3213_v10 = vsel %vm13677_vm6, %v3180_v48, %v13676_v16  ;;  %v13686_v15 = vld [vmem:[#allocation468_spill] sm:$0xff]  ;;  %v13691_v62 = vld [vmem:[#allocation462_spill] sm:$0xff]  ;;  %v13694_v55 = vld [vmem:[#allocation11_spill] sm:$0xff] }
 0x8f0   : > { %v4982_v3 = vsel %vm4963_vm15, %v3285_v26, %v4904_v49  ;;  %6217 = vmatmul.msk.f32.vlgmr.msra.gmra.mxu3 %vm13668_vm10, %v4988_v11  ;;  %vm13680_vm10 = vmmov %vm13672_vm14  ;;  %v3246_v61 = vsel %vm3233_vm13, %v3213_v10, %v13681_v2  ;;  %vm13683_vm14 = vcmask 228352   ;;  %v6030_v17 = vld [vmem:[%s6620_s25 + $0x2e5] sm:$0xff]  ;;  %v13697_v19 = vld [vmem:[#allocation17_spill] sm:$0xff] }
 0x8f1   : > { %6211 = vmatmul.msk.f32.gmra.mxu2 %vm13673_vm12, %v4982_v3  ;;  %v3174_v14 = vsel %vm13680_vm10, %v3141_v40, %v13679_v35  ;;  %v3022_v39 = vsel %vm13683_vm14, %v2989_v9, %v13682_v42  ;;  %vm13685_vm12 = vmmov %vm13677_vm6  ;;  %v3279_v31 = vsel %vm13687_vm4, %v3246_v61, %v13686_v15  ;;  %v13690_v7 = vld [vmem:[#allocation272_spill] sm:$0xff]  ;;  %vm13693_vm10 = vcmask 883712   ;;  %v13695_v60 = vld [vmem:[#allocation15_spill] sm:$0xff] }
 0x8f2   : > { %v3207_v4 = vsel %vm13685_vm12, %v3174_v14, %v13684_v6  ;;  %v3055_v36 = vsel %vm3035_vm7, %v3022_v39, %v13688_v5  ;;  %vm13692_vm6 = vmmov %vm13687_vm4  ;;  %v6456_v23 = vld [vmem:[%s6620_s25 + $0x164] sm:$0xff]  ;;  %v6457_v0 = vld [vmem:[%s6620_s25 + $0xec] sm:$0xff]  ;;  %vm13705_vm14 = vcmask 392192  }
 0x8f3   : > { %v3240_v28 = vsel %vm3233_vm13, %v3207_v4, %v13689_v27  ;;  %v3088_v52 = vsel %vm3068_vm8, %v3055_v36, %v13690_v7  ;;  %v2819_v45 = vsel %vm2804_vm0, %v6456_v23, %v13694_v55  ;;  %v2812_v32 = vsel %vm2804_vm0, %v6457_v0, %v13695_v60  ;;  %v13696_v53 = vld [vmem:[#allocation315_spill] sm:$0xff]  ;;  %v6459_v44 = vld [vmem:[%s6620_s25 + $0x14c] sm:$0xff]  ;;  %vm13701_vm4 = vmmov %vm13693_vm10 }
 0x8f4   : > { %v4892_v20 = vpop.permute.xlu2 %4891  ;;  %v3273_v34 = vsel %vm13692_vm6, %v3240_v28, %v13691_v62  ;;  %v3121_v58 = vsel %vm3101_vm9, %v3088_v52, %v13696_v53  ;;  %v6458_v37 = vld [vmem:[%s6620_s25 + $0x1c4] sm:$0xff]  ;;  %v13698_v43 = vld [vmem:[#allocation21_spill] sm:$0xff]  ;;  %v13726_v53 = vld [vmem:[#allocation182_spill] sm:$0xff] }
 0x8f5   : > { %v4976_v56 = vsel %vm4963_vm15, %v3279_v31, %v4892_v20  ;;  %v2825_v30 = vsel %vm2804_vm0, %v6458_v37, %v13697_v19  ;;  %v2818_v33 = vsel %vm2804_vm0, %v6459_v44, %v13698_v43  ;;  %v13699_v1 = vld [vmem:[#allocation349_spill] sm:$0xff]  ;;  %v13700_v49 = vld [vmem:[#allocation511_spill] sm:$0xff]  ;;  %v13702_v29 = vld [vmem:[#allocation24_spill] sm:$0xff] }
 0x8f6   : > { %6205 = vmatmul.msk.f32.gmra.mxu1 %vm13693_vm10, %v4976_v56  ;;  %v4880_v38 = vpop.permute.xlu1 %4879  ;;  %v3154_v26 = vsel %vm3134_vm11, %v3121_v58, %v13699_v1  ;;  %v4545_v11 = vsel %vm2804_vm0, %v6030_v17, %v13700_v49  ;;  %v6460_v41 = vld [vmem:[%s6620_s25 + $0x224] sm:$0xff]  ;;  %v6461_v25 = vld [vmem:[%s6620_s25 + $0x20c] sm:$0xff]  ;;  %vm13719_vm10 = vcmask 162816  }
 0x8f7   : > { %v4224_v22 = vpop.permute.xlu0 %4223  ;;  %v4970_v47 = vsel %vm4963_vm15, %v3273_v34, %v4880_v38  ;;  %v2831_v12 = vsel %vm2804_vm0, %v6460_v41, %v13702_v29  ;;  %v13703_v50 = vld [vmem:[#allocation39_spill] sm:$0xff]  ;;  %v13704_v3 = vld [vmem:[#allocation368_spill] sm:$0xff]  ;;  %v13711_v9 = vld [vmem:[#allocation45_spill] sm:$0xff] }
 0x8f8   : > { %6199 = vmatmul.msk.f32.gmra.mxu0 %vm13701_vm4, %v4970_v47  ;;  %v2830_v18 = vsel %vm2804_vm0, %v6461_v25, %v13703_v50  ;;  %v3187_v21 = vsel %vm13705_vm14, %v3154_v26, %v13704_v3  ;;  %v13706_v54 = vld [vmem:[#allocation523_spill] sm:$0xff]  ;;  %v6462_v46 = vld [vmem:[%s6620_s25 + $0x1cc] sm:$0xff]  ;;  %vm13722_vm4 = vmmov %vm13719_vm10  ;;  %vm13727_vm14 = vcmask 228352  }
 0x8f9   : > { %v4577_v24 = vsel %vm2837_vm1, %v4545_v11, %v13706_v54  ;;  %v13707_v8 = vld [vmem:[#allocation36_spill] sm:$0xff]  ;;  %v13709_v57 = vld [vmem:[#allocation411_spill] sm:$0xff]  ;;  %v13713_v61 = vld [vmem:[#allocation445_spill] sm:$0xff] }
 0x8fa   : > { %v2826_v48 = vsel %vm2804_vm0, %v6462_v46, %v13707_v8  ;;  %v13708_v51 = vld [vmem:[#allocation92_spill] sm:$0xff]  ;;  %v3220_v40 = vsel %vm13685_vm12, %v3187_v21, %v13709_v57  ;;  %v13710_v16 = vld [vmem:[#allocation555_spill] sm:$0xff]  ;;  %v13715_v4 = vld [vmem:[#allocation65_spill] sm:$0xff]  ;;  %vm13728_vm12 = vcmask 883712  }
 0x8fb   : > { %v2863_v13 = vsel %vm2837_vm1, %v2830_v18, %v13708_v51  ;;  %v4609_v10 = vsel %vm2870_vm2, %v4577_v24, %v13710_v16  ;;  %v6463_v59 = vld [vmem:[%s6620_s25 + $0x22c] sm:$0xff]  ;;  %v13712_v14 = vld [vmem:[#allocation111_spill] sm:$0xff]  ;;  %v3253_v42 = vsel %vm3233_vm13, %v3220_v40, %v13713_v61  ;;  %v2845_v15 = vsel %vm2837_vm1, %v2812_v32, %v13715_v4  ;;  %v13723_v34 = vld [vmem:[#allocation634_spill] sm:$0xff] }
 0x8fc   : > { %v2832_v35 = vsel %vm2804_vm0, %v6463_v59, %v13711_v9  ;;  %v2896_v2 = vsel %vm2870_vm2, %v2863_v13, %v13712_v14  ;;  %v13714_v39 = vld [vmem:[#allocation584_spill] sm:$0xff]  ;;  %v13716_v31 = vld [vmem:[#allocation37_spill] sm:$0xff]  ;;  %v4906_v17 = vpop.permute.xlu2 %4905  ;;  %v13721_v52 = vld [vmem:[#allocation163_spill] sm:$0xff] }
 0x8fd   : > { %v4641_v6 = vsel %vm2903_vm3, %v4609_v10, %v13714_v39  ;;  %v2929_v20 = vsel %vm2903_vm3, %v2896_v2, %v13716_v31  ;;  %v13717_v5 = vld [vmem:[#allocation464_spill] sm:$0xff]  ;;  %v13718_v27 = vld [vmem:[#allocation601_spill] sm:$0xff]  ;;  %v13729_v19 = vld [vmem:[#allocation79_spill] sm:$0xff] }
 0x8fe   : > { %v3286_v36 = vsel %vm13692_vm6, %v3253_v42, %v13717_v5  ;;  %v4673_v28 = vsel %vm13719_vm10, %v4641_v6, %v13718_v27  ;;  %v13720_v56 = vld [vmem:[#allocation69_spill] sm:$0xff]  ;;  %v2962_v62 = vsel %vm13722_vm4, %v2929_v20, %v13721_v52  ;;  %v13724_v55 = vld [vmem:[#allocation76_spill] sm:$0xff]  ;;  %v4480_v37 = vpop.permute.xlu1 %4479  ;;  %v2865_v44 = vsel %vm2837_vm1, %v2832_v35, %v13729_v19  ;;  %vm13732_vm6 = vmmov %vm13727_vm14 }
 0x8ff   : > { %v2859_v7 = vsel %vm2837_vm1, %v2826_v48, %v13720_v56  ;;  %v4705_v38 = vsel %vm2969_vm5, %v4673_v28, %v13723_v34  ;;  %v4983_v23 = vsel %vm4963_vm15, %v3286_v36, %v4906_v17  ;;  %v2852_v0 = vsel %vm2837_vm1, %v2819_v45, %v13724_v55  ;;  %v13725_v60 = vld [vmem:[#allocation77_spill] sm:$0xff]  ;;  %v4352_v49 = vpop.permute.xlu0 %4351  ;;  %v13733_v11 = vld [vmem:[#allocation91_spill] sm:$0xff]  ;;  %v13738_v24 = vld [vmem:[#allocation278_spill] sm:$0xff] }
 0x900   : > { %v2851_v32 = vsel %vm2837_vm1, %v2818_v33, %v13725_v60  ;;  %v2995_v58 = vsel %vm2969_vm5, %v2962_v62, %v13726_v53  ;;  %v4737_v47 = vsel %vm13727_vm14, %v4705_v38, %v11606_v63  ;;  %6212 = vmatmul.msk.f32.gmra.mxu2 %vm13728_vm12, %v4983_v23  ;;  %v13730_v43 = vld [vmem:[#allocation85_spill] sm:$0xff]  ;;  %v2864_v41 = vsel %vm2837_vm1, %v2831_v12, %v13733_v11  ;;  %v13735_v25 = vld [vmem:[#allocation259_spill] sm:$0xff]  ;;  %v13739_v12 = vld [vmem:[#allocation118_spill] sm:$0xff] }
 0x901   : > { %v2858_v1 = vsel %vm2837_vm1, %v2825_v30, %v13730_v43  ;;  %v13731_v26 = vld [vmem:[#allocation225_spill] sm:$0xff]  ;;  %v4769_v33 = vsel %vm3035_vm7, %v4737_v47, %v4224_v22  ;;  %v13736_v3 = vld [vmem:[#allocation99_spill] sm:$0xff]  ;;  %v2892_v8 = vsel %vm2870_vm2, %v2859_v7, %v13739_v12  ;;  %v13741_v13 = vld [vmem:[#allocation124_spill] sm:$0xff]  ;;  %vm13758_vm12 = vcmask 424960  }
 0x902   : > { %v3028_v45 = vsel %vm13732_vm6, %v2995_v58, %v13731_v26  ;;  %v13734_v29 = vld [vmem:[#allocation93_spill] sm:$0xff]  ;;  %v4801_v18 = vsel %vm3068_vm8, %v4769_v33, %v4352_v49  ;;  %v2884_v30 = vsel %vm2870_vm2, %v2851_v32, %v13736_v3  ;;  %v13740_v48 = vld [vmem:[#allocation119_spill] sm:$0xff]  ;;  %v2898_v57 = vsel %vm2870_vm2, %v2865_v44, %v13741_v13  ;;  %v13744_v9 = vld [vmem:[#allocation132_spill] sm:$0xff] }
 0x903   : > { %v2878_v63 = vsel %vm2870_vm2, %v2845_v15, %v13734_v29  ;;  %v3061_v50 = vsel %vm3035_vm7, %v3028_v45, %v13735_v25  ;;  %v13737_v21 = vld [vmem:[#allocation113_spill] sm:$0xff]  ;;  %v4833_v46 = vsel %vm3101_vm9, %v4801_v18, %v4480_v37  ;;  %v2891_v51 = vsel %vm2870_vm2, %v2858_v1, %v13740_v48  ;;  %v13745_v14 = vld [vmem:[#allocation142_spill] sm:$0xff]  ;;  %v13746_v61 = vld [vmem:[#allocation355_spill] sm:$0xff] }
 0x904   : > { %v2885_v54 = vsel %vm2870_vm2, %v2852_v0, %v13737_v21  ;;  %v3094_v22 = vsel %vm3068_vm8, %v3061_v50, %v13738_v24  ;;  %v13742_v40 = vld [vmem:[#allocation321_spill] sm:$0xff]  ;;  %4927 = vrot.lane.b32.xlu2 %v4833_v46, %s6550_s22  ;;  %v2917_v2 = vsel %vm2903_vm3, %v2884_v30, %v13745_v14  ;;  %v13747_v39 = vld [vmem:[#allocation136_spill] sm:$0xff]  ;;  %v13748_v4 = vld [vmem:[#allocation138_spill] sm:$0xff]  ;;  %v11793_v27 = vpop.permute.xlu2 %4225 }
 0x905   : > { %v3127_v16 = vsel %vm3101_vm9, %v3094_v22, %v13742_v40  ;;  %v13743_v10 = vld [vmem:[#allocation125_spill] sm:$0xff]  ;;  %v2918_v35 = vsel %vm2903_vm3, %v2885_v54, %v13744_v9  ;;  %v2911_v6 = vsel %vm2903_vm3, %v2878_v63, %v13747_v39  ;;  %v2924_v15 = vsel %vm2903_vm3, %v2891_v51, %v13748_v4  ;;  %v13749_v31 = vld [vmem:[#allocation154_spill] sm:$0xff]  ;;  %vm13750_vm10 = vmmov %vm13722_vm4 }
 0x906   : > { %v2897_v59 = vsel %vm2870_vm2, %v2864_v41, %v13743_v10  ;;  %v3160_v42 = vsel %vm3134_vm11, %v3127_v16, %v13746_v61  ;;  %v2950_v20 = vsel %vm13750_vm10, %v2917_v2, %v13749_v31  ;;  %v13751_v5 = vld [vmem:[#allocation374_spill] sm:$0xff]  ;;  %vm13752_vm4 = vcmask 392192   ;;  %v13753_v28 = vld [vmem:[#allocation28_spill] sm:$0xff]  ;;  %v13754_v56 = vld [vmem:[#allocation61_spill] sm:$0xff]  ;;  %v4098_v37 = vpop.permute.xlu1 %4097 }
 0x907   : > { %v3193_v36 = vsel %vm13752_vm4, %v3160_v42, %v13751_v5  ;;  %v2930_v17 = vsel %vm2903_vm3, %v2897_v59, %v13753_v28  ;;  %vm13755_vm14 = vmmov %vm13750_vm10  ;;  %v13756_v52 = vld [vmem:[#allocation170_spill] sm:$0xff]  ;;  %v13757_v34 = vld [vmem:[#allocation417_spill] sm:$0xff]  ;;  %vm13768_vm4 = vcmask 490496   ;;  %v4918_v11 = vpop.permute.xlu0 %4917 }
 0x908   : > { %v2944_v7 = vsel %vm13755_vm14, %v2911_v6, %v13754_v56  ;;  %v2983_v62 = vsel %vm2969_vm5, %v2950_v20, %v13756_v52  ;;  %v3226_v38 = vsel %vm13758_vm12, %v3193_v36, %v13757_v34  ;;  %v13759_v23 = vld [vmem:[#allocation147_spill] sm:$0xff]  ;;  %v13760_v0 = vld [vmem:[#allocation164_spill] sm:$0xff]  ;;  %v13761_v32 = vld [vmem:[#allocation213_spill] sm:$0xff] }
 0x909   : > { %v2925_v55 = vsel %vm2903_vm3, %v2892_v8, %v13759_v23  ;;  %v2977_v60 = vsel %vm2969_vm5, %v2944_v7, %v13760_v0  ;;  %v3016_v53 = vsel %vm13732_vm6, %v2983_v62, %v13761_v32  ;;  %v13762_v58 = vld [vmem:[#allocation451_spill] sm:$0xff]  ;;  %v13763_v19 = vld [vmem:[#allocation149_spill] sm:$0xff]  ;;  %vm13765_vm10 = vmmov %vm13732_vm6 }
 0x90a   : > { %v3259_v47 = vsel %vm3233_vm13, %v3226_v38, %v13762_v58  ;;  %v2931_v44 = vsel %vm2903_vm3, %v2898_v57, %v13763_v19  ;;  %v13764_v43 = vld [vmem:[#allocation207_spill] sm:$0xff]  ;;  %v13767_v33 = vld [vmem:[#allocation470_spill] sm:$0xff]  ;;  %v13769_v41 = vld [vmem:[#allocation72_spill] sm:$0xff] }
 0x90b   : > { %v3010_v1 = vsel %vm13765_vm10, %v2977_v60, %v13764_v43  ;;  %v13766_v26 = vld [vmem:[#allocation247_spill] sm:$0xff]  ;;  %v3292_v49 = vsel %vm13768_vm4, %v3259_v47, %v13767_v33  ;;  %v2958_v29 = vsel %vm13755_vm14, %v2925_v55, %v13769_v41  ;;  %v13770_v63 = vld [vmem:[#allocation241_spill] sm:$0xff]  ;;  %v13771_v50 = vld [vmem:[#allocation266_spill] sm:$0xff]  ;;  %vm13778_vm10 = vcmask 883712  }
 0x90c   : > { %v3049_v45 = vsel %vm3035_vm7, %v3016_v53, %v13766_v26  ;;  %v3043_v25 = vsel %vm3035_vm7, %v3010_v1, %v13770_v63  ;;  %v4989_v3 = vsel %vm4963_vm15, %v3292_v49, %v4918_v11  ;;  %v13772_v30 = vld [vmem:[#allocation153_spill] sm:$0xff]  ;;  %vm13773_vm12 = vmmov %vm13755_vm14  ;;  %v13774_v54 = vld [vmem:[#allocation156_spill] sm:$0xff]  ;;  %vm13786_vm14 = vcmask 228352   ;;  %v4354_v7 = vpop.permute.xlu2 %4353 }
 0x90d   : > { %v3082_v18 = vsel %vm3068_vm8, %v3049_v45, %v13771_v50  ;;  %v2951_v21 = vsel %vm13773_vm12, %v2918_v35, %v13772_v30  ;;  %vm13775_vm6 = vmmov %vm13773_vm12  ;;  %v13776_v22 = vld [vmem:[#allocation260_spill] sm:$0xff]  ;;  %v13777_v12 = vld [vmem:[#allocation309_spill] sm:$0xff]  ;;  %6218 = vmatmul.msk.f32.gmra.mxu3 %vm13778_vm10, %v4989_v3  ;;  %vm13789_vm12 = vcmask 392192  }
 0x90e   : > { %v2957_v24 = vsel %vm13775_vm6, %v2924_v15, %v13774_v54  ;;  %v3076_v46 = vsel %vm3068_vm8, %v3043_v25, %v13776_v22  ;;  %v3115_v8 = vsel %vm3101_vm9, %v3082_v18, %v13777_v12  ;;  %v13779_v48 = vld [vmem:[#allocation162_spill] sm:$0xff]  ;;  %vm13780_vm4 = vmmov %vm13775_vm6  ;;  %v13782_v40 = vld [vmem:[#allocation303_spill] sm:$0xff]  ;;  %v4894_v45 = vpop.permute.xlu1 %4893 }
 0x90f   : > { %v2963_v51 = vsel %vm13780_vm4, %v2930_v17, %v13779_v48  ;;  %v13781_v13 = vld [vmem:[#allocation190_spill] sm:$0xff]  ;;  %v3109_v16 = vsel %vm3101_vm9, %v3076_v46, %v13782_v40  ;;  %v13783_v10 = vld [vmem:[#allocation343_spill] sm:$0xff]  ;;  %v6031_v9 = vld [vmem:[%s6620_s25 + $0x2ed] sm:$0xff]  ;;  %vm13796_vm4 = vcmask 424960   ;;  %v4882_v50 = vpop.permute.xlu0 %4881 }
 0x910   : > { %v2990_v57 = vsel %vm2969_vm5, %v2957_v24, %v13781_v13  ;;  %v3148_v59 = vsel %vm3134_vm11, %v3115_v8, %v13783_v10  ;;  %v13784_v35 = vld [vmem:[#allocation196_spill] sm:$0xff]  ;;  %v13785_v2 = vld [vmem:[#allocation209_spill] sm:$0xff]  ;;  %v13788_v6 = vld [vmem:[#allocation362_spill] sm:$0xff] }
 0x911   : > { %v2996_v14 = vsel %vm2969_vm5, %v2963_v51, %v13784_v35  ;;  %v3023_v61 = vsel %vm13786_vm14, %v2990_v57, %v13785_v2  ;;  %v13787_v42 = vld [vmem:[#allocation337_spill] sm:$0xff]  ;;  %v3181_v4 = vsel %vm13789_vm12, %v3148_v59, %v13788_v6  ;;  %v13790_v15 = vld [vmem:[#allocation215_spill] sm:$0xff]  ;;  %vm13791_vm6 = vmmov %vm13786_vm14 }
 0x912   : > { %v3142_v39 = vsel %vm3134_vm11, %v3109_v16, %v13787_v42  ;;  %v3029_v31 = vsel %vm13791_vm6, %v2996_v14, %v13790_v15  ;;  %v13792_v20 = vld [vmem:[#allocation252_spill] sm:$0xff]  ;;  %vm13794_vm10 = vmmov %vm13789_vm12  ;;  %v13795_v17 = vld [vmem:[#allocation405_spill] sm:$0xff]  ;;  %vm13805_vm12 = vcmask 490496  }
 0x913   : > { %v3056_v5 = vsel %vm3035_vm7, %v3023_v61, %v13792_v20  ;;  %v13793_v36 = vld [vmem:[#allocation356_spill] sm:$0xff]  ;;  %v3214_v56 = vsel %vm13796_vm4, %v3181_v4, %v13795_v17  ;;  %v13797_v52 = vld [vmem:[#allocation258_spill] sm:$0xff]  ;;  %v13798_v34 = vld [vmem:[#allocation399_spill] sm:$0xff] }
 0x914   : > { %v3175_v28 = vsel %vm13794_vm10, %v3142_v39, %v13793_v36  ;;  %v3062_v62 = vsel %vm3035_vm7, %v3029_v31, %v13797_v52  ;;  %vm13799_vm14 = vmmov %vm13796_vm4  ;;  %v13800_v23 = vld [vmem:[#allocation439_spill] sm:$0xff]  ;;  %v13801_v0 = vld [vmem:[#allocation510_spill] sm:$0xff]  ;;  %vm13814_vm10 = vcmask 883712   ;;  %vm13816_vm4 = vcmask 162816  }
 0x915   : > { %v3208_v38 = vsel %vm13799_vm14, %v3175_v28, %v13798_v34  ;;  %v3247_v55 = vsel %vm3233_vm13, %v3214_v56, %v13800_v23  ;;  %v4546_v60 = vsel %vm2804_vm0, %v6031_v9, %v13801_v0  ;;  %v13802_v32 = vld [vmem:[#allocation292_spill] sm:$0xff]  ;;  %v13803_v58 = vld [vmem:[#allocation433_spill] sm:$0xff]  ;;  %v13804_v19 = vld [vmem:[#allocation458_spill] sm:$0xff]  ;;  %vm13819_vm14 = vcmask 392192  }
 0x916   : > { %v3095_v53 = vsel %vm3068_vm8, %v3062_v62, %v13802_v32  ;;  %v3241_v47 = vsel %vm3233_vm13, %v3208_v38, %v13803_v58  ;;  %v3280_v43 = vsel %vm13805_vm12, %v3247_v55, %v13804_v19  ;;  %v13806_v1 = vld [vmem:[#allocation533_spill] sm:$0xff]  ;;  %v13807_v33 = vld [vmem:[#allocation311_spill] sm:$0xff]  ;;  %v13808_v11 = vld [vmem:[#allocation452_spill] sm:$0xff]  ;;  %v4920_v38 = vpop.permute.xlu2 %4919 }
 0x917   : > { %v4578_v26 = vsel %vm2837_vm1, %v4546_v60, %v13806_v1  ;;  %v3128_v49 = vsel %vm3101_vm9, %v3095_v53, %v13807_v33  ;;  %vm13809_vm6 = vmmov %vm13805_vm12  ;;  %v13810_v63 = vld [vmem:[#allocation548_spill] sm:$0xff]  ;;  %v4977_v18 = vsel %vm4963_vm15, %v3280_v43, %v4894_v45  ;;  %v13811_v3 = vld [vmem:[#allocation286_spill] sm:$0xff]  ;;  %v4908_v45 = vpop.permute.xlu1 %4907 }
 0x918   : > { %v3274_v41 = vsel %vm13809_vm6, %v3241_v47, %v13808_v11  ;;  %v4610_v25 = vsel %vm2870_vm2, %v4578_v26, %v13810_v63  ;;  %v3089_v30 = vsel %vm3068_vm8, %v3056_v5, %v13811_v3  ;;  %v13812_v54 = vld [vmem:[#allocation354_spill] sm:$0xff]  ;;  %v13813_v22 = vld [vmem:[#allocation583_spill] sm:$0xff]  ;;  %6206 = vmatmul.msk.f32.gmra.mxu1 %vm13814_vm10, %v4977_v18  ;;  %v13817_v51 = vld [vmem:[#allocation305_spill] sm:$0xff] }
 0x919   : > { %v3161_v24 = vsel %vm3134_vm11, %v3128_v49, %v13812_v54  ;;  %v4642_v46 = vsel %vm2903_vm3, %v4610_v25, %v13813_v22  ;;  %v4971_v12 = vsel %vm4963_vm15, %v3274_v41, %v4882_v50  ;;  %v13815_v8 = vld [vmem:[#allocation83_spill] sm:$0xff]  ;;  %v3122_v13 = vsel %vm3101_vm9, %v3089_v30, %v13817_v51  ;;  %v13818_v57 = vld [vmem:[#allocation388_spill] sm:$0xff]  ;;  %vm13821_vm12 = vmmov %vm13816_vm4  ;;  %v4482_v25 = vpop.permute.xlu0 %4481 }
 0x91a   : > { %v2964_v48 = vsel %vm13816_vm4, %v2931_v44, %v13815_v8  ;;  %v3194_v40 = vsel %vm13819_vm14, %v3161_v24, %v13818_v57  ;;  %v13820_v16 = vld [vmem:[#allocation611_spill] sm:$0xff]  ;;  %vm13822_vm6 = vmmov %vm13814_vm10  ;;  %v13823_v59 = vld [vmem:[#allocation184_spill] sm:$0xff]  ;;  %vm13826_vm10 = vcmask 424960  }
 0x91b   : > { %v4674_v10 = vsel %vm13821_vm12, %v4642_v46, %v13820_v16  ;;  %6200 = vmatmul.msk.f32.gmra.mxu0 %vm13822_vm6, %v4971_v12  ;;  %v2984_v9 = vsel %vm2969_vm5, %v2951_v21, %v13823_v59  ;;  %v13824_v35 = vld [vmem:[#allocation348_spill] sm:$0xff]  ;;  %v13825_v2 = vld [vmem:[#allocation407_spill] sm:$0xff]  ;;  %v13829_v4 = vld [vmem:[#allocation382_spill] sm:$0xff] }
 0x91c   : > { %v3155_v14 = vsel %vm3134_vm11, %v3122_v13, %v13824_v35  ;;  %v3227_v44 = vsel %vm13826_vm10, %v3194_v40, %v13825_v2  ;;  %v13827_v61 = vld [vmem:[#allocation627_spill] sm:$0xff]  ;;  %vm13830_vm4 = vmmov %vm13819_vm14  ;;  %v13831_v31 = vld [vmem:[#allocation450_spill] sm:$0xff]  ;;  %vm13832_vm14 = vcmask 228352  }
 0x91d   : > { %v4706_v42 = vsel %vm2969_vm5, %v4674_v10, %v13827_v61  ;;  %v13828_v39 = vld [vmem:[#allocation195_spill] sm:$0xff]  ;;  %v3188_v15 = vsel %vm13830_vm4, %v3155_v14, %v13829_v4  ;;  %v3260_v20 = vsel %vm3233_vm13, %v3227_v44, %v13831_v31  ;;  %v13833_v5 = vld [vmem:[#allocation189_spill] sm:$0xff]  ;;  %vm13835_vm12 = vmmov %vm13832_vm14 }
 0x91e   : > { %v2997_v6 = vsel %vm2969_vm5, %v2964_v48, %v13828_v39  ;;  %v4738_v21 = vsel %vm13832_vm14, %v4706_v42, %v4098_v37  ;;  %v2991_v36 = vsel %vm2969_vm5, %v2958_v29, %v13833_v5  ;;  %v13834_v28 = vld [vmem:[#allocation229_spill] sm:$0xff]  ;;  %vm13837_vm6 = vmmov %vm13826_vm10  ;;  %v13838_v62 = vld [vmem:[#allocation482_spill] sm:$0xff]  ;;  %vm13839_vm10 = vcmask 490496  }
 0x91f   : > { %v3030_v17 = vsel %vm13835_vm12, %v2997_v6, %v13834_v28  ;;  %v13836_v56 = vld [vmem:[#allocation401_spill] sm:$0xff]  ;;  %v3293_v34 = vsel %vm13839_vm10, %v3260_v20, %v13838_v62  ;;  %v13840_v23 = vld [vmem:[#allocation203_spill] sm:$0xff]  ;;  %vm13841_vm4 = vmmov %vm13835_vm12  ;;  %v4770_v26 = vsel %vm3035_vm7, %v4738_v21, %v11793_v27  ;;  %v4922_v20 = vpop.permute.xlu2 %4921 }
 0x920   : > { %v3221_v52 = vsel %vm13837_vm6, %v3188_v15, %v13836_v56  ;;  %v3017_v55 = vsel %vm13841_vm4, %v2984_v9, %v13840_v23  ;;  %v13842_v0 = vld [vmem:[#allocation248_spill] sm:$0xff]  ;;  %v4990_v29 = vsel %vm4963_vm15, %v3293_v34, %v4920_v38  ;;  %v13844_v53 = vld [vmem:[#allocation223_spill] sm:$0xff]  ;;  %vm13845_vm14 = vmmov %vm13841_vm4  ;;  %vm13849_vm6 = vcmask 883712  }
 0x921   : > { %v3063_v60 = vsel %vm3035_vm7, %v3030_v17, %v13842_v0  ;;  %v13843_v37 = vld [vmem:[#allocation444_spill] sm:$0xff]  ;;  %v3024_v58 = vsel %vm13845_vm14, %v2991_v36, %v13844_v53  ;;  %v13846_v47 = vld [vmem:[#allocation291_spill] sm:$0xff]  ;;  %v13847_v43 = vld [vmem:[#allocation478_spill] sm:$0xff]  ;;  %6219 = vmatmul.msk.f32.gmra.mxu3 %vm13849_vm6, %v4990_v29  ;;  %v4802_v63 = vsel %vm3068_vm8, %v4770_v26, %v4354_v7  ;;  %vm13859_vm4 = vcmask 392192  }
 0x922   : > { %v3254_v32 = vsel %vm3233_vm13, %v3221_v52, %v13843_v37  ;;  %v3096_v19 = vsel %vm3068_vm8, %v3063_v60, %v13846_v47  ;;  %vm13848_vm12 = vmmov %vm13839_vm10  ;;  %v13850_v33 = vld [vmem:[#allocation242_spill] sm:$0xff]  ;;  %v13851_v11 = vld [vmem:[#allocation325_spill] sm:$0xff]  ;;  %v4834_v22 = vsel %vm3101_vm9, %v4802_v63, %v4482_v25  ;;  %vm13863_vm14 = vcmask 424960   ;;  %v4910_v37 = vpop.permute.xlu1 %4909  ;;  %v4896_v47 = vpop.permute.xlu0 %4895 }
 0x923   : > { %v3287_v1 = vsel %vm13848_vm12, %v3254_v32, %v13847_v43  ;;  %v3057_v49 = vsel %vm3035_vm7, %v3024_v58, %v13850_v33  ;;  %v3129_v41 = vsel %vm3101_vm9, %v3096_v19, %v13851_v11  ;;  %v13852_v18 = vld [vmem:[#allocation246_spill] sm:$0xff]  ;;  %v13853_v30 = vld [vmem:[#allocation285_spill] sm:$0xff]  ;;  %v13854_v54 = vld [vmem:[#allocation344_spill] sm:$0xff]  ;;  %4929 = vrot.lane.b32.xlu0 %v4834_v22, %s6550_s22  ;;  %s5450_s22 = scalar_lea.hbm %s12487_s2, %s6226_s5 }
 0x924   : > { %v4984_v50 = vsel %vm4963_vm15, %v3287_v1, %v4908_v45  ;;  %v3050_v3 = vsel %vm3035_vm7, %v3017_v55, %v13852_v18  ;;  %v3090_v27 = vsel %vm3068_vm8, %v3057_v49, %v13853_v30  ;;  %v3162_v24 = vsel %vm3134_vm11, %v3129_v41, %v13854_v54  ;;  %vm13855_vm10 = vmmov %vm13849_vm6  ;;  %v13856_v46 = vld [vmem:[#allocation280_spill] sm:$0xff]  ;;  %v13857_v12 = vld [vmem:[#allocation319_spill] sm:$0xff]  ;;  %s5454_s28 = sshll.u32 %s5450_s22, 4  ;;  %s5455_s28 = int_to_ptr.hbm [resolvable:$true] %s5454_s28 }
 0x925   : > { %6213 = vmatmul.msk.f32.gmra.mxu2 %vm13855_vm10, %v4984_v50  ;;  %v3083_v7 = vsel %vm3068_vm8, %v3050_v3, %v13856_v46  ;;  %v3123_v8 = vsel %vm3101_vm9, %v3090_v27, %v13857_v12  ;;  %v13858_v48 = vld [vmem:[#allocation387_spill] sm:$0xff]  ;;  %v13861_v40 = vld [vmem:[#allocation338_spill] sm:$0xff]  ;;  %v13862_v10 = vld [vmem:[#allocation421_spill] sm:$0xff]  ;;  %s6485_s29 = sshra.s32 %s5455_s28, 4  ;;  %s6486_s29 = int_to_ptr.hbm [resolvable:$true] %s6485_s29 }
 0x926   : > { %v3195_v51 = vsel %vm13859_vm4, %v3162_v24, %v13858_v48  ;;  %v13860_v13 = vld [vmem:[#allocation299_spill] sm:$0xff]  ;;  %v3156_v16 = vsel %vm3134_vm11, %v3123_v8, %v13861_v40  ;;  %v13864_v9 = vld [vmem:[#allocation342_spill] sm:$0xff]  ;;  %v13865_v14 = vld [vmem:[#allocation381_spill] sm:$0xff]  ;;  %s6487_s30 = scalar_lea.hbm %s6486_s29, 8  ;;  %p6492_p0 = scmp.lt.s32.totalorder %s6486_s29, %s12487_s2 }
 0x927   : > { %v3116_v57 = vsel %vm3101_vm9, %v3083_v7, %v13860_v13  ;;  %v3228_v59 = vsel %vm13863_vm14, %v3195_v51, %v13862_v10  ;;  %vm13866_vm12 = vmmov %vm13859_vm4  ;;  %v13867_v44 = vld [vmem:[#allocation440_spill] sm:$0xff]  ;;  %v13870_v6 = vld [vmem:[#allocation415_spill] sm:$0xff]  ;;  %p6488_p11 = scmp.ne.s32.totalorder %s6486_s29, %s6487_s30  ;;  %p6493_p1 = scmp.lt.s32.totalorder %s6491_s14, %s6487_s30 }
 0x928   : > { %v3149_v35 = vsel %vm3134_vm11, %v3116_v57, %v13864_v9  ;;  %v3189_v2 = vsel %vm13866_vm12, %v3156_v16, %v13865_v14  ;;  %v3261_v61 = vsel %vm3233_vm13, %v3228_v59, %v13867_v44  ;;  %v13868_v42 = vld [vmem:[#allocation376_spill] sm:$0xff]  ;;  %vm13869_vm6 = vmmov %vm13859_vm4  ;;  %v13872_v15 = vld [vmem:[#allocation481_spill] sm:$0xff]  ;;  %vm13873_vm4 = vcmask 490496  }
 0x929   : > { %v3182_v39 = vsel %vm13869_vm6, %v3149_v35, %v13868_v42  ;;  %vm13871_vm10 = vmmov %vm13863_vm14  ;;  %v3294_v31 = vsel %vm13873_vm4, %v3261_v61, %v13872_v15  ;;  %v6464_v21 = vld [vmem:[%s6620_s25 + $0x244] sm:$0xff]  ;;  %v13877_v56 = vld [vmem:[#allocation434_spill] sm:$0xff]  ;;  %vm13882_vm6 = vcmask 883712   ;;  %p6489_p12 = pnand %p6488_p11, %p6605_p5  ;;  %p6494_p2 = por %p6493_p1, %p6492_p0 }
 0x92a   : > { %v3222_v4 = vsel %vm13871_vm10, %v3189_v2, %v13870_v6  ;;  %v13874_v5 = vld [vmem:[#allocation44_spill] sm:$0xff]  ;;  %v13875_v28 = vld [vmem:[#allocation395_spill] sm:$0xff]  ;;  %vm13876_vm14 = vmmov %vm13871_vm10  ;;  %v4991_v62 = vsel %vm4963_vm15, %v3294_v31, %v4922_v20 }
 0x92b   : > { %v2833_v36 = vsel %vm2804_vm0, %v6464_v21, %v13874_v5  ;;  %v3215_v17 = vsel %vm13876_vm14, %v3182_v39, %v13875_v28  ;;  %v3255_v52 = vsel %vm3233_vm13, %v3222_v4, %v13877_v56  ;;  %v13878_v34 = vld [vmem:[#allocation95_spill] sm:$0xff]  ;;  %v13879_v23 = vld [vmem:[#allocation438_spill] sm:$0xff]  ;;  %v13880_v0 = vld [vmem:[#allocation477_spill] sm:$0xff]  ;;  %6220 = vmatmul.msk.f32.gmra.mxu3 %vm13882_vm6, %v4991_v62  ;;  %vm13889_vm14 = vcmask 162816   ;;  %v4924_v15 = vpop.permute.xlu2 %4923  ;;  %p6490_p13 = pneg %p6489_p12 }
 0x92c   : > { %v2866_v38 = vsel %vm2837_vm1, %v2833_v36, %v13878_v34  ;;  %v3248_v55 = vsel %vm3233_vm13, %v3215_v17, %v13879_v23  ;;  %vm13881_vm12 = vmmov %vm13873_vm4  ;;  %v13883_v32 = vld [vmem:[#allocation114_spill] sm:$0xff]  ;;  %v13884_v53 = vld [vmem:[#allocation472_spill] sm:$0xff] }
 0x92d   : > { %v3288_v60 = vsel %vm13881_vm12, %v3255_v52, %v13880_v0  ;;  %v2899_v29 = vsel %vm2870_vm2, %v2866_v38, %v13883_v32  ;;  %vm13885_vm10 = vmmov %vm13873_vm4  ;;  %v13886_v43 = vld [vmem:[#allocation41_spill] sm:$0xff]  ;;  %v13888_v45 = vld [vmem:[#allocation166_spill] sm:$0xff]  ;;  %p6495_p3 = pnand %p6494_p2, %p6490_p13 }
 0x92e   : > { %v3281_v58 = vsel %vm13885_vm10, %v3248_v55, %v13884_v53  ;;  %v4985_v19 = vsel %vm4963_vm15, %v3288_v60, %v4910_v37  ;;  %v2932_v1 = vsel %vm2903_vm3, %v2899_v29, %v13886_v43  ;;  %vm13887_vm4 = vmmov %vm13882_vm6  ;;  %v13891_v49 = vld [vmem:[#allocation185_spill] sm:$0xff]  ;;  %v13892_v41 = vld [vmem:[#allocation228_spill] sm:$0xff]  ;;  %vm13893_vm6 = vcmask 228352  }
 0x92f   : > { %v4978_v26 = vsel %vm4963_vm15, %v3281_v58, %v4896_v47  ;;  %6214 = vmatmul.msk.f32.gmra.mxu2 %vm13887_vm4, %v4985_v19  ;;  %v2965_v33 = vsel %vm13889_vm14, %v2932_v1, %v13888_v45  ;;  %vm13890_vm12 = vmmov %vm13887_vm4  ;;  %v13894_v25 = vld [vmem:[#allocation262_spill] sm:$0xff]  ;;  %v6465_v18 = vld [vmem:[%s6620_s25 + $0x16c] sm:$0xff]  ;;  %vm13903_vm10 = vcmask 392192  }
 0x930   : > { %6207 = vmatmul.msk.f32.gmra.mxu1 %vm13890_vm12, %v4978_v26  ;;  %v2998_v11 = vsel %vm2969_vm5, %v2965_v33, %v13891_v49  ;;  %v13895_v3 = vld [vmem:[#allocation26_spill] sm:$0xff]  ;;  %v13896_v27 = vld [vmem:[#allocation281_spill] sm:$0xff]  ;;  %v13898_v46 = vld [vmem:[#allocation324_spill] sm:$0xff] }
 0x931   : > { %v3031_v63 = vsel %vm13893_vm6, %v2998_v11, %v13892_v41  ;;  %v2820_v30 = vsel %vm2804_vm0, %v6465_v18, %v13895_v3  ;;  %v13897_v24 = vld [vmem:[#allocation58_spill] sm:$0xff]  ;;  %v13899_v12 = vld [vmem:[#allocation112_spill] sm:$0xff]  ;;  %v13901_v13 = vld [vmem:[#allocation23_spill] sm:$0xff] }
 0x932   : > { %v3064_v50 = vsel %vm3035_vm7, %v3031_v63, %v13894_v25  ;;  %v2853_v22 = vsel %vm2837_vm1, %v2820_v30, %v13897_v24  ;;  %v13900_v48 = vld [vmem:[#allocation358_spill] sm:$0xff]  ;;  %v13902_v40 = vld [vmem:[#allocation377_spill] sm:$0xff]  ;;  %vm13905_vm4 = vmmov %vm13889_vm14  ;;  %vm13907_vm14 = vcmask 424960  }
 0x933   : > { %v3097_v54 = vsel %vm3068_vm8, %v3064_v50, %v13896_v27  ;;  %v2886_v8 = vsel %vm2870_vm2, %v2853_v22, %v13899_v12  ;;  %v13904_v10 = vld [vmem:[#allocation62_spill] sm:$0xff]  ;;  %v13906_v9 = vld [vmem:[#allocation420_spill] sm:$0xff]  ;;  %v13908_v14 = vld [vmem:[#allocation183_spill] sm:$0xff]  ;;  %v4898_v41 = vpop.permute.xlu0 %4897 }
 0x934   : > { %v3130_v7 = vsel %vm3101_vm9, %v3097_v54, %v13898_v46  ;;  %v2919_v57 = vsel %vm2903_vm3, %v2886_v8, %v13901_v13  ;;  %v13909_v44 = vld [vmem:[#allocation454_spill] sm:$0xff]  ;;  %v13910_v42 = vld [vmem:[#allocation217_spill] sm:$0xff]  ;;  %vm13911_vm12 = vmmov %vm13893_vm6  ;;  %vm13913_vm6 = vcmask 490496  }
 0x935   : > { %v3163_v51 = vsel %vm3134_vm11, %v3130_v7, %v13900_v48  ;;  %v2952_v59 = vsel %vm13905_vm4, %v2919_v57, %v13904_v10  ;;  %v13912_v6 = vld [vmem:[#allocation473_spill] sm:$0xff]  ;;  %v13914_v31 = vld [vmem:[#allocation236_spill] sm:$0xff]  ;;  %v13915_v5 = vld [vmem:[#allocation279_spill] sm:$0xff]  ;;  %vm13923_vm4 = vcmask 392192  }
 0x936   : > { %v3196_v16 = vsel %vm13903_vm10, %v3163_v51, %v13902_v40  ;;  %v2985_v2 = vsel %vm2969_vm5, %v2952_v59, %v13908_v14  ;;  %vm13916_vm10 = vcmask 883712   ;;  %v6466_v28 = vld [vmem:[%s6620_s25 + $0x1e4] sm:$0xff]  ;;  %v13918_v52 = vld [vmem:[#allocation313_spill] sm:$0xff]  ;;  %v13924_v29 = vld [vmem:[#allocation146_spill] sm:$0xff] }
 0x937   : > { %v3229_v35 = vsel %vm13907_vm14, %v3196_v16, %v13906_v9  ;;  %v3018_v39 = vsel %vm13911_vm12, %v2985_v2, %v13910_v42  ;;  %v13917_v17 = vld [vmem:[#allocation35_spill] sm:$0xff]  ;;  %v13919_v34 = vld [vmem:[#allocation89_spill] sm:$0xff]  ;;  %v13920_v23 = vld [vmem:[#allocation332_spill] sm:$0xff]  ;;  %vm13927_vm12 = vcmask 162816  }
 0x938   : > { %v3262_v61 = vsel %vm3233_vm13, %v3229_v35, %v13909_v44  ;;  %v3051_v20 = vsel %vm3035_vm7, %v3018_v39, %v13914_v31  ;;  %v2827_v56 = vsel %vm2804_vm0, %v6466_v28, %v13917_v17  ;;  %v13921_v0 = vld [vmem:[#allocation108_spill] sm:$0xff]  ;;  %v13922_v37 = vld [vmem:[#allocation375_spill] sm:$0xff]  ;;  %v13925_v58 = vld [vmem:[#allocation409_spill] sm:$0xff] }
 0x939   : > { %v3295_v4 = vsel %vm13913_vm6, %v3262_v61, %v13912_v6  ;;  %v3084_v36 = vsel %vm3068_vm8, %v3051_v20, %v13915_v5  ;;  %v2860_v38 = vsel %vm2837_vm1, %v2827_v56, %v13919_v34  ;;  %v13926_v19 = vld [vmem:[#allocation160_spill] sm:$0xff]  ;;  %v13929_v45 = vld [vmem:[#allocation179_spill] sm:$0xff]  ;;  %v13931_v63 = vld [vmem:[#allocation222_spill] sm:$0xff] }
 0x93a   : > { %v4992_v21 = vsel %vm4963_vm15, %v3295_v4, %v4924_v15  ;;  %v3117_v62 = vsel %vm3101_vm9, %v3084_v36, %v13918_v52  ;;  %v2893_v60 = vsel %vm2870_vm2, %v2860_v38, %v13921_v0  ;;  %v13928_v1 = vld [vmem:[#allocation428_spill] sm:$0xff]  ;;  %v13930_v49 = vld [vmem:[#allocation471_spill] sm:$0xff]  ;;  %v13936_v54 = vld [vmem:[#allocation318_spill] sm:$0xff] }
 0x93b   : > { %6221 = vmatmul.msk.f32.gmra.mxu3 %vm13916_vm10, %v4992_v21  ;;  %v3150_v55 = vsel %vm3134_vm11, %v3117_v62, %v13920_v23  ;;  %v2926_v53 = vsel %vm2903_vm3, %v2893_v60, %v13924_v29  ;;  %vm13932_vm10 = vcmask 228352   ;;  %v13933_v18 = vld [vmem:[#allocation256_spill] sm:$0xff]  ;;  %v13935_v30 = vld [vmem:[#allocation275_spill] sm:$0xff]  ;;  %v13940_v8 = vld [vmem:[#allocation414_spill] sm:$0xff] }
 0x93c   : > { %v3183_v32 = vsel %vm13923_vm4, %v3150_v55, %v13922_v37  ;;  %v2959_v43 = vsel %vm13927_vm12, %v2926_v53, %v13926_v19  ;;  %vm13934_vm4 = vcmask 883712   ;;  %v13937_v22 = vld [vmem:[#allocation352_spill] sm:$0xff]  ;;  %v13938_v7 = vld [vmem:[#allocation371_spill] sm:$0xff]  ;;  %vm13941_vm12 = vcmask 424960   ;;  %v4912_v16 = vpop.permute.xlu1 %4911  ;;  %v13947_v61 = vld [vmem:[#allocation30_spill] sm:$0xff] }
 0x93d   : > { %v3216_v47 = vsel %vm13907_vm14, %v3183_v32, %v13925_v58  ;;  %v2992_v33 = vsel %vm2969_vm5, %v2959_v43, %v13929_v45  ;;  %vm13939_vm14 = vcmask 392192   ;;  %v13942_v51 = vld [vmem:[#allocation448_spill] sm:$0xff]  ;;  %v13943_v57 = vld [vmem:[#allocation467_spill] sm:$0xff]  ;;  %v13948_v39 = vld [vmem:[#allocation122_spill] sm:$0xff] }
 0x93e   : > { %v3249_v26 = vsel %vm3233_vm13, %v3216_v47, %v13928_v1  ;;  %v3025_v25 = vsel %vm13932_vm10, %v2992_v33, %v13931_v63  ;;  %vm13944_vm10 = vmmov %vm13934_vm4  ;;  %v6467_v59 = vld [vmem:[%s6620_s25 + $0x1ec] sm:$0xff]  ;;  %v13949_v4 = vld [vmem:[#allocation94_spill] sm:$0xff] }
 0x93f   : > { %v3282_v11 = vsel %vm13913_vm6, %v3249_v26, %v13930_v49  ;;  %v3058_v3 = vsel %vm3035_vm7, %v3025_v25, %v13933_v18  ;;  %v13945_v9 = vld [vmem:[#allocation20_spill] sm:$0xff]  ;;  %v13950_v31 = vld [vmem:[#allocation141_spill] sm:$0xff]  ;;  %v13952_v36 = vld [vmem:[#allocation159_spill] sm:$0xff] }
 0x940   : > { %v4979_v50 = vsel %vm4963_vm15, %v3282_v11, %v4898_v41  ;;  %v3091_v27 = vsel %vm3068_vm8, %v3058_v3, %v13935_v30  ;;  %v2828_v35 = vsel %vm2804_vm0, %v6467_v59, %v13945_v9  ;;  %v13946_v14 = vld [vmem:[#allocation88_spill] sm:$0xff]  ;;  %v13954_v17 = vld [vmem:[#allocation33_spill] sm:$0xff]  ;;  %v13960_v0 = vld [vmem:[#allocation199_spill] sm:$0xff] }
 0x941   : > { %6208 = vmatmul.msk.f32.gmra.mxu1 %vm13934_vm4, %v4979_v50  ;;  %v3124_v24 = vsel %vm3101_vm9, %v3091_v27, %v13936_v54  ;;  %v2861_v2 = vsel %vm2837_vm1, %v2828_v35, %v13946_v14  ;;  %v6468_v44 = vld [vmem:[%s6620_s25 + $0x24c] sm:$0xff]  ;;  %vm13953_vm4 = vcmask 162816   ;;  %v13961_v37 = vld [vmem:[#allocation255_spill] sm:$0xff]  ;;  %v13962_v29 = vld [vmem:[#allocation218_spill] sm:$0xff] }
 0x942   : > { %v3157_v46 = vsel %vm3134_vm11, %v3124_v24, %v13937_v22  ;;  %v2834_v42 = vsel %vm2804_vm0, %v6468_v44, %v13947_v61  ;;  %v2894_v6 = vsel %vm2870_vm2, %v2861_v2, %v13948_v39  ;;  %v13951_v21 = vld [vmem:[#allocation128_spill] sm:$0xff]  ;;  %v13955_v52 = vld [vmem:[#allocation193_spill] sm:$0xff]  ;;  %v13967_v33 = vld [vmem:[#allocation50_spill] sm:$0xff] }
 0x943   : > { %v3190_v12 = vsel %vm13939_vm14, %v3157_v46, %v13938_v7  ;;  %v2867_v15 = vsel %vm2837_vm1, %v2834_v42, %v13949_v4  ;;  %v2927_v20 = vsel %vm2903_vm3, %v2894_v6, %v13950_v31  ;;  %v13956_v34 = vld [vmem:[#allocation165_spill] sm:$0xff]  ;;  %vm13957_vm14 = vmmov %vm13953_vm4  ;;  %v13958_v23 = vld [vmem:[#allocation212_spill] sm:$0xff] }
 0x944   : > { %v3223_v48 = vsel %vm13941_vm12, %v3190_v12, %v13940_v8  ;;  %v2900_v5 = vsel %vm2870_vm2, %v2867_v15, %v13951_v21  ;;  %v2960_v28 = vsel %vm13953_vm4, %v2927_v20, %v13952_v36  ;;  %vm13959_vm12 = vcmask 228352   ;;  %v13964_v58 = vld [vmem:[#allocation289_spill] sm:$0xff]  ;;  %v13966_v1 = vld [vmem:[#allocation308_spill] sm:$0xff]  ;;  %v13968_v11 = vld [vmem:[#allocation295_spill] sm:$0xff] }
 0x945   : > { %v3256_v13 = vsel %vm3233_vm13, %v3223_v48, %v13942_v51  ;;  %v2933_v56 = vsel %vm2903_vm3, %v2900_v5, %v13954_v17  ;;  %v2993_v62 = vsel %vm2969_vm5, %v2960_v28, %v13955_v52  ;;  %v13965_v19 = vld [vmem:[#allocation261_spill] sm:$0xff]  ;;  %v6469_v45 = vld [vmem:[%s6620_s25 + $0x264] sm:$0xff]  ;;  %v13971_v3 = vld [vmem:[#allocation314_spill] sm:$0xff]  ;;  %vm13977_vm4 = vcmask 424960  }
 0x946   : > { %v3289_v40 = vsel %vm13913_vm6, %v3256_v13, %v13943_v57  ;;  %v2966_v38 = vsel %vm13957_vm14, %v2933_v56, %v13956_v34  ;;  %v3026_v55 = vsel %vm13959_vm12, %v2993_v62, %v13958_v23  ;;  %vm13963_vm6 = vmmov %vm13959_vm12  ;;  %v2835_v49 = vsel %vm2804_vm0, %v6469_v45, %v13967_v33  ;;  %v13969_v63 = vld [vmem:[#allocation351_spill] sm:$0xff]  ;;  %v13970_v50 = vld [vmem:[#allocation84_spill] sm:$0xff] }
 0x947   : > { %v4986_v10 = vsel %vm4963_vm15, %v3289_v40, %v4912_v16  ;;  %v2999_v60 = vsel %vm2969_vm5, %v2966_v38, %v13960_v0  ;;  %v3059_v32 = vsel %vm3035_vm7, %v3026_v55, %v13961_v37  ;;  %v2868_v18 = vsel %vm2837_vm1, %v2835_v49, %v13970_v50  ;;  %v13972_v27 = vld [vmem:[#allocation385_spill] sm:$0xff]  ;;  %v13974_v24 = vld [vmem:[#allocation127_spill] sm:$0xff]  ;;  %v13976_v12 = vld [vmem:[#allocation404_spill] sm:$0xff] }
 0x948   : > { %6215 = vmatmul.msk.f32.gmra.mxu2 %vm13944_vm10, %v4986_v10  ;;  %v3032_v53 = vsel %vm13963_vm6, %v2999_v60, %v13962_v29  ;;  %v3092_v47 = vsel %vm3068_vm8, %v3059_v32, %v13964_v58  ;;  %vm13973_vm10 = vcmask 392192   ;;  %v2901_v22 = vsel %vm2870_vm2, %v2868_v18, %v13974_v24  ;;  %v13975_v46 = vld [vmem:[#allocation357_spill] sm:$0xff]  ;;  %v13978_v48 = vld [vmem:[#allocation150_spill] sm:$0xff]  ;;  %v13979_v13 = vld [vmem:[#allocation391_spill] sm:$0xff] }
 0x949   : > { %v3065_v43 = vsel %vm3035_vm7, %v3032_v53, %v13965_v19  ;;  %v3125_v26 = vsel %vm3101_vm9, %v3092_v47, %v13966_v1  ;;  %v2934_v51 = vsel %vm2903_vm3, %v2901_v22, %v13978_v48  ;;  %vm13980_vm14 = vmmov %vm13973_vm10  ;;  %v13981_v40 = vld [vmem:[#allocation447_spill] sm:$0xff]  ;;  %v13982_v10 = vld [vmem:[#allocation82_spill] sm:$0xff]  ;;  %vm13983_vm12 = vcmask 162816  }
 0x94a   : > { %v3098_v41 = vsel %vm3068_vm8, %v3065_v43, %v13968_v11  ;;  %v3158_v25 = vsel %vm3134_vm11, %v3125_v26, %v13969_v63  ;;  %v2967_v59 = vsel %vm13983_vm12, %v2934_v51, %v13982_v10  ;;  %v13984_v9 = vld [vmem:[#allocation410_spill] sm:$0xff]  ;;  %vm13985_vm6 = vmmov %vm13977_vm4  ;;  %v13986_v14 = vld [vmem:[#allocation480_spill] sm:$0xff]  ;;  %vm13994_vm12 = vcmask 883712   ;;  %v12192_v43 = vpop.f32.mrf.mxu0 }
 0x94b   : > { %v3131_v30 = vsel %vm3101_vm9, %v3098_v41, %v13971_v3  ;;  %v3191_v54 = vsel %vm13973_vm10, %v3158_v25, %v13972_v27  ;;  %vm13987_vm10 = vcmask 490496   ;;  %v13988_v61 = vld [vmem:[#allocation198_spill] sm:$0xff]  ;;  %v13989_v39 = vld [vmem:[#allocation453_spill] sm:$0xff]  ;;  %v13990_v15 = vld [vmem:[#allocation232_spill] sm:$0xff] }
 0x94c   : > { %v3164_v7 = vsel %vm3134_vm11, %v3131_v30, %v13975_v46  ;;  %v3224_v8 = vsel %vm13977_vm4, %v3191_v54, %v13976_v12  ;;  %v3000_v42 = vsel %vm2969_vm5, %v2967_v59, %v13988_v61  ;;  %vm13991_vm4 = vcmask 228352   ;;  %v13992_v20 = vld [vmem:[#allocation484_spill] sm:$0xff]  ;;  %v13995_v36 = vld [vmem:[#allocation251_spill] sm:$0xff]  ;;  %v13996_v56 = vld [vmem:[#allocation294_spill] sm:$0xff] }
 0x94d   : > { %v3197_v57 = vsel %vm13980_vm14, %v3164_v7, %v13979_v13  ;;  %v3257_v16 = vsel %vm3233_vm13, %v3224_v8, %v13981_v40  ;;  %v3033_v31 = vsel %vm13991_vm4, %v3000_v42, %v13990_v15  ;;  %vm13993_vm14 = vmmov %vm13987_vm10  ;;  %v13998_v62 = vld [vmem:[#allocation328_spill] sm:$0xff]  ;;  %v13999_v38 = vld [vmem:[#allocation347_spill] sm:$0xff]  ;;  %vm14003_vm4 = vcmask 424960  }
 0x94e   : > { %v3230_v35 = vsel %vm13985_vm6, %v3197_v57, %v13984_v9  ;;  %v3290_v2 = vsel %vm13987_vm10, %v3257_v16, %v13986_v14  ;;  %v3066_v28 = vsel %vm3035_vm7, %v3033_v31, %v13995_v36  ;;  %vm13997_vm6 = vmmov %vm13994_vm12  ;;  %v14000_v55 = vld [vmem:[#allocation390_spill] sm:$0xff]  ;;  %vm14001_vm10 = vcmask 392192   ;;  %v14002_v60 = vld [vmem:[#allocation424_spill] sm:$0xff] }
 0x94f   : > { %v3263_v6 = vsel %vm3233_vm13, %v3230_v35, %v13989_v39  ;;  %v3099_v52 = vsel %vm3068_vm8, %v3066_v28, %v13996_v56  ;;  %v14004_v29 = vld [vmem:[#allocation443_spill] sm:$0xff]  ;;  %v6470_v1 = vld [vmem:[%s6620_s25 + $0x26c] sm:$0xff]  ;;  %v14008_v33 = vld [vmem:[#allocation98_spill] sm:$0xff]  ;;  %v12233_v39 = vpop.f32.mrf.mxu1  ;;  %s134_s25 = sand.u32 1, %s6525_s10  }
 0x950   : > { %v3296_v21 = vsel %vm13993_vm14, %v3263_v6, %v13992_v20  ;;  %v3132_v34 = vsel %vm3101_vm9, %v3099_v52, %v13998_v62  ;;  %v14005_v58 = vld [vmem:[#allocation483_spill] sm:$0xff]  ;;  %v14007_v26 = vld [vmem:[#allocation49_spill] sm:$0xff]  ;;  %v14010_v63 = vld [vmem:[#allocation46_spill] sm:$0xff]  ;;  %s5518_s4 = sshll.u32 %s134_s25, 3  ;;  %s5440_s13 = scalar_lea.sflag [#allocation3], %s134_s25 }
 0x951   : > { %v3165_v23 = vsel %vm3134_vm11, %v3132_v34, %v13999_v38  ;;  %v2836_v45 = vsel %vm2804_vm0, %v6470_v1, %v14007_v26  ;;  %v14009_v11 = vld [vmem:[#allocation117_spill] sm:$0xff]  ;;  %v14013_v3 = vld [vmem:[#allocation188_spill] sm:$0xff]  ;;  %v14014_v27 = vld [vmem:[#allocation231_spill] sm:$0xff]  ;;  %vm14021_vm0 = vcmask 392192   ;;  %s136_s26 = scalar_lea.vmem [#allocation2], %s5518_s4 }
 0x952   : > { %v3198_v0 = vsel %vm14001_vm10, %v3165_v23, %v14000_v55  ;;  %v2869_v49 = vsel %vm2837_vm1, %v2836_v45, %v14008_v33  ;;  %v14011_v50 = vld [vmem:[#allocation169_spill] sm:$0xff]  ;;  %vm14015_vm10 = vcmask 228352   ;;  %v12211_v46 = vpop.f32.mrf.mxu0  ;;  %v14017_v7 = vld [vmem:[#allocation284_spill] sm:$0xff]  ;;  %v14018_v8 = vld [vmem:[#allocation327_spill] sm:$0xff]  ;;  %v12259_v23 = vpop.f32.mrf.mxu2  ;;  %s5452_s27 = sshll.u32 %s136_s26, 4  ;;  %s5453_s27 = int_to_ptr.vmem [resolvable:$true] %s5452_s27 }
 0x953   : > { %v3231_v37 = vsel %vm14003_vm4, %v3198_v0, %v14002_v60  ;;  %v2902_v41 = vsel %vm2870_vm2, %v2869_v49, %v14009_v11  ;;  %v14016_v24 = vld [vmem:[#allocation265_spill] sm:$0xff]  ;;  %v14020_v57 = vld [vmem:[#allocation380_spill] sm:$0xff]  ;;  %v14022_v16 = vld [vmem:[#allocation423_spill] sm:$0xff]  ;;  %v5225_v20 = vsel %vm2969_vm5, %v12211_v46, 0.0 }
 0x954   : > { %v3264_v53 = vsel %vm3233_vm13, %v3231_v37, %v14004_v29  ;;  %v2935_v25 = vsel %vm2903_vm3, %v2902_v41, %v14010_v63  ;;  %v14019_v51 = vld [vmem:[#allocation361_spill] sm:$0xff]  ;;  %vm14023_vm1 = vmmov %vm14003_vm4  ;;  %v14025_v35 = vld [vmem:[#allocation476_spill] sm:$0xff] }
 0x955   : > { %v3297_v47 = vsel %vm13993_vm14, %v3264_v53, %v14005_v58  ;;  %v14024_v59 = vld [vmem:[#allocation457_spill] sm:$0xff]  ;;  %vm14026_vm2 = vmmov %vm13993_vm14 }
 0x95a   : > { %v4914_v44 = vpop.permute.xlu0 %4913 }
 0x95b   : > { %v4987_v4 = vsel %vm4963_vm15, %v3290_v2, %v4914_v44  ;;  %v12227_v44 = vpop.f32.mrf.mxu0 }
 0x95c   : > { %v4926_v5 = vpop.permute.xlu1 %4925  ;;  %6216 = vmatmul.msk.f32.gmra.mxu2 %vm13994_vm12, %v4987_v4  ;;  %vm14006_vm12 = vmmov %vm13997_vm6  ;;  %v12237_v4 = vpop.f32.mrf.mxu1  ;;  %v5227_v36 = vsel %vm2969_vm5, %v12227_v44, 0.0 }
 0x95d   : > { %v4993_v17 = vsel %vm4963_vm15, %v3296_v21, %v4926_v5  ;;  %vm14027_vm3 = vmmov %vm14006_vm12  ;;  %v5224_v5 = vsel %vm2969_vm5, %v12192_v43, 0.0  ;;  %v5241_v45 = vsel %vm2969_vm5, %v12237_v4, 0.0 }
 0x95e   : > { %6222 = vmatmul.msk.f32.gmra.mxu3 %vm13997_vm6, %v4993_v17  ;;  %v4928_v32 = vpop.permute.xlu2 %4927  ;;  %vm14012_vm6 = vcmask 162816   ;;  %v5226_v28 = vadd.f32 %v5225_v20, %v5224_v5 }
 0x95f   : > { %v4994_v19 = vsel %vm4963_vm15, %v3297_v47, %v4928_v32  ;;  %v2968_v18 = vsel %vm14012_vm6, %v2935_v25, %v14011_v50  ;;  %v12269_v47 = vpop.f32.mrf.mxu2 }
 0x960   : > { %v3001_v30 = vsel %vm2969_vm5, %v2968_v18, %v14013_v3  ;;  %v5228_v56 = vadd.f32 %v5227_v36, %v5226_v28 }
 0x961   : > { %v3034_v54 = vsel %vm14015_vm10, %v3001_v30, %v14014_v27 }
 0x962   : > { %v3067_v22 = vsel %vm3035_vm7, %v3034_v54, %v14016_v24 }
 0x963   : > { %v3100_v12 = vsel %vm3068_vm8, %v3067_v22, %v14017_v7  ;;  %v12231_v42 = vpop.f32.mrf.mxu0  ;;  %vm5434_vm8 = vcmask 1040384  }
 0x964   : > { %v3133_v48 = vsel %vm3101_vm9, %v3100_v12, %v14018_v8  ;;  %v12241_v31 = vpop.f32.mrf.mxu1  ;;  %v5229_v17 = vsel %vm2969_vm5, %v12231_v42, 0.0  ;;  %vm5436_vm9 = vcmask 1041408  }
 0x965   : > { %v3166_v13 = vsel %vm3134_vm11, %v3133_v48, %v14019_v51  ;;  %v5230_v34 = vadd.f32 %v5229_v17, %v5228_v56  ;;  %v5243_v11 = vsel %vm2969_vm5, %v12241_v31, 0.0 }
 0x966   : > { %6223 = vmatmul.msk.f32.gmra.mxu3 %vm14006_vm12, %v4994_v19  ;;  %v3199_v40 = vsel %vm14021_vm0, %v3166_v13, %v14020_v57  ;;  %v5239_v19 = vsel %vm2969_vm5, %v12233_v39, 0.0  ;;  %v5255_v13 = vsel %vm2969_vm5, %v12259_v23, 0.0 }
 0x967   : > { %v3232_v10 = vsel %vm14023_vm1, %v3199_v40, %v14022_v16  ;;  %v5257_v16 = vsel %vm2969_vm5, %v12269_v47, 0.0 }
 0x968   : > { %v3265_v9 = vsel %vm3233_vm13, %v3232_v10, %v14024_v59 }
 0x969   : > { %v3298_v14 = vsel %vm14026_vm2, %v3265_v9, %v14025_v35 }
 0x96b   : > { %v12235_v6 = vpop.f32.mrf.mxu0 }
 0x96c   : > { %v12253_v52 = vpop.f32.mrf.mxu1  ;;  %v5231_v62 = vsel %vm2969_vm5, %v12235_v6, 0.0 }
 0x96d   : > { %v5232_v55 = vadd.f32 %v5231_v62, %v5230_v34  ;;  %v5245_v25 = vsel %vm2969_vm5, %v12253_v52, 0.0 }
 0x973   : > { %v12239_v15 = vpop.f32.mrf.mxu0  ;;  %v12297_v12 = vpop.f32.mrf.mxu3 }
 0x974   : > { %v5233_v38 = vsel %vm2969_vm5, %v12239_v15, 0.0  ;;  %v12267_v29 = vpop.f32.mrf.mxu1  ;;  %v12277_v49 = vpop.f32.mrf.mxu2 }
 0x975   : > { %v5234_v37 = vadd.f32 %v5233_v38, %v5232_v55  ;;  %v5247_v3 = vsel %vm2969_vm5, %v12267_v29, 0.0  ;;  %v5259_v9 = vsel %vm2969_vm5, %v12277_v49, 0.0 }
 0x97b   : > { %v12245_v21 = vpop.f32.mrf.mxu0 }
 0x97c   : > { %v5235_v60 = vsel %vm2969_vm5, %v12245_v21, 0.0 }
 0x97d   : > { %v5236_v53 = vadd.f32 %v5235_v60, %v5234_v37 }
 0x983   : > { %v12285_v18 = vpop.f32.mrf.mxu2 }
 0x990   : > { %v12303_v40 = vpop.f32.mrf.mxu3 }
 0x995   : > { %v4930_v2 = vpop.permute.xlu0 %4929  ;;  %v12273_v26 = vpop.f32.mrf.mxu1 }
 0x996   : > { %v4995_v61 = vsel %vm4963_vm15, %v3298_v14, %v4930_v2  ;;  %v5249_v54 = vsel %vm2969_vm5, %v12273_v26, 0.0  ;;  %v5261_v2 = vsel %vm2969_vm5, %v12285_v18, 0.0 }
 0x997   : > { %6224 = vmatmul.msk.f32.gmra.mxu3 %vm14027_vm3, %v4995_v61 }
 0x998   : > { %v12261_v0 = vpop.f32.mrf.mxu0 }
 0x999   : > { %v5237_v32 = vsel %vm2969_vm5, %v12261_v0, 0.0 }
 0x99a   : > { %v5238_v58 = vadd.f32 %v5237_v32, %v5236_v53  ;;  %v5271_v32 = vsel %vm2969_vm5, %v12297_v12, 0.0 }
 0x99c   : > { %v5240_v1 = vadd.f32 %v5239_v19, %v5238_v58  ;;  %v5273_v58 = vsel %vm2969_vm5, %v12303_v40, 0.0 }
 0x99e   : > { %v5242_v33 = vadd.f32 %v5241_v45, %v5240_v1 }
 0x9a0   : > { %v5244_v41 = vadd.f32 %v5243_v11, %v5242_v33 }
 0x9a2   : > { %v5246_v50 = vadd.f32 %v5245_v25, %v5244_v41 }
 0x9a4   : > { %v5248_v30 = vadd.f32 %v5247_v3, %v5246_v50  ;;  %v12311_v14 = vpop.f32.mrf.mxu3 }
 0x9a5   : > { %v5275_v45 = vsel %vm2969_vm5, %v12311_v14, 0.0 }
 0x9a6   : > { %v5250_v22 = vadd.f32 %v5249_v54, %v5248_v30  ;;  %v6551_v30 = vmov 256.0  }
 0x9a7   : > { %6328 = vrcp.f32 %v6551_v30 }
 0x9a8   : > { %v12299_v8 = vpop.f32.mrf.mxu2 }
 0x9a9   : > { %v5263_v5 = vsel %vm2969_vm5, %v12299_v8, 0.0 }
 0x9ad   : > { %v12281_v63 = vpop.f32.mrf.mxu1 }
 0x9ae   : > { %v5251_v24 = vsel %vm2969_vm5, %v12281_v63, 0.0  ;;  %v12321_v17 = vpop.f32.mrf.mxu3 }
 0x9af   : > { %v5252_v48 = vadd.f32 %v5251_v24, %v5250_v22  ;;  %v5277_v11 = vsel %vm2969_vm5, %v12321_v17, 0.0 }
 0x9b2   : > { %v12307_v10 = vpop.f32.mrf.mxu2 }
 0x9b3   : > { %v5265_v28 = vsel %vm2969_vm5, %v12307_v10, 0.0 }
 0x9be   : > { %v12289_v27 = vpop.f32.mrf.mxu1  ;;  %v12329_v37 = vpop.f32.mrf.mxu3 }
 0x9bf   : > { %v5253_v7 = vsel %vm2969_vm5, %v12289_v27, 0.0  ;;  %v5279_v25 = vsel %vm2969_vm5, %v12329_v37, 0.0 }
 0x9c0   : > { %v5254_v51 = vadd.f32 %v5253_v7, %v5252_v48  ;;  %v6329_v7 = vpop.eup %6328 }
 0x9c1   : > { %vm5298_vm7 = vweird.f32 %v6329_v7 }
 0x9c2   : > { %v5256_v57 = vadd.f32 %v5255_v13, %v5254_v51 }
 0x9c4   : > { %v5258_v59 = vadd.f32 %v5257_v16, %v5256_v57  ;;  %v5294_v16 = vmul.f32 256.0, %v6329_v7 }
 0x9c6   : > { %v5260_v35 = vadd.f32 %v5259_v9, %v5258_v59 }
 0x9c8   : > { %v5262_v20 = vadd.f32 %v5261_v2, %v5260_v35  ;;  %v5295_v35 = vsub.f32 1.0, %v5294_v16 }
 0x9ca   : > { %v5264_v36 = vadd.f32 %v5263_v5, %v5262_v20  ;;  %v5296_v5 = vmul.f32 %v6329_v7, %v5295_v35 }
 0x9cb   : > { %v12315_v61 = vpop.f32.mrf.mxu2 }
 0x9cc   : > { %v5266_v56 = vadd.f32 %v5265_v28, %v5264_v36  ;;  %v5267_v34 = vsel %vm2969_vm5, %v12315_v61, 0.0  ;;  %v5297_v28 = vadd.f32 %v6329_v7, %v5296_v5 }
 0x9ce   : > { %v5268_v55 = vadd.f32 %v5267_v34, %v5266_v56  ;;  %v5299_v34 = vsel %vm5298_vm7, %v6329_v7, %v5297_v28 }
 0x9df   : > { %v12323_v62 = vpop.f32.mrf.mxu2 }
 0x9e0   : > { %v5269_v38 = vsel %vm2969_vm5, %v12323_v62, 0.0 }
 0x9e1   : > { %v5270_v60 = vadd.f32 %v5269_v38, %v5268_v55  ;;  %v12335_v1 = vpop.f32.mrf.mxu3 }
 0x9e2   : > { %v5281_v54 = vsel %vm2969_vm5, %v12335_v1, 0.0 }
 0x9e3   : > { %v5272_v53 = vadd.f32 %v5271_v32, %v5270_v60 }
 0x9e5   : > { %v5274_v19 = vadd.f32 %v5273_v58, %v5272_v53 }
 0x9e7   : > { %v5276_v33 = vadd.f32 %v5275_v45, %v5274_v19 }
 0x9e9   : > { %v5278_v41 = vadd.f32 %v5277_v11, %v5276_v33  ;;  %v12343_v3 = vpop.f32.mrf.mxu3 }
 0x9ea   : > { %v5283_v22 = vsel %vm2969_vm5, %v12343_v3, 0.0 }
 0x9eb   : > { %v5280_v50 = vadd.f32 %v5279_v25, %v5278_v41 }
 0x9ed   : > { %v5282_v24 = vadd.f32 %v5281_v54, %v5280_v50 }
 0x9ef   : > { %v5284_v48 = vadd.f32 %v5283_v22, %v5282_v24 }
 0xa1a   : > { %v12349_v51 = vpop.f32.mrf.mxu3 }
 0xa1b   : > { %v5285_v13 = vsel %vm2969_vm5, %v12349_v51, 0.0 }
 0xa1c   : > { %v5286_v57 = vadd.f32 %v5285_v13, %v5284_v48 }
 0xa1e   : > { %v5287_v59 = vrot.slane %v5286_v57, 4 }
 0xa20   : > { %v5288_v9 = vadd.f32 %v5287_v59, %v5286_v57 }
 0xa22   : > { %v5289_v2 = vrot.slane %v5288_v9, 2 }
 0xa24   : > { %v5290_v20 = vadd.f32 %v5289_v2, %v5288_v9 }
 0xa26   : > { %v5291_v36 = vrot.slane %v5290_v20, 1 }
 0xa28   : > { %v5292_v56 = vadd.f32 %v5291_v36, %v5290_v20 }
 0xa2a   : > { %v12353_v38 = vmul.f32 %v5299_v34, %v5292_v56 }
 0xa2c   : > { %v5301_v55 = vsub.f32 %v12192_v43, %v12353_v38  ;;  %v5302_v60 = vsub.f32 %v12211_v46, %v12353_v38  ;;  %v5303_v32 = vsub.f32 %v12227_v44, %v12353_v38  ;;  %v5304_v53 = vsub.f32 %v12231_v42, %v12353_v38 }
 0xa2d   : > { %v5305_v45 = vsub.f32 %v12235_v6, %v12353_v38  ;;  %v5306_v11 = vsub.f32 %v12239_v15, %v12353_v38  ;;  %v5307_v44 = vsub.f32 %v12245_v21, %v12353_v38  ;;  %v5308_v6 = vsub.f32 %v12261_v0, %v12353_v38 }
 0xa2e   : > { %v5333_v58 = vmul.f32 %v5301_v55, %v5301_v55  ;;  %v5334_v19 = vmul.f32 %v5302_v60, %v5302_v60  ;;  %v5335_v33 = vmul.f32 %v5303_v32, %v5303_v32  ;;  %v5336_v41 = vmul.f32 %v5304_v53, %v5304_v53 }
 0xa2f   : > { %v5337_v50 = vmul.f32 %v5305_v45, %v5305_v45  ;;  %v5338_v54 = vmul.f32 %v5306_v11, %v5306_v11  ;;  %v5309_v22 = vsub.f32 %v12233_v39, %v12353_v38  ;;  %v5339_v7 = vmul.f32 %v5307_v44, %v5307_v44 }
 0xa30   : > { %v5365_v43 = vsel %vm2969_vm5, %v5333_v58, 0.0  ;;  %v5366_v46 = vsel %vm2969_vm5, %v5334_v19, 0.0  ;;  %v5368_v42 = vsel %vm2969_vm5, %v5335_v33, 0.0  ;;  %v5370_v24 = vsel %vm2969_vm5, %v5336_v41, 0.0 }
 0xa31   : > { %v5367_v25 = vadd.f32 %v5366_v46, %v5365_v43  ;;  %v5372_v48 = vsel %vm2969_vm5, %v5337_v50, 0.0  ;;  %v5310_v21 = vsub.f32 %v12237_v4, %v12353_v38  ;;  %v5340_v57 = vmul.f32 %v5308_v6, %v5308_v6 }
 0xa32   : > { %v5374_v16 = vsel %vm2969_vm5, %v5338_v54, 0.0  ;;  %v5311_v0 = vsub.f32 %v12241_v31, %v12353_v38  ;;  %v5341_v9 = vmul.f32 %v5309_v22, %v5309_v22  ;;  %v5376_v35 = vsel %vm2969_vm5, %v5339_v7, 0.0 }
 0xa33   : > { %v5369_v30 = vadd.f32 %v5368_v42, %v5367_v25  ;;  %v5312_v39 = vsub.f32 %v12253_v52, %v12353_v38  ;;  %v5342_v20 = vmul.f32 %v5310_v21, %v5310_v21  ;;  %v5378_v5 = vsel %vm2969_vm5, %v5340_v57, 0.0 }
 0xa34   : > { %v5313_v4 = vsub.f32 %v12267_v29, %v12353_v38  ;;  %v5343_v28 = vmul.f32 %v5311_v0, %v5311_v0  ;;  %v5380_v56 = vsel %vm2969_vm5, %v5341_v9, 0.0  ;;  %v5314_v31 = vsub.f32 %v12273_v26, %v12353_v38 }
 0xa35   : > { %v5371_v15 = vadd.f32 %v5370_v24, %v5369_v30  ;;  %v5344_v55 = vmul.f32 %v5312_v39, %v5312_v39  ;;  %v5382_v60 = vsel %vm2969_vm5, %v5342_v20, 0.0  ;;  %v5315_v52 = vsub.f32 %v12281_v63, %v12353_v38 }
 0xa36   : > { %v5345_v53 = vmul.f32 %v5313_v4, %v5313_v4  ;;  %v5384_v58 = vsel %vm2969_vm5, %v5343_v28, 0.0  ;;  %v5316_v29 = vsub.f32 %v12289_v27, %v12353_v38  ;;  %v5346_v45 = vmul.f32 %v5314_v31, %v5314_v31 }
 0xa37   : > { %v5373_v13 = vadd.f32 %v5372_v48, %v5371_v15  ;;  %v5386_v33 = vsel %vm2969_vm5, %v5344_v55, 0.0  ;;  %v5317_v26 = vsub.f32 %v12259_v23, %v12353_v38  ;;  %v5347_v41 = vmul.f32 %v5315_v52, %v5315_v52 }
 0xa38   : > { %v5388_v43 = vsel %vm2969_vm5, %v5345_v53, 0.0  ;;  %v5318_v63 = vsub.f32 %v12269_v47, %v12353_v38  ;;  %v5348_v25 = vmul.f32 %v5316_v29, %v5316_v29  ;;  %v5390_v44 = vsel %vm2969_vm5, %v5346_v45, 0.0 }
 0xa39   : > { %v5375_v59 = vadd.f32 %v5374_v16, %v5373_v13  ;;  %v5319_v27 = vsub.f32 %v12277_v49, %v12353_v38  ;;  %v5349_v42 = vmul.f32 %v5317_v26, %v5317_v26  ;;  %v5392_v30 = vsel %vm2969_vm5, %v5347_v41, 0.0 }
 0xa3a   : > { %v5320_v23 = vsub.f32 %v12285_v18, %v12353_v38  ;;  %v5350_v54 = vmul.f32 %v5318_v63, %v5318_v63  ;;  %v5394_v24 = vsel %vm2969_vm5, %v5348_v25, 0.0  ;;  %v5321_v47 = vsub.f32 %v12299_v8, %v12353_v38 }
 0xa3b   : > { %v5377_v2 = vadd.f32 %v5376_v35, %v5375_v59  ;;  %v5351_v22 = vmul.f32 %v5319_v27, %v5319_v27  ;;  %v5396_v7 = vsel %vm2969_vm5, %v5349_v42, 0.0  ;;  %v5322_v49 = vsub.f32 %v12307_v10, %v12353_v38 }
 0xa3c   : > { %v5352_v13 = vmul.f32 %v5320_v23, %v5320_v23  ;;  %v5398_v21 = vsel %vm2969_vm5, %v5350_v54, 0.0  ;;  %v5323_v18 = vsub.f32 %v12315_v61, %v12353_v38  ;;  %v5353_v16 = vmul.f32 %v5321_v47, %v5321_v47 }
 0xa3d   : > { %v5379_v36 = vadd.f32 %v5378_v5, %v5377_v2  ;;  %v5400_v59 = vsel %vm2969_vm5, %v5351_v22, 0.0  ;;  %v5324_v8 = vsub.f32 %v12323_v62, %v12353_v38  ;;  %v5354_v9 = vmul.f32 %v5322_v49, %v5322_v49 }
 0xa3e   : > { %v5402_v35 = vsel %vm2969_vm5, %v5352_v13, 0.0  ;;  %v5325_v10 = vsub.f32 %v12297_v12, %v12353_v38  ;;  %v5355_v39 = vmul.f32 %v5323_v18, %v5323_v18  ;;  %v5404_v20 = vsel %vm2969_vm5, %v5353_v16, 0.0 }
 0xa3f   : > { %v5381_v34 = vadd.f32 %v5380_v56, %v5379_v36  ;;  %v5326_v61 = vsub.f32 %v12303_v40, %v12353_v38  ;;  %v5356_v36 = vmul.f32 %v5324_v8, %v5324_v8  ;;  %v5406_v4 = vsel %vm2969_vm5, %v5354_v9, 0.0 }
 0xa40   : > { %v5327_v62 = vsub.f32 %v12311_v14, %v12353_v38  ;;  %v5357_v56 = vmul.f32 %v5325_v10, %v5325_v10  ;;  %v5328_v12 = vsub.f32 %v12321_v17, %v12353_v38  ;;  %v5329_v40 = vsub.f32 %v12329_v37, %v12353_v38 }
 0xa41   : > { %v5383_v32 = vadd.f32 %v5382_v60, %v5381_v34  ;;  %v5408_v34 = vsel %vm2969_vm5, %v5355_v39, 0.0  ;;  %v5358_v55 = vmul.f32 %v5326_v61, %v5326_v61  ;;  %v5410_v60 = vsel %vm2969_vm5, %v5356_v36, 0.0 }
 0xa42   : > { %v5359_v52 = vmul.f32 %v5327_v62, %v5327_v62  ;;  %v5412_v53 = vsel %vm2969_vm5, %v5357_v56, 0.0  ;;  %v5330_v14 = vsub.f32 %v12335_v1, %v12353_v38  ;;  %v5331_v17 = vsub.f32 %v12343_v3, %v12353_v38 }
 0xa43   : > { %v5385_v19 = vadd.f32 %v5384_v58, %v5383_v32  ;;  %v5414_v29 = vsel %vm2969_vm5, %v5358_v55, 0.0  ;;  %v5332_v37 = vsub.f32 %v12349_v51, %v12353_v38 }
 0xa44   : > { %v5362_v41 = vmul.f32 %v5330_v14, %v5330_v14 }
 0xa45   : > { %v5387_v11 = vadd.f32 %v5386_v33, %v5385_v19  ;;  %v5360_v19 = vmul.f32 %v5328_v12, %v5328_v12  ;;  %v5361_v33 = vmul.f32 %v5329_v40, %v5329_v40 }
 0xa46   : > { %v5422_v3 = vsel %vm2969_vm5, %v5362_v41, 0.0 }
 0xa47   : > { %v5389_v46 = vadd.f32 %v5388_v43, %v5387_v11  ;;  %v5416_v11 = vsel %vm2969_vm5, %v5359_v52, 0.0  ;;  %v5418_v43 = vsel %vm2969_vm5, %v5360_v19, 0.0  ;;  %v5420_v63 = vsel %vm2969_vm5, %v5361_v33, 0.0 }
 0xa49   : > { %v5391_v50 = vadd.f32 %v5390_v44, %v5389_v46  ;;  %v5363_v46 = vmul.f32 %v5331_v17, %v5331_v17  ;;  %v5364_v44 = vmul.f32 %v5332_v37, %v5332_v37 }
 0xa4b   : > { %v5393_v6 = vadd.f32 %v5392_v30, %v5391_v50  ;;  %v5424_v27 = vsel %vm2969_vm5, %v5363_v46, 0.0  ;;  %v5426_v30 = vsel %vm2969_vm5, %v5364_v44, 0.0 }
 0xa4d   : > { %v5395_v15 = vadd.f32 %v5394_v24, %v5393_v6 }
 0xa4f   : > { %v5397_v48 = vadd.f32 %v5396_v7, %v5395_v15 }
 0xa51   : > { %v5399_v57 = vadd.f32 %v5398_v21, %v5397_v48 }
 0xa53   : > { %v5401_v0 = vadd.f32 %v5400_v59, %v5399_v57 }
 0xa55   : > { %v5403_v2 = vadd.f32 %v5402_v35, %v5401_v0 }
 0xa57   : > { %v5405_v5 = vadd.f32 %v5404_v20, %v5403_v2 }
 0xa59   : > { %v5407_v28 = vadd.f32 %v5406_v4, %v5405_v5 }
 0xa5b   : > { %v5409_v31 = vadd.f32 %v5408_v34, %v5407_v28 }
 0xa5d   : > { %v5411_v32 = vadd.f32 %v5410_v60, %v5409_v31 }
 0xa5f   : > { %v5413_v58 = vadd.f32 %v5412_v53, %v5411_v32 }
 0xa61   : > { %v5415_v45 = vadd.f32 %v5414_v29, %v5413_v58 }
 0xa63   : > { %v5417_v26 = vadd.f32 %v5416_v11, %v5415_v45 }
 0xa65   : > { %v5419_v1 = vadd.f32 %v5418_v43, %v5417_v26 }
 0xa67   : > { %v5421_v25 = vadd.f32 %v5420_v63, %v5419_v1 }
 0xa69   : > { %v5423_v50 = vadd.f32 %v5422_v3, %v5421_v25 }
 0xa6b   : > { %v5425_v42 = vadd.f32 %v5424_v27, %v5423_v50 }
 0xa6d   : > { %v5427_v6 = vadd.f32 %v5426_v30, %v5425_v42 }
 0xa6f   : > { %v5428_v51 = vrot.slane %v5427_v6, 4 }
 0xa71   : > { %v5429_v23 = vadd.f32 %v5428_v51, %v5427_v6 }
 0xa73   : > { %v5430_v54 = vrot.slane %v5429_v23, 2 }
 0xa75   : > { %v5431_v24 = vadd.f32 %v5430_v54, %v5429_v23 }
 0xa77   : > { %v5432_v15 = vrot.slane %v5431_v24, 1 }
 0xa79   : > { %v5433_v47 = vadd.f32 %v5432_v15, %v5431_v24 }
 0xa7b   : > { %v5435_v22 = vsel %vm5434_vm8, %v12353_v38, %v5433_v47 }
 0xa7c   : > { %v5437_v7 = vsel %vm5436_vm9, %v5435_v22, 0.0 }
 0xa7d   : > { %5438 = vst.msk [vmem:[%s136_s26] sm:$0xff] %vm2969_vm5, %v5437_v7 }
 0xa7e   : > { %6498 = shalt.err (!%p6495_p3)
}
 0xa7f   : > { %6272 = dma.vmem_to_hbm [thread:$0]  (%p6605_p5), %s5453_s27, 128, %s5455_s28, %s5440_s13  }
 0xa80 PF: > { %p6278_p4 = scmp.ge.s32.totalorder %s6533_s12, 2  ;;  %s5466_s21 = sand.u32 1, %s6521_s9  }
 0xa81   : > { %s5467_s23 = scalar_lea.sflag [#allocation3], %s5466_s21 }
 0xa82   : > { %p6275_p7 = pnand %p6278_p4, %p6609_p6 }
 0xa84   : > { %p6276_p8 = pneg %p6275_p7 }
 0xa86   : > { %6516 = dma.done.wait (%p6276_p8), %s5467_s23, 128  }
 0xa87   : > { %6518 = vsyncadd (%p6276_p8), %s5467_s23, 4294967168  ;;  %p12_p9 = scmp.ge.s32.totalorder %s6592_s15, 4   ;;  %s14028_s9 = smov %s6525_s10 }
 0xa88   : > { %s14029_s10 = smov %s6529_s11  ;;  %s14030_s11 = smov %s6603_s18 }
 0xa89   : > { %s14031_s12 = smov %s6592_s15  ;;  %14 = sbr.rel (!%p12_p9) target bundleno = 3 (0x3), region = 69 }
 0xa8e   :  { %5473 = vsyncpa [#allocation3], 1 }
 0xa8f   :  { %5475 = vsyncpa [#allocation3 + $0x1], 1 }

</bundles_post_ra>
